<compile_context>
chip_gen: v7x
topology: tpu7x:2x2x1
jax: 0.10.0
libtpu: 0.0.40
codegen_flags: <defaults>
</compile_context>

<pallas_src>
import jax
import jax.numpy as jnp
from jax.experimental import pallas as pl
from jax.experimental.pallas import tpu as pltpu


LANE = 128     # TPU lane width
CIN_PAD = 16   # input channels padded so bf16 im2col concat is tile-aligned
COUT_PAD = 8   # output channels padded so the final matmul M-dim is 8-aligned


# --------------------------------------------------------------------------
# Helpers shared by kernel and wrapper
# --------------------------------------------------------------------------
def _elu(y):
    # ELU(alpha=1), overflow-safe (exp only sees the clamped value).
    return jnp.where(y > 0, y, jnp.exp(jnp.minimum(y, 0.0)) - 1.0)


def _geom(H, W):
    """Channel-major, guard-padded activation geometry (pixels along lanes)."""
    Hp, Wp = H + 2, W + 2                       # spatially zero-padded (pad=1)
    P = Hp * Wp                                 # padded pixel count (row-major)
    PR = ((P + LANE - 1) // LANE) * LANE        # lane-rounded pixel columns
    G = ((Wp + 1 + LANE - 1) // LANE) * LANE    # guard columns (>= Wp+1, aligned)
    Ptot = G + PR + G                           # guard | pixels(+tail) | guard
    return Hp, Wp, P, PR, G, Ptot


# --------------------------------------------------------------------------
# Fused Pallas kernel: entire ConvBlock forward for one batch element
# --------------------------------------------------------------------------
def _make_fused_kernel(H, W, num_blocks, hid):
    _, Wp, _, PR, G, _ = _geom(H, W)
    # 3x3 tap offsets in flat (row-major, padded) pixel space.
    tap_off = [(dy - 1) * Wp + (dx - 1) for dy in range(3) for dx in range(3)]

    def kernel(x_ref, mask_ref,
               w0_ref, h0_ref,
               bw1_ref, bw2_ref, bw3_ref, bh_ref,
               wo_ref, bo_ref,
               o_ref,
               act_a, act_b):
        f32 = jnp.float32

        # Guard columns must be zero (taps over-read <= Wp+1 columns past the
        # interior).  They are never written below; zero them every grid step
        # (not under program_id==0) so megacore grid sharding stays correct.
        zg = jnp.zeros((hid, G), f32)
        act_a[:, :G] = zg
        act_a[:, G + PR:] = zg
        act_b[:, :G] = zg
        act_b[:, G + PR:] = zg

        # Hoisted interior mask (1 = real interior pixel, 0 = pad ring / tail).
        mask = jnp.broadcast_to(mask_ref[...], (hid, PR))

        def conv3x3(load, w):
            # im2col: 9 lane-shifted (C, PR) slices stacked along K, then one
            # MXU matmul (n_out, 9*C) @ (9*C, PR) -> (n_out, PR); bf16 in,
            # f32 accumulate.
            xcat = jnp.concatenate(
                [load(G + r).astype(jnp.bfloat16) for r in tap_off], axis=0)
            return jnp.dot(w, xcat, preferred_element_type=f32)

        # ---- layer0: ELU(conv3x3(x) [scale folded into w] + shift) --------- #
        y = conv3x3(lambda s: x_ref[0, :, s:s + PR], w0_ref[...])
        act_a[:, G:G + PR] = _elu(y + h0_ref[...]) * mask

        # ---- residual blocks (static unroll) -------------------------------- #
        for b in range(num_blocks):
            # conv1: 3x3 + shift + ELU                       act_a -> act_b
            # (unmasked write: conv2's masked write re-zeroes the border ring
            #  before conv3's taps read it)
            y = conv3x3(lambda s: act_a[:, s:s + PR], bw1_ref[b])
            act_b[:, G:G + PR] = _elu(y + bh_ref[b, 0])

            # conv2: 1x1 + shift + ELU                       act_b -> act_b
            v = act_b[:, G:G + PR].astype(jnp.bfloat16)
            y = jnp.dot(bw2_ref[b], v, preferred_element_type=f32)
            act_b[:, G:G + PR] = _elu(y + bh_ref[b, 1]) * mask

            # conv3: 3x3 + shift + residual + ELU     act_b (+act_a) -> act_a
            y = conv3x3(lambda s: act_b[:, s:s + PR], bw3_ref[b])
            y = y + bh_ref[b, 2] + act_a[:, G:G + PR]
            act_a[:, G:G + PR] = _elu(y) * mask

        # ---- out_layer: plain 3x3 conv + bias, lane-dense (Cout_pad, PR) ---- #
        y = conv3x3(lambda s: act_a[:, s:s + PR], wo_ref[...])
        o_ref[0, :, :] = (y + bo_ref[...]).astype(o_ref.dtype)

    return kernel


# --------------------------------------------------------------------------
# Wrapper: layout plumbing + single pallas_call
# --------------------------------------------------------------------------
def _const_spec(arr):
    nd = arr.ndim
    return pl.BlockSpec(arr.shape, lambda n, _nd=nd: (0,) * _nd)   # loaded once


def _pack_conv3x3(w_hwio, scale, cin_pad):
    """(3,3,Cin,Cout) HWIO -> (Cout, 9*cin_pad) GEMM weights, scale folded in."""
    _, _, cin, cout = w_hwio.shape
    w = w_hwio * scale.reshape(1, 1, 1, cout)
    w = jnp.pad(w, ((0, 0), (0, 0), (0, cin_pad - cin), (0, 0)))
    w = w.reshape(9, cin_pad, cout)
    return jnp.transpose(w, (2, 0, 1)).reshape(cout, 9 * cin_pad)


def convblock_forward(x_nchw, params):
    N, Cin, H, W = x_nchw.shape
    num_blocks = len(params["blocks"])
    hid = params["layer0"]["w"].shape[3]
    Cout = params["out_layer"]["w"].shape[3]
    assert hid % 16 == 0 and Cin <= CIN_PAD and Cout <= COUT_PAD
    Hp, Wp, P, PR, G, Ptot = _geom(H, W)
    f32, bf16 = jnp.float32, jnp.bfloat16

    # ---- input: channel-major (N, CIN_PAD, Ptot) with zero guard columns ---- #
    x = x_nchw.astype(f32)
    x = jnp.pad(x, ((0, 0), (0, CIN_PAD - Cin), (1, 1), (1, 1)))
    x = x.reshape(N, CIN_PAD, P)
    x = jnp.pad(x, ((0, 0), (0, 0), (G, Ptot - G - P)))

    # ---- interior-pixel mask (1 at real pixels, 0 at pad ring / lane tail) -- #
    yy = jnp.arange(Hp)[:, None]
    xx = jnp.arange(Wp)[None, :]
    interior = ((yy >= 1) & (yy <= H) & (xx >= 1) & (xx <= W))
    mask = jnp.pad(interior.reshape(P).astype(f32), (0, PR - P)).reshape(1, PR)

    # ---- weights: channel-major GEMM form, affine scale folded in, bf16 ----- #
    p0 = params["layer0"]
    w0 = _pack_conv3x3(p0["w"], p0["scale"], CIN_PAD).astype(bf16)
    h0 = p0["shift"].reshape(hid, 1).astype(f32)

    blocks = params["blocks"]
    bw1 = jnp.stack([_pack_conv3x3(bp["conv1"]["w"], bp["conv1"]["scale"], hid)
                     for bp in blocks]).astype(bf16)
    bw3 = jnp.stack([_pack_conv3x3(bp["conv3"]["w"], bp["conv3"]["scale"], hid)
                     for bp in blocks]).astype(bf16)
    bw2 = jnp.stack([(bp["conv2"]["w"][0, 0]
                      * bp["conv2"]["scale"].reshape(1, hid)).T
                     for bp in blocks]).astype(bf16)
    bh = jnp.stack([jnp.stack([bp[c]["shift"].reshape(hid, 1)
                               for c in ("conv1", "conv2", "conv3")])
                    for bp in blocks]).astype(f32)                  # (nb,3,hid,1)

    po = params["out_layer"]
    wo = _pack_conv3x3(po["w"], jnp.ones((Cout,), f32), hid)
    wo = jnp.pad(wo, ((0, COUT_PAD - Cout), (0, 0))).astype(bf16)
    bo = jnp.pad(po["b"], (0, COUT_PAD - Cout)).reshape(COUT_PAD, 1).astype(f32)

    args = (x, mask, w0, h0, bw1, bw2, bw3, bh, wo, bo)

    # Advisory cost estimate for the fused call.
    macs = N * PR * (9 * CIN_PAD * hid
                     + num_blocks * (2 * 9 * hid * hid + hid * hid)
                     + 9 * hid * COUT_PAD)
    bytes_accessed = (sum(int(a.size) * a.dtype.itemsize for a in args)
                      + N * PR * COUT_PAD * 4)
    cost = pl.CostEstimate(flops=2 * macs,
                           transcendentals=N * PR * hid * (1 + 3 * num_blocks),
                           bytes_accessed=bytes_accessed)

    kernel = _make_fused_kernel(H, W, num_blocks, hid)
    out_flat = pl.pallas_call(
        kernel,
        out_shape=jax.ShapeDtypeStruct((N, COUT_PAD, PR), f32),
        grid=(N,),
        in_specs=[pl.BlockSpec((1, CIN_PAD, Ptot), lambda n: (n, 0, 0))]
                 + [_const_spec(a) for a in args[1:]],
        out_specs=pl.BlockSpec((1, COUT_PAD, PR), lambda n: (n, 0, 0)),
        scratch_shapes=[pltpu.VMEM((hid, Ptot), f32),
                        pltpu.VMEM((hid, Ptot), f32)],
        compiler_params=pltpu.CompilerParams(
            dimension_semantics=("parallel",)),      # batch across v7x's 2 TCs
        cost_estimate=cost,
    )(*args)

    # Crop channel padding, lane tail and the spatial padding ring -> NCHW.
    y = out_flat[:, :Cout, :P].reshape(N, Cout, Hp, Wp)
    return y[:, :, 1:H + 1, 1:W + 1]


# --------------------------------------------------------------------------
# Parameter construction (deterministic, synthetic)
# --------------------------------------------------------------------------
def _kaiming_uniform(key, k, cin, cout):
    fan_in = cin * k * k
    bound = (6.0 / fan_in) ** 0.5
    return jax.random.uniform(key, (k, k, cin, cout), jnp.float32, -bound, bound)


def _conv2d_params(key, k, cin, cout):
    k1, k2, k3 = jax.random.split(key, 3)
    return dict(
        w=_kaiming_uniform(k1, k, cin, cout),
        scale=jax.random.uniform(k2, (cout,), jnp.float32, 0.5, 1.5),
        shift=jax.random.uniform(k3, (cout,), jnp.float32, -0.1, 0.1),
    )


def init_params(key, num_blocks, in_ch, hid, out_ch):
    params = {}
    key, k0 = jax.random.split(key)
    params["layer0"] = _conv2d_params(k0, 3, in_ch, hid)
    blocks = []
    for _ in range(num_blocks):
        key, k1, k2, k3 = jax.random.split(key, 4)
        blocks.append(dict(conv1=_conv2d_params(k1, 3, hid, hid),
                           conv2=_conv2d_params(k2, 1, hid, hid),
                           conv3=_conv2d_params(k3, 3, hid, hid)))
    params["blocks"] = blocks
    key, kw, kb = jax.random.split(key, 3)
    # PyTorch zero-inits this layer; small random values used (synthetic).
    params["out_layer"] = dict(
        w=0.1 * jax.random.normal(kw, (3, 3, hid, out_ch), jnp.float32),
        b=0.1 * jax.random.normal(kb, (out_ch,), jnp.float32),
    )
    return params


# --------------------------------------------------------------------------
# Pure-JAX reference (lax.conv, f32) for correctness check
# --------------------------------------------------------------------------
def _conv_ref(x, w, pad):
    return jax.lax.conv_general_dilated(
        x, w, (1, 1), [(pad, pad), (pad, pad)],
        dimension_numbers=("NHWC", "HWIO", "NHWC"))


def convblock_reference(x_nchw, params):
    x = jnp.transpose(x_nchw, (0, 2, 3, 1))
    p = params["layer0"]
    x = _elu(_conv_ref(x, p["w"], 1) * p["scale"] + p["shift"])
    for bp in params["blocks"]:
        identity = x
        c1, c2, c3 = bp["conv1"], bp["conv2"], bp["conv3"]
        out = _elu(_conv_ref(x, c1["w"], 1) * c1["scale"] + c1["shift"])
        out = _elu(_conv_ref(out, c2["w"], 0) * c2["scale"] + c2["shift"])
        out = _elu(_conv_ref(out, c3["w"], 1) * c3["scale"] + c3["shift"] + identity)
        x = out
    p = params["out_layer"]
    x = _conv_ref(x, p["w"], 1) + p["b"]
    return jnp.transpose(x, (0, 3, 1, 2))


if __name__ == "__main__":
    key = jax.random.PRNGKey(0)
    kx, kp = jax.random.split(key)

    # ConvBlock(num_blocks=2, in_channels=3, hidden_channels=32, out_channels=3)
    N, Cin, H, W = 2, 3, 16, 16
    hidden, Cout, num_blocks = 32, 3, 2

    x = jax.random.normal(kx, (N, Cin, H, W), jnp.float32)
    params = init_params(kp, num_blocks, Cin, hidden, Cout)

    y = jax.jit(convblock_forward)(x, params)
    y = jax.block_until_ready(y)

    y_ref = convblock_reference(x, params)
    assert y.shape == (N, Cout, H, W), y.shape

    # bf16 MXU operands (f32 accumulation) => relaxed tolerance vs f32 reference.
    err = jnp.abs(y - y_ref)
    max_err = float(jnp.max(err))
    rel_rms = float(jnp.sqrt(jnp.mean(err ** 2)
                             / (jnp.mean(y_ref ** 2) + 1e-12)))
    assert jnp.allclose(y, y_ref, atol=1e-1, rtol=1e-1), (max_err, rel_rms)
    assert rel_rms < 5e-2, rel_rms

    print("KERNEL_OK")
</pallas_src>

<mosaic_0001>
module attributes {stable_mosaic.version = 11 : i64} {
  func.func @kernel(%arg0: i32, %arg1: memref<1x16x640xf32, #tpu.memory_space<vmem>>, %arg2: memref<1x384xf32, #tpu.memory_space<vmem>>, %arg3: memref<32x144xbf16, #tpu.memory_space<vmem>>, %arg4: memref<32x1xf32, #tpu.memory_space<vmem>>, %arg5: memref<2x32x288xbf16, #tpu.memory_space<vmem>>, %arg6: memref<2x32x32xbf16, #tpu.memory_space<vmem>>, %arg7: memref<2x32x288xbf16, #tpu.memory_space<vmem>>, %arg8: memref<2x3x32x1xf32, #tpu.memory_space<vmem>>, %arg9: memref<8x288xbf16, #tpu.memory_space<vmem>>, %arg10: memref<8x1xf32, #tpu.memory_space<vmem>>, %arg11: memref<1x8x384xf32, #tpu.memory_space<vmem>>, %arg12: memref<32x640xf32, #tpu.memory_space<vmem>>, %arg13: memref<32x640xf32, #tpu.memory_space<vmem>>) attributes {dimension_semantics = [#tpu.dimension_semantics<parallel>], iteration_bounds = array<i64: 2>, scalar_prefetch = 0 : i64, scratch_operands = 2 : i64, tpu.core_type = #tpu.core_type<tc>, window_params = [{transform_indices = @transform_0, window_bounds = array<i64: 1, 16, 640>}, {pipeline_mode = #tpu.pipeline_mode<synchronous>, transform_indices = @transform_1, window_bounds = array<i64: 1, 384>}, {pipeline_mode = #tpu.pipeline_mode<synchronous>, transform_indices = @transform_2, window_bounds = array<i64: 32, 144>}, {pipeline_mode = #tpu.pipeline_mode<synchronous>, transform_indices = @transform_3, window_bounds = array<i64: 32, 1>}, {pipeline_mode = #tpu.pipeline_mode<synchronous>, transform_indices = @transform_4, window_bounds = array<i64: 2, 32, 288>}, {pipeline_mode = #tpu.pipeline_mode<synchronous>, transform_indices = @transform_5, window_bounds = array<i64: 2, 32, 32>}, {pipeline_mode = #tpu.pipeline_mode<synchronous>, transform_indices = @transform_6, window_bounds = array<i64: 2, 32, 288>}, {pipeline_mode = #tpu.pipeline_mode<synchronous>, transform_indices = @transform_7, window_bounds = array<i64: 2, 3, 32, 1>}, {pipeline_mode = #tpu.pipeline_mode<synchronous>, transform_indices = @transform_8, window_bounds = array<i64: 8, 288>}, {pipeline_mode = #tpu.pipeline_mode<synchronous>, transform_indices = @transform_9, window_bounds = array<i64: 8, 1>}, {transform_indices = @transform_10, window_bounds = array<i64: 1, 8, 384>}]} {
    %cst = arith.constant 0.000000e+00 : f32
    %0 = vector.broadcast %cst : f32 to vector<32x128xf32>
    %c0 = arith.constant 0 : index
    %c0_0 = arith.constant 0 : index
    %1 = vector.load %arg12[%c0, %c0_0] : memref<32x640xf32, #tpu.memory_space<vmem>>, vector<32x128xf32>
    tpu.vector_store %arg12[%c0, %c0_0], %0 {strides = array<i32>} : memref<32x640xf32, #tpu.memory_space<vmem>>, vector<32x128xf32>,
    %c0_1 = arith.constant 0 : index
    %c512 = arith.constant 512 : index
    %2 = vector.load %arg12[%c0_1, %c512] : memref<32x640xf32, #tpu.memory_space<vmem>>, vector<32x128xf32>
    tpu.vector_store %arg12[%c0_1, %c512], %0 {strides = array<i32>} : memref<32x640xf32, #tpu.memory_space<vmem>>, vector<32x128xf32>,
    %c0_2 = arith.constant 0 : index
    %c0_3 = arith.constant 0 : index
    %3 = vector.load %arg13[%c0_2, %c0_3] : memref<32x640xf32, #tpu.memory_space<vmem>>, vector<32x128xf32>
    tpu.vector_store %arg13[%c0_2, %c0_3], %0 {strides = array<i32>} : memref<32x640xf32, #tpu.memory_space<vmem>>, vector<32x128xf32>,
    %c0_4 = arith.constant 0 : index
    %c512_5 = arith.constant 512 : index
    %4 = vector.load %arg13[%c0_4, %c512_5] : memref<32x640xf32, #tpu.memory_space<vmem>>, vector<32x128xf32>
    tpu.vector_store %arg13[%c0_4, %c512_5], %0 {strides = array<i32>} : memref<32x640xf32, #tpu.memory_space<vmem>>, vector<32x128xf32>,
    %c0_6 = arith.constant 0 : index
    %c0_7 = arith.constant 0 : index
    %5 = vector.load %arg2[%c0_6, %c0_7] : memref<1x384xf32, #tpu.memory_space<vmem>>, vector<1x384xf32>
    %6 = vector.shape_cast %5 : vector<1x384xf32> to vector<1x384xf32>
    %7 = vector.broadcast %6 : vector<1x384xf32> to vector<32x384xf32>
    %c0_8 = arith.constant 0 : index
    %c0_9 = arith.constant 0 : index
    %8 = vector.load %arg3[%c0_8, %c0_9] : memref<32x144xbf16, #tpu.memory_space<vmem>>, vector<32x144xbf16>
    %c0_10 = arith.constant 0 : index
    %c0_11 = arith.constant 0 : index
    %c109 = arith.constant 109 : index
    %9 = vector.load %arg1[%c0_10, %c0_11, %c109] : memref<1x16x640xf32, #tpu.memory_space<vmem>>, vector<1x16x384xf32>
    %10 = vector.shape_cast %9 : vector<1x16x384xf32> to vector<16x384xf32>
    %11 = arith.truncf %10 : vector<16x384xf32> to vector<16x384xbf16>
    %c0_12 = arith.constant 0 : index
    %c0_13 = arith.constant 0 : index
    %c110 = arith.constant 110 : index
    %12 = vector.load %arg1[%c0_12, %c0_13, %c110] : memref<1x16x640xf32, #tpu.memory_space<vmem>>, vector<1x16x384xf32>
    %13 = vector.shape_cast %12 : vector<1x16x384xf32> to vector<16x384xf32>
    %14 = arith.truncf %13 : vector<16x384xf32> to vector<16x384xbf16>
    %c0_14 = arith.constant 0 : index
    %c0_15 = arith.constant 0 : index
    %c111 = arith.constant 111 : index
    %15 = vector.load %arg1[%c0_14, %c0_15, %c111] : memref<1x16x640xf32, #tpu.memory_space<vmem>>, vector<1x16x384xf32>
    %16 = vector.shape_cast %15 : vector<1x16x384xf32> to vector<16x384xf32>
    %17 = arith.truncf %16 : vector<16x384xf32> to vector<16x384xbf16>
    %c0_16 = arith.constant 0 : index
    %c0_17 = arith.constant 0 : index
    %c127 = arith.constant 127 : index
    %18 = vector.load %arg1[%c0_16, %c0_17, %c127] : memref<1x16x640xf32, #tpu.memory_space<vmem>>, vector<1x16x384xf32>
    %19 = vector.shape_cast %18 : vector<1x16x384xf32> to vector<16x384xf32>
    %20 = arith.truncf %19 : vector<16x384xf32> to vector<16x384xbf16>
    %c0_18 = arith.constant 0 : index
    %c0_19 = arith.constant 0 : index
    %c128 = arith.constant 128 : index
    %21 = vector.load %arg1[%c0_18, %c0_19, %c128] : memref<1x16x640xf32, #tpu.memory_space<vmem>>, vector<1x16x384xf32>
    %22 = vector.shape_cast %21 : vector<1x16x384xf32> to vector<16x384xf32>
    %23 = arith.truncf %22 : vector<16x384xf32> to vector<16x384xbf16>
    %c0_20 = arith.constant 0 : index
    %c0_21 = arith.constant 0 : index
    %c129 = arith.constant 129 : index
    %24 = vector.load %arg1[%c0_20, %c0_21, %c129] : memref<1x16x640xf32, #tpu.memory_space<vmem>>, vector<1x16x384xf32>
    %25 = vector.shape_cast %24 : vector<1x16x384xf32> to vector<16x384xf32>
    %26 = arith.truncf %25 : vector<16x384xf32> to vector<16x384xbf16>
    %c0_22 = arith.constant 0 : index
    %c0_23 = arith.constant 0 : index
    %c145 = arith.constant 145 : index
    %27 = vector.load %arg1[%c0_22, %c0_23, %c145] : memref<1x16x640xf32, #tpu.memory_space<vmem>>, vector<1x16x384xf32>
    %28 = vector.shape_cast %27 : vector<1x16x384xf32> to vector<16x384xf32>
    %29 = arith.truncf %28 : vector<16x384xf32> to vector<16x384xbf16>
    %c0_24 = arith.constant 0 : index
    %c0_25 = arith.constant 0 : index
    %c146 = arith.constant 146 : index
    %30 = vector.load %arg1[%c0_24, %c0_25, %c146] : memref<1x16x640xf32, #tpu.memory_space<vmem>>, vector<1x16x384xf32>
    %31 = vector.shape_cast %30 : vector<1x16x384xf32> to vector<16x384xf32>
    %32 = arith.truncf %31 : vector<16x384xf32> to vector<16x384xbf16>
    %c0_26 = arith.constant 0 : index
    %c0_27 = arith.constant 0 : index
    %c147 = arith.constant 147 : index
    %33 = vector.load %arg1[%c0_26, %c0_27, %c147] : memref<1x16x640xf32, #tpu.memory_space<vmem>>, vector<1x16x384xf32>
    %34 = vector.shape_cast %33 : vector<1x16x384xf32> to vector<16x384xf32>
    %35 = arith.truncf %34 : vector<16x384xf32> to vector<16x384xbf16>
    %36 = tpu.concatenate %11, %14, %17, %20, %23, %26, %29, %32, %35 in 0 : vector<16x384xbf16>, vector<16x384xbf16>, vector<16x384xbf16>, vector<16x384xbf16>, vector<16x384xbf16>, vector<16x384xbf16>, vector<16x384xbf16>, vector<16x384xbf16>, vector<16x384xbf16> -> vector<144x384xbf16>
    %cst_28 = arith.constant dense<0.000000e+00> : vector<32x384xf32>
    %37 = tpu.matmul %8, %36, %cst_28 {dimension_numbers = #tpu.dot_dimension_numbers<[1], [0], [0], [1], [0, 0, 1, 1], [], []>} : vector<32x144xbf16>, vector<144x384xbf16>, vector<32x384xf32> -> vector<32x384xf32>
    %c0_29 = arith.constant 0 : index
    %c0_30 = arith.constant 0 : index
    %38 = vector.load %arg4[%c0_29, %c0_30] : memref<32x1xf32, #tpu.memory_space<vmem>>, vector<32x1xf32>
    %39 = vector.broadcast %38 : vector<32x1xf32> to vector<32x384xf32>
    %40 = arith.addf %37, %39 : vector<32x384xf32>
    %cst_31 = arith.constant 0.000000e+00 : f32
    %41 = vector.broadcast %cst_31 : f32 to vector<32x384xf32>
    %42 = arith.cmpf ogt, %40, %41 : vector<32x384xf32>
    %cst_32 = arith.constant 0.000000e+00 : f32
    %43 = vector.broadcast %cst_32 : f32 to vector<32x384xf32>
    %44 = arith.minimumf %40, %43 : vector<32x384xf32>
    %45 = math.exp %44 : vector<32x384xf32>
    %cst_33 = arith.constant 1.000000e+00 : f32
    %46 = vector.broadcast %cst_33 : f32 to vector<32x384xf32>
    %47 = arith.subf %45, %46 : vector<32x384xf32>
    %48 = arith.select %42, %40, %47 : vector<32x384xi1>, vector<32x384xf32>
    %49 = arith.mulf %48, %7 : vector<32x384xf32>
    %c0_34 = arith.constant 0 : index
    %c128_35 = arith.constant 128 : index
    %50 = vector.load %arg12[%c0_34, %c128_35] : memref<32x640xf32, #tpu.memory_space<vmem>>, vector<32x384xf32>
    tpu.vector_store %arg12[%c0_34, %c128_35], %49 {strides = array<i32>} : memref<32x640xf32, #tpu.memory_space<vmem>>, vector<32x384xf32>,
    %c0_36 = arith.constant 0 : index
    %c0_37 = arith.constant 0 : index
    %c0_38 = arith.constant 0 : index
    %51 = vector.load %arg5[%c0_36, %c0_37, %c0_38] : memref<2x32x288xbf16, #tpu.memory_space<vmem>>, vector<1x32x288xbf16>
    %52 = vector.shape_cast %51 : vector<1x32x288xbf16> to vector<32x288xbf16>
    %c0_39 = arith.constant 0 : index
    %c109_40 = arith.constant 109 : index
    %53 = vector.load %arg12[%c0_39, %c109_40] : memref<32x640xf32, #tpu.memory_space<vmem>>, vector<32x384xf32>
    %54 = arith.truncf %53 : vector<32x384xf32> to vector<32x384xbf16>
    %c0_41 = arith.constant 0 : index
    %c110_42 = arith.constant 110 : index
    %55 = vector.load %arg12[%c0_41, %c110_42] : memref<32x640xf32, #tpu.memory_space<vmem>>, vector<32x384xf32>
    %56 = arith.truncf %55 : vector<32x384xf32> to vector<32x384xbf16>
    %c0_43 = arith.constant 0 : index
    %c111_44 = arith.constant 111 : index
    %57 = vector.load %arg12[%c0_43, %c111_44] : memref<32x640xf32, #tpu.memory_space<vmem>>, vector<32x384xf32>
    %58 = arith.truncf %57 : vector<32x384xf32> to vector<32x384xbf16>
    %c0_45 = arith.constant 0 : index
    %c127_46 = arith.constant 127 : index
    %59 = vector.load %arg12[%c0_45, %c127_46] : memref<32x640xf32, #tpu.memory_space<vmem>>, vector<32x384xf32>
    %60 = arith.truncf %59 : vector<32x384xf32> to vector<32x384xbf16>
    %c0_47 = arith.constant 0 : index
    %c128_48 = arith.constant 128 : index
    %61 = vector.load %arg12[%c0_47, %c128_48] : memref<32x640xf32, #tpu.memory_space<vmem>>, vector<32x384xf32>
    %62 = arith.truncf %61 : vector<32x384xf32> to vector<32x384xbf16>
    %c0_49 = arith.constant 0 : index
    %c129_50 = arith.constant 129 : index
    %63 = vector.load %arg12[%c0_49, %c129_50] : memref<32x640xf32, #tpu.memory_space<vmem>>, vector<32x384xf32>
    %64 = arith.truncf %63 : vector<32x384xf32> to vector<32x384xbf16>
    %c0_51 = arith.constant 0 : index
    %c145_52 = arith.constant 145 : index
    %65 = vector.load %arg12[%c0_51, %c145_52] : memref<32x640xf32, #tpu.memory_space<vmem>>, vector<32x384xf32>
    %66 = arith.truncf %65 : vector<32x384xf32> to vector<32x384xbf16>
    %c0_53 = arith.constant 0 : index
    %c146_54 = arith.constant 146 : index
    %67 = vector.load %arg12[%c0_53, %c146_54] : memref<32x640xf32, #tpu.memory_space<vmem>>, vector<32x384xf32>
    %68 = arith.truncf %67 : vector<32x384xf32> to vector<32x384xbf16>
    %c0_55 = arith.constant 0 : index
    %c147_56 = arith.constant 147 : index
    %69 = vector.load %arg12[%c0_55, %c147_56] : memref<32x640xf32, #tpu.memory_space<vmem>>, vector<32x384xf32>
    %70 = arith.truncf %69 : vector<32x384xf32> to vector<32x384xbf16>
    %71 = tpu.concatenate %54, %56, %58, %60, %62, %64, %66, %68, %70 in 0 : vector<32x384xbf16>, vector<32x384xbf16>, vector<32x384xbf16>, vector<32x384xbf16>, vector<32x384xbf16>, vector<32x384xbf16>, vector<32x384xbf16>, vector<32x384xbf16>, vector<32x384xbf16> -> vector<288x384xbf16>
    %cst_57 = arith.constant dense<0.000000e+00> : vector<32x384xf32>
    %72 = tpu.matmul %52, %71, %cst_57 {dimension_numbers = #tpu.dot_dimension_numbers<[1], [0], [0], [1], [0, 0, 1, 1], [], []>} : vector<32x288xbf16>, vector<288x384xbf16>, vector<32x384xf32> -> vector<32x384xf32>
    %c0_58 = arith.constant 0 : index
    %c0_59 = arith.constant 0 : index
    %c0_60 = arith.constant 0 : index
    %c0_61 = arith.constant 0 : index
    %73 = vector.load %arg8[%c0_58, %c0_59, %c0_60, %c0_61] : memref<2x3x32x1xf32, #tpu.memory_space<vmem>>, vector<1x1x32x1xf32>
    %74 = vector.shape_cast %73 : vector<1x1x32x1xf32> to vector<32x1xf32>
    %75 = vector.broadcast %74 : vector<32x1xf32> to vector<32x384xf32>
    %76 = arith.addf %72, %75 : vector<32x384xf32>
    %cst_62 = arith.constant 0.000000e+00 : f32
    %77 = vector.broadcast %cst_62 : f32 to vector<32x384xf32>
    %78 = arith.cmpf ogt, %76, %77 : vector<32x384xf32>
    %cst_63 = arith.constant 0.000000e+00 : f32
    %79 = vector.broadcast %cst_63 : f32 to vector<32x384xf32>
    %80 = arith.minimumf %76, %79 : vector<32x384xf32>
    %81 = math.exp %80 : vector<32x384xf32>
    %cst_64 = arith.constant 1.000000e+00 : f32
    %82 = vector.broadcast %cst_64 : f32 to vector<32x384xf32>
    %83 = arith.subf %81, %82 : vector<32x384xf32>
    %84 = arith.select %78, %76, %83 : vector<32x384xi1>, vector<32x384xf32>
    %c0_65 = arith.constant 0 : index
    %c128_66 = arith.constant 128 : index
    %85 = vector.load %arg13[%c0_65, %c128_66] : memref<32x640xf32, #tpu.memory_space<vmem>>, vector<32x384xf32>
    tpu.vector_store %arg13[%c0_65, %c128_66], %84 {strides = array<i32>} : memref<32x640xf32, #tpu.memory_space<vmem>>, vector<32x384xf32>,
    %c0_67 = arith.constant 0 : index
    %c128_68 = arith.constant 128 : index
    %86 = vector.load %arg13[%c0_67, %c128_68] : memref<32x640xf32, #tpu.memory_space<vmem>>, vector<32x384xf32>
    %87 = arith.truncf %86 : vector<32x384xf32> to vector<32x384xbf16>
    %c0_69 = arith.constant 0 : index
    %c0_70 = arith.constant 0 : index
    %c0_71 = arith.constant 0 : index
    %88 = vector.load %arg6[%c0_69, %c0_70, %c0_71] : memref<2x32x32xbf16, #tpu.memory_space<vmem>>, vector<1x32x32xbf16>
    %89 = vector.shape_cast %88 : vector<1x32x32xbf16> to vector<32x32xbf16>
    %cst_72 = arith.constant dense<0.000000e+00> : vector<32x384xf32>
    %90 = tpu.matmul %89, %87, %cst_72 {dimension_numbers = #tpu.dot_dimension_numbers<[1], [0], [0], [1], [0, 0, 1, 1], [], []>} : vector<32x32xbf16>, vector<32x384xbf16>, vector<32x384xf32> -> vector<32x384xf32>
    %c0_73 = arith.constant 0 : index
    %c1 = arith.constant 1 : index
    %c0_74 = arith.constant 0 : index
    %c0_75 = arith.constant 0 : index
    %91 = vector.load %arg8[%c0_73, %c1, %c0_74, %c0_75] : memref<2x3x32x1xf32, #tpu.memory_space<vmem>>, vector<1x1x32x1xf32>
    %92 = vector.shape_cast %91 : vector<1x1x32x1xf32> to vector<32x1xf32>
    %93 = vector.broadcast %92 : vector<32x1xf32> to vector<32x384xf32>
    %94 = arith.addf %90, %93 : vector<32x384xf32>
    %cst_76 = arith.constant 0.000000e+00 : f32
    %95 = vector.broadcast %cst_76 : f32 to vector<32x384xf32>
    %96 = arith.cmpf ogt, %94, %95 : vector<32x384xf32>
    %cst_77 = arith.constant 0.000000e+00 : f32
    %97 = vector.broadcast %cst_77 : f32 to vector<32x384xf32>
    %98 = arith.minimumf %94, %97 : vector<32x384xf32>
    %99 = math.exp %98 : vector<32x384xf32>
    %cst_78 = arith.constant 1.000000e+00 : f32
    %100 = vector.broadcast %cst_78 : f32 to vector<32x384xf32>
    %101 = arith.subf %99, %100 : vector<32x384xf32>
    %102 = arith.select %96, %94, %101 : vector<32x384xi1>, vector<32x384xf32>
    %103 = arith.mulf %102, %7 : vector<32x384xf32>
    %c0_79 = arith.constant 0 : index
    %c128_80 = arith.constant 128 : index
    %104 = vector.load %arg13[%c0_79, %c128_80] : memref<32x640xf32, #tpu.memory_space<vmem>>, vector<32x384xf32>
    tpu.vector_store %arg13[%c0_79, %c128_80], %103 {strides = array<i32>} : memref<32x640xf32, #tpu.memory_space<vmem>>, vector<32x384xf32>,
    %c0_81 = arith.constant 0 : index
    %c0_82 = arith.constant 0 : index
    %c0_83 = arith.constant 0 : index
    %105 = vector.load %arg7[%c0_81, %c0_82, %c0_83] : memref<2x32x288xbf16, #tpu.memory_space<vmem>>, vector<1x32x288xbf16>
    %106 = vector.shape_cast %105 : vector<1x32x288xbf16> to vector<32x288xbf16>
    %c0_84 = arith.constant 0 : index
    %c109_85 = arith.constant 109 : index
    %107 = vector.load %arg13[%c0_84, %c109_85] : memref<32x640xf32, #tpu.memory_space<vmem>>, vector<32x384xf32>
    %108 = arith.truncf %107 : vector<32x384xf32> to vector<32x384xbf16>
    %c0_86 = arith.constant 0 : index
    %c110_87 = arith.constant 110 : index
    %109 = vector.load %arg13[%c0_86, %c110_87] : memref<32x640xf32, #tpu.memory_space<vmem>>, vector<32x384xf32>
    %110 = arith.truncf %109 : vector<32x384xf32> to vector<32x384xbf16>
    %c0_88 = arith.constant 0 : index
    %c111_89 = arith.constant 111 : index
    %111 = vector.load %arg13[%c0_88, %c111_89] : memref<32x640xf32, #tpu.memory_space<vmem>>, vector<32x384xf32>
    %112 = arith.truncf %111 : vector<32x384xf32> to vector<32x384xbf16>
    %c0_90 = arith.constant 0 : index
    %c127_91 = arith.constant 127 : index
    %113 = vector.load %arg13[%c0_90, %c127_91] : memref<32x640xf32, #tpu.memory_space<vmem>>, vector<32x384xf32>
    %114 = arith.truncf %113 : vector<32x384xf32> to vector<32x384xbf16>
    %c0_92 = arith.constant 0 : index
    %c128_93 = arith.constant 128 : index
    %115 = vector.load %arg13[%c0_92, %c128_93] : memref<32x640xf32, #tpu.memory_space<vmem>>, vector<32x384xf32>
    %116 = arith.truncf %115 : vector<32x384xf32> to vector<32x384xbf16>
    %c0_94 = arith.constant 0 : index
    %c129_95 = arith.constant 129 : index
    %117 = vector.load %arg13[%c0_94, %c129_95] : memref<32x640xf32, #tpu.memory_space<vmem>>, vector<32x384xf32>
    %118 = arith.truncf %117 : vector<32x384xf32> to vector<32x384xbf16>
    %c0_96 = arith.constant 0 : index
    %c145_97 = arith.constant 145 : index
    %119 = vector.load %arg13[%c0_96, %c145_97] : memref<32x640xf32, #tpu.memory_space<vmem>>, vector<32x384xf32>
    %120 = arith.truncf %119 : vector<32x384xf32> to vector<32x384xbf16>
    %c0_98 = arith.constant 0 : index
    %c146_99 = arith.constant 146 : index
    %121 = vector.load %arg13[%c0_98, %c146_99] : memref<32x640xf32, #tpu.memory_space<vmem>>, vector<32x384xf32>
    %122 = arith.truncf %121 : vector<32x384xf32> to vector<32x384xbf16>
    %c0_100 = arith.constant 0 : index
    %c147_101 = arith.constant 147 : index
    %123 = vector.load %arg13[%c0_100, %c147_101] : memref<32x640xf32, #tpu.memory_space<vmem>>, vector<32x384xf32>
    %124 = arith.truncf %123 : vector<32x384xf32> to vector<32x384xbf16>
    %125 = tpu.concatenate %108, %110, %112, %114, %116, %118, %120, %122, %124 in 0 : vector<32x384xbf16>, vector<32x384xbf16>, vector<32x384xbf16>, vector<32x384xbf16>, vector<32x384xbf16>, vector<32x384xbf16>, vector<32x384xbf16>, vector<32x384xbf16>, vector<32x384xbf16> -> vector<288x384xbf16>
    %cst_102 = arith.constant dense<0.000000e+00> : vector<32x384xf32>
    %126 = tpu.matmul %106, %125, %cst_102 {dimension_numbers = #tpu.dot_dimension_numbers<[1], [0], [0], [1], [0, 0, 1, 1], [], []>} : vector<32x288xbf16>, vector<288x384xbf16>, vector<32x384xf32> -> vector<32x384xf32>
    %c0_103 = arith.constant 0 : index
    %c2 = arith.constant 2 : index
    %c0_104 = arith.constant 0 : index
    %c0_105 = arith.constant 0 : index
    %127 = vector.load %arg8[%c0_103, %c2, %c0_104, %c0_105] : memref<2x3x32x1xf32, #tpu.memory_space<vmem>>, vector<1x1x32x1xf32>
    %128 = vector.shape_cast %127 : vector<1x1x32x1xf32> to vector<32x1xf32>
    %129 = vector.broadcast %128 : vector<32x1xf32> to vector<32x384xf32>
    %130 = arith.addf %126, %129 : vector<32x384xf32>
    %c0_106 = arith.constant 0 : index
    %c128_107 = arith.constant 128 : index
    %131 = vector.load %arg12[%c0_106, %c128_107] : memref<32x640xf32, #tpu.memory_space<vmem>>, vector<32x384xf32>
    %132 = arith.addf %130, %131 : vector<32x384xf32>
    %cst_108 = arith.constant 0.000000e+00 : f32
    %133 = vector.broadcast %cst_108 : f32 to vector<32x384xf32>
    %134 = arith.cmpf ogt, %132, %133 : vector<32x384xf32>
    %cst_109 = arith.constant 0.000000e+00 : f32
    %135 = vector.broadcast %cst_109 : f32 to vector<32x384xf32>
    %136 = arith.minimumf %132, %135 : vector<32x384xf32>
    %137 = math.exp %136 : vector<32x384xf32>
    %cst_110 = arith.constant 1.000000e+00 : f32
    %138 = vector.broadcast %cst_110 : f32 to vector<32x384xf32>
    %139 = arith.subf %137, %138 : vector<32x384xf32>
    %140 = arith.select %134, %132, %139 : vector<32x384xi1>, vector<32x384xf32>
    %141 = arith.mulf %140, %7 : vector<32x384xf32>
    %c0_111 = arith.constant 0 : index
    %c128_112 = arith.constant 128 : index
    %142 = vector.load %arg12[%c0_111, %c128_112] : memref<32x640xf32, #tpu.memory_space<vmem>>, vector<32x384xf32>
    tpu.vector_store %arg12[%c0_111, %c128_112], %141 {strides = array<i32>} : memref<32x640xf32, #tpu.memory_space<vmem>>, vector<32x384xf32>,
    %c1_113 = arith.constant 1 : index
    %c0_114 = arith.constant 0 : index
    %c0_115 = arith.constant 0 : index
    %143 = vector.load %arg5[%c1_113, %c0_114, %c0_115] : memref<2x32x288xbf16, #tpu.memory_space<vmem>>, vector<1x32x288xbf16>
    %144 = vector.shape_cast %143 : vector<1x32x288xbf16> to vector<32x288xbf16>
    %c0_116 = arith.constant 0 : index
    %c109_117 = arith.constant 109 : index
    %145 = vector.load %arg12[%c0_116, %c109_117] : memref<32x640xf32, #tpu.memory_space<vmem>>, vector<32x384xf32>
    %146 = arith.truncf %145 : vector<32x384xf32> to vector<32x384xbf16>
    %c0_118 = arith.constant 0 : index
    %c110_119 = arith.constant 110 : index
    %147 = vector.load %arg12[%c0_118, %c110_119] : memref<32x640xf32, #tpu.memory_space<vmem>>, vector<32x384xf32>
    %148 = arith.truncf %147 : vector<32x384xf32> to vector<32x384xbf16>
    %c0_120 = arith.constant 0 : index
    %c111_121 = arith.constant 111 : index
    %149 = vector.load %arg12[%c0_120, %c111_121] : memref<32x640xf32, #tpu.memory_space<vmem>>, vector<32x384xf32>
    %150 = arith.truncf %149 : vector<32x384xf32> to vector<32x384xbf16>
    %c0_122 = arith.constant 0 : index
    %c127_123 = arith.constant 127 : index
    %151 = vector.load %arg12[%c0_122, %c127_123] : memref<32x640xf32, #tpu.memory_space<vmem>>, vector<32x384xf32>
    %152 = arith.truncf %151 : vector<32x384xf32> to vector<32x384xbf16>
    %c0_124 = arith.constant 0 : index
    %c128_125 = arith.constant 128 : index
    %153 = vector.load %arg12[%c0_124, %c128_125] : memref<32x640xf32, #tpu.memory_space<vmem>>, vector<32x384xf32>
    %154 = arith.truncf %153 : vector<32x384xf32> to vector<32x384xbf16>
    %c0_126 = arith.constant 0 : index
    %c129_127 = arith.constant 129 : index
    %155 = vector.load %arg12[%c0_126, %c129_127] : memref<32x640xf32, #tpu.memory_space<vmem>>, vector<32x384xf32>
    %156 = arith.truncf %155 : vector<32x384xf32> to vector<32x384xbf16>
    %c0_128 = arith.constant 0 : index
    %c145_129 = arith.constant 145 : index
    %157 = vector.load %arg12[%c0_128, %c145_129] : memref<32x640xf32, #tpu.memory_space<vmem>>, vector<32x384xf32>
    %158 = arith.truncf %157 : vector<32x384xf32> to vector<32x384xbf16>
    %c0_130 = arith.constant 0 : index
    %c146_131 = arith.constant 146 : index
    %159 = vector.load %arg12[%c0_130, %c146_131] : memref<32x640xf32, #tpu.memory_space<vmem>>, vector<32x384xf32>
    %160 = arith.truncf %159 : vector<32x384xf32> to vector<32x384xbf16>
    %c0_132 = arith.constant 0 : index
    %c147_133 = arith.constant 147 : index
    %161 = vector.load %arg12[%c0_132, %c147_133] : memref<32x640xf32, #tpu.memory_space<vmem>>, vector<32x384xf32>
    %162 = arith.truncf %161 : vector<32x384xf32> to vector<32x384xbf16>
    %163 = tpu.concatenate %146, %148, %150, %152, %154, %156, %158, %160, %162 in 0 : vector<32x384xbf16>, vector<32x384xbf16>, vector<32x384xbf16>, vector<32x384xbf16>, vector<32x384xbf16>, vector<32x384xbf16>, vector<32x384xbf16>, vector<32x384xbf16>, vector<32x384xbf16> -> vector<288x384xbf16>
    %cst_134 = arith.constant dense<0.000000e+00> : vector<32x384xf32>
    %164 = tpu.matmul %144, %163, %cst_134 {dimension_numbers = #tpu.dot_dimension_numbers<[1], [0], [0], [1], [0, 0, 1, 1], [], []>} : vector<32x288xbf16>, vector<288x384xbf16>, vector<32x384xf32> -> vector<32x384xf32>
    %c1_135 = arith.constant 1 : index
    %c0_136 = arith.constant 0 : index
    %c0_137 = arith.constant 0 : index
    %c0_138 = arith.constant 0 : index
    %165 = vector.load %arg8[%c1_135, %c0_136, %c0_137, %c0_138] : memref<2x3x32x1xf32, #tpu.memory_space<vmem>>, vector<1x1x32x1xf32>
    %166 = vector.shape_cast %165 : vector<1x1x32x1xf32> to vector<32x1xf32>
    %167 = vector.broadcast %166 : vector<32x1xf32> to vector<32x384xf32>
    %168 = arith.addf %164, %167 : vector<32x384xf32>
    %cst_139 = arith.constant 0.000000e+00 : f32
    %169 = vector.broadcast %cst_139 : f32 to vector<32x384xf32>
    %170 = arith.cmpf ogt, %168, %169 : vector<32x384xf32>
    %cst_140 = arith.constant 0.000000e+00 : f32
    %171 = vector.broadcast %cst_140 : f32 to vector<32x384xf32>
    %172 = arith.minimumf %168, %171 : vector<32x384xf32>
    %173 = math.exp %172 : vector<32x384xf32>
    %cst_141 = arith.constant 1.000000e+00 : f32
    %174 = vector.broadcast %cst_141 : f32 to vector<32x384xf32>
    %175 = arith.subf %173, %174 : vector<32x384xf32>
    %176 = arith.select %170, %168, %175 : vector<32x384xi1>, vector<32x384xf32>
    %c0_142 = arith.constant 0 : index
    %c128_143 = arith.constant 128 : index
    %177 = vector.load %arg13[%c0_142, %c128_143] : memref<32x640xf32, #tpu.memory_space<vmem>>, vector<32x384xf32>
    tpu.vector_store %arg13[%c0_142, %c128_143], %176 {strides = array<i32>} : memref<32x640xf32, #tpu.memory_space<vmem>>, vector<32x384xf32>,
    %c0_144 = arith.constant 0 : index
    %c128_145 = arith.constant 128 : index
    %178 = vector.load %arg13[%c0_144, %c128_145] : memref<32x640xf32, #tpu.memory_space<vmem>>, vector<32x384xf32>
    %179 = arith.truncf %178 : vector<32x384xf32> to vector<32x384xbf16>
    %c1_146 = arith.constant 1 : index
    %c0_147 = arith.constant 0 : index
    %c0_148 = arith.constant 0 : index
    %180 = vector.load %arg6[%c1_146, %c0_147, %c0_148] : memref<2x32x32xbf16, #tpu.memory_space<vmem>>, vector<1x32x32xbf16>
    %181 = vector.shape_cast %180 : vector<1x32x32xbf16> to vector<32x32xbf16>
    %cst_149 = arith.constant dense<0.000000e+00> : vector<32x384xf32>
    %182 = tpu.matmul %181, %179, %cst_149 {dimension_numbers = #tpu.dot_dimension_numbers<[1], [0], [0], [1], [0, 0, 1, 1], [], []>} : vector<32x32xbf16>, vector<32x384xbf16>, vector<32x384xf32> -> vector<32x384xf32>
    %c1_150 = arith.constant 1 : index
    %c1_151 = arith.constant 1 : index
    %c0_152 = arith.constant 0 : index
    %c0_153 = arith.constant 0 : index
    %183 = vector.load %arg8[%c1_150, %c1_151, %c0_152, %c0_153] : memref<2x3x32x1xf32, #tpu.memory_space<vmem>>, vector<1x1x32x1xf32>
    %184 = vector.shape_cast %183 : vector<1x1x32x1xf32> to vector<32x1xf32>
    %185 = vector.broadcast %184 : vector<32x1xf32> to vector<32x384xf32>
    %186 = arith.addf %182, %185 : vector<32x384xf32>
    %cst_154 = arith.constant 0.000000e+00 : f32
    %187 = vector.broadcast %cst_154 : f32 to vector<32x384xf32>
    %188 = arith.cmpf ogt, %186, %187 : vector<32x384xf32>
    %cst_155 = arith.constant 0.000000e+00 : f32
    %189 = vector.broadcast %cst_155 : f32 to vector<32x384xf32>
    %190 = arith.minimumf %186, %189 : vector<32x384xf32>
    %191 = math.exp %190 : vector<32x384xf32>
    %cst_156 = arith.constant 1.000000e+00 : f32
    %192 = vector.broadcast %cst_156 : f32 to vector<32x384xf32>
    %193 = arith.subf %191, %192 : vector<32x384xf32>
    %194 = arith.select %188, %186, %193 : vector<32x384xi1>, vector<32x384xf32>
    %195 = arith.mulf %194, %7 : vector<32x384xf32>
    %c0_157 = arith.constant 0 : index
    %c128_158 = arith.constant 128 : index
    %196 = vector.load %arg13[%c0_157, %c128_158] : memref<32x640xf32, #tpu.memory_space<vmem>>, vector<32x384xf32>
    tpu.vector_store %arg13[%c0_157, %c128_158], %195 {strides = array<i32>} : memref<32x640xf32, #tpu.memory_space<vmem>>, vector<32x384xf32>,
    %c1_159 = arith.constant 1 : index
    %c0_160 = arith.constant 0 : index
    %c0_161 = arith.constant 0 : index
    %197 = vector.load %arg7[%c1_159, %c0_160, %c0_161] : memref<2x32x288xbf16, #tpu.memory_space<vmem>>, vector<1x32x288xbf16>
    %198 = vector.shape_cast %197 : vector<1x32x288xbf16> to vector<32x288xbf16>
    %c0_162 = arith.constant 0 : index
    %c109_163 = arith.constant 109 : index
    %199 = vector.load %arg13[%c0_162, %c109_163] : memref<32x640xf32, #tpu.memory_space<vmem>>, vector<32x384xf32>
    %200 = arith.truncf %199 : vector<32x384xf32> to vector<32x384xbf16>
    %c0_164 = arith.constant 0 : index
    %c110_165 = arith.constant 110 : index
    %201 = vector.load %arg13[%c0_164, %c110_165] : memref<32x640xf32, #tpu.memory_space<vmem>>, vector<32x384xf32>
    %202 = arith.truncf %201 : vector<32x384xf32> to vector<32x384xbf16>
    %c0_166 = arith.constant 0 : index
    %c111_167 = arith.constant 111 : index
    %203 = vector.load %arg13[%c0_166, %c111_167] : memref<32x640xf32, #tpu.memory_space<vmem>>, vector<32x384xf32>
    %204 = arith.truncf %203 : vector<32x384xf32> to vector<32x384xbf16>
    %c0_168 = arith.constant 0 : index
    %c127_169 = arith.constant 127 : index
    %205 = vector.load %arg13[%c0_168, %c127_169] : memref<32x640xf32, #tpu.memory_space<vmem>>, vector<32x384xf32>
    %206 = arith.truncf %205 : vector<32x384xf32> to vector<32x384xbf16>
    %c0_170 = arith.constant 0 : index
    %c128_171 = arith.constant 128 : index
    %207 = vector.load %arg13[%c0_170, %c128_171] : memref<32x640xf32, #tpu.memory_space<vmem>>, vector<32x384xf32>
    %208 = arith.truncf %207 : vector<32x384xf32> to vector<32x384xbf16>
    %c0_172 = arith.constant 0 : index
    %c129_173 = arith.constant 129 : index
    %209 = vector.load %arg13[%c0_172, %c129_173] : memref<32x640xf32, #tpu.memory_space<vmem>>, vector<32x384xf32>
    %210 = arith.truncf %209 : vector<32x384xf32> to vector<32x384xbf16>
    %c0_174 = arith.constant 0 : index
    %c145_175 = arith.constant 145 : index
    %211 = vector.load %arg13[%c0_174, %c145_175] : memref<32x640xf32, #tpu.memory_space<vmem>>, vector<32x384xf32>
    %212 = arith.truncf %211 : vector<32x384xf32> to vector<32x384xbf16>
    %c0_176 = arith.constant 0 : index
    %c146_177 = arith.constant 146 : index
    %213 = vector.load %arg13[%c0_176, %c146_177] : memref<32x640xf32, #tpu.memory_space<vmem>>, vector<32x384xf32>
    %214 = arith.truncf %213 : vector<32x384xf32> to vector<32x384xbf16>
    %c0_178 = arith.constant 0 : index
    %c147_179 = arith.constant 147 : index
    %215 = vector.load %arg13[%c0_178, %c147_179] : memref<32x640xf32, #tpu.memory_space<vmem>>, vector<32x384xf32>
    %216 = arith.truncf %215 : vector<32x384xf32> to vector<32x384xbf16>
    %217 = tpu.concatenate %200, %202, %204, %206, %208, %210, %212, %214, %216 in 0 : vector<32x384xbf16>, vector<32x384xbf16>, vector<32x384xbf16>, vector<32x384xbf16>, vector<32x384xbf16>, vector<32x384xbf16>, vector<32x384xbf16>, vector<32x384xbf16>, vector<32x384xbf16> -> vector<288x384xbf16>
    %cst_180 = arith.constant dense<0.000000e+00> : vector<32x384xf32>
    %218 = tpu.matmul %198, %217, %cst_180 {dimension_numbers = #tpu.dot_dimension_numbers<[1], [0], [0], [1], [0, 0, 1, 1], [], []>} : vector<32x288xbf16>, vector<288x384xbf16>, vector<32x384xf32> -> vector<32x384xf32>
    %c1_181 = arith.constant 1 : index
    %c2_182 = arith.constant 2 : index
    %c0_183 = arith.constant 0 : index
    %c0_184 = arith.constant 0 : index
    %219 = vector.load %arg8[%c1_181, %c2_182, %c0_183, %c0_184] : memref<2x3x32x1xf32, #tpu.memory_space<vmem>>, vector<1x1x32x1xf32>
    %220 = vector.shape_cast %219 : vector<1x1x32x1xf32> to vector<32x1xf32>
    %221 = vector.broadcast %220 : vector<32x1xf32> to vector<32x384xf32>
    %222 = arith.addf %218, %221 : vector<32x384xf32>
    %c0_185 = arith.constant 0 : index
    %c128_186 = arith.constant 128 : index
    %223 = vector.load %arg12[%c0_185, %c128_186] : memref<32x640xf32, #tpu.memory_space<vmem>>, vector<32x384xf32>
    %224 = arith.addf %222, %223 : vector<32x384xf32>
    %cst_187 = arith.constant 0.000000e+00 : f32
    %225 = vector.broadcast %cst_187 : f32 to vector<32x384xf32>
    %226 = arith.cmpf ogt, %224, %225 : vector<32x384xf32>
    %cst_188 = arith.constant 0.000000e+00 : f32
    %227 = vector.broadcast %cst_188 : f32 to vector<32x384xf32>
    %228 = arith.minimumf %224, %227 : vector<32x384xf32>
    %229 = math.exp %228 : vector<32x384xf32>
    %cst_189 = arith.constant 1.000000e+00 : f32
    %230 = vector.broadcast %cst_189 : f32 to vector<32x384xf32>
    %231 = arith.subf %229, %230 : vector<32x384xf32>
    %232 = arith.select %226, %224, %231 : vector<32x384xi1>, vector<32x384xf32>
    %233 = arith.mulf %232, %7 : vector<32x384xf32>
    %c0_190 = arith.constant 0 : index
    %c128_191 = arith.constant 128 : index
    %234 = vector.load %arg12[%c0_190, %c128_191] : memref<32x640xf32, #tpu.memory_space<vmem>>, vector<32x384xf32>
    tpu.vector_store %arg12[%c0_190, %c128_191], %233 {strides = array<i32>} : memref<32x640xf32, #tpu.memory_space<vmem>>, vector<32x384xf32>,
    %c0_192 = arith.constant 0 : index
    %c0_193 = arith.constant 0 : index
    %235 = vector.load %arg9[%c0_192, %c0_193] : memref<8x288xbf16, #tpu.memory_space<vmem>>, vector<8x288xbf16>
    %c0_194 = arith.constant 0 : index
    %c109_195 = arith.constant 109 : index
    %236 = vector.load %arg12[%c0_194, %c109_195] : memref<32x640xf32, #tpu.memory_space<vmem>>, vector<32x384xf32>
    %237 = arith.truncf %236 : vector<32x384xf32> to vector<32x384xbf16>
    %c0_196 = arith.constant 0 : index
    %c110_197 = arith.constant 110 : index
    %238 = vector.load %arg12[%c0_196, %c110_197] : memref<32x640xf32, #tpu.memory_space<vmem>>, vector<32x384xf32>
    %239 = arith.truncf %238 : vector<32x384xf32> to vector<32x384xbf16>
    %c0_198 = arith.constant 0 : index
    %c111_199 = arith.constant 111 : index
    %240 = vector.load %arg12[%c0_198, %c111_199] : memref<32x640xf32, #tpu.memory_space<vmem>>, vector<32x384xf32>
    %241 = arith.truncf %240 : vector<32x384xf32> to vector<32x384xbf16>
    %c0_200 = arith.constant 0 : index
    %c127_201 = arith.constant 127 : index
    %242 = vector.load %arg12[%c0_200, %c127_201] : memref<32x640xf32, #tpu.memory_space<vmem>>, vector<32x384xf32>
    %243 = arith.truncf %242 : vector<32x384xf32> to vector<32x384xbf16>
    %c0_202 = arith.constant 0 : index
    %c128_203 = arith.constant 128 : index
    %244 = vector.load %arg12[%c0_202, %c128_203] : memref<32x640xf32, #tpu.memory_space<vmem>>, vector<32x384xf32>
    %245 = arith.truncf %244 : vector<32x384xf32> to vector<32x384xbf16>
    %c0_204 = arith.constant 0 : index
    %c129_205 = arith.constant 129 : index
    %246 = vector.load %arg12[%c0_204, %c129_205] : memref<32x640xf32, #tpu.memory_space<vmem>>, vector<32x384xf32>
    %247 = arith.truncf %246 : vector<32x384xf32> to vector<32x384xbf16>
    %c0_206 = arith.constant 0 : index
    %c145_207 = arith.constant 145 : index
    %248 = vector.load %arg12[%c0_206, %c145_207] : memref<32x640xf32, #tpu.memory_space<vmem>>, vector<32x384xf32>
    %249 = arith.truncf %248 : vector<32x384xf32> to vector<32x384xbf16>
    %c0_208 = arith.constant 0 : index
    %c146_209 = arith.constant 146 : index
    %250 = vector.load %arg12[%c0_208, %c146_209] : memref<32x640xf32, #tpu.memory_space<vmem>>, vector<32x384xf32>
    %251 = arith.truncf %250 : vector<32x384xf32> to vector<32x384xbf16>
    %c0_210 = arith.constant 0 : index
    %c147_211 = arith.constant 147 : index
    %252 = vector.load %arg12[%c0_210, %c147_211] : memref<32x640xf32, #tpu.memory_space<vmem>>, vector<32x384xf32>
    %253 = arith.truncf %252 : vector<32x384xf32> to vector<32x384xbf16>
    %254 = tpu.concatenate %237, %239, %241, %243, %245, %247, %249, %251, %253 in 0 : vector<32x384xbf16>, vector<32x384xbf16>, vector<32x384xbf16>, vector<32x384xbf16>, vector<32x384xbf16>, vector<32x384xbf16>, vector<32x384xbf16>, vector<32x384xbf16>, vector<32x384xbf16> -> vector<288x384xbf16>
    %cst_212 = arith.constant dense<0.000000e+00> : vector<8x384xf32>
    %255 = tpu.matmul %235, %254, %cst_212 {dimension_numbers = #tpu.dot_dimension_numbers<[1], [0], [0], [1], [0, 0, 1, 1], [], []>} : vector<8x288xbf16>, vector<288x384xbf16>, vector<8x384xf32> -> vector<8x384xf32>
    %c0_213 = arith.constant 0 : index
    %c0_214 = arith.constant 0 : index
    %256 = vector.load %arg10[%c0_213, %c0_214] : memref<8x1xf32, #tpu.memory_space<vmem>>, vector<8x1xf32>
    %257 = vector.broadcast %256 : vector<8x1xf32> to vector<8x384xf32>
    %258 = arith.addf %255, %257 : vector<8x384xf32>
    %c0_215 = arith.constant 0 : index
    %c0_216 = arith.constant 0 : index
    %c0_217 = arith.constant 0 : index
    %259 = vector.load %arg11[%c0_215, %c0_216, %c0_217] : memref<1x8x384xf32, #tpu.memory_space<vmem>>, vector<1x8x384xf32>
    %260 = vector.shape_cast %259 : vector<1x8x384xf32> to vector<8x384xf32>
    %261 = vector.shape_cast %258 : vector<8x384xf32> to vector<1x8x384xf32>
    tpu.vector_store %arg11[%c0_215, %c0_216, %c0_217], %261 {strides = array<i32>} : memref<1x8x384xf32, #tpu.memory_space<vmem>>, vector<1x8x384xf32>,
    return
  }
  func.func @transform_0(%arg0: i32) -> (i32, i32, i32) {
    %c0_i32 = arith.constant 0 : i32
    %c0_i32_0 = arith.constant 0 : i32
    %c0_i32_1 = arith.constant 0 : i32
    return %arg0, %c0_i32, %c0_i32_0 : i32, i32, i32
  }
  func.func @transform_1(%arg0: i32) -> (i32, i32) {
    %c0_i32 = arith.constant 0 : i32
    %c0_i32_0 = arith.constant 0 : i32
    %c0_i32_1 = arith.constant 0 : i32
    return %c0_i32, %c0_i32_0 : i32, i32
  }
  func.func @transform_2(%arg0: i32) -> (i32, i32) {
    %c0_i32 = arith.constant 0 : i32
    %c0_i32_0 = arith.constant 0 : i32
    %c0_i32_1 = arith.constant 0 : i32
    return %c0_i32, %c0_i32_0 : i32, i32
  }
  func.func @transform_3(%arg0: i32) -> (i32, i32) {
    %c0_i32 = arith.constant 0 : i32
    %c0_i32_0 = arith.constant 0 : i32
    %c0_i32_1 = arith.constant 0 : i32
    return %c0_i32, %c0_i32_0 : i32, i32
  }
  func.func @transform_4(%arg0: i32) -> (i32, i32, i32) {
    %c0_i32 = arith.constant 0 : i32
    %c0_i32_0 = arith.constant 0 : i32
    %c0_i32_1 = arith.constant 0 : i32
    %c0_i32_2 = arith.constant 0 : i32
    return %c0_i32, %c0_i32_0, %c0_i32_1 : i32, i32, i32
  }
  func.func @transform_5(%arg0: i32) -> (i32, i32, i32) {
    %c0_i32 = arith.constant 0 : i32
    %c0_i32_0 = arith.constant 0 : i32
    %c0_i32_1 = arith.constant 0 : i32
    %c0_i32_2 = arith.constant 0 : i32
    return %c0_i32, %c0_i32_0, %c0_i32_1 : i32, i32, i32
  }
  func.func @transform_6(%arg0: i32) -> (i32, i32, i32) {
    %c0_i32 = arith.constant 0 : i32
    %c0_i32_0 = arith.constant 0 : i32
    %c0_i32_1 = arith.constant 0 : i32
    %c0_i32_2 = arith.constant 0 : i32
    return %c0_i32, %c0_i32_0, %c0_i32_1 : i32, i32, i32
  }
  func.func @transform_7(%arg0: i32) -> (i32, i32, i32, i32) {
    %c0_i32 = arith.constant 0 : i32
    %c0_i32_0 = arith.constant 0 : i32
    %c0_i32_1 = arith.constant 0 : i32
    %c0_i32_2 = arith.constant 0 : i32
    %c0_i32_3 = arith.constant 0 : i32
    return %c0_i32, %c0_i32_0, %c0_i32_1, %c0_i32_2 : i32, i32, i32, i32
  }
  func.func @transform_8(%arg0: i32) -> (i32, i32) {
    %c0_i32 = arith.constant 0 : i32
    %c0_i32_0 = arith.constant 0 : i32
    %c0_i32_1 = arith.constant 0 : i32
    return %c0_i32, %c0_i32_0 : i32, i32
  }
  func.func @transform_9(%arg0: i32) -> (i32, i32) {
    %c0_i32 = arith.constant 0 : i32
    %c0_i32_0 = arith.constant 0 : i32
    %c0_i32_1 = arith.constant 0 : i32
    return %c0_i32, %c0_i32_0 : i32, i32
  }
  func.func @transform_10(%arg0: i32) -> (i32, i32, i32) {
    %c0_i32 = arith.constant 0 : i32
    %c0_i32_0 = arith.constant 0 : i32
    %c0_i32_1 = arith.constant 0 : i32
    return %arg0, %c0_i32, %c0_i32_0 : i32, i32, i32
  }
}

</mosaic_0001>

<bundles_post_ra>
// kernel: convblock_forward.1
= control target key start
LH: loop header
LB: loop body
LE: loop exit
PB: predicated region body
PF: predicated region fallthrough
CT: control target
= control target key end

     0   :  { %s6392_s13 = smov 0   ;;  %s9878_s0 = inlined_call_operand.vmem [shape: f32[2,16,640], index: 0, kind: input, shape index: {}]   ;;  %s9879_s1 = inlined_call_operand.vmem [shape: f32[1,384], index: 1, kind: input, shape index: {}]   ;;  %s9880_s2 = inlined_call_operand.vmem [shape: bf16[32,144], index: 2, kind: input, shape index: {}]   ;;  %s9881_s3 = inlined_call_operand.vmem [shape: f32[32,1], index: 3, kind: input, shape index: {}]   ;;  %s9882_s4 = inlined_call_operand.vmem [shape: bf16[2,32,288], index: 4, kind: input, shape index: {}]   ;;  %s9883_s5 = inlined_call_operand.vmem [shape: bf16[2,32,32], index: 5, kind: input, shape index: {}]   ;;  %s9884_s6 = inlined_call_operand.vmem [shape: bf16[2,32,288], index: 6, kind: input, shape index: {}]   ;;  %s9885_s7 = inlined_call_operand.vmem [shape: f32[2,3,32,1], index: 7, kind: input, shape index: {}]   ;;  %s9886_s8 = inlined_call_operand.vmem [shape: bf16[8,288], index: 8, kind: input, shape index: {}]   ;;  %s9887_s9 = inlined_call_operand.vmem [shape: f32[8,1], index: 9, kind: input, shape index: {}]   ;;  %s9888_s10 = inlined_call_operand.vmem [shape: f32[2,8,384], index: 10, kind: output, shape index: {}]  }
   0x1 LB: > { %s5593_s14 = sadd.s32 4294967295, %s6322_s13   ;;  %p5597_p0 = scmp.ge.s32.totalorder %s6322_s13, 1  ;;  %s6322_s13 = sphi %s6392_s13, %s20_s13  }
   0x2   : > { %p312_p1 = scmp.lt.s32.totalorder %s6322_s13, 3 }
   0x4   : > { %p313_p2 = pnand %p5597_p0, %p312_p1 }
   0x6   : > { %316 = sbr.rel (%p313_p2) target bundleno = 4309 (0x10d5), region = 60 }
   0xd   : > { %p350_p3 = scmp.lt.s32.totalorder %s5593_s14, 1  ;;  %s6324_s19 = smov 127   ;;  %v9889_v15 = vmov 0   ;;  %vm434_vm0 = vcmask 1039360   ;;  %vm446_vm1 = vcmask 1031168   ;;  %vm458_vm2 = vcmask 900096  }
   0xe   : > { %s6325_s20 = smov 126   ;;  %s6326_s21 = smov 110   ;;  %752 = vmatprep.subr.bf16.mxu1 %v9889_v15  ;;  %6101 = vset.pattern.permute.xlu1 %v9889_v15  ;;  %vm468_vm3 = vcmask 891904   ;;  %vm483_vm4 = vcmask 883712   ;;  %vm495_vm5 = vcmask 752640   ;;  %vm9901_vm6 = vcmask 744448  }
   0xf   : > { %s9943_s14 = smov (!%p350_p3, %s5593_s14), 1  ;;  %s6327_s22 = smov 109   ;;  %6102 = vset.pattern.permute.xlu0 %v9889_v15  ;;  %vm637_vm7 = vcmask 154624   ;;  %vm692_vm8 = vcmask 130048   ;;  %vm9900_vm9 = vcmask 736256  }
  0x10   : > { %s6078_s15 = smul.u32 80, %s9943_s14  ;;  %s6328_s23 = smov 108  }
  0x11   : > { %s6329_s24 = smov 92   ;;  %s6330_s25 = smov 91  }
  0x12   : > { %s6406_s18 = scalar_lea.vmem %s9878_s0, %s6078_s15  ;;  %s6331_s26 = smov 90  }
  0x13   : > { %v401_v0 = vld [vmem:[%s6406_s18 + $0x18] sm:$0xff]  ;;  %v405_v1 = vld [vmem:[%s6406_s18 + $0x40] sm:$0xff]  ;;  %v399_v2 = vld [vmem:[%s6406_s18 + $0x8] sm:$0xff]  ;;  %s6332_s27 = smov 19  }
  0x14   : > { %v409_v3 = vpack.c.bf16 %v405_v1, %v401_v0  ;;  %v403_v4 = vld [vmem:[%s6406_s18 + $0x30] sm:$0xff]  ;;  %v404_v6 = vld [vmem:[%s6406_s18 + $0x38] sm:$0xff]  ;;  %v398_v8 = vld [vmem:[%s6406_s18] sm:$0xff] }
  0x15   : > { %v400_v5 = vld [vmem:[%s6406_s18 + $0x10] sm:$0xff]  ;;  %v407_v7 = vpack.c.bf16 %v403_v4, %v399_v2  ;;  %v402_v9 = vld [vmem:[%s6406_s18 + $0x28] sm:$0xff]  ;;  %v413_v12 = vld [vmem:[%s6406_s18 + $0x20] sm:$0xff] }
  0x16   : > { %432 = vrot.lane.b32.xlu1 %v409_v3, %s6324_s19  ;;  %v406_v10 = vpack.c.bf16 %v402_v9, %v398_v8  ;;  %v408_v11 = vpack.c.bf16 %v404_v6, %v400_v5  ;;  %v417_v13 = vld [vmem:[%s6406_s18 + $0x48] sm:$0xff] }
  0x17   : > { %428 = vrot.lane.b32.xlu0 %v407_v7, %s6324_s19  ;;  %v421_v14 = vpack.c.bf16 %v417_v13, %v413_v12  ;;  %v6105_v2 = vld [vmem:[%s9880_s2 + $0x4] ss:$8 sps:$4 sm:$0xff]  }
  0x18   : > { %5606 = vmatprep.mubr.msk.bf16.mxu1 %vm692_vm8, %v6105_v2  ;;  %5604 = vmatprep.mubr.msk.bf16.mxu0 %vm692_vm8, %v6105_v2  ;;  %v6103_v2 = vld [vmem:[%s9880_s2] ss:$8 sps:$4 sm:$0xff]  }
  0x1a   : > { %426 = vrot.lane.b32.xlu1 %v406_v10, %s6324_s19 }
  0x1b   : > { %430 = vrot.lane.b32.xlu0 %v408_v11, %s6324_s19 }
  0x1e   : > { %442 = vrot.lane.b32.xlu1 %v408_v11, %s6325_s20 }
  0x1f   : > { %440 = vrot.lane.b32.xlu0 %v407_v7, %s6325_s20 }
  0x22   : > { %438 = vrot.lane.b32.xlu1 %v406_v10, %s6325_s20 }
  0x23   : > { %444 = vrot.lane.b32.xlu0 %v409_v3, %s6325_s20 }
  0x26   : > { %454 = vrot.lane.b32.xlu1 %v408_v11, %s6326_s21 }
  0x27   : > { %452 = vrot.lane.b32.xlu0 %v407_v7, %s6326_s21 }
  0x2a   : > { %450 = vrot.lane.b32.xlu1 %v406_v10, %s6326_s21 }
  0x2b   : > { %456 = vrot.lane.b32.xlu0 %v409_v3, %s6326_s21 }
  0x2e   : > { %464 = vrot.lane.b32.xlu1 %v408_v11, %s6327_s22 }
  0x2f   : > { %462 = vrot.lane.b32.xlu0 %v407_v7, %s6327_s22 }
  0x32   : > { %475 = vrot.lane.b32.xlu1 %v407_v7, %s6328_s23 }
  0x33   : > { %466 = vrot.lane.b32.xlu0 %v409_v3, %s6327_s22 }
  0x36   : > { %479 = vrot.lane.b32.xlu1 %v409_v3, %s6328_s23 }
  0x37   : > { %477 = vrot.lane.b32.xlu0 %v408_v11, %s6328_s23 }
  0x3a   : > { %487 = vrot.lane.b32.xlu1 %v407_v7, %s6329_s24 }
  0x3b   : > { %481 = vrot.lane.b32.xlu0 %v421_v14, %s6328_s23 }
  0x3e   : > { %491 = vrot.lane.b32.xlu1 %v409_v3, %s6329_s24 }
  0x3f   : > { %489 = vrot.lane.b32.xlu0 %v408_v11, %s6329_s24 }
  0x42   : > { %499 = vrot.lane.b32.xlu1 %v407_v7, %s6330_s25 }
  0x43   : > { %493 = vrot.lane.b32.xlu0 %v421_v14, %s6329_s24 }
  0x46   : > { %503 = vrot.lane.b32.xlu1 %v409_v3, %s6330_s25 }
  0x47   : > { %501 = vrot.lane.b32.xlu0 %v408_v11, %s6330_s25 }
  0x4a   : > { %511 = vrot.lane.b32.xlu1 %v407_v7, %s6331_s26 }
  0x4b   : > { %505 = vrot.lane.b32.xlu0 %v421_v14, %s6330_s25 }
  0x4e   : > { %515 = vrot.lane.b32.xlu1 %v409_v3, %s6331_s26 }
  0x4f   : > { %513 = vrot.lane.b32.xlu0 %v408_v11, %s6331_s26 }
  0x52   : > { %567 = vrot.lane.b32.xlu1 %v407_v7, %s6332_s27 }
  0x53   : > { %517 = vrot.lane.b32.xlu0 %v421_v14, %s6331_s26  ;;  %v524_v14 = vld [vmem:[%s9881_s3 + $0x8] sm:$0xff] }
  0x56   : > { %565 = vrot.lane.b32.xlu1 %v406_v10, %s6332_s27 }
  0x57   : > { %569 = vrot.lane.b32.xlu0 %v408_v11, %s6332_s27 }
  0x5b   : > { %571 = vrot.lane.b32.xlu0 %v409_v3, %s6332_s27 }
  0x88   : > { %v433_v16 = vpop.permute.xlu1 %432 }
  0x89   : > { %v429_v17 = vpop.permute.xlu0 %428  ;;  %579 = vrot.lane.b32.xlu0 %v433_v16, %s6332_s27 }
  0x8c   : > { %v427_v18 = vpop.permute.xlu1 %426 }
  0x8d   : > { %v431_v19 = vpop.permute.xlu0 %430  ;;  %v435_v48 = vsel %vm434_vm0, %v427_v18, %v429_v17  ;;  %v9891_v18 = vmov 0.0|0.0  }
  0x8e   : > { %v437_v33 = vsel %vm434_vm0, %v431_v19, %v433_v16  ;;  %v436_v45 = vsel %vm434_vm0, %v429_v17, %v431_v19  ;;  %v523_v16 = vld [vmem:[%s9881_s3] sm:$0xff]  ;;  %v525_v17 = vld [vmem:[%s9881_s3 + $0x10] sm:$0xff]  ;;  %v526_v19 = vld [vmem:[%s9881_s3 + $0x18] sm:$0xff] }
  0x90   : > { %v443_v20 = vpop.permute.xlu1 %442 }
  0x91   : > { %v441_v21 = vpop.permute.xlu0 %440 }
  0x92   : > { %v448_v53 = vsel %vm446_vm1, %v441_v21, %v443_v20 }
  0x94   : > { %v439_v22 = vpop.permute.xlu1 %438 }
  0x95   : > { %v445_v23 = vpop.permute.xlu0 %444  ;;  %v447_v56 = vsel %vm446_vm1, %v439_v22, %v441_v21 }
  0x96   : > { %587 = vrot.lane.b32.xlu0 %v445_v23, %s6332_s27  ;;  %v449_v36 = vsel %vm446_vm1, %v443_v20, %v445_v23 }
  0x98   : > { %v6458_v24 = vpop.permute.xlu1 %454 }
  0x99   : > { %v6460_v25 = vpop.permute.xlu0 %452 }
  0x9a   : > { %v460_v61 = vsel %vm458_vm2, %v6460_v25, %v6458_v24 }
  0x9c   : > { %v6462_v26 = vpop.permute.xlu1 %450 }
  0x9d   : > { %v457_v27 = vpop.permute.xlu0 %456  ;;  %v459_v3 = vsel %vm458_vm2, %v6462_v26, %v6460_v25 }
  0x9e   : > { %595 = vrot.lane.b32.xlu0 %v457_v27, %s6332_s27  ;;  %v461_v39 = vsel %vm458_vm2, %v6458_v24, %v457_v27 }
  0xa0   : > { %v6465_v28 = vpop.permute.xlu1 %464 }
  0xa1   : > { %v6467_v29 = vpop.permute.xlu0 %462 }
  0xa2   : > { %597 = vrot.lane.b32.xlu1 %v6467_v29, %s6332_s27  ;;  %v469_v8 = vsel %vm468_vm3, %v6467_v29, %v6465_v28 }
  0xa4   : > { %v6471_v30 = vpop.permute.xlu1 %475 }
  0xa5   : > { %v467_v31 = vpop.permute.xlu0 %466 }
  0xa6   : > { %603 = vrot.lane.b32.xlu0 %v467_v31, %s6332_s27  ;;  %605 = vrot.lane.b32.xlu1 %v6471_v30, %s6332_s27  ;;  %v470_v42 = vsel %vm468_vm3, %v6465_v28, %v467_v31 }
  0xa8   : > { %v480_v32 = vpop.permute.xlu1 %479 }
  0xa9   : > { %v6477_v34 = vpop.permute.xlu0 %477 }
  0xaa   : > { %577 = vrot.lane.b32.xlu0 %v437_v33, %s6332_s27  ;;  %v485_v44 = vsel %vm483_vm4, %v6477_v34, %v480_v32  ;;  %v484_v9 = vsel %vm483_vm4, %v6471_v30, %v6477_v34 }
  0xac   : > { %v6480_v35 = vpop.permute.xlu1 %487 }
  0xad   : > { %613 = vrot.lane.b32.xlu1 %v6480_v35, %s6332_s27  ;;  %v482_v37 = vpop.permute.xlu0 %481 }
  0xae   : > { %585 = vrot.lane.b32.xlu0 %v449_v36, %s6332_s27  ;;  %v486_v50 = vsel %vm483_vm4, %v480_v32, %v482_v37 }
  0xb0   : > { %v492_v38 = vpop.permute.xlu1 %491 }
  0xb1   : > { %v6488_v40 = vpop.permute.xlu0 %489 }
  0xb2   : > { %593 = vrot.lane.b32.xlu0 %v461_v39, %s6332_s27  ;;  %v497_v52 = vsel %vm495_vm5, %v6488_v40, %v492_v38  ;;  %v496_v11 = vsel %vm495_vm5, %v6480_v35, %v6488_v40 }
  0xb4   : > { %v6491_v41 = vpop.permute.xlu1 %499 }
  0xb5   : > { %621 = vrot.lane.b32.xlu1 %v6491_v41, %s6332_s27  ;;  %v494_v43 = vpop.permute.xlu0 %493 }
  0xb6   : > { %601 = vrot.lane.b32.xlu0 %v470_v42, %s6332_s27  ;;  %v498_v58 = vsel %vm495_vm5, %v492_v38, %v494_v43 }
  0xb8   : > { %v504_v46 = vpop.permute.xlu1 %503 }
  0xb9   : > { %575 = vrot.lane.b32.xlu1 %v436_v45, %s6332_s27  ;;  %v502_v47 = vpop.permute.xlu0 %501 }
  0xba   : > { %609 = vrot.lane.b32.xlu0 %v485_v44, %s6332_s27  ;;  %v509_v60 = vsel %vm9901_vm6, %v502_v47, %v504_v46  ;;  %v508_v12 = vsel %vm9901_vm6, %v6491_v41, %v502_v47 }
  0xbc   : > { %v512_v49 = vpop.permute.xlu1 %511 }
  0xbd   : > { %573 = vrot.lane.b32.xlu1 %v435_v48, %s6332_s27  ;;  %v506_v51 = vpop.permute.xlu0 %505 }
  0xbe   : > { %611 = vrot.lane.b32.xlu0 %v486_v50, %s6332_s27  ;;  %v510_v4 = vsel %vm9901_vm6, %v504_v46, %v506_v51 }
  0xc0   : > { %v516_v54 = vpop.permute.xlu1 %515 }
  0xc1   : > { %583 = vrot.lane.b32.xlu1 %v448_v53, %s6332_s27  ;;  %v514_v55 = vpop.permute.xlu0 %513 }
  0xc2   : > { %617 = vrot.lane.b32.xlu0 %v497_v52, %s6332_s27  ;;  %v521_v7 = vsel %vm9900_vm9, %v514_v55, %v516_v54  ;;  %v520_v13 = vsel %vm9900_vm9, %v512_v49, %v514_v55 }
  0xc4   : > { %v568_v57 = vpop.permute.xlu1 %567 }
  0xc5   : > { %581 = vrot.lane.b32.xlu1 %v447_v56, %s6332_s27  ;;  %v518_v59 = vpop.permute.xlu0 %517 }
  0xc6   : > { %619 = vrot.lane.b32.xlu0 %v498_v58, %s6332_s27  ;;  %v522_v10 = vsel %vm9900_vm9, %v516_v54, %v518_v59 }
  0xc8   : > { %v566_v62 = vpop.permute.xlu1 %565 }
  0xc9   : > { %591 = vrot.lane.b32.xlu1 %v460_v61, %s6332_s27  ;;  %v570_v63 = vpop.permute.xlu0 %569  ;;  %v638_v0 = vsel %vm637_vm7, %v566_v62, %v568_v57 }
  0xca   : > { %625 = vrot.lane.b32.xlu0 %v509_v60, %s6332_s27  ;;  %v639_v1 = vsel %vm637_vm7, %v568_v57, %v570_v63 }
  0xcb   : > { %699 = vmatprep.subr.bf16.mxu0 %v639_v1 }
  0xcc   : > { %700 = vmatpush1.bf16.msra.mxu0 %v638_v0 }
  0xcd   : > { %589 = vrot.lane.b32.xlu1 %v459_v3, %s6332_s27  ;;  %v572_v5 = vpop.permute.xlu0 %571  ;;  %v6106_v3 = vld [vmem:[%s9880_s2 + $0x14] ss:$8 sps:$4 sm:$0xff]  }
  0xce   : > { %627 = vrot.lane.b32.xlu0 %v510_v4, %s6332_s27  ;;  %v640_v6 = vsel %vm637_vm7, %v570_v63, %v572_v5 }
  0xcf   : > { %753 = vmatpush1.bf16.msra.mxu1 %v640_v6 }
  0xd0   : > { %754 = vmatprep.subr.bf16.mxu1 %v9889_v15 }
  0xd1   : > { %599 = vrot.lane.b32.xlu1 %v469_v8, %s6332_s27 }
  0xd2   : > { %633 = vrot.lane.b32.xlu0 %v521_v7, %s6332_s27 }
  0xd5   : > { %607 = vrot.lane.b32.xlu1 %v484_v9, %s6332_s27 }
  0xd6   : > { %635 = vrot.lane.b32.xlu0 %v522_v10, %s6332_s27  ;;  %v6108_v10 = vld [vmem:[%s9880_s2 + $0x10] ss:$8 sps:$4 sm:$0xff]  }
  0xd9   : > { %615 = vrot.lane.b32.xlu1 %v496_v11, %s6332_s27 }
  0xda   : > { %534 = vperm.xlu0 %6102, %v524_v14  }
  0xdd   : > { %623 = vrot.lane.b32.xlu1 %v508_v12, %s6332_s27 }
  0xde   : > { %1065 = vrot.lane.b32.xlu0 %v9891_v18, %s6328_s23 }
  0xe1   : > { %631 = vrot.lane.b32.xlu1 %v520_v13, %s6332_s27 }
  0xe2   : > { %1079 = vrot.lane.b32.xlu0 %v9891_v18, %s6329_s24 }
  0xe5   : > { %629 = vrot.lane.b32.xlu1 %v512_v49, %s6332_s27 }
  0xe6   : > { %1087 = vrot.lane.b32.xlu0 %v9891_v18, %s6329_s24 }
  0xe9   : > { %529 = vperm.xlu1 %6101, %v523_v16  }
  0xea   : > { %1109 = vrot.lane.b32.xlu0 %v9891_v18, %s6330_s25 }
  0xed   : > { %539 = vperm.xlu1 %6101, %v525_v17  }
  0xee   : > { %1123 = vrot.lane.b32.xlu0 %v9891_v18, %s6331_s26 }
  0xf1   : > { %544 = vperm.xlu1 %6101, %v526_v19  }
  0xf2   : > { %1131 = vrot.lane.b32.xlu0 %v9891_v18, %s6331_s26 }
  0xf5   : > { %961 = vrot.lane.b32.xlu1 %v9891_v18, %s6324_s19 }
  0xf9   : > { %969 = vrot.lane.b32.xlu1 %v9891_v18, %s6324_s19 }
  0xfb   : > { %v580_v20 = vpop.permute.xlu0 %579 }
  0xfd   : > { %983 = vrot.lane.b32.xlu1 %v9891_v18, %s6325_s20 }
 0x101   : > { %991 = vrot.lane.b32.xlu1 %v9891_v18, %s6325_s20 }
 0x105   : > { %1005 = vrot.lane.b32.xlu1 %v9891_v18, %s6326_s21 }
 0x108   : > { %v588_v21 = vpop.permute.xlu0 %587 }
 0x109   : > { %1013 = vrot.lane.b32.xlu1 %v9891_v18, %s6326_s21 }
 0x10d   : > { %1057 = vrot.lane.b32.xlu1 %v9891_v18, %s6328_s23 }
 0x110   : > { %v596_v22 = vpop.permute.xlu0 %595 }
 0x111   : > { %1193 = vrot.lane.b32.xlu1 %v9891_v18, %s6332_s27 }
 0x114   : > { %v598_v23 = vpop.permute.xlu1 %597 }
 0x115   : > { %1201 = vrot.lane.b32.xlu1 %v9891_v18, %s6332_s27 }
 0x118   : > { %v604_v24 = vpop.permute.xlu0 %603  ;;  %v606_v25 = vpop.permute.xlu1 %605 }
 0x119   : > { %1101 = vrot.lane.b32.xlu1 %v9891_v18, %s6330_s25 }
 0x11c   : > { %v578_v26 = vpop.permute.xlu0 %577 }
 0x11d   : > { %v643_v27 = vsel %vm637_vm7, %v578_v26, %v580_v20 }
 0x11e   : > { %755 = vmatpush1.bf16.msra.mxu1 %v643_v27 }
 0x11f   : > { %756 = vmatprep.subr.bf16.mxu1 %v9889_v15  ;;  %v6606_v30 = vpop.permute.xlu1 %613 }
 0x120   : > { %v586_v28 = vpop.permute.xlu0 %585 }
 0x121   : > { %v646_v29 = vsel %vm637_vm7, %v586_v28, %v588_v21 }
 0x122   : > { %757 = vmatpush1.bf16.msra.mxu1 %v646_v29 }
 0x123   : > { %758 = vmatprep.subr.bf16.mxu1 %v9889_v15 }
 0x124   : > { %v594_v31 = vpop.permute.xlu0 %593 }
 0x125   : > { %v649_v32 = vsel %vm637_vm7, %v594_v31, %v596_v22 }
 0x126   : > { %759 = vmatpush1.bf16.msra.mxu1 %v649_v32 }
 0x127   : > { %v6610_v33 = vpop.permute.xlu1 %621  ;;  %760 = vmatprep.subr.bf16.mxu1 %v9889_v15 }
 0x128   : > { %v602_v34 = vpop.permute.xlu0 %601 }
 0x129   : > { %v652_v35 = vsel %vm637_vm7, %v602_v34, %v604_v24 }
 0x12a   : > { %761 = vmatpush1.bf16.msra.mxu1 %v652_v35 }
 0x12b   : > { %v576_v36 = vpop.permute.xlu1 %575  ;;  %762 = vmatprep.subr.bf16.mxu1 %v9889_v15 }
 0x12c   : > { %v610_v37 = vpop.permute.xlu0 %609  ;;  %v642_v38 = vsel %vm637_vm7, %v576_v36, %v578_v26 }
 0x12d   : > { %701 = vmatprep.subr.bf16.mxu0 %v642_v38 }
 0x12f   : > { %v574_v39 = vpop.permute.xlu1 %573 }
 0x130   : > { %v612_v40 = vpop.permute.xlu0 %611  ;;  %v641_v41 = vsel %vm637_vm7, %v574_v39, %v576_v36 }
 0x131   : > { %702 = vmatpush1.bf16.msra.mxu0 %v641_v41  ;;  %v655_v42 = vsel %vm637_vm7, %v610_v37, %v612_v40 }
 0x132   : > { %763 = vmatpush1.bf16.msra.mxu1 %v655_v42 }
 0x133   : > { %v584_v43 = vpop.permute.xlu1 %583  ;;  %764 = vmatprep.subr.bf16.mxu1 %v9889_v15 }
 0x134   : > { %v618_v44 = vpop.permute.xlu0 %617  ;;  %v645_v45 = vsel %vm637_vm7, %v584_v43, %v586_v28  ;;  %v379_v28 = vlaneseq }
 0x135   : > { %703 = vmatprep.subr.bf16.mxu0 %v645_v45 }
 0x137   : > { %v582_v46 = vpop.permute.xlu1 %581 }
 0x138   : > { %v620_v47 = vpop.permute.xlu0 %619  ;;  %v644_v48 = vsel %vm637_vm7, %v582_v46, %v584_v43 }
 0x139   : > { %704 = vmatpush1.bf16.msra.mxu0 %v644_v48  ;;  %v658_v49 = vsel %vm637_vm7, %v618_v44, %v620_v47 }
 0x13a   : > { %765 = vmatpush1.bf16.msra.mxu1 %v658_v49 }
 0x13b   : > { %v592_v50 = vpop.permute.xlu1 %591  ;;  %766 = vmatprep.subr.bf16.mxu1 %v9889_v15 }
 0x13c   : > { %v626_v51 = vpop.permute.xlu0 %625  ;;  %v648_v52 = vsel %vm637_vm7, %v592_v50, %v594_v31 }
 0x13d   : > { %705 = vmatprep.subr.bf16.mxu0 %v648_v52 }
 0x13f   : > { %v590_v53 = vpop.permute.xlu1 %589 }
 0x140   : > { %v628_v54 = vpop.permute.xlu0 %627  ;;  %v647_v55 = vsel %vm637_vm7, %v590_v53, %v592_v50 }
 0x141   : > { %706 = vmatpush1.bf16.msra.mxu0 %v647_v55  ;;  %v661_v56 = vsel %vm637_vm7, %v626_v51, %v628_v54 }
 0x142   : > { %767 = vmatpush1.bf16.msra.mxu1 %v661_v56 }
 0x143   : > { %v600_v57 = vpop.permute.xlu1 %599  ;;  %768 = vmatprep.subr.bf16.mxu1 %v9889_v15 }
 0x144   : > { %v634_v58 = vpop.permute.xlu0 %633  ;;  %v651_v59 = vsel %vm637_vm7, %v600_v57, %v602_v34  ;;  %v650_v60 = vsel %vm637_vm7, %v598_v23, %v600_v57 }
 0x145   : > { %707 = vmatprep.subr.bf16.mxu0 %v651_v59 }
 0x146   : > { %708 = vmatpush1.bf16.msra.mxu0 %v650_v60 }
 0x147   : > { %v608_v61 = vpop.permute.xlu1 %607 }
 0x148   : > { %v636_v62 = vpop.permute.xlu0 %635  ;;  %v654_v63 = vsel %vm637_vm7, %v608_v61, %v610_v37  ;;  %v653_v0 = vsel %vm637_vm7, %v606_v25, %v608_v61  ;;  %v6661_v37 = vld [vmem:[%s9879_s1] sm:$0x7] }
 0x149   : > { %709 = vmatprep.subr.bf16.mxu0 %v654_v63  ;;  %v664_v1 = vsel %vm637_vm7, %v634_v58, %v636_v62 }
 0x14a   : > { %769 = vmatpush1.bf16.msra.mxu1 %v664_v1  ;;  %710 = vmatpush1.bf16.msra.mxu0 %v653_v0 }
 0x14b   : > { %v616_v4 = vpop.permute.xlu1 %615 }
 0x14c   : > { %v657_v5 = vsel %vm637_vm7, %v616_v4, %v618_v44  ;;  %v656_v6 = vsel %vm637_vm7, %v6606_v30, %v616_v4 }
 0x14d   : > { %785 = vmatmul.mubr.bf16.vlgmr.msra.gmra.mrb[0].mxu1 %v6103_v2  ;;  %711 = vmatprep.subr.bf16.mxu0 %v657_v5 }
 0x14e   : > { %712 = vmatpush1.bf16.msra.mxu0 %v656_v6  ;;  %5607 = vmatprep.mubr.msk.bf16.mxu1 %vm692_vm8, %v6106_v3 }
 0x14f   : > { %v624_v7 = vpop.permute.xlu1 %623 }
 0x150   : > { %v660_v8 = vsel %vm637_vm7, %v624_v7, %v626_v51  ;;  %v659_v9 = vsel %vm637_vm7, %v6610_v33, %v624_v7  ;;  %v6655_v33 = vshrl.u32 %v379_v28, 7 }
 0x151   : > { %713 = vmatprep.subr.bf16.mxu0 %v660_v8 }
 0x152   : > { %714 = vmatpush1.bf16.msra.mxu0 %v659_v9  ;;  %v389_v35 = vsub.s32 2, %v6655_v33 }
 0x153   : > { %v632_v11 = vpop.permute.xlu1 %631 }
 0x154   : > { %v663_v12 = vsel %vm637_vm7, %v632_v11, %v634_v58  ;;  %v6666_v48 = vrot.slane %v6661_v37, %v389_v35 }
 0x155   : > { %793 = vmatmul.mubr.bf16.gmra.mrb[4].mxu1 %v6108_v10  ;;  %715 = vmatprep.subr.bf16.mxu0 %v663_v12 }
 0x157   : > { %v630_v13 = vpop.permute.xlu1 %629 }
 0x158   : > { %v662_v14 = vsel %vm637_vm7, %v630_v13, %v632_v11 }
 0x159   : > { %716 = vmatpush1.bf16.msra.mxu0 %v662_v14  ;;  %v535_v19 = vpop.permute.xlu0 %534 }
 0x15c   : > { %732 = vmatmul.mubr.bf16.vlgmr.msra.gmra.mrb[0].mxu0 %v6103_v2 }
 0x15d   : > { %5605 = vmatprep.mubr.msk.bf16.mxu0 %vm692_vm8, %v6106_v3  ;;  %v381_v3 = vsub.s32 0, %v6655_v33 }
 0x15f   : > { %v6686_v8 = vrot.slane %v6661_v37, %v381_v3 }
 0x164   : > { %742 = vmatmul.mubr.bf16.gmra.mrb[4].mxu0 %v6108_v10 }
 0x168   : > { %v530_v16 = vpop.permute.xlu1 %529 }
 0x16c   : > { %v540_v6 = vpop.permute.xlu1 %539 }
 0x220   : > { %v786_v17 = vpop.f32.mrb[0].mxu1 }
 0x221   : > { %v787_v20 = vadd.f32 %v786_v17, %v530_v16  ;;  %v788_v21 = vpop.f32.mrb[1].mxu1  ;;  %v385_v17 = vsub.s32 1, %v6655_v33 }
 0x222   : > { %v789_v22 = vpop.f32.mrb[2].mxu1 }
 0x223   : > { %v815_v23 = vmin.f32 %v787_v20, 0.0  ;;  %v790_v24 = vadd.f32 %v789_v22, %v535_v19  ;;  %v791_v25 = vpop.f32.mrb[3].mxu1  ;;  %vm803_vm10 = vcmp.gt.f32.partialorder %v787_v20, 0.0 }
 0x225   : > { %v829_v26 = vmul.f32 1.442695, %v815_v23  ;;  %v818_v27 = vmin.f32 %v790_v24, 0.0  ;;  %vm806_vm11 = vcmp.gt.f32.partialorder %v790_v24, 0.0 }
 0x227   : > { %6148 = vpow2.f32 %v829_v26  ;;  %v835_v29 = vmul.f32 1.442695, %v818_v27  ;;  %v6704_v26 = vrot.slane %v6661_v37, %v385_v17 }
 0x228   : > { %v6651_v30 = vpop.f32.mrb[4].mxu1 }
 0x229   : > { %6150 = vpow2.f32 %v835_v29  ;;  %v796_v31 = vpop.f32.mrb[5].mxu1  ;;  %v795_v25 = vadd.f32 %v6651_v30, %v540_v6 }
 0x22a   : > { %v6653_v32 = vpop.f32.mrb[6].mxu1 }
 0x22b   : > { %v799_v34 = vpop.f32.mrb[7].mxu1  ;;  %v821_v31 = vmin.f32 %v795_v25, 0.0 }
 0x22d   : > { %v841_v34 = vmul.f32 1.442695, %v821_v31 }
 0x22f   : > { %v733_v36 = vpop.f32.mrb[0].mxu0 }
 0x230   : > { %v734_v38 = vadd.f32 %v733_v36, %v530_v16  ;;  %v735_v39 = vpop.f32.mrb[1].mxu0 }
 0x231   : > { %v6149_v40 = vpop.eup %6148  ;;  %v6663_v41 = vadd.f32 %v735_v39, %v530_v16  ;;  %v737_v42 = vpop.f32.mrb[2].mxu0 }
 0x232   : > { %v5610_v43 = vadd.f32 -1.0, %v6149_v40  ;;  %v813_v44 = vmin.f32 %v734_v38, 0.0  ;;  %v738_v45 = vadd.f32 %v737_v42, %v535_v19  ;;  %v739_v46 = vpop.f32.mrb[3].mxu0  ;;  %vm801_vm12 = vcmp.gt.f32.partialorder %v734_v38, 0.0 }
 0x233   : > { %v6151_v47 = vpop.eup %6150  ;;  %v814_v49 = vmin.f32 %v6663_v41, 0.0  ;;  %v740_v50 = vadd.f32 %v739_v46, %v535_v19  ;;  %vm802_vm15 = vcmp.gt.f32.partialorder %v6663_v41, 0.0 }
 0x234   : > { %v863_v51 = vsel %vm803_vm10, %v787_v20, %v5610_v43  ;;  %v5613_v52 = vadd.f32 -1.0, %v6151_v47  ;;  %v825_v53 = vmul.f32 1.442695, %v813_v44  ;;  %v816_v54 = vmin.f32 %v738_v45, 0.0  ;;  %v545_v20 = vpop.permute.xlu1 %544 }
 0x235   : > { %v817_v56 = vmin.f32 %v740_v50, 0.0  ;;  %v6670_v57 = vmul.f32 %v863_v51, %v6666_v48  ;;  %v827_v59 = vmul.f32 1.442695, %v814_v49  ;;  %vm804_vm13 = vcmp.gt.f32.partialorder %v738_v45, 0.0 }
 0x236   : > { %v866_v55 = vsel %vm806_vm11, %v790_v24, %v5613_v52  ;;  %6152 = vpow2.f32 %v825_v53  ;;  %v831_v60 = vmul.f32 1.442695, %v816_v54  ;;  %v798_v22 = vadd.f32 %v6653_v32, %v545_v20 }
 0x237   : > { %v6673_v58 = vmul.f32 %v866_v55, %v6666_v48  ;;  %v743_v61 = vpop.f32.mrb[4].mxu0  ;;  %v833_v62 = vmul.f32 1.442695, %v817_v56  ;;  %vm805_vm14 = vcmp.gt.f32.partialorder %v740_v50, 0.0  ;;  %vm809_vm10 = vcmp.gt.f32.partialorder %v795_v25, 0.0 }
 0x238   : > { %v6675_v63 = vpop.f32.mrb[5].mxu0  ;;  %6154 = vpow2.f32 %v831_v60  ;;  %v824_v28 = vmin.f32 %v798_v22, 0.0  ;;  %v744_v36 = vadd.f32 %v743_v61, %v540_v6  ;;  %vm812_vm8 = vcmp.gt.f32.partialorder %v798_v22, 0.0 }
 0x239   : > { %v924_v0 = vpack.c.bf16 %v6673_v58, %v6670_v57  ;;  %v747_v1 = vpop.f32.mrb[6].mxu0  ;;  %6156 = vpow2.f32 %v833_v62 }
 0x23a   : > { %v6679_v2 = vpop.f32.mrb[7].mxu0  ;;  %6158 = vpow2.f32 %v827_v59  ;;  %v847_v30 = vmul.f32 1.442695, %v824_v28  ;;  %v748_v35 = vadd.f32 %v747_v1, %v545_v20 }
 0x23b   : > { %1121 = vrot.lane.b32.xlu1 %v924_v0, %s6331_s26  ;;  %967 = vrot.lane.b32.xlu0 %v924_v0, %s6324_s19  ;;  %v750_v43 = vadd.f32 %v6679_v2, %v545_v20 }
 0x23c   : > { %6160 = vpow2.f32 %v847_v30  ;;  %v822_v37 = vmin.f32 %v748_v35, 0.0  ;;  %vm810_vm11 = vcmp.gt.f32.partialorder %v748_v35, 0.0 }
 0x23d   : > { %6162 = vpow2.f32 %v841_v34  ;;  %v823_v47 = vmin.f32 %v750_v43, 0.0 }
 0x23e   : > { %v843_v39 = vmul.f32 1.442695, %v822_v37 }
 0x23f   : > { %989 = vrot.lane.b32.xlu0 %v924_v0, %s6325_s20  ;;  %v845_v53 = vmul.f32 1.442695, %v823_v47 }
 0x240   : > { %v6153_v4 = vpop.eup %6152  ;;  %6164 = vpow2.f32 %v843_v39 }
 0x241   : > { %v5608_v5 = vadd.f32 -1.0, %v6153_v4 }
 0x242   : > { %v6155_v7 = vpop.eup %6154 }
 0x243   : > { %1011 = vrot.lane.b32.xlu0 %v924_v0, %s6326_s21  ;;  %v6157_v9 = vpop.eup %6156  ;;  %v861_v10 = vsel %vm801_vm12, %v734_v38, %v5608_v5  ;;  %v5611_v11 = vadd.f32 -1.0, %v6155_v7  ;;  %v819_v38 = vmin.f32 %v744_v36, 0.0  ;;  %vm807_vm12 = vcmp.gt.f32.partialorder %v744_v36, 0.0 }
 0x244   : > { %v6159_v12 = vpop.eup %6158  ;;  %v5612_v14 = vadd.f32 -1.0, %v6157_v9  ;;  %v6690_v16 = vmul.f32 %v861_v10, %v6686_v8  ;;  %v6785_v9 = vpop.permute.xlu1 %961 }
 0x245   : > { %v864_v13 = vsel %vm804_vm13, %v738_v45, %v5611_v11  ;;  %v5609_v21 = vadd.f32 -1.0, %v6159_v12  ;;  %v746_v45 = vadd.f32 %v6675_v63, %v540_v6  ;;  %vm811_vm13 = vcmp.gt.f32.partialorder %v750_v43, 0.0 }
 0x246   : > { %v6694_v19 = vmul.f32 %v864_v13, %v6686_v8  ;;  %v865_v24 = vsel %vm805_vm14, %v740_v50, %v5612_v14  ;;  %v6161_v40 = vpop.eup %6160 }
 0x247   : > { %1031 = vrot.lane.b32.xlu0 %v924_v0, %s6327_s22  ;;  %v862_v27 = vsel %vm802_vm15, %v6663_v41, %v5609_v21  ;;  %v6712_v29 = vmul.f32 %v865_v24, %v6704_v26  ;;  %v837_v41 = vmul.f32 1.442695, %v819_v38  ;;  %v6163_v42 = vpop.eup %6162  ;;  %v5619_v44 = vadd.f32 -1.0, %v6161_v40  ;;  %v6806_v21 = vpop.permute.xlu0 %1065 }
 0x248   : > { %v6700_v23 = vpack.c.bf16 %v6694_v19, %v6690_v16  ;;  %v6715_v32 = vmul.f32 %v862_v27, %v6704_v26  ;;  %v5616_v46 = vadd.f32 -1.0, %v6163_v42  ;;  %v820_v50 = vmin.f32 %v746_v45, 0.0  ;;  %v6799_v14 = vpop.permute.xlu1 %969 }
 0x249   : > { %6166 = vpow2.f32 %v837_v41  ;;  %v872_v49 = vsel %vm812_vm8, %v798_v22, %v5619_v44  ;;  %vm808_vm14 = vcmp.gt.f32.partialorder %v746_v45, 0.0  ;;  %vm1445_vm15 = vcmask 261120  }
 0x24a   : > { %1195 = vrot.lane.b32.xlu1 %v6700_v23, %s6332_s27  ;;  %v6722_v33 = vpack.c.bf16 %v6712_v29, %v6715_v32  ;;  %v869_v51 = vsel %vm809_vm10, %v795_v25, %v5616_v46  ;;  %v6749_v52 = vmul.f32 %v872_v49, %v6666_v48  ;;  %v6165_v54 = vpop.eup %6164  ;;  %v839_v56 = vmul.f32 1.442695, %v820_v50 }
 0x24b   : > { %1055 = vrot.lane.b32.xlu0 %v924_v0, %s6328_s23  ;;  %v6752_v55 = vmul.f32 %v869_v51, %v6666_v48  ;;  %6168 = vpow2.f32 %v845_v53  ;;  %v5617_v61 = vadd.f32 -1.0, %v6165_v54 }
 0x24c   : > { %6170 = vpow2.f32 %v839_v56  ;;  %v984_v20 = vpop.permute.xlu1 %983 }
 0x24d   : > { %v6760_v60 = vpack.c.bf16 %v6749_v52, %v6752_v55  ;;  %v870_v63 = vsel %vm810_vm11, %v748_v35, %v5617_v61 }
 0x24e   : > { %1117 = vrot.lane.b32.xlu1 %v6700_v23, %s6331_s26  ;;  %v6771_v1 = vmul.f32 %v870_v63, %v6686_v8 }
 0x24f   : > { %1077 = vrot.lane.b32.xlu0 %v924_v0, %s6329_s24 }
 0x250   : > { %v6814_v22 = vpop.permute.xlu1 %991 }
 0x252   : > { %965 = vrot.lane.b32.xlu1 %v6722_v33, %s6324_s19 }
 0x253   : > { %1099 = vrot.lane.b32.xlu0 %v924_v0, %s6330_s25  ;;  %v6167_v59 = vpop.eup %6166 }
 0x254   : > { %v5614_v62 = vadd.f32 -1.0, %v6167_v59  ;;  %v1006_v24 = vpop.permute.xlu1 %1005 }
 0x255   : > { %v6169_v2 = vpop.eup %6168 }
 0x256   : > { %987 = vrot.lane.b32.xlu1 %v6722_v33, %s6325_s20  ;;  %v6171_v4 = vpop.eup %6170  ;;  %v5618_v6 = vadd.f32 -1.0, %v6169_v2 }
 0x257   : > { %1199 = vrot.lane.b32.xlu0 %v924_v0, %s6332_s27  ;;  %v867_v0 = vsel %vm807_vm12, %v744_v36, %v5614_v62  ;;  %v5615_v7 = vadd.f32 -1.0, %v6171_v4 }
 0x258   : > { %v6774_v3 = vmul.f32 %v867_v0, %v6686_v8  ;;  %v871_v10 = vsel %vm811_vm13, %v750_v43, %v5618_v6  ;;  %v6824_v27 = vpop.permute.xlu1 %1013 }
 0x259   : > { %v868_v11 = vsel %vm808_vm14, %v746_v45, %v5615_v7  ;;  %v6791_v12 = vmul.f32 %v871_v10, %v6704_v26 }
 0x25a   : > { %1009 = vrot.lane.b32.xlu1 %v6722_v33, %s6326_s21  ;;  %v926_v5 = vpack.c.bf16 %v6771_v1, %v6774_v3  ;;  %v6794_v13 = vmul.f32 %v868_v11, %v6704_v26 }
 0x25b   : > { %963 = vrot.lane.b32.xlu0 %v6700_v23, %s6324_s19 }
 0x25c   : > { %v927_v17 = vpack.c.bf16 %v6791_v12, %v6794_v13  ;;  %v6831_v31 = vpop.permute.xlu1 %1057 }
 0x25e   : > { %1029 = vrot.lane.b32.xlu1 %v6722_v33, %s6327_s22 }
 0x25f   : > { %985 = vrot.lane.b32.xlu0 %v6700_v23, %s6325_s20 }
 0x262   : > { %1053 = vrot.lane.b32.xlu1 %v6722_v33, %s6328_s23 }
 0x263   : > { %1007 = vrot.lane.b32.xlu0 %v6700_v23, %s6326_s21 }
 0x266   : > { %1075 = vrot.lane.b32.xlu1 %v6722_v33, %s6329_s24 }
 0x267   : > { %1027 = vrot.lane.b32.xlu0 %v6700_v23, %s6327_s22 }
 0x26a   : > { %1097 = vrot.lane.b32.xlu1 %v6722_v33, %s6330_s25 }
 0x26b   : > { %1051 = vrot.lane.b32.xlu0 %v6700_v23, %s6328_s23 }
 0x26e   : > { %1037 = vrot.lane.b32.xlu1 %v6760_v60, %s6327_s22 }
 0x26f   : > { %1073 = vrot.lane.b32.xlu0 %v6700_v23, %s6329_s24 }
 0x272   : > { %1063 = vrot.lane.b32.xlu1 %v6760_v60, %s6328_s23 }
 0x273   : > { %1095 = vrot.lane.b32.xlu0 %v6700_v23, %s6330_s25  ;;  %v6816_v23 = vpop.permute.xlu0 %1079 }
 0x276   : > { %1085 = vrot.lane.b32.xlu1 %v6760_v60, %s6329_s24 }
 0x277   : > { %1197 = vrot.lane.b32.xlu0 %v6722_v33, %s6332_s27  ;;  %v6820_v25 = vpop.permute.xlu0 %1087 }
 0x27a   : > { %1033 = vrot.lane.b32.xlu1 %v926_v5, %s6327_s22 }
 0x27b   : > { %1119 = vrot.lane.b32.xlu0 %v6722_v33, %s6331_s26  ;;  %v6828_v28 = vpop.permute.xlu0 %1109  ;;  %v1194_v33 = vpop.permute.xlu1 %1193 }
 0x27e   : > { %1059 = vrot.lane.b32.xlu1 %v926_v5, %s6328_s23 }
 0x27f   : > { %975 = vrot.lane.b32.xlu0 %v6760_v60, %s6324_s19  ;;  %v6833_v30 = vpop.permute.xlu0 %1123  ;;  %v6840_v35 = vpop.permute.xlu1 %1201 }
 0x282   : > { %1081 = vrot.lane.b32.xlu1 %v926_v5, %s6329_s24 }
 0x283   : > { %997 = vrot.lane.b32.xlu0 %v6760_v60, %s6325_s20  ;;  %v6837_v34 = vpop.permute.xlu0 %1131  ;;  %v6847_v38 = vpop.permute.xlu1 %1101 }
 0x286   : > { %973 = vrot.lane.b32.xlu1 %v927_v17, %s6324_s19 }
 0x287   : > { %1019 = vrot.lane.b32.xlu0 %v6760_v60, %s6326_s21 }
 0x28a   : > { %995 = vrot.lane.b32.xlu1 %v927_v17, %s6325_s20 }
 0x28b   : > { %1107 = vrot.lane.b32.xlu0 %v6760_v60, %s6330_s25 }
 0x28e   : > { %1017 = vrot.lane.b32.xlu1 %v927_v17, %s6326_s21 }
 0x28f   : > { %1129 = vrot.lane.b32.xlu0 %v6760_v60, %s6331_s26 }
 0x292   : > { %1105 = vrot.lane.b32.xlu1 %v927_v17, %s6330_s25 }
 0x293   : > { %971 = vrot.lane.b32.xlu0 %v926_v5, %s6324_s19 }
 0x296   : > { %1205 = vrot.lane.b32.xlu1 %v927_v17, %s6332_s27 }
 0x297   : > { %993 = vrot.lane.b32.xlu0 %v926_v5, %s6325_s20 }
 0x29a   : > { %1127 = vrot.lane.b32.xlu1 %v927_v17, %s6331_s26 }
 0x29b   : > { %1015 = vrot.lane.b32.xlu0 %v926_v5, %s6326_s21 }
 0x29f   : > { %1103 = vrot.lane.b32.xlu0 %v926_v5, %s6330_s25 }
 0x2a3   : > { %1203 = vrot.lane.b32.xlu0 %v926_v5, %s6332_s27 }
 0x2a7   : > { %1125 = vrot.lane.b32.xlu0 %v926_v5, %s6331_s26 }
 0x2ab   : > { %1035 = vrot.lane.b32.xlu0 %v927_v17, %s6327_s22 }
 0x2ad   : > { %v6842_v36 = vpop.permute.xlu0 %967  ;;  %v6852_v40 = vpop.permute.xlu1 %1121 }
 0x2af   : > { %1061 = vrot.lane.b32.xlu0 %v927_v17, %s6328_s23 }
 0x2b1   : > { %v6845_v37 = vpop.permute.xlu0 %989 }
 0x2b3   : > { %1083 = vrot.lane.b32.xlu0 %v927_v17, %s6329_s24 }
 0x2b5   : > { %v6850_v39 = vpop.permute.xlu0 %1011 }
 0x2b9   : > { %v1032_v41 = vpop.permute.xlu0 %1031 }
 0x2ba   : > { %1263 = vrot.lane.b32.xlu1 %v1032_v41, %s6332_s27 }
 0x2bc   : > { %v1196_v43 = vpop.permute.xlu1 %1195 }
 0x2bd   : > { %v6855_v42 = vpop.permute.xlu0 %1055 }
 0x2c0   : > { %v6859_v45 = vpop.permute.xlu1 %1117 }
 0x2c1   : > { %v6857_v44 = vpop.permute.xlu0 %1077 }
 0x2c4   : > { %v966_v47 = vpop.permute.xlu1 %965 }
 0x2c5   : > { %v6861_v46 = vpop.permute.xlu0 %1099 }
 0x2c8   : > { %v988_v50 = vpop.permute.xlu1 %987 }
 0x2c9   : > { %v6863_v49 = vpop.permute.xlu0 %1199 }
 0x2cc   : > { %v1010_v53 = vpop.permute.xlu1 %1009 }
 0x2cd   : > { %v964_v51 = vpop.permute.xlu0 %963 }
 0x2ce   : > { %v977_v4 = vsel %vm434_vm0, %v6785_v9, %v964_v51  ;;  %v979_v9 = vsel %vm434_vm0, %v966_v47, %v6842_v36  ;;  %v978_v15 = vsel %vm434_vm0, %v964_v51, %v966_v47  ;;  %v1001_v47 = vsel %vm446_vm1, %v988_v50, %v6845_v37 }
 0x2cf   : > { %v1023_v51 = vsel %vm458_vm2, %v1010_v53, %v6850_v39 }
 0x2d0   : > { %v1030_v56 = vpop.permute.xlu1 %1029 }
 0x2d1   : > { %v986_v54 = vpop.permute.xlu0 %985 }
 0x2d2   : > { %v999_v7 = vsel %vm446_vm1, %v984_v20, %v986_v54 }
 0x2d4   : > { %v1054_v61 = vpop.permute.xlu1 %1053 }
 0x2d5   : > { %v1008_v59 = vpop.permute.xlu0 %1007 }
 0x2d6   : > { %v1021_v17 = vsel %vm458_vm2, %v1006_v24, %v1008_v59 }
 0x2d8   : > { %v1076_v63 = vpop.permute.xlu1 %1075 }
 0x2d9   : > { %v1028_v62 = vpop.permute.xlu0 %1027 }
 0x2da   : > { %1257 = vrot.lane.b32.xlu1 %v1028_v62, %s6332_s27 }
 0x2dc   : > { %v6866_v2 = vpop.permute.xlu1 %1097 }
 0x2dd   : > { %v1052_v0 = vpop.permute.xlu0 %1051 }
 0x2de   : > { %1273 = vrot.lane.b32.xlu0 %v1052_v0, %s6332_s27  ;;  %1209 = vrot.lane.b32.xlu1 %v977_v4, %s6332_s27 }
 0x2e0   : > { %v6872_v6 = vpop.permute.xlu1 %1037 }
 0x2e1   : > { %v1074_v5 = vpop.permute.xlu0 %1073 }
 0x2e2   : > { %1289 = vrot.lane.b32.xlu0 %v1074_v5, %s6332_s27  ;;  %1225 = vrot.lane.b32.xlu1 %v999_v7, %s6332_s27  ;;  %v1000_v7 = vsel %vm446_vm1, %v986_v54, %v988_v50 }
 0x2e4   : > { %v6879_v11 = vpop.permute.xlu1 %1063 }
 0x2e5   : > { %v6877_v10 = vpop.permute.xlu0 %1095 }
 0x2e6   : > { %1241 = vrot.lane.b32.xlu0 %v1021_v17, %s6332_s27  ;;  %1213 = vrot.lane.b32.xlu1 %v979_v9, %s6332_s27  ;;  %v1337_v17 = vsel %vm637_vm7, %v1194_v33, %v1196_v43  ;;  %v1022_v33 = vsel %vm458_vm2, %v1008_v59, %v1010_v53  ;;  %v1090_v59 = vsel %vm495_vm5, %v1076_v63, %v6857_v44 }
 0x2e8   : > { %v6888_v20 = vpop.permute.xlu1 %1085 }
 0x2e9   : > { %v6886_v4 = vpop.permute.xlu0 %1197 }
 0x2ea   : > { %1211 = vrot.lane.b32.xlu0 %v978_v15, %s6332_s27  ;;  %1227 = vrot.lane.b32.xlu1 %v1000_v7, %s6332_s27  ;;  %v1338_v24 = vsel %vm637_vm7, %v1196_v43, %v6886_v4  ;;  %v1040_v43 = vsel %vm468_vm3, %v1030_v56, %v1032_v41  ;;  %v1039_v7 = vsel %vm468_vm3, %v1028_v62, %v1030_v56 }
 0x2eb   : > { %1452 = vmatprep.subr.bf16.mxu0 %v1338_v24  ;;  %v1068_v24 = vsel %vm483_vm4, %v1054_v61, %v6855_v42  ;;  %v1067_v41 = vsel %vm483_vm4, %v1052_v0, %v1054_v61 }
 0x2ec   : > { %1453 = vmatpush1.bf16.msra.mxu0 %v1337_v17  ;;  %v6899_v18 = vpop.permute.xlu1 %1033 }
 0x2ed   : > { %v6897_v9 = vpop.permute.xlu0 %1119 }
 0x2ee   : > { %1229 = vrot.lane.b32.xlu0 %v1001_v47, %s6332_s27  ;;  %1245 = vrot.lane.b32.xlu1 %v1023_v51, %s6332_s27  ;;  %v1089_v47 = vsel %vm495_vm5, %v1074_v5, %v1076_v63 }
 0x2f0   : > { %v6909_v54 = vpop.permute.xlu1 %1059 }
 0x2f1   : > { %v6907_v15 = vpop.permute.xlu0 %975 }
 0x2f2   : > { %1243 = vrot.lane.b32.xlu0 %v1022_v33, %s6332_s27  ;;  %1261 = vrot.lane.b32.xlu1 %v1040_v43, %s6332_s27 }
 0x2f4   : > { %v6922_v17 = vpop.permute.xlu1 %1081 }
 0x2f5   : > { %v6915_v50 = vpop.permute.xlu0 %997 }
 0x2f6   : > { %1259 = vrot.lane.b32.xlu0 %v1039_v7, %s6332_s27  ;;  %1277 = vrot.lane.b32.xlu1 %v1068_v24, %s6332_s27 }
 0x2f8   : > { %v974_v56 = vpop.permute.xlu1 %973 }
 0x2f9   : > { %v6924_v53 = vpop.permute.xlu0 %1019 }
 0x2fa   : > { %1275 = vrot.lane.b32.xlu0 %v1067_v41, %s6332_s27  ;;  %1293 = vrot.lane.b32.xlu1 %v1090_v59, %s6332_s27 }
 0x2fc   : > { %v996_v61 = vpop.permute.xlu1 %995 }
 0x2fd   : > { %v6931_v62 = vpop.permute.xlu0 %1107 }
 0x2fe   : > { %1291 = vrot.lane.b32.xlu0 %v1089_v47, %s6332_s27  ;;  %1265 = vrot.lane.b32.xlu1 %v6899_v18, %s6332_s27  ;;  %v982_v47 = vsel %vm434_vm0, %v974_v56, %v6907_v15 }
 0x300   : > { %v1018_v5 = vpop.permute.xlu1 %1017 }
 0x301   : > { %v6937_v51 = vpop.permute.xlu0 %1129 }
 0x302   : > { %1271 = vrot.lane.b32.xlu0 %v6872_v6, %s6332_s27  ;;  %1281 = vrot.lane.b32.xlu1 %v6909_v54, %s6332_s27 }
 0x304   : > { %v1106_v59 = vpop.permute.xlu1 %1105 }
 0x305   : > { %v972_v0 = vpop.permute.xlu0 %971 }
 0x306   : > { %1297 = vrot.lane.b32.xlu1 %v6922_v17, %s6332_s27  ;;  %v980_v63 = vsel %vm434_vm0, %v6799_v14, %v972_v0  ;;  %v981_v7 = vsel %vm434_vm0, %v972_v0, %v974_v56  ;;  %v1112_v14 = vsel %vm9901_vm6, %v6866_v2, %v6861_v46 }
 0x307   : > { %1217 = vrot.lane.b32.xlu0 %v980_v63, %s6332_s27 }
 0x309   : > { %v994_v33 = vpop.permute.xlu0 %993 }
 0x30a   : > { %v1002_v43 = vsel %vm446_vm1, %v6814_v22, %v994_v33  ;;  %v1003_v0 = vsel %vm446_vm1, %v994_v33, %v996_v61  ;;  %v1004_v33 = vsel %vm446_vm1, %v996_v61, %v6915_v50  ;;  %v1072_v61 = vsel %vm483_vm4, %v6879_v11, %v6806_v21 }
 0x30b   : > { %1233 = vrot.lane.b32.xlu1 %v1002_v43, %s6332_s27  ;;  %1219 = vrot.lane.b32.xlu0 %v981_v7, %s6332_s27  ;;  %v1111_v43 = vsel %vm9901_vm6, %v6877_v10, %v6866_v2  ;;  %v1026_v2 = vsel %vm458_vm2, %v1018_v5, %v6924_v53  ;;  %v1091_v21 = vsel %vm495_vm5, %v6857_v44, %v6816_v23 }
 0x30d   : > { %v1016_v24 = vpop.permute.xlu0 %1015 }
 0x30e   : > { %v1024_v41 = vsel %vm458_vm2, %v6824_v27, %v1016_v24  ;;  %v6965_v27 = vpop.permute.xlu1 %1205 }
 0x30f   : > { %1249 = vrot.lane.b32.xlu1 %v1024_v41, %s6332_s27  ;;  %1309 = vrot.lane.b32.xlu0 %v1112_v14, %s6332_s27  ;;  %v1025_v14 = vsel %vm458_vm2, %v1016_v24, %v1018_v5 }
 0x311   : > { %v1104_v22 = vpop.permute.xlu0 %1103 }
 0x312   : > { %v1114_v44 = vsel %vm9901_vm6, %v1104_v22, %v1106_v59 }
 0x313   : > { %1221 = vrot.lane.b32.xlu1 %v982_v47, %s6332_s27  ;;  %1235 = vrot.lane.b32.xlu0 %v1003_v0, %s6332_s27 }
 0x315   : > { %v1204_v63 = vpop.permute.xlu0 %1203 }
 0x316   : > { %v1341_v7 = vsel %vm637_vm7, %v1204_v63, %v6965_v27  ;;  %v1340_v41 = vsel %vm637_vm7, %v6840_v35, %v1204_v63 }
 0x317   : > { %1307 = vrot.lane.b32.xlu1 %v1111_v43, %s6332_s27  ;;  %1305 = vrot.lane.b32.xlu0 %v6877_v10, %s6332_s27  ;;  %v5642_v43 = vld [vmem:[%s9885_s7 + $0x20] sm:$0xff] }
 0x318   : > { %1454 = vmatprep.subr.bf16.mxu0 %v1341_v7 }
 0x319   : > { %1455 = vmatpush1.bf16.msra.mxu0 %v1340_v41  ;;  %v6977_v56 = vpop.permute.xlu0 %1125 }
 0x31b   : > { %1237 = vrot.lane.b32.xlu1 %v1004_v33, %s6332_s27  ;;  %1253 = vrot.lane.b32.xlu0 %v1026_v2, %s6332_s27  ;;  %v1140_v2 = vld [vmem:[%s9885_s7 + $0x8] sm:$0xff] }
 0x31d   : > { %v1036_v35 = vpop.permute.xlu0 %1035 }
 0x31e   : > { %v1041_v10 = vsel %vm468_vm3, %v6899_v18, %v1036_v35 }
 0x31f   : > { %1207 = vrot.lane.b32.xlu1 %v6760_v60, %s6332_s27  ;;  %1215 = vrot.lane.b32.xlu0 %v6842_v36, %s6332_s27  ;;  %v1069_v60 = vsel %vm483_vm4, %v6855_v42, %v6831_v31  ;;  %v1042_v36 = vsel %vm468_vm3, %v1036_v35, %v6872_v6  ;;  %v1094_v6 = vsel %vm495_vm5, %v6888_v20, %v6820_v25  ;;  %v5644_v35 = vld [vmem:[%s9885_s7 + $0x30] sm:$0xff] }
 0x320   : > { %v1134_v25 = vsel %vm9900_vm9, %v6897_v9, %v6852_v40 }
 0x321   : > { %v1062_v47 = vpop.permute.xlu0 %1061 }
 0x322   : > { %v1071_v18 = vsel %vm483_vm4, %v1062_v47, %v6879_v11  ;;  %v1070_v11 = vsel %vm483_vm4, %v6909_v54, %v1062_v47  ;;  %v6111_v54 = vld [vmem:[%s9882_s4 + $0x4] ss:$12 sps:$4 sm:$0xff]  }
 0x323   : > { %1267 = vrot.lane.b32.xlu0 %v1041_v10, %s6332_s27  ;;  %1251 = vrot.lane.b32.xlu1 %v1025_v14, %s6332_s27 }
 0x324   : > { %1484 = vmatprep.mubr.bf16.mxu0 %v6111_v54  ;;  %1590 = vmatprep.mubr.bf16.mxu1 %v6111_v54 }
 0x325   : > { %v1084_v31 = vpop.permute.xlu0 %1083 }
 0x326   : > { %v1092_v42 = vsel %vm495_vm5, %v6922_v17, %v1084_v31  ;;  %v1093_v23 = vsel %vm495_vm5, %v1084_v31, %v6888_v20  ;;  %v1115_v20 = vsel %vm9901_vm6, %v1106_v59, %v6931_v62  ;;  %v1133_v17 = vsel %vm9900_vm9, %v6859_v45, %v6897_v9 }
 0x327   : > { %1287 = vrot.lane.b32.xlu0 %v1072_v61, %s6332_s27  ;;  %1279 = vrot.lane.b32.xlu1 %v1069_v60, %s6332_s27  ;;  %v1116_v9 = vsel %vm9901_vm6, %v6931_v62, %v6828_v28  ;;  %v1339_v61 = vsel %vm637_vm7, %v6886_v4, %v6863_v49  ;;  %v5645_v49 = vld [vmem:[%s9885_s7 + $0x38] sm:$0xff] }
 0x32b   : > { %1285 = vrot.lane.b32.xlu0 %v1071_v18, %s6332_s27  ;;  %1269 = vrot.lane.b32.xlu1 %v1042_v36, %s6332_s27  ;;  %v5643_v18 = vld [vmem:[%s9885_s7 + $0x28] sm:$0xff]  ;;  %v9902_v36 = vmov 0.0|0.0  }
 0x32f   : > { %1295 = vrot.lane.b32.xlu0 %v1091_v21, %s6332_s27  ;;  %1313 = vrot.lane.b32.xlu1 %v1104_v22, %s6332_s27  ;;  %v1135_v22 = vsel %vm9900_vm9, %v6852_v40, %v6833_v30  ;;  %v1141_v30 = vld [vmem:[%s9885_s7 + $0x10] sm:$0xff] }
 0x333   : > { %1299 = vrot.lane.b32.xlu0 %v1092_v42, %s6332_s27  ;;  %1283 = vrot.lane.b32.xlu1 %v1070_v11, %s6332_s27 }
 0x337   : > { %1303 = vrot.lane.b32.xlu0 %v1094_v6, %s6332_s27  ;;  %1223 = vrot.lane.b32.xlu1 %v6907_v15, %s6332_s27  ;;  %v1128_v15 = vpop.permute.xlu1 %1127 }
 0x338   : > { %v1136_v5 = vsel %vm9900_vm9, %v6977_v56, %v1128_v15 }
 0x33b   : > { %1301 = vrot.lane.b32.xlu1 %v1093_v23, %s6332_s27  ;;  %1315 = vrot.lane.b32.xlu0 %v1114_v44, %s6332_s27 }
 0x33f   : > { %1231 = vrot.lane.b32.xlu1 %v6845_v37, %s6332_s27  ;;  %1325 = vrot.lane.b32.xlu0 %v1134_v25, %s6332_s27  ;;  %v1264_v37 = vpop.permute.xlu1 %1263 }
 0x343   : > { %1317 = vrot.lane.b32.xlu1 %v1115_v20, %s6332_s27  ;;  %1321 = vrot.lane.b32.xlu0 %v6859_v45, %s6332_s27  ;;  %v1113_v45 = vsel %vm9901_vm6, %v6861_v46, %v6847_v38  ;;  %v1139_v46 = vld [vmem:[%s9885_s7] sm:$0xff] }
 0x347   : > { %1323 = vrot.lane.b32.xlu1 %v1133_v17, %s6332_s27  ;;  %1247 = vrot.lane.b32.xlu0 %v6850_v39, %s6332_s27 }
 0x34b   : > { %1239 = vrot.lane.b32.xlu1 %v6915_v50, %s6332_s27  ;;  %1331 = vrot.lane.b32.xlu0 %v1136_v5, %s6332_s27  ;;  %v1137_v50 = vsel %vm9900_vm9, %v1128_v15, %v6937_v51 }
 0x34c   : > { %v7055_v24 = vpop.permute.xlu1 %1257 }
 0x34f   : > { %1311 = vrot.lane.b32.xlu1 %v1113_v45, %s6332_s27  ;;  %1319 = vrot.lane.b32.xlu0 %v1116_v9, %s6332_s27 }
 0x350   : > { %v7065_v39 = vpop.permute.xlu0 %1273  ;;  %v1210_v59 = vpop.permute.xlu1 %1209 }
 0x353   : > { %1333 = vrot.lane.b32.xlu1 %v1137_v50, %s6332_s27  ;;  %1327 = vrot.lane.b32.xlu0 %v1135_v22, %s6332_s27 }
 0x354   : > { %v7074_v38 = vpop.permute.xlu0 %1289  ;;  %v7076_v28 = vpop.permute.xlu1 %1225 }
 0x357   : > { %1329 = vrot.lane.b32.xlu1 %v6977_v56, %s6332_s27  ;;  %1145 = vperm.xlu0 %6102, %v1139_v46   ;;  %v1138_v56 = vsel %vm9900_vm9, %v6937_v51, %v6837_v34  ;;  %v1142_v51 = vld [vmem:[%s9885_s7 + $0x18] sm:$0xff] }
 0x358   : > { %v7083_v62 = vpop.permute.xlu0 %1241  ;;  %v7085_v0 = vpop.permute.xlu1 %1213 }
 0x35b   : > { %1255 = vrot.lane.b32.xlu1 %v6924_v53, %s6332_s27  ;;  %1155 = vperm.xlu0 %6102, %v1141_v30  }
 0x35c   : > { %v1212_v40 = vpop.permute.xlu0 %1211  ;;  %v1228_v63 = vpop.permute.xlu1 %1227 }
 0x35d   : > { %v1344_v7 = vsel %vm637_vm7, %v1212_v40, %v7085_v0  ;;  %v1343_v41 = vsel %vm637_vm7, %v1210_v59, %v1212_v40  ;;  %v1349_v22 = vsel %vm637_vm7, %v7076_v28, %v1228_v63 }
 0x35e   : > { %1456 = vmatprep.subr.bf16.mxu0 %v1344_v7 }
 0x35f   : > { %1335 = vrot.lane.b32.xlu1 %v1138_v56, %s6332_s27  ;;  %1769 = vperm.xlu0 %6102, %v5642_v43  }
 0x360   : > { %1457 = vmatpush1.bf16.msra.mxu0 %v1343_v41  ;;  %v7102_v53 = vpop.permute.xlu0 %1229  ;;  %v7104_v33 = vpop.permute.xlu1 %1245 }
 0x361   : > { %v1350_v9 = vsel %vm637_vm7, %v1228_v63, %v7102_v53 }
 0x363   : > { %1150 = vperm.xlu1 %6101, %v1140_v2   ;;  %1779 = vperm.xlu0 %6102, %v5644_v35  }
 0x364   : > { %v1244_v10 = vpop.permute.xlu0 %1243  ;;  %v7112_v34 = vpop.permute.xlu1 %1261 }
 0x365   : > { %v1363_v14 = vsel %vm637_vm7, %v7112_v34, %v1264_v37  ;;  %v1356_v28 = vsel %vm637_vm7, %v1244_v10, %v7104_v33  ;;  %v1355_v41 = vsel %vm637_vm7, %v7083_v62, %v1244_v10 }
 0x366   : > { %5791 = vmatprep.subr.bf16.mxu1 %v1363_v14 }
 0x367   : > { %1160 = vperm.xlu1 %6101, %v1142_v51   ;;  %5792 = vmatpush3.bf16.msra.mxu1 %v1339_v61 }
 0x368   : > { %v7122_v60 = vpop.permute.xlu0 %1259  ;;  %v7124_v47 = vpop.permute.xlu1 %1277  ;;  %2213 = vrot.lane.b32.xlu0 %v9902_v36, %s6330_s25 }
 0x369   : > { %v1362_v62 = vsel %vm637_vm7, %v7122_v60, %v7112_v34  ;;  %v1361_v61 = vsel %vm637_vm7, %v7055_v24, %v7122_v60 }
 0x36b   : > { %1774 = vperm.xlu1 %6101, %v5643_v18  }
 0x36c   : > { %v7131_v21 = vpop.permute.xlu0 %1275  ;;  %v7133_v31 = vpop.permute.xlu1 %1293  ;;  %2235 = vrot.lane.b32.xlu0 %v9902_v36, %s6331_s26 }
 0x36d   : > { %v1368_v24 = vsel %vm637_vm7, %v7131_v21, %v7124_v47 }
 0x36f   : > { %1784 = vperm.xlu1 %6101, %v5645_v49  }
 0x370   : > { %v7140_v4 = vpop.permute.xlu0 %1291  ;;  %v7142_v42 = vpop.permute.xlu1 %1265 }
 0x373   : > { %2065 = vrot.lane.b32.xlu1 %v9902_v36, %s6324_s19 }
 0x374   : > { %v1272_v11 = vpop.permute.xlu0 %1271  ;;  %v7146_v6 = vpop.permute.xlu1 %1281 }
 0x377   : > { %2073 = vrot.lane.b32.xlu1 %v9902_v36, %s6324_s19 }
 0x378   : > { %v7150_v23 = vpop.permute.xlu1 %1297 }
 0x379   : > { %v1218_v44 = vpop.permute.xlu0 %1217 }
 0x37b   : > { %2087 = vrot.lane.b32.xlu1 %v9902_v36, %s6325_s20 }
 0x37d   : > { %v1220_v54 = vpop.permute.xlu0 %1219  ;;  %v1234_v25 = vpop.permute.xlu1 %1233 }
 0x37e   : > { %v1346_v45 = vsel %vm637_vm7, %v1218_v44, %v1220_v54 }
 0x37f   : > { %2095 = vrot.lane.b32.xlu1 %v9902_v36, %s6325_s20 }
 0x381   : > { %v7156_v20 = vpop.permute.xlu0 %1309  ;;  %v1250_v15 = vpop.permute.xlu1 %1249 }
 0x383   : > { %2109 = vrot.lane.b32.xlu1 %v9902_v36, %s6326_s21 }
 0x385   : > { %v1236_v17 = vpop.permute.xlu0 %1235  ;;  %v7160_v37 = vpop.permute.xlu1 %1221 }
 0x386   : > { %v1347_v5 = vsel %vm637_vm7, %v1220_v54, %v7160_v37  ;;  %v1352_v43 = vsel %vm637_vm7, %v1234_v25, %v1236_v17 }
 0x387   : > { %1458 = vmatprep.subr.bf16.mxu0 %v1347_v5  ;;  %2117 = vrot.lane.b32.xlu1 %v9902_v36, %s6326_s21 }
 0x388   : > { %1459 = vmatpush1.bf16.msra.mxu0 %v1346_v45 }
 0x389   : > { %v7169_v59 = vpop.permute.xlu0 %1305  ;;  %1460 = vmatprep.subr.bf16.mxu0 %v1350_v9  ;;  %v7171_v50 = vpop.permute.xlu1 %1307 }
 0x38b   : > { %2161 = vrot.lane.b32.xlu1 %v9902_v36, %s6328_s23 }
 0x38c   : > { %1461 = vmatpush1.bf16.msra.mxu0 %v1349_v22 }
 0x38d   : > { %v7177_v46 = vpop.permute.xlu0 %1253  ;;  %v7179_v30 = vpop.permute.xlu1 %1237 }
 0x38e   : > { %v1353_v40 = vsel %vm637_vm7, %v1236_v17, %v7179_v30 }
 0x38f   : > { %1462 = vmatprep.subr.bf16.mxu0 %v1353_v40  ;;  %2169 = vrot.lane.b32.xlu1 %v9902_v36, %s6328_s23 }
 0x390   : > { %1463 = vmatpush1.bf16.msra.mxu0 %v1352_v43 }
 0x391   : > { %v1216_v63 = vpop.permute.xlu0 %1215  ;;  %1464 = vmatprep.subr.bf16.mxu0 %v1356_v28  ;;  %v1208_v7 = vpop.permute.xlu1 %1207 }
 0x392   : > { %v1342_v34 = vsel %vm637_vm7, %v6965_v27, %v1208_v7  ;;  %v1345_v27 = vsel %vm637_vm7, %v7085_v0, %v1216_v63  ;;  %v1380_v7 = vsel %vm637_vm7, %v7171_v50, %v7156_v20 }
 0x393   : > { %2183 = vrot.lane.b32.xlu1 %v9902_v36, %s6329_s24 }
 0x394   : > { %1465 = vmatpush1.bf16.msra.mxu0 %v1355_v41 }
 0x395   : > { %v1268_v56 = vpop.permute.xlu0 %1267  ;;  %v1252_v2 = vpop.permute.xlu1 %1251 }
 0x396   : > { %v1359_v35 = vsel %vm637_vm7, %v1252_v2, %v7177_v46  ;;  %v1358_v51 = vsel %vm637_vm7, %v1250_v15, %v1252_v2  ;;  %v1364_v25 = vsel %vm637_vm7, %v7142_v42, %v1268_v56  ;;  %v1367_v42 = vsel %vm637_vm7, %v7065_v39, %v7131_v21 }
 0x397   : > { %1466 = vmatprep.subr.bf16.mxu0 %v1359_v35  ;;  %2191 = vrot.lane.b32.xlu1 %v9902_v36, %s6329_s24  ;;  %v1374_v39 = vsel %vm637_vm7, %v7140_v4, %v7133_v31 }
 0x398   : > { %1467 = vmatpush1.bf16.msra.mxu0 %v1358_v51 }
 0x399   : > { %v1288_v10 = vpop.permute.xlu0 %1287  ;;  %1468 = vmatprep.subr.bf16.mxu0 %v1362_v62  ;;  %v1280_v14 = vpop.permute.xlu1 %1279 }
 0x39a   : > { %v1369_v60 = vsel %vm637_vm7, %v7124_v47, %v1280_v14 }
 0x39b   : > { %2205 = vrot.lane.b32.xlu1 %v9902_v36, %s6330_s25 }
 0x39c   : > { %1469 = vmatpush1.bf16.msra.mxu0 %v1361_v61 }
 0x39d   : > { %v1286_v18 = vpop.permute.xlu0 %1285  ;;  %v1270_v49 = vpop.permute.xlu1 %1269 }
 0x39e   : > { %v1365_v44 = vsel %vm637_vm7, %v1268_v56, %v1270_v49  ;;  %v1366_v54 = vsel %vm637_vm7, %v1270_v49, %v1272_v11  ;;  %v1372_v17 = vsel %vm637_vm7, %v1286_v18, %v1288_v10 }
 0x39f   : > { %1470 = vmatprep.subr.bf16.mxu0 %v1365_v44  ;;  %5793 = vmatprep.subr.bf16.mxu1 %v1366_v54  ;;  %v6114_v44 = vld [vmem:[%s9882_s4 + $0x18] ss:$12 sps:$4 sm:$0xff]  }
 0x3a0   : > { %1471 = vmatpush1.bf16.msra.mxu0 %v1364_v25  ;;  %5794 = vmatpush3.bf16.msra.mxu1 %v1342_v34 }
 0x3a1   : > { %v1296_v15 = vpop.permute.xlu0 %1295  ;;  %1472 = vmatprep.subr.bf16.mxu0 %v1368_v24  ;;  %5795 = vmatprep.subr.bf16.mxu1 %v1369_v60  ;;  %v1314_v11 = vpop.permute.xlu1 %1313 }
 0x3a2   : > { %2298 = vrot.lane.b32.xlu1 %v9902_v36, %s6332_s27  ;;  %v1375_v40 = vsel %vm637_vm7, %v7133_v31, %v1296_v15  ;;  %v9903_v15 = vmov 0  }
 0x3a4   : > { %1473 = vmatpush1.bf16.msra.mxu0 %v1367_v42  ;;  %5796 = vmatpush3.bf16.msra.mxu1 %v1345_v27 }
 0x3a5   : > { %v1300_v5 = vpop.permute.xlu0 %1299  ;;  %5797 = vmatprep.subr.bf16.mxu1 %v1372_v17  ;;  %v1284_v47 = vpop.permute.xlu1 %1283 }
 0x3a6   : > { %v1371_v45 = vsel %vm637_vm7, %v1284_v47, %v1286_v18  ;;  %v1370_v9 = vsel %vm637_vm7, %v7146_v6, %v1284_v47  ;;  %2306 = vrot.lane.b32.xlu1 %v9902_v36, %s6332_s27  ;;  %v1373_v6 = vsel %vm637_vm7, %v7074_v38, %v7140_v4  ;;  %v1379_v4 = vsel %vm637_vm7, %v7169_v59, %v7171_v50  ;;  %v6112_v59 = vld [vmem:[%s9882_s4 + $0x1c] ss:$12 sps:$4 sm:$0xff]  }
 0x3a7   : > { %1474 = vmatprep.subr.bf16.mxu0 %v1371_v45 }
 0x3a8   : > { %1475 = vmatpush1.bf16.msra.mxu0 %v1370_v9 }
 0x3a9   : > { %v1304_v0 = vpop.permute.xlu0 %1303  ;;  %1476 = vmatprep.subr.bf16.mxu0 %v1374_v39  ;;  %v1224_v21 = vpop.permute.xlu1 %1223  ;;  %v6116_v39 = vld [vmem:[%s9882_s4 + $0x20] ss:$12 sps:$4 sm:$0xff]  }
 0x3aa   : > { %v1348_v22 = vsel %vm637_vm7, %v7160_v37, %v1224_v21  ;;  %2227 = vrot.lane.b32.xlu1 %v9902_v36, %s6331_s26  ;;  %v1376_v37 = vsel %vm637_vm7, %v7150_v23, %v1300_v5 }
 0x3ab   : > { %5798 = vmatpush3.bf16.msra.mxu1 %v1348_v22 }
 0x3ac   : > { %1477 = vmatpush1.bf16.msra.mxu0 %v1373_v6  ;;  %5799 = vmatprep.subr.bf16.mxu1 %v1375_v40 }
 0x3ad   : > { %v1316_v43 = vpop.permute.xlu0 %1315  ;;  %v1302_v28 = vpop.permute.xlu1 %1301 }
 0x3ae   : > { %v1377_v63 = vsel %vm637_vm7, %v1300_v5, %v1302_v28  ;;  %v1378_v56 = vsel %vm637_vm7, %v1302_v28, %v1304_v0  ;;  %v1382_v51 = vsel %vm637_vm7, %v1314_v11, %v1316_v43 }
 0x3af   : > { %1478 = vmatprep.subr.bf16.mxu0 %v1377_v63 }
 0x3b0   : > { %1479 = vmatpush1.bf16.msra.mxu0 %v1376_v37 }
 0x3b1   : > { %v1326_v41 = vpop.permute.xlu0 %1325  ;;  %1480 = vmatprep.subr.bf16.mxu0 %v1380_v7  ;;  %v1232_v38 = vpop.permute.xlu1 %1231 }
 0x3b2   : > { %v1351_v31 = vsel %vm637_vm7, %v7102_v53, %v1232_v38  ;;  %v6109_v53 = vld [vmem:[%s9882_s4] ss:$12 sps:$4 sm:$0xff]  }
 0x3b3   : > { %5800 = vmatpush3.bf16.msra.mxu1 %v1351_v31 }
 0x3b4   : > { %1481 = vmatpush1.bf16.msra.mxu0 %v1379_v4  ;;  %5801 = vmatprep.subr.bf16.mxu1 %v1378_v56 }
 0x3b5   : > { %v1322_v23 = vpop.permute.xlu0 %1321  ;;  %v1318_v2 = vpop.permute.xlu1 %1317 }
 0x3b6   : > { %v1383_v35 = vsel %vm637_vm7, %v1316_v43, %v1318_v2 }
 0x3b7   : > { %1482 = vmatprep.subr.bf16.mxu0 %v1383_v35 }
 0x3b8   : > { %1483 = vmatpush1.bf16.msra.mxu0 %v1382_v51 }
 0x3b9   : > { %v1248_v50 = vpop.permute.xlu0 %1247  ;;  %v1324_v62 = vpop.permute.xlu1 %1323 }
 0x3ba   : > { %v1386_v10 = vsel %vm637_vm7, %v1324_v62, %v1326_v41  ;;  %v1385_v14 = vsel %vm637_vm7, %v1322_v23, %v1324_v62  ;;  %v1357_v24 = vsel %vm637_vm7, %v7104_v33, %v1248_v50 }
 0x3bb   : > { %1505 = vmatprep.subr.bf16.mxu0 %v1386_v10  ;;  %1485 = vmatmul.mubr.bf16.vlgmr.msra.gmra.mrb[8].mxu0 %v6109_v53 }
 0x3bc   : > { %1506 = vmatpush1.bf16.msra.mxu0 %v1385_v14  ;;  %1494 = vmatprep.mubr.bf16.mxu0 %v6112_v59 }
 0x3bd   : > { %v1332_v61 = vpop.permute.xlu0 %1331  ;;  %v1240_v18 = vpop.permute.xlu1 %1239 }
 0x3be   : > { %v1354_v49 = vsel %vm637_vm7, %v7179_v30, %v1240_v18 }
 0x3bf   : > { %5802 = vmatpush3.bf16.msra.mxu1 %v1354_v49 }
 0x3c1   : > { %v1320_v54 = vpop.permute.xlu0 %1319  ;;  %v1312_v34 = vpop.permute.xlu1 %1311 }
 0x3c2   : > { %v1381_v25 = vsel %vm637_vm7, %v7156_v20, %v1312_v34  ;;  %v1384_v60 = vsel %vm637_vm7, %v1318_v2, %v1320_v54  ;;  %v6115_v20 = vld [vmem:[%s9882_s4 + $0x8] ss:$12 sps:$4 sm:$0xff]  }
 0x3c3   : > { %5803 = vmatprep.subr.bf16.mxu1 %v1381_v25  ;;  %1495 = vmatmul.mubr.bf16.gmra.mrb[12].mxu0 %v6114_v44 }
 0x3c4   : > { %5804 = vmatpush3.bf16.msra.mxu1 %v1357_v24  ;;  %1537 = vmatprep.mubr.bf16.mxu0 %v9903_v15 }
 0x3c5   : > { %5805 = vmatprep.subr.bf16.mxu1 %v1384_v60  ;;  %v1334_v30 = vpop.permute.xlu1 %1333  ;;  %v1328_v33 = vpop.permute.xlu0 %1327 }
 0x3c6   : > { %v1389_v11 = vsel %vm637_vm7, %v1332_v61, %v1334_v30  ;;  %v1387_v47 = vsel %vm637_vm7, %v1326_v41, %v1328_v33 }
 0x3c7   : > { %1507 = vmatprep.subr.bf16.mxu0 %v1389_v11 }
 0x3c9   : > { %v1330_v27 = vpop.permute.xlu1 %1329 }
 0x3ca   : > { %v1388_v42 = vsel %vm637_vm7, %v1330_v27, %v1332_v61 }
 0x3cb   : > { %1508 = vmatpush1.bf16.msra.mxu0 %v1388_v42 }
 0x3cd   : > { %v1256_v17 = vpop.permute.xlu1 %1255 }
 0x3ce   : > { %v1360_v5 = vsel %vm637_vm7, %v7177_v46, %v1256_v17  ;;  %5626 = vmatmul.mubr.msk.bf16.vlgmr.msra.gmra.mrb[8].mxu0 %vm1445_vm15, %v6115_v20 }
 0x3cf   : > { %5806 = vmatpush3.bf16.msra.mxu1 %v1360_v5  ;;  %1547 = vmatprep.mubr.bf16.mxu0 %v9903_v15 }
 0x3d0   : > { %5952 = vmatprep.subr.bf16.mxu1 %v1387_v47 }
 0x3d1   : > { %v1336_v45 = vpop.permute.xlu1 %1335 }
 0x3d2   : > { %1591 = vmatmul.mubr.bf16.vlgmr.msra.gmra.mrb[8].mxu1 %v6109_v53  ;;  %v1390_v9 = vsel %vm637_vm7, %v1334_v30, %v1336_v45 }
 0x3d3   : > { %5953 = vmatpush3.bf16.msra.mxu1 %v1387_v47  ;;  %1598 = vmatprep.mubr.bf16.mxu1 %v6112_v59 }
 0x3d4   : > { %5954 = vmatprep.subr.bf16.mxu1 %v1390_v9 }
 0x3d6   : > { %5627 = vmatmul.mubr.msk.bf16.gmra.mrb[12].mxu0 %vm1445_vm15, %v6116_v39  ;;  %v7292_v46 = vpop.permute.xlu0 %1145 }
 0x3d7   : > { %5955 = vmatpush3.bf16.msra.mxu1 %v1390_v9 }
 0x3da   : > { %1599 = vmatmul.mubr.bf16.gmra.mrb[12].mxu1 %v6114_v44  ;;  %v1156_v50 = vpop.permute.xlu0 %1155 }
 0x3db   : > { %5956 = vmatprep.mubr.msk.bf16.mxu1 %vm1445_vm15, %v6115_v20 }
 0x3e2   : > { %5957 = vmatmul.mubr.msk.bf16.vlgmr.msra.gmra.mrb[16].mxu1 %vm1445_vm15, %v6116_v39  ;;  %v7297_v6 = vpop.permute.xlu1 %1150 }
 0x3e3   : > { %1835 = vmatprep.mubr.bf16.mxu1 %v9903_v15 }
 0x3e6   : > { %v1161_v49 = vpop.permute.xlu1 %1160 }
 0x4a1   : > { %v1539_v0 = vpop.f32.mrb[8].mxu0 }
 0x4a2   : > { %v7295_v21 = vadd.f32 %v1539_v0, %v7292_v46  ;;  %v1541_v22 = vpop.f32.mrb[9].mxu0 }
 0x4a3   : > { %v7300_v40 = vadd.f32 %v1541_v22, %v7292_v46  ;;  %v1543_v43 = vpop.f32.mrb[10].mxu0 }
 0x4a4   : > { %v1668_v28 = vmin.f32 %v7295_v21, 0.0  ;;  %v7304_v63 = vadd.f32 %v1543_v43, %v7297_v6  ;;  %v1545_v37 = vpop.f32.mrb[11].mxu0  ;;  %vm1656_vm8 = vcmp.gt.f32.partialorder %v7295_v21, 0.0 }
 0x4a5   : > { %v1669_v7 = vmin.f32 %v7300_v40, 0.0  ;;  %v7308_v41 = vadd.f32 %v1545_v37, %v7297_v6  ;;  %v5807_v38 = vpop.f32.mrb[8].mxu1  ;;  %vm1657_vm10 = vcmp.gt.f32.partialorder %v7300_v40, 0.0 }
 0x4a6   : > { %v1680_v31 = vmul.f32 1.442695, %v1668_v28  ;;  %v1671_v4 = vmin.f32 %v7304_v63, 0.0  ;;  %v5808_v56 = vpop.f32.mrb[9].mxu1  ;;  %vm1659_vm11 = vcmp.gt.f32.partialorder %v7304_v63, 0.0 }
 0x4a7   : > { %v1682_v23 = vmul.f32 1.442695, %v1669_v7  ;;  %v1672_v2 = vmin.f32 %v7308_v41, 0.0  ;;  %v5809_v35 = vadd.f32 %v5808_v56, %v5807_v38  ;;  %v5810_v51 = vpop.f32.mrb[10].mxu1  ;;  %vm1660_vm12 = vcmp.gt.f32.partialorder %v7308_v41, 0.0 }
 0x4a8   : > { %6172 = vpow2.f32 %v1680_v31  ;;  %v1686_v53 = vmul.f32 1.442695, %v1671_v4  ;;  %v5811_v59 = vpop.f32.mrb[11].mxu1 }
 0x4a9   : > { %6174 = vpow2.f32 %v1682_v23  ;;  %v1688_v62 = vmul.f32 1.442695, %v1672_v2  ;;  %v5812_v10 = vadd.f32 %v5811_v59, %v5810_v51  ;;  %v1549_v14 = vpop.f32.mrb[12].mxu0  ;;  %v1593_v23 = vadd.f32 %v5809_v35, %v7292_v46 }
 0x4aa   : > { %6176 = vpow2.f32 %v1686_v53  ;;  %v7312_v61 = vadd.f32 %v1549_v14, %v1156_v50  ;;  %v1551_v18 = vpop.f32.mrb[13].mxu0 }
 0x4ab   : > { %6178 = vpow2.f32 %v1688_v62  ;;  %v7314_v44 = vadd.f32 %v1551_v18, %v1156_v50  ;;  %v1553_v54 = vpop.f32.mrb[14].mxu0 }
 0x4ac   : > { %v1674_v34 = vmin.f32 %v7312_v61, 0.0  ;;  %v7317_v25 = vadd.f32 %v1553_v54, %v1161_v49  ;;  %v1555_v24 = vpop.f32.mrb[15].mxu0  ;;  %v1596_v54 = vadd.f32 %v5812_v10, %v7297_v6  ;;  %vm1662_vm13 = vcmp.gt.f32.partialorder %v7312_v61, 0.0 }
 0x4ad   : > { %v1675_v60 = vmin.f32 %v7314_v44, 0.0  ;;  %v7320_v30 = vadd.f32 %v1555_v24, %v1161_v49  ;;  %v5813_v11 = vpop.f32.mrb[12].mxu1  ;;  %vm1663_vm14 = vcmp.gt.f32.partialorder %v7314_v44, 0.0 }
 0x4ae   : > { %v1692_v27 = vmul.f32 1.442695, %v1674_v34  ;;  %v1677_v42 = vmin.f32 %v7317_v25, 0.0  ;;  %v5814_v20 = vpop.f32.mrb[13].mxu1 }
 0x4af   : > { %v1694_v33 = vmul.f32 1.442695, %v1675_v60  ;;  %v1678_v17 = vmin.f32 %v7320_v30, 0.0  ;;  %v5815_v5 = vadd.f32 %v5814_v20, %v5813_v11  ;;  %v5816_v47 = vpop.f32.mrb[14].mxu1 }
 0x4b0   : > { %6180 = vpow2.f32 %v1692_v27  ;;  %v1698_v45 = vmul.f32 1.442695, %v1677_v42  ;;  %v5817_v9 = vpop.f32.mrb[15].mxu1 }
 0x4b1   : > { %6182 = vpow2.f32 %v1694_v33  ;;  %v1700_v39 = vmul.f32 1.442695, %v1678_v17  ;;  %v5818_v0 = vadd.f32 %v5817_v9, %v5816_v47  ;;  %v1601_v7 = vadd.f32 %v5815_v5, %v1156_v50 }
 0x4b2   : > { %v6173_v22 = vpop.eup %6172  ;;  %6184 = vpow2.f32 %v1698_v45 }
 0x4b3   : > { %v6175_v43 = vpop.eup %6174  ;;  %v5630_v28 = vadd.f32 -1.0, %v6173_v22  ;;  %6186 = vpow2.f32 %v1700_v39  ;;  %v1604_v59 = vadd.f32 %v5818_v0, %v1161_v49 }
 0x4b4   : > { %v6177_v37 = vpop.eup %6176  ;;  %v5631_v31 = vadd.f32 -1.0, %v6175_v43 }
 0x4b5   : > { %v6179_v38 = vpop.eup %6178  ;;  %v5633_v4 = vadd.f32 -1.0, %v6177_v37  ;;  %v5958_v56 = vpop.f32.mrb[16].mxu1  ;;  %v1716_v62 = vsel %vm1656_vm8, %v7295_v21, %v5630_v28  ;;  %vm1665_vm8 = vcmp.gt.f32.partialorder %v7317_v25, 0.0 }
 0x4b6   : > { %v5634_v2 = vadd.f32 -1.0, %v6179_v38  ;;  %v7328_v51 = vadd.f32 %v5958_v56, %v1601_v7  ;;  %v1641_v53 = vpop.f32.mrb[17].mxu1  ;;  %v1717_v21 = vsel %vm1657_vm10, %v7300_v40, %v5631_v31  ;;  %vm1666_vm10 = vcmp.gt.f32.partialorder %v7320_v30, 0.0  ;;  %v6117_v38 = vld [vmem:[%s9883_s5] sm:$0xff]  }
 0x4b7   : > { %v1719_v14 = vsel %vm1659_vm11, %v7304_v63, %v5633_v4  ;;  %v7332_v50 = vadd.f32 %v1641_v53, %v1593_v23  ;;  %v5959_v18 = vpop.f32.mrb[18].mxu1 }
 0x4b8   : > { %v1752_v34 = vpack.c.bf16 %v1719_v14, %v1716_v62  ;;  %v1676_v46 = vmin.f32 %v7328_v51, 0.0  ;;  %v1653_v35 = vadd.f32 %v5959_v18, %v1604_v59  ;;  %v1644_v24 = vpop.f32.mrb[19].mxu1  ;;  %v1720_v63 = vsel %vm1660_vm12, %v7308_v41, %v5634_v2  ;;  %v6118_v2 = vld [vmem:[%s9883_s5 + $0x8] sm:$0xff]  }
 0x4b9   : > { %v1670_v60 = vmin.f32 %v7332_v50, 0.0  ;;  %v1645_v11 = vadd.f32 %v1644_v24, %v1596_v54  ;;  %v1753_v6 = vpack.c.bf16 %v1720_v63, %v1717_v21  ;;  %vm1664_vm11 = vcmp.gt.f32.partialorder %v7328_v51, 0.0 }
 0x4ba   : > { %v6181_v49 = vpop.eup %6180  ;;  %v1696_v27 = vmul.f32 1.442695, %v1676_v46  ;;  %v1679_v42 = vmin.f32 %v1653_v35, 0.0  ;;  %vm1667_vm12 = vcmp.gt.f32.partialorder %v1653_v35, 0.0 }
 0x4bb   : > { %v6183_v10 = vpop.eup %6182  ;;  %v5636_v20 = vadd.f32 -1.0, %v6181_v49  ;;  %v1684_v33 = vmul.f32 1.442695, %v1670_v60  ;;  %v1673_v17 = vmin.f32 %v1645_v11, 0.0  ;;  %1803 = vmatprep.subr.bf16.mxu1 %v1753_v6 }
 0x4bc   : > { %v6185_v5 = vpop.eup %6184  ;;  %v5637_v47 = vadd.f32 -1.0, %v6183_v10  ;;  %6188 = vpow2.f32 %v1696_v27  ;;  %v1702_v45 = vmul.f32 1.442695, %v1679_v42  ;;  %1804 = vmatpush1.bf16.msra.mxu1 %v1752_v34  ;;  %v1770_v34 = vpop.permute.xlu0 %1769 }
 0x4bd   : > { %v6187_v9 = vpop.eup %6186  ;;  %v5639_v39 = vadd.f32 -1.0, %v6185_v5  ;;  %6190 = vpow2.f32 %v1684_v33  ;;  %v1690_v40 = vmul.f32 1.442695, %v1673_v17  ;;  %v1722_v0 = vsel %vm1662_vm13, %v7312_v61, %v5636_v20 }
 0x4be   : > { %v5640_v41 = vadd.f32 -1.0, %v6187_v9  ;;  %6192 = vpow2.f32 %v1702_v45  ;;  %v1723_v28 = vsel %vm1663_vm14, %v7314_v44, %v5637_v47  ;;  %vm1658_vm13 = vcmp.gt.f32.partialorder %v7332_v50, 0.0 }
 0x4bf   : > { %v1725_v22 = vsel %vm1665_vm8, %v7317_v25, %v5639_v39  ;;  %6194 = vpow2.f32 %v1690_v40  ;;  %vm1661_vm14 = vcmp.gt.f32.partialorder %v1645_v11, 0.0 }
 0x4c0   : > { %v1755_v43 = vpack.c.bf16 %v1725_v22, %v1722_v0  ;;  %v1726_v37 = vsel %vm1666_vm10, %v7320_v30, %v5640_v41  ;;  %v1780_v17 = vpop.permute.xlu0 %1779 }
 0x4c1   : > { %v1756_v7 = vpack.c.bf16 %v1726_v37, %v1723_v28 }
 0x4c3   : > { %1805 = vmatprep.subr.bf16.mxu1 %v1756_v7 }
 0x4c4   : > { %1806 = vmatpush1.bf16.msra.mxu1 %v1755_v43 }
 0x4c6   : > { %v6189_v31 = vpop.eup %6188 }
 0x4c7   : > { %v6191_v4 = vpop.eup %6190  ;;  %v5638_v61 = vadd.f32 -1.0, %v6189_v31  ;;  %5648 = vmatmul.mubr.msk.bf16.vlgmr.msra.gmra.mrb[20].mxu1 %vm1445_vm15, %v6117_v38 }
 0x4c8   : > { %v6193_v25 = vpop.eup %6192  ;;  %v5632_v56 = vadd.f32 -1.0, %v6191_v4  ;;  %1845 = vmatprep.mubr.bf16.mxu1 %v9903_v15 }
 0x4c9   : > { %v6195_v23 = vpop.eup %6194  ;;  %v5641_v44 = vadd.f32 -1.0, %v6193_v25  ;;  %v1724_v53 = vsel %vm1664_vm11, %v7328_v51, %v5638_v61 }
 0x4ca   : > { %v5635_v30 = vadd.f32 -1.0, %v6195_v23  ;;  %v1718_v62 = vsel %vm1658_vm13, %v7332_v50, %v5632_v56 }
 0x4cb   : > { %v1727_v59 = vsel %vm1667_vm12, %v1653_v35, %v5641_v44  ;;  %v7365_v35 = vpop.permute.xlu1 %1774 }
 0x4cc   : > { %v1721_v14 = vsel %vm1661_vm14, %v1645_v11, %v5635_v30  ;;  %v1757_v18 = vpack.c.bf16 %v1727_v59, %v1724_v53 }
 0x4cd   : > { %v1754_v54 = vpack.c.bf16 %v1721_v14, %v1718_v62 }
 0x4cf   : > { %5649 = vmatmul.mubr.msk.bf16.gmra.mrb[24].mxu1 %vm1445_vm15, %v6118_v2  ;;  %5960 = vmatprep.subr.bf16.mxu1 %v1754_v54  ;;  %v1785_v39 = vpop.permute.xlu1 %1784 }
 0x4d0   : > { %5961 = vmatpush3.bf16.msra.mxu1 %v1754_v54  ;;  %5964 = vmatprep.mubr.msk.bf16.mxu1 %vm1445_vm15, %v6117_v38 }
 0x4d1   : > { %5962 = vmatprep.subr.bf16.mxu1 %v1757_v18 }
 0x4d4   : > { %5963 = vmatpush3.bf16.msra.mxu1 %v1757_v18 }
 0x4d7   : > { %5965 = vmatmul.mubr.msk.bf16.vlgmr.msra.gmra.mrb[28].mxu1 %vm1445_vm15, %v6118_v2 }
 0x59a   : > { %v1837_v46 = vpop.f32.mrb[20].mxu1 }
 0x59b   : > { %v1838_v24 = vadd.f32 %v1837_v46, %v1770_v34  ;;  %v1839_v51 = vpop.f32.mrb[21].mxu1 }
 0x59c   : > { %v1840_v50 = vadd.f32 %v1839_v51, %v1770_v34  ;;  %v1841_v60 = vpop.f32.mrb[22].mxu1 }
 0x59d   : > { %v1917_v11 = vmin.f32 %v1838_v24, 0.0  ;;  %v1842_v21 = vadd.f32 %v1841_v60, %v7365_v35  ;;  %v1843_v63 = vpop.f32.mrb[23].mxu1  ;;  %vm1905_vm8 = vcmp.gt.f32.partialorder %v1838_v24, 0.0 }
 0x59e   : > { %v1918_v49 = vmin.f32 %v1840_v50, 0.0  ;;  %v1844_v27 = vadd.f32 %v1843_v63, %v7365_v35  ;;  %vm1906_vm10 = vcmp.gt.f32.partialorder %v1840_v50, 0.0 }
 0x59f   : > { %v1929_v42 = vmul.f32 1.442695, %v1917_v11  ;;  %v1920_v6 = vmin.f32 %v1842_v21, 0.0  ;;  %vm1908_vm11 = vcmp.gt.f32.partialorder %v1842_v21, 0.0 }
 0x5a0   : > { %v1931_v10 = vmul.f32 1.442695, %v1918_v49  ;;  %v1921_v20 = vmin.f32 %v1844_v27, 0.0  ;;  %vm1909_vm12 = vcmp.gt.f32.partialorder %v1844_v27, 0.0 }
 0x5a1   : > { %6196 = vpow2.f32 %v1929_v42  ;;  %v1935_v33 = vmul.f32 1.442695, %v1920_v6 }
 0x5a2   : > { %6198 = vpow2.f32 %v1931_v10  ;;  %v1937_v5 = vmul.f32 1.442695, %v1921_v20  ;;  %v1847_v47 = vpop.f32.mrb[24].mxu1 }
 0x5a3   : > { %6200 = vpow2.f32 %v1935_v33  ;;  %v7369_v45 = vadd.f32 %v1847_v47, %v1780_v17  ;;  %v1849_v9 = vpop.f32.mrb[25].mxu1 }
 0x5a4   : > { %6202 = vpow2.f32 %v1937_v5  ;;  %v7371_v40 = vadd.f32 %v1849_v9, %v1780_v17  ;;  %v1851_v41 = vpop.f32.mrb[26].mxu1 }
 0x5a5   : > { %v1923_v0 = vmin.f32 %v7369_v45, 0.0  ;;  %v7374_v22 = vadd.f32 %v1851_v41, %v1785_v39  ;;  %v1853_v43 = vpop.f32.mrb[27].mxu1  ;;  %vm1911_vm13 = vcmp.gt.f32.partialorder %v7369_v45, 0.0 }
 0x5a6   : > { %v1924_v28 = vmin.f32 %v7371_v40, 0.0  ;;  %v7377_v37 = vadd.f32 %v1853_v43, %v1785_v39  ;;  %vm1912_vm14 = vcmp.gt.f32.partialorder %v7371_v40, 0.0 }
 0x5a7   : > { %v1941_v7 = vmul.f32 1.442695, %v1923_v0  ;;  %v1926_v38 = vmin.f32 %v7374_v22, 0.0 }
 0x5a8   : > { %v1943_v31 = vmul.f32 1.442695, %v1924_v28  ;;  %v1927_v4 = vmin.f32 %v7377_v37, 0.0 }
 0x5a9   : > { %6204 = vpow2.f32 %v1941_v7  ;;  %v1947_v61 = vmul.f32 1.442695, %v1926_v38 }
 0x5aa   : > { %6206 = vpow2.f32 %v1943_v31  ;;  %v1949_v25 = vmul.f32 1.442695, %v1927_v4  ;;  %v5966_v56 = vpop.f32.mrb[28].mxu1 }
 0x5ab   : > { %v6197_v23 = vpop.eup %6196  ;;  %6208 = vpow2.f32 %v1947_v61  ;;  %v7381_v44 = vadd.f32 %v5966_v56, %v1780_v17  ;;  %v1890_v30 = vpop.f32.mrb[29].mxu1 }
 0x5ac   : > { %v6199_v2 = vpop.eup %6198  ;;  %v5652_v53 = vadd.f32 -1.0, %v6197_v23  ;;  %6210 = vpow2.f32 %v1949_v25  ;;  %v7383_v59 = vadd.f32 %v1890_v30, %v1770_v34  ;;  %v5967_v62 = vpop.f32.mrb[30].mxu1 }
 0x5ad   : > { %v6201_v14 = vpop.eup %6200  ;;  %v5653_v18 = vadd.f32 -1.0, %v6199_v2  ;;  %v1925_v54 = vmin.f32 %v7381_v44, 0.0  ;;  %v7386_v46 = vadd.f32 %v5967_v62, %v1785_v39  ;;  %v1893_v51 = vpop.f32.mrb[31].mxu1 }
 0x5ae   : > { %v6203_v60 = vpop.eup %6202  ;;  %v1965_v11 = vsel %vm1905_vm8, %v1838_v24, %v5652_v53  ;;  %v5655_v63 = vadd.f32 -1.0, %v6201_v14  ;;  %v1919_v49 = vmin.f32 %v7383_v59, 0.0  ;;  %vm1914_vm8 = vcmp.gt.f32.partialorder %v7374_v22, 0.0 }
 0x5af   : > { %v1966_v42 = vsel %vm1906_vm10, %v1840_v50, %v5653_v18  ;;  %v5656_v6 = vadd.f32 -1.0, %v6203_v60  ;;  %v1945_v34 = vmul.f32 1.442695, %v1925_v54  ;;  %v1977_v10 = vmul.f32 %v1965_v11, %v6686_v8 }
 0x5b0   : > { %v1968_v20 = vsel %vm1908_vm11, %v1842_v21, %v5655_v63  ;;  %v1933_v33 = vmul.f32 1.442695, %v1919_v49  ;;  %v1928_v47 = vmin.f32 %v7386_v46, 0.0  ;;  %v1978_v24 = vmul.f32 %v1966_v42, %v6704_v26 }
 0x5b1   : > { %v1980_v17 = vmul.f32 %v1968_v20, %v6686_v8  ;;  %v1969_v5 = vsel %vm1909_vm12, %v1844_v27, %v5656_v6  ;;  %6212 = vpow2.f32 %v1945_v34  ;;  %v1894_v50 = vadd.f32 %v1893_v51, %v7365_v35 }
 0x5b2   : > { %v1981_v9 = vmul.f32 %v1969_v5, %v6704_v26  ;;  %6214 = vpow2.f32 %v1933_v33  ;;  %v1951_v0 = vmul.f32 1.442695, %v1928_v47  ;;  %vm1915_vm10 = vcmp.gt.f32.partialorder %v7377_v37, 0.0 }
 0x5b3   : > { %v6205_v39 = vpop.eup %6204  ;;  %v2026_v41 = vpack.c.bf16 %v1980_v17, %v1977_v10  ;;  %v1922_v7 = vmin.f32 %v1894_v50, 0.0  ;;  %vm1913_vm11 = vcmp.gt.f32.partialorder %v7381_v44, 0.0  ;;  %vm1916_vm12 = vcmp.gt.f32.partialorder %v7386_v46, 0.0 }
 0x5b4   : > { %v6207_v43 = vpop.eup %6206  ;;  %v7395_v21 = vpack.c.bf16 %v1981_v9, %v1978_v24  ;;  %v5658_v28 = vadd.f32 -1.0, %v6205_v39  ;;  %6216 = vpow2.f32 %v1951_v0 }
 0x5b5   : > { %v6209_v38 = vpop.eup %6208  ;;  %v5659_v27 = vadd.f32 -1.0, %v6207_v43  ;;  %2300 = vrot.lane.b32.xlu1 %v2026_v41, %s6332_s27  ;;  %2067 = vrot.lane.b32.xlu0 %v2026_v41, %s6324_s19  ;;  %v1939_v61 = vmul.f32 1.442695, %v1922_v7  ;;  %v7499_v7 = vpop.permute.xlu0 %2213 }
 0x5b6   : > { %v6211_v31 = vpop.eup %6210  ;;  %v1971_v35 = vsel %vm1911_vm13, %v7369_v45, %v5658_v28  ;;  %v5661_v4 = vadd.f32 -1.0, %v6209_v38  ;;  %vm1907_vm13 = vcmp.gt.f32.partialorder %v7383_v59, 0.0 }
 0x5b7   : > { %v1972_v25 = vsel %vm1912_vm14, %v7371_v40, %v5659_v27  ;;  %v5662_v56 = vadd.f32 -1.0, %v6211_v31  ;;  %6218 = vpow2.f32 %v1939_v61  ;;  %v1983_v30 = vmul.f32 %v1971_v35, %v6686_v8 }
 0x5b8   : > { %v1974_v23 = vsel %vm1914_vm8, %v7374_v22, %v5661_v4  ;;  %v1984_v40 = vmul.f32 %v1972_v25, %v6704_v26  ;;  %vm1910_vm14 = vcmp.gt.f32.partialorder %v1894_v50, 0.0 }
 0x5b9   : > { %v1986_v2 = vmul.f32 %v1974_v23, %v6686_v8  ;;  %v1975_v45 = vsel %vm1915_vm10, %v7377_v37, %v5662_v56  ;;  %2221 = vrot.lane.b32.xlu1 %v2026_v41, %s6331_s26  ;;  %2089 = vrot.lane.b32.xlu0 %v2026_v41, %s6325_s20  ;;  %v7507_v27 = vpop.permute.xlu0 %2235 }
 0x5ba   : > { %v1987_v53 = vmul.f32 %v1975_v45, %v6704_v26 }
 0x5bb   : > { %v6213_v62 = vpop.eup %6212  ;;  %v2030_v14 = vpack.c.bf16 %v1986_v2, %v1983_v30 }
 0x5bc   : > { %v6215_v22 = vpop.eup %6214  ;;  %v2031_v18 = vpack.c.bf16 %v1987_v53, %v1984_v40  ;;  %v5660_v54 = vadd.f32 -1.0, %v6213_v62 }
 0x5bd   : > { %2069 = vrot.lane.b32.xlu1 %v7395_v21, %s6324_s19  ;;  %2111 = vrot.lane.b32.xlu0 %v2026_v41, %s6326_s21  ;;  %v5654_v37 = vadd.f32 -1.0, %v6215_v22 }
 0x5be   : > { %v6217_v51 = vpop.eup %6216  ;;  %v1973_v60 = vsel %vm1913_vm11, %v7381_v44, %v5660_v54 }
 0x5bf   : > { %v5663_v11 = vadd.f32 -1.0, %v6217_v51  ;;  %v1985_v42 = vmul.f32 %v1973_v60, %v6666_v48  ;;  %v1967_v6 = vsel %vm1907_vm13, %v7383_v59, %v5654_v37  ;;  %v7444_v59 = vpop.permute.xlu1 %2065 }
 0x5c0   : > { %v1979_v33 = vmul.f32 %v1967_v6, %v6666_v48 }
 0x5c1   : > { %2091 = vrot.lane.b32.xlu1 %v7395_v21, %s6325_s20  ;;  %2131 = vrot.lane.b32.xlu0 %v2026_v41, %s6327_s22  ;;  %v6219_v63 = vpop.eup %6218  ;;  %v1976_v49 = vsel %vm1916_vm12, %v7386_v46, %v5663_v11 }
 0x5c2   : > { %v1988_v34 = vmul.f32 %v1976_v49, %v6666_v48  ;;  %v5657_v44 = vadd.f32 -1.0, %v6219_v63 }
 0x5c3   : > { %v7452_v5 = vpop.permute.xlu1 %2073 }
 0x5c4   : > { %v2032_v10 = vpack.c.bf16 %v1988_v34, %v1985_v42  ;;  %v1970_v20 = vsel %vm1910_vm14, %v1894_v50, %v5657_v44 }
 0x5c5   : > { %2113 = vrot.lane.b32.xlu1 %v7395_v21, %s6326_s21  ;;  %2155 = vrot.lane.b32.xlu0 %v2026_v41, %s6328_s23  ;;  %v1982_v17 = vmul.f32 %v1970_v20, %v6666_v48 }
 0x5c7   : > { %v7432_v46 = vpack.c.bf16 %v1982_v17, %v1979_v33  ;;  %v2088_v47 = vpop.permute.xlu1 %2087 }
 0x5c9   : > { %2133 = vrot.lane.b32.xlu1 %v7395_v21, %s6327_s22  ;;  %2177 = vrot.lane.b32.xlu0 %v2026_v41, %s6329_s24 }
 0x5cb   : > { %v7460_v24 = vpop.permute.xlu1 %2095 }
 0x5cd   : > { %2157 = vrot.lane.b32.xlu1 %v7395_v21, %s6328_s23  ;;  %2199 = vrot.lane.b32.xlu0 %v2026_v41, %s6330_s25 }
 0x5cf   : > { %v7464_v9 = vpop.permute.xlu1 %2109 }
 0x5d1   : > { %2179 = vrot.lane.b32.xlu1 %v7395_v21, %s6329_s24  ;;  %2302 = vrot.lane.b32.xlu0 %v7395_v21, %s6332_s27 }
 0x5d3   : > { %v7470_v50 = vpop.permute.xlu1 %2117 }
 0x5d5   : > { %2201 = vrot.lane.b32.xlu1 %v7395_v21, %s6330_s25  ;;  %2223 = vrot.lane.b32.xlu0 %v7395_v21, %s6331_s26 }
 0x5d7   : > { %v7474_v39 = vpop.permute.xlu1 %2161 }
 0x5d9   : > { %2137 = vrot.lane.b32.xlu1 %v2030_v14, %s6327_s22  ;;  %2075 = vrot.lane.b32.xlu0 %v2030_v14, %s6324_s19 }
 0x5db   : > { %v7480_v41 = vpop.permute.xlu1 %2169 }
 0x5dd   : > { %2077 = vrot.lane.b32.xlu1 %v2031_v18, %s6324_s19  ;;  %2097 = vrot.lane.b32.xlu0 %v2030_v14, %s6325_s20 }
 0x5df   : > { %v7484_v0 = vpop.permute.xlu1 %2183 }
 0x5e1   : > { %2099 = vrot.lane.b32.xlu1 %v2031_v18, %s6325_s20  ;;  %2119 = vrot.lane.b32.xlu0 %v2030_v14, %s6326_s21 }
 0x5e3   : > { %v7490_v43 = vpop.permute.xlu1 %2191 }
 0x5e5   : > { %2121 = vrot.lane.b32.xlu1 %v2031_v18, %s6326_s21  ;;  %2163 = vrot.lane.b32.xlu0 %v2030_v14, %s6328_s23 }
 0x5e7   : > { %v7493_v21 = vpop.permute.xlu1 %2205 }
 0x5e9   : > { %2165 = vrot.lane.b32.xlu1 %v2031_v18, %s6328_s23  ;;  %2185 = vrot.lane.b32.xlu0 %v2030_v14, %s6329_s24 }
 0x5eb   : > { %v2299_v28 = vpop.permute.xlu1 %2298 }
 0x5ed   : > { %2187 = vrot.lane.b32.xlu1 %v2031_v18, %s6329_s24  ;;  %2207 = vrot.lane.b32.xlu0 %v2030_v14, %s6330_s25 }
 0x5ef   : > { %v7501_v38 = vpop.permute.xlu1 %2306 }
 0x5f1   : > { %2209 = vrot.lane.b32.xlu1 %v2031_v18, %s6330_s25  ;;  %2308 = vrot.lane.b32.xlu0 %v2030_v14, %s6332_s27 }
 0x5f3   : > { %v7509_v31 = vpop.permute.xlu1 %2227 }
 0x5f5   : > { %2310 = vrot.lane.b32.xlu1 %v2031_v18, %s6332_s27  ;;  %2229 = vrot.lane.b32.xlu0 %v2030_v14, %s6331_s26 }
 0x5f9   : > { %2231 = vrot.lane.b32.xlu1 %v2031_v18, %s6331_s26  ;;  %2139 = vrot.lane.b32.xlu0 %v2031_v18, %s6327_s22 }
 0x5fd   : > { %2141 = vrot.lane.b32.xlu1 %v2032_v10, %s6327_s22  ;;  %2079 = vrot.lane.b32.xlu0 %v2032_v10, %s6324_s19 }
 0x601   : > { %2312 = vrot.lane.b32.xlu1 %v2032_v10, %s6332_s27  ;;  %2101 = vrot.lane.b32.xlu0 %v2032_v10, %s6325_s20 }
 0x605   : > { %2225 = vrot.lane.b32.xlu1 %v7432_v46, %s6331_s26  ;;  %2123 = vrot.lane.b32.xlu0 %v2032_v10, %s6326_s21 }
 0x609   : > { %2167 = vrot.lane.b32.xlu0 %v2032_v10, %s6328_s23 }
 0x60d   : > { %2189 = vrot.lane.b32.xlu0 %v2032_v10, %s6329_s24 }
 0x611   : > { %2211 = vrot.lane.b32.xlu0 %v2032_v10, %s6330_s25 }
 0x615   : > { %2233 = vrot.lane.b32.xlu0 %v2032_v10, %s6331_s26 }
 0x619   : > { %2071 = vrot.lane.b32.xlu0 %v7432_v46, %s6324_s19 }
 0x61d   : > { %2093 = vrot.lane.b32.xlu0 %v7432_v46, %s6325_s20 }
 0x621   : > { %2115 = vrot.lane.b32.xlu0 %v7432_v46, %s6326_s21 }
 0x625   : > { %2135 = vrot.lane.b32.xlu0 %v7432_v46, %s6327_s22 }
 0x627   : > { %v2068_v35 = vpop.permute.xlu0 %2067  ;;  %v2301_v4 = vpop.permute.xlu1 %2300 }
 0x628   : > { %v2081_v51 = vsel %vm434_vm0, %v7444_v59, %v2068_v35  ;;  %v2442_v42 = vsel %vm637_vm7, %v2299_v28, %v2301_v4 }
 0x629   : > { %2159 = vrot.lane.b32.xlu0 %v7432_v46, %s6328_s23 }
 0x62b   : > { %v2090_v61 = vpop.permute.xlu0 %2089  ;;  %v7515_v25 = vpop.permute.xlu1 %2221 }
 0x62c   : > { %v2103_v56 = vsel %vm446_vm1, %v2088_v47, %v2090_v61 }
 0x62d   : > { %2181 = vrot.lane.b32.xlu0 %v7432_v46, %s6329_s24  ;;  %2330 = vrot.lane.b32.xlu1 %v2103_v56, %s6332_s27 }
 0x62f   : > { %v2112_v23 = vpop.permute.xlu0 %2111  ;;  %v7521_v30 = vpop.permute.xlu1 %2069 }
 0x630   : > { %v2125_v63 = vsel %vm458_vm2, %v7464_v9, %v2112_v23  ;;  %v2082_v44 = vsel %vm434_vm0, %v2068_v35, %v7521_v30 }
 0x631   : > { %2203 = vrot.lane.b32.xlu0 %v7432_v46, %s6330_s25 }
 0x633   : > { %v2132_v2 = vpop.permute.xlu0 %2131  ;;  %v7525_v45 = vpop.permute.xlu1 %2091 }
 0x634   : > { %v2104_v40 = vsel %vm446_vm1, %v2090_v61, %v7525_v45 }
 0x635   : > { %2304 = vrot.lane.b32.xlu0 %v7432_v46, %s6332_s27  ;;  %2332 = vrot.lane.b32.xlu1 %v2104_v40, %s6332_s27 }
 0x637   : > { %v2156_v53 = vpop.permute.xlu0 %2155  ;;  %v7532_v62 = vpop.permute.xlu1 %2113 }
 0x638   : > { %v2126_v33 = vsel %vm458_vm2, %v2112_v23, %v7532_v62 }
 0x639   : > { %2362 = vrot.lane.b32.xlu0 %v2132_v2, %s6332_s27 }
 0x63b   : > { %v7535_v14 = vpop.permute.xlu0 %2177  ;;  %v7537_v22 = vpop.permute.xlu1 %2133 }
 0x63c   : > { %v2143_v59 = vsel %vm468_vm3, %v2132_v2, %v7537_v22 }
 0x63d   : > { %2378 = vrot.lane.b32.xlu0 %v2156_v53, %s6332_s27 }
 0x63f   : > { %v7540_v18 = vpop.permute.xlu0 %2199  ;;  %v7542_v54 = vpop.permute.xlu1 %2157 }
 0x640   : > { %v2171_v37 = vsel %vm483_vm4, %v2156_v53, %v7542_v54 }
 0x641   : > { %2314 = vrot.lane.b32.xlu0 %v2081_v51, %s6332_s27  ;;  %2380 = vrot.lane.b32.xlu1 %v2171_v37, %s6332_s27 }
 0x643   : > { %v7550_v60 = vpop.permute.xlu0 %2302  ;;  %v7552_v11 = vpop.permute.xlu1 %2179 }
 0x644   : > { %v2443_v49 = vsel %vm637_vm7, %v2301_v4, %v7550_v60 }
 0x645   : > { %2346 = vrot.lane.b32.xlu0 %v2125_v63, %s6332_s27  ;;  %2556 = vmatprep.subr.bf16.mxu1 %v2443_v49 }
 0x646   : > { %2557 = vmatpush1.bf16.msra.mxu1 %v2442_v42 }
 0x647   : > { %v7560_v6 = vpop.permute.xlu0 %2223  ;;  %v7562_v34 = vpop.permute.xlu1 %2201 }
 0x649   : > { %2316 = vrot.lane.b32.xlu0 %v2082_v44, %s6332_s27 }
 0x64b   : > { %v2076_v10 = vpop.permute.xlu0 %2075  ;;  %v2138_v20 = vpop.permute.xlu1 %2137 }
 0x64c   : > { %2370 = vrot.lane.b32.xlu1 %v2138_v20, %s6332_s27  ;;  %v2084_v28 = vsel %vm434_vm0, %v7452_v5, %v2076_v10 }
 0x64d   : > { %2348 = vrot.lane.b32.xlu0 %v2126_v33, %s6332_s27 }
 0x64f   : > { %v2098_v17 = vpop.permute.xlu0 %2097  ;;  %v2078_v46 = vpop.permute.xlu1 %2077 }
 0x650   : > { %v2106_v2 = vsel %vm446_vm1, %v7460_v24, %v2098_v17  ;;  %v2085_v63 = vsel %vm434_vm0, %v2076_v10, %v2078_v46 }
 0x651   : > { %2364 = vrot.lane.b32.xlu0 %v2143_v59, %s6332_s27 }
 0x653   : > { %v2120_v47 = vpop.permute.xlu0 %2119  ;;  %v2100_v9 = vpop.permute.xlu1 %2099 }
 0x654   : > { %v2107_v61 = vsel %vm446_vm1, %v2098_v17, %v2100_v9  ;;  %v2128_v53 = vsel %vm458_vm2, %v7470_v50, %v2120_v47 }
 0x655   : > { %2322 = vrot.lane.b32.xlu0 %v2084_v28, %s6332_s27 }
 0x657   : > { %v2164_v35 = vpop.permute.xlu0 %2163  ;;  %v2122_v4 = vpop.permute.xlu1 %2121 }
 0x658   : > { %2386 = vrot.lane.b32.xlu1 %v2164_v35, %s6332_s27  ;;  %v2129_v42 = vsel %vm458_vm2, %v2120_v47, %v2122_v4 }
 0x659   : > { %2340 = vrot.lane.b32.xlu0 %v2107_v61, %s6332_s27 }
 0x65b   : > { %v7580_v56 = vpop.permute.xlu0 %2185  ;;  %v2166_v23 = vpop.permute.xlu1 %2165 }
 0x65c   : > { %2338 = vrot.lane.b32.xlu1 %v2106_v2, %s6332_s27  ;;  %v2174_v47 = vsel %vm483_vm4, %v2164_v35, %v2166_v23 }
 0x65f   : > { %v7585_v40 = vpop.permute.xlu0 %2207  ;;  %v7587_v5 = vpop.permute.xlu1 %2187 }
 0x660   : > { %2354 = vrot.lane.b32.xlu1 %v2128_v53, %s6332_s27 }
 0x663   : > { %v2309_v51 = vpop.permute.xlu0 %2308  ;;  %v7592_v37 = vpop.permute.xlu1 %2209 }
 0x664   : > { %2324 = vrot.lane.b32.xlu1 %v2085_v63, %s6332_s27  ;;  %v2445_v44 = vsel %vm637_vm7, %v7501_v38, %v2309_v51 }
 0x667   : > { %v7596_v49 = vpop.permute.xlu0 %2229  ;;  %v7598_v24 = vpop.permute.xlu1 %2310 }
 0x668   : > { %2356 = vrot.lane.b32.xlu1 %v2129_v42, %s6332_s27  ;;  %v2446_v50 = vsel %vm637_vm7, %v2309_v51, %v7598_v24 }
 0x669   : > { %2558 = vmatprep.subr.bf16.mxu1 %v2446_v50 }
 0x66a   : > { %2559 = vmatpush1.bf16.msra.mxu1 %v2445_v44 }
 0x66b   : > { %v2140_v33 = vpop.permute.xlu0 %2139  ;;  %v7608_v17 = vpop.permute.xlu1 %2231 }
 0x66c   : > { %v2145_v10 = vsel %vm468_vm3, %v2138_v20, %v2140_v33 }
 0x66d   : > { %2372 = vrot.lane.b32.xlu0 %v2145_v10, %s6332_s27 }
 0x66f   : > { %v2080_v59 = vpop.permute.xlu0 %2079  ;;  %v2142_v61 = vpop.permute.xlu1 %2141 }
 0x670   : > { %v2086_v20 = vsel %vm434_vm0, %v2078_v46, %v2080_v59 }
 0x671   : > { %2388 = vrot.lane.b32.xlu0 %v2174_v47, %s6332_s27 }
 0x673   : > { %v7612_v28 = vpop.permute.xlu0 %2101 }
 0x674   : > { %v2108_v2 = vsel %vm446_vm1, %v2100_v9, %v7612_v28 }
 0x675   : > { %2342 = vrot.lane.b32.xlu1 %v2108_v2, %s6332_s27  ;;  %2376 = vrot.lane.b32.xlu0 %v2142_v61, %s6332_s27  ;;  %v2146_v2 = vsel %vm468_vm3, %v2140_v33, %v2142_v61  ;;  %v2193_v61 = vsel %vm495_vm5, %v7535_v14, %v7552_v11 }
 0x677   : > { %v7618_v38 = vpop.permute.xlu0 %2123 }
 0x678   : > { %v2130_v35 = vsel %vm458_vm2, %v2122_v4, %v7618_v38 }
 0x679   : > { %2326 = vrot.lane.b32.xlu0 %v2086_v20, %s6332_s27 }
 0x67b   : > { %v2168_v53 = vpop.permute.xlu0 %2167 }
 0x67c   : > { %v2176_v4 = vsel %vm483_vm4, %v2168_v53, %v7480_v41  ;;  %v2175_v20 = vsel %vm483_vm4, %v2166_v23, %v2168_v53 }
 0x67d   : > { %2358 = vrot.lane.b32.xlu0 %v2130_v35, %s6332_s27 }
 0x67f   : > { %v2190_v51 = vpop.permute.xlu0 %2189 }
 0x680   : > { %v2198_v33 = vsel %vm495_vm5, %v2190_v51, %v7490_v43 }
 0x683   : > { %v7625_v63 = vpop.permute.xlu0 %2211 }
 0x687   : > { %v7627_v9 = vpop.permute.xlu0 %2233 }
 0x68b   : > { %v2072_v42 = vpop.permute.xlu0 %2071 }
 0x68c   : > { %2320 = vrot.lane.b32.xlu0 %v2072_v42, %s6332_s27 }
 0x68f   : > { %v2094_v50 = vpop.permute.xlu0 %2093 }
 0x690   : > { %v2105_v46 = vsel %vm446_vm1, %v7525_v45, %v2094_v50  ;;  %v2196_v45 = vsel %vm495_vm5, %v7580_v56, %v7587_v5 }
 0x691   : > { %2334 = vrot.lane.b32.xlu0 %v2105_v46, %s6332_s27  ;;  %v2083_v46 = vsel %vm434_vm0, %v7521_v30, %v2072_v42  ;;  %v2197_v30 = vsel %vm495_vm5, %v7587_v5, %v2190_v51  ;;  %v2215_v51 = vsel %vm9901_vm6, %v7540_v18, %v7562_v34 }
 0x693   : > { %v2116_v44 = vpop.permute.xlu0 %2115 }
 0x695   : > { %2392 = vrot.lane.b32.xlu0 %v2176_v4, %s6332_s27  ;;  %v7732_v4 = vpop.permute.xlu1 %2312 }
 0x697   : > { %v2136_v10 = vpop.permute.xlu0 %2135 }
 0x698   : > { %2368 = vrot.lane.b32.xlu1 %v2136_v10, %s6332_s27 }
 0x699   : > { %2394 = vrot.lane.b32.xlu0 %v7535_v14, %s6332_s27 }
 0x69b   : > { %v2160_v47 = vpop.permute.xlu0 %2159 }
 0x69c   : > { %2374 = vrot.lane.b32.xlu1 %v2146_v2, %s6332_s27  ;;  %v2172_v53 = vsel %vm483_vm4, %v7542_v54, %v2160_v47  ;;  %v2127_v54 = vsel %vm458_vm2, %v7532_v62, %v2116_v44  ;;  %v2144_v62 = vsel %vm468_vm3, %v7537_v22, %v2136_v10  ;;  %v2237_v22 = vsel %vm9900_vm9, %v7515_v25, %v7560_v6  ;;  %v5666_v10 = vld [vmem:[%s9885_s7 + $0x50] sm:$0xff] }
 0x69d   : > { %2404 = vrot.lane.b32.xlu0 %v2196_v45, %s6332_s27 }
 0x69f   : > { %v2182_v41 = vpop.permute.xlu0 %2181 }
 0x6a0   : > { %2390 = vrot.lane.b32.xlu1 %v2175_v20, %s6332_s27  ;;  %v2194_v14 = vsel %vm495_vm5, %v7552_v11, %v2182_v41 }
 0x6a1   : > { %2336 = vrot.lane.b32.xlu0 %v2094_v50, %s6332_s27 }
 0x6a3   : > { %v2204_v35 = vpop.permute.xlu0 %2203 }
 0x6a4   : > { %2318 = vrot.lane.b32.xlu1 %v2083_v46, %s6332_s27  ;;  %v2216_v11 = vsel %vm9901_vm6, %v7562_v34, %v2204_v35  ;;  %v2173_v34 = vsel %vm483_vm4, %v2160_v47, %v7474_v39  ;;  %v2195_v39 = vsel %vm495_vm5, %v2182_v41, %v7484_v0  ;;  %v2226_v0 = vpop.permute.xlu1 %2225 }
 0x6a5   : > { %2408 = vrot.lane.b32.xlu0 %v2198_v33, %s6332_s27 }
 0x6a7   : > { %v7657_v23 = vpop.permute.xlu0 %2304 }
 0x6a8   : > { %2396 = vrot.lane.b32.xlu1 %v2193_v61, %s6332_s27  ;;  %v7752_v2 = vpop.permute.xlu1 %2330  ;;  %v5665_v61 = vld [vmem:[%s9885_s7 + $0x48] sm:$0xff] }
 0x6a9   : > { %2382 = vrot.lane.b32.xlu0 %v2172_v53, %s6332_s27 }
 0x6ab   : > { %v7666_v43 = vpop.permute.xlu0 %2362 }
 0x6ac   : > { %2328 = vrot.lane.b32.xlu1 %v2080_v59, %s6332_s27  ;;  %v2218_v59 = vsel %vm9901_vm6, %v7585_v40, %v7592_v37 }
 0x6ad   : > { %2410 = vrot.lane.b32.xlu0 %v7540_v18, %s6332_s27 }
 0x6af   : > { %v7676_v42 = vpop.permute.xlu0 %2378 }
 0x6b0   : > { %2406 = vrot.lane.b32.xlu1 %v2197_v30, %s6332_s27  ;;  %v5667_v30 = vld [vmem:[%s9885_s7 + $0x58] sm:$0xff] }
 0x6b1   : > { %2398 = vrot.lane.b32.xlu0 %v2194_v14, %s6332_s27 }
 0x6b3   : > { %v7688_v5 = vpop.permute.xlu0 %2314 }
 0x6b4   : > { %2350 = vrot.lane.b32.xlu1 %v2127_v54, %s6332_s27 }
 0x6b5   : > { %2420 = vrot.lane.b32.xlu0 %v2218_v59, %s6332_s27 }
 0x6b7   : > { %v7697_v50 = vpop.permute.xlu0 %2346 }
 0x6b8   : > { %2402 = vrot.lane.b32.xlu1 %v7580_v56, %s6332_s27  ;;  %v2220_v56 = vsel %vm9901_vm6, %v7625_v63, %v7499_v7  ;;  %v2219_v7 = vsel %vm9901_vm6, %v7592_v37, %v7625_v63  ;;  %v5664_v63 = vld [vmem:[%s9885_s7 + $0x40] sm:$0xff] }
 0x6b9   : > { %2414 = vrot.lane.b32.xlu0 %v2216_v11, %s6332_s27 }
 0x6bb   : > { %v7710_v18 = vpop.permute.xlu0 %2316 }
 0x6bc   : > { %2366 = vrot.lane.b32.xlu1 %v2144_v62, %s6332_s27 }
 0x6bd   : > { %2352 = vrot.lane.b32.xlu0 %v2116_v44, %s6332_s27  ;;  %v2240_v44 = vsel %vm9900_vm9, %v7596_v49, %v7608_v17 }
 0x6c0   : > { %2412 = vrot.lane.b32.xlu1 %v2215_v51, %s6332_s27 }
 0x6c1   : > { %2424 = vrot.lane.b32.xlu0 %v2220_v56, %s6332_s27 }
 0x6c4   : > { %2344 = vrot.lane.b32.xlu1 %v7612_v28, %s6332_s27  ;;  %v7720_v28 = vpop.permute.xlu0 %2348 }
 0x6c5   : > { %2428 = vrot.lane.b32.xlu0 %v2237_v22, %s6332_s27 }
 0x6c8   : > { %2384 = vrot.lane.b32.xlu1 %v2173_v34, %s6332_s27  ;;  %v7737_v37 = vpop.permute.xlu0 %2364 }
 0x6c9   : > { %2426 = vrot.lane.b32.xlu0 %v7515_v25, %s6332_s27  ;;  %v6121_v25 = vld [vmem:[%s9884_s6 + $0x4] ss:$12 sps:$4 sm:$0xff]  }
 0x6ca   : > { %2588 = vmatprep.mubr.bf16.mxu1 %v6121_v25  ;;  %2694 = vmatprep.mubr.bf16.mxu0 %v6121_v25 }
 0x6cc   : > { %2422 = vrot.lane.b32.xlu1 %v2219_v7, %s6332_s27  ;;  %v7749_v47 = vpop.permute.xlu0 %2322 }
 0x6cd   : > { %2436 = vrot.lane.b32.xlu0 %v2240_v44, %s6332_s27 }
 0x6d0   : > { %2400 = vrot.lane.b32.xlu1 %v2195_v39, %s6332_s27  ;;  %v7760_v45 = vpop.permute.xlu0 %2340 }
 0x6d1   : > { %2434 = vrot.lane.b32.xlu0 %v7596_v49, %s6332_s27  ;;  %v2217_v49 = vsel %vm9901_vm6, %v2204_v35, %v7493_v21  ;;  %v2241_v21 = vsel %vm9900_vm9, %v7608_v17, %v7627_v9  ;;  %v2239_v17 = vsel %vm9900_vm9, %v2226_v0, %v7509_v31 }
 0x6d4   : > { %2418 = vrot.lane.b32.xlu1 %v7585_v40, %s6332_s27  ;;  %v7758_v40 = vpop.permute.xlu1 %2332 }
 0x6d5   : > { %2250 = vperm.xlu0 %6102, %v5664_v63  }
 0x6d8   : > { %2416 = vrot.lane.b32.xlu1 %v2217_v49, %s6332_s27  ;;  %v7768_v41 = vpop.permute.xlu1 %2380  ;;  %v2448_v49 = vsel %vm637_vm7, %v7688_v5, %v7710_v18 }
 0x6d9   : > { %2260 = vperm.xlu0 %6102, %v5666_v10  }
 0x6dc   : > { %2360 = vrot.lane.b32.xlu1 %v7618_v38, %s6332_s27  ;;  %v2238_v38 = vsel %vm9900_vm9, %v7560_v6, %v2226_v0  ;;  %v7777_v35 = vpop.permute.xlu1 %2370  ;;  %v2242_v6 = vsel %vm9900_vm9, %v7627_v9, %v7507_v27 }
 0x6dd   : > { %3041 = vrot.lane.b32.xlu0 %v9902_v36, %s6328_s23 }
 0x6df   : > { %v7770_v20 = vpop.permute.xlu0 %2372 }
 0x6e0   : > { %2438 = vrot.lane.b32.xlu1 %v2241_v21, %s6332_s27  ;;  %v7786_v33 = vpop.permute.xlu1 %2386 }
 0x6e1   : > { %3049 = vrot.lane.b32.xlu0 %v9902_v36, %s6328_s23 }
 0x6e3   : > { %v7781_v46 = vpop.permute.xlu0 %2388 }
 0x6e4   : > { %2430 = vrot.lane.b32.xlu1 %v2238_v38, %s6332_s27  ;;  %v2339_v53 = vpop.permute.xlu1 %2338 }
 0x6e5   : > { %3063 = vrot.lane.b32.xlu0 %v9902_v36, %s6329_s24 }
 0x6e7   : > { %v7797_v31 = vpop.permute.xlu0 %2376 }
 0x6e8   : > { %2432 = vrot.lane.b32.xlu1 %v2239_v17, %s6332_s27  ;;  %v2355_v9 = vpop.permute.xlu1 %2354 }
 0x6e9   : > { %3071 = vrot.lane.b32.xlu0 %v9902_v36, %s6329_s24 }
 0x6eb   : > { %v7804_v27 = vpop.permute.xlu0 %2326 }
 0x6ec   : > { %2440 = vrot.lane.b32.xlu1 %v2242_v6, %s6332_s27  ;;  %v2325_v54 = vpop.permute.xlu1 %2324 }
 0x6ed   : > { %3178 = vrot.lane.b32.xlu0 %v9902_v36, %s6332_s27  ;;  %v2452_v21 = vsel %vm637_vm7, %v2325_v54, %v7804_v27  ;;  %v2451_v17 = vsel %vm637_vm7, %v7749_v47, %v2325_v54 }
 0x6ef   : > { %v7808_v14 = vpop.permute.xlu0 %2358 }
 0x6f0   : > { %2255 = vperm.xlu1 %6101, %v5665_v61   ;;  %v2357_v11 = vpop.permute.xlu1 %2356  ;;  %v2454_v61 = vsel %vm637_vm7, %v7752_v2, %v7758_v40 }
 0x6f1   : > { %3186 = vrot.lane.b32.xlu0 %v9902_v36, %s6332_s27 }
 0x6f4   : > { %2265 = vperm.xlu1 %6101, %v5667_v30   ;;  %v7820_v51 = vpop.permute.xlu1 %2342 }
 0x6f5   : > { %v2458_v47 = vsel %vm637_vm7, %v7760_v45, %v7820_v51 }
 0x6f8   : > { %2945 = vrot.lane.b32.xlu1 %v9902_v36, %s6324_s19 }
 0x6fc   : > { %2953 = vrot.lane.b32.xlu1 %v9902_v36, %s6324_s19 }
 0x6fe   : > { %v7812_v59 = vpop.permute.xlu0 %2320 }
 0x700   : > { %2967 = vrot.lane.b32.xlu1 %v9902_v36, %s6325_s20 }
 0x703   : > { %v7816_v62 = vpop.permute.xlu0 %2334 }
 0x704   : > { %2975 = vrot.lane.b32.xlu1 %v9902_v36, %s6325_s20  ;;  %v2455_v5 = vsel %vm637_vm7, %v7758_v40, %v7816_v62  ;;  %v2460_v40 = vsel %vm637_vm7, %v7697_v50, %v7720_v28  ;;  %v2444_v50 = vsel %vm637_vm7, %v7550_v60, %v7657_v23  ;;  %v2447_v60 = vsel %vm637_vm7, %v7598_v24, %v7732_v4 }
 0x705   : > { %v2469_v23 = vsel %vm637_vm7, %v7777_v35, %v7770_v20 }
 0x707   : > { %v7822_v56 = vpop.permute.xlu0 %2392 }
 0x708   : > { %2989 = vrot.lane.b32.xlu1 %v9902_v36, %s6326_s21 }
 0x70a   : > { %v2369_v22 = vpop.permute.xlu1 %2368 }
 0x70b   : > { %v7826_v34 = vpop.permute.xlu0 %2394 }
 0x70c   : > { %2997 = vrot.lane.b32.xlu1 %v9902_v36, %s6326_s21 }
 0x70e   : > { %v2375_v7 = vpop.permute.xlu1 %2374 }
 0x70f   : > { %v7830_v44 = vpop.permute.xlu0 %2404 }
 0x710   : > { %3085 = vrot.lane.b32.xlu1 %v9902_v36, %s6330_s25 }
 0x712   : > { %v7834_v39 = vpop.permute.xlu1 %2390 }
 0x713   : > { %v7836_v25 = vpop.permute.xlu0 %2336  ;;  %v2476_v24 = vsel %vm637_vm7, %v7781_v46, %v7834_v39 }
 0x714   : > { %3093 = vrot.lane.b32.xlu1 %v9902_v36, %s6330_s25 }
 0x716   : > { %v7840_v63 = vpop.permute.xlu1 %2318 }
 0x717   : > { %v7842_v0 = vpop.permute.xlu0 %2408  ;;  %v2449_v10 = vsel %vm637_vm7, %v7710_v18, %v7840_v63 }
 0x718   : > { %2560 = vmatprep.subr.bf16.mxu1 %v2449_v10  ;;  %3107 = vrot.lane.b32.xlu1 %v9902_v36, %s6331_s26  ;;  %v2457_v10 = vsel %vm637_vm7, %v2339_v53, %v7760_v45  ;;  %v2463_v45 = vsel %vm637_vm7, %v2355_v9, %v2357_v11  ;;  %v2470_v9 = vsel %vm637_vm7, %v7770_v20, %v2375_v7 }
 0x719   : > { %2561 = vmatpush1.bf16.msra.mxu1 %v2448_v49 }
 0x71a   : > { %2562 = vmatprep.subr.bf16.mxu1 %v2452_v21  ;;  %v7854_v38 = vpop.permute.xlu1 %2396 }
 0x71b   : > { %v2383_v6 = vpop.permute.xlu0 %2382 }
 0x71c   : > { %3115 = vrot.lane.b32.xlu1 %v9902_v36, %s6331_s26 }
 0x71d   : > { %2563 = vmatpush1.bf16.msra.mxu1 %v2451_v17  ;;  %v2464_v17 = vsel %vm637_vm7, %v2357_v11, %v7808_v14  ;;  %v2471_v11 = vsel %vm637_vm7, %v2375_v7, %v7797_v31  ;;  %v2472_v31 = vsel %vm637_vm7, %v7676_v42, %v7768_v41  ;;  %v2475_v7 = vsel %vm637_vm7, %v7786_v33, %v7781_v46 }
 0x71e   : > { %2564 = vmatprep.subr.bf16.mxu1 %v2455_v5  ;;  %v2329_v18 = vpop.permute.xlu1 %2328  ;;  %v2478_v46 = vsel %vm637_vm7, %v7826_v34, %v7854_v38 }
 0x71f   : > { %v7871_v54 = vpop.permute.xlu0 %2410 }
 0x721   : > { %2565 = vmatpush1.bf16.msra.mxu1 %v2454_v61 }
 0x722   : > { %2566 = vmatprep.subr.bf16.mxu1 %v2458_v47  ;;  %v7869_v30 = vpop.permute.xlu1 %2406 }
 0x723   : > { %v2399_v21 = vpop.permute.xlu0 %2398 }
 0x724   : > { %v2479_v42 = vsel %vm637_vm7, %v7854_v38, %v2399_v21  ;;  %v2483_v38 = vsel %vm637_vm7, %v7869_v30, %v7842_v0 }
 0x725   : > { %2567 = vmatpush1.bf16.msra.mxu1 %v2457_v10 }
 0x726   : > { %v7875_v49 = vpop.permute.xlu1 %2350 }
 0x727   : > { %v2461_v2 = vsel %vm637_vm7, %v7720_v28, %v7875_v49  ;;  %v7886_v61 = vpop.permute.xlu0 %2420  ;;  %v2466_v28 = vsel %vm637_vm7, %v7666_v43, %v7737_v37 }
 0x728   : > { %2568 = vmatprep.subr.bf16.mxu1 %v2461_v2 }
 0x729   : > { %2569 = vmatpush1.bf16.msra.mxu1 %v2460_v40  ;;  %v2450_v40 = vsel %vm637_vm7, %v7840_v63, %v7812_v59  ;;  %v2482_v59 = vsel %vm637_vm7, %v7830_v44, %v7869_v30 }
 0x72a   : > { %2570 = vmatprep.subr.bf16.mxu1 %v2464_v17  ;;  %v2403_v5 = vpop.permute.xlu1 %2402  ;;  %v2453_v17 = vsel %vm637_vm7, %v7804_v27, %v2329_v18 }
 0x72b   : > { %v2415_v43 = vpop.permute.xlu0 %2414  ;;  %v2481_v27 = vsel %vm637_vm7, %v2403_v5, %v7830_v44 }
 0x72d   : > { %2571 = vmatpush1.bf16.msra.mxu1 %v2463_v45 }
 0x72e   : > { %v2367_v53 = vpop.permute.xlu1 %2366 }
 0x72f   : > { %v2467_v47 = vsel %vm637_vm7, %v7737_v37, %v2367_v53  ;;  %v2468_v10 = vsel %vm637_vm7, %v2367_v53, %v2369_v22  ;;  %v2473_v37 = vsel %vm637_vm7, %v7768_v41, %v2383_v6  ;;  %v2353_v20 = vpop.permute.xlu0 %2352  ;;  %v2477_v41 = vsel %vm637_vm7, %v7834_v39, %v7822_v56 }
 0x730   : > { %2572 = vmatprep.subr.bf16.mxu1 %v2467_v47  ;;  %5827 = vmatprep.subr.bf16.mxu0 %v2468_v10  ;;  %v2456_v39 = vsel %vm637_vm7, %v7816_v62, %v7836_v25  ;;  %v2462_v0 = vsel %vm637_vm7, %v7875_v49, %v2353_v20  ;;  %v6122_v47 = vld [vmem:[%s9884_s6 + $0x1c] ss:$12 sps:$4 sm:$0xff]  }
 0x731   : > { %2573 = vmatpush1.bf16.msra.mxu1 %v2466_v28  ;;  %5828 = vmatpush3.bf16.msra.mxu0 %v2444_v50  ;;  %v6124_v28 = vld [vmem:[%s9884_s6 + $0x18] ss:$12 sps:$4 sm:$0xff]  }
 0x732   : > { %2574 = vmatprep.subr.bf16.mxu1 %v2470_v9  ;;  %5829 = vmatprep.subr.bf16.mxu0 %v2471_v11  ;;  %v2413_v22 = vpop.permute.xlu1 %2412 }
 0x733   : > { %v2425_v33 = vpop.permute.xlu0 %2424  ;;  %v2485_v34 = vsel %vm637_vm7, %v2413_v22, %v2415_v43  ;;  %v2484_v62 = vsel %vm637_vm7, %v7871_v54, %v2413_v22 }
 0x735   : > { %2575 = vmatpush1.bf16.msra.mxu1 %v2469_v23  ;;  %5830 = vmatpush3.bf16.msra.mxu0 %v2447_v60 }
 0x736   : > { %2576 = vmatprep.subr.bf16.mxu1 %v2473_v37  ;;  %v2345_v2 = vpop.permute.xlu1 %2344 }
 0x737   : > { %v2459_v45 = vsel %vm637_vm7, %v7820_v51, %v2345_v2  ;;  %v6119_v51 = vld [vmem:[%s9884_s6] ss:$12 sps:$4 sm:$0xff]   ;;  %v6125_v2 = vld [vmem:[%s9884_s6 + $0x8] ss:$12 sps:$4 sm:$0xff]  }
 0x739   : > { %2577 = vmatpush1.bf16.msra.mxu1 %v2472_v31 }
 0x73a   : > { %2578 = vmatprep.subr.bf16.mxu1 %v2476_v24  ;;  %v2385_v4 = vpop.permute.xlu1 %2384 }
 0x73b   : > { %v2474_v35 = vsel %vm637_vm7, %v2383_v6, %v2385_v4  ;;  %v6126_v4 = vld [vmem:[%s9884_s6 + $0x20] ss:$12 sps:$4 sm:$0xff]  }
 0x73c   : > { %5831 = vmatprep.subr.bf16.mxu0 %v2474_v35 }
 0x73d   : > { %2579 = vmatpush1.bf16.msra.mxu1 %v2475_v7  ;;  %5832 = vmatpush3.bf16.msra.mxu0 %v2450_v40 }
 0x73e   : > { %2580 = vmatprep.subr.bf16.mxu1 %v2479_v42  ;;  %5833 = vmatprep.subr.bf16.mxu0 %v2477_v41  ;;  %v2423_v6 = vpop.permute.xlu1 %2422 }
 0x73f   : > { %v2488_v44 = vsel %vm637_vm7, %v7886_v61, %v2423_v6  ;;  %v2489_v53 = vsel %vm637_vm7, %v2423_v6, %v2425_v33 }
 0x741   : > { %2581 = vmatpush1.bf16.msra.mxu1 %v2478_v46  ;;  %5834 = vmatpush3.bf16.msra.mxu0 %v2453_v17 }
 0x742   : > { %2582 = vmatprep.subr.bf16.mxu1 %v2482_v59  ;;  %v2401_v63 = vpop.permute.xlu1 %2400 }
 0x743   : > { %v2480_v56 = vsel %vm637_vm7, %v2399_v21, %v2401_v63  ;;  %v2429_v21 = vpop.permute.xlu0 %2428 }
 0x744   : > { %5835 = vmatprep.subr.bf16.mxu0 %v2480_v56 }
 0x745   : > { %2583 = vmatpush1.bf16.msra.mxu1 %v2481_v27  ;;  %5836 = vmatpush3.bf16.msra.mxu0 %v2456_v39 }
 0x746   : > { %2584 = vmatprep.subr.bf16.mxu1 %v2485_v34  ;;  %5837 = vmatprep.subr.bf16.mxu0 %v2483_v38  ;;  %v2419_v18 = vpop.permute.xlu1 %2418 }
 0x747   : > { %v2487_v30 = vsel %vm637_vm7, %v2419_v18, %v7886_v61  ;;  %v2427_v54 = vpop.permute.xlu0 %2426 }
 0x748   : > { %v2490_v22 = vsel %vm637_vm7, %v2427_v54, %v2429_v21 }
 0x749   : > { %2585 = vmatpush1.bf16.msra.mxu1 %v2484_v62  ;;  %5838 = vmatpush3.bf16.msra.mxu0 %v2459_v45 }
 0x74a   : > { %2586 = vmatprep.subr.bf16.mxu1 %v2488_v44  ;;  %v2417_v25 = vpop.permute.xlu1 %2416 }
 0x74b   : > { %v2486_v5 = vsel %vm637_vm7, %v2415_v43, %v2417_v25  ;;  %v2437_v50 = vpop.permute.xlu0 %2436 }
 0x74c   : > { %5839 = vmatprep.subr.bf16.mxu0 %v2486_v5 }
 0x74d   : > { %2587 = vmatpush1.bf16.msra.mxu1 %v2487_v30  ;;  %5840 = vmatpush3.bf16.msra.mxu0 %v2462_v0 }
 0x74e   : > { %5841 = vmatprep.subr.bf16.mxu0 %v2489_v53  ;;  %v2361_v10 = vpop.permute.xlu1 %2360 }
 0x74f   : > { %v2465_v49 = vsel %vm637_vm7, %v7808_v14, %v2361_v10  ;;  %v2435_v60 = vpop.permute.xlu0 %2434 }
 0x750   : > { %2589 = vmatmul.mubr.bf16.vlgmr.msra.gmra.mrb[32].mxu1 %v6119_v51  ;;  %v2493_v37 = vsel %vm637_vm7, %v2435_v60, %v2437_v50 }
 0x751   : > { %5842 = vmatpush3.bf16.msra.mxu0 %v2465_v49  ;;  %2598 = vmatprep.mubr.bf16.mxu1 %v6122_v47 }
 0x752   : > { %v2439_v61 = vpop.permute.xlu1 %2438 }
 0x753   : > { %v2494_v14 = vsel %vm637_vm7, %v2437_v50, %v2439_v61 }
 0x754   : > { %2695 = vmatmul.mubr.bf16.vlgmr.msra.gmra.mrb[16].mxu0 %v6119_v51  ;;  %v7986_v6 = vpop.permute.xlu0 %2250 }
 0x755   : > { %2702 = vmatprep.mubr.bf16.mxu0 %v6122_v47 }
 0x756   : > { %v2431_v9 = vpop.permute.xlu1 %2430 }
 0x757   : > { %v2491_v11 = vsel %vm637_vm7, %v2429_v21, %v2431_v9 }
 0x758   : > { %2599 = vmatmul.mubr.bf16.gmra.mrb[36].mxu1 %v6124_v28  ;;  %2609 = vmatprep.subr.bf16.mxu1 %v2491_v11  ;;  %v7988_v27 = vpop.permute.xlu0 %2260 }
 0x759   : > { %2610 = vmatpush1.bf16.msra.mxu1 %v2490_v22  ;;  %2641 = vmatprep.mubr.bf16.mxu1 %v9903_v15 }
 0x75a   : > { %2611 = vmatprep.subr.bf16.mxu1 %v2494_v14  ;;  %v2433_v23 = vpop.permute.xlu1 %2432 }
 0x75b   : > { %v2492_v43 = vsel %vm637_vm7, %v2431_v9, %v2433_v23 }
 0x75c   : > { %2703 = vmatmul.mubr.bf16.gmra.mrb[20].mxu0 %v6124_v28  ;;  %5968 = vmatprep.subr.bf16.mxu0 %v2492_v43 }
 0x75d   : > { %2612 = vmatpush1.bf16.msra.mxu1 %v2493_v37  ;;  %5969 = vmatpush3.bf16.msra.mxu0 %v2492_v43 }
 0x75e   : > { %v2441_v31 = vpop.permute.xlu1 %2440  ;;  %5972 = vmatprep.mubr.msk.bf16.mxu0 %vm1445_vm15, %v6125_v2 }
 0x75f   : > { %v2495_v24 = vsel %vm637_vm7, %v2439_v61, %v2441_v31 }
 0x760   : > { %5674 = vmatmul.mubr.msk.bf16.vlgmr.msra.gmra.mrb[32].mxu1 %vm1445_vm15, %v6125_v2  ;;  %5970 = vmatprep.subr.bf16.mxu0 %v2495_v24 }
 0x761   : > { %5971 = vmatpush3.bf16.msra.mxu0 %v2495_v24  ;;  %2651 = vmatprep.mubr.bf16.mxu1 %v9903_v15 }
 0x764   : > { %5973 = vmatmul.mubr.msk.bf16.vlgmr.msra.gmra.mrb[24].mxu0 %vm1445_vm15, %v6126_v4 }
 0x768   : > { %5675 = vmatmul.mubr.msk.bf16.gmra.mrb[36].mxu1 %vm1445_vm15, %v6126_v4 }
 0x76f   : > { %v2256_v38 = vpop.permute.xlu1 %2255 }
 0x773   : > { %v7995_v53 = vpop.permute.xlu1 %2265 }
 0x827   : > { %v5843_v20 = vpop.f32.mrb[16].mxu0 }
 0x828   : > { %v5844_v35 = vpop.f32.mrb[17].mxu0 }
 0x829   : > { %v5845_v7 = vadd.f32 %v5844_v35, %v5843_v20  ;;  %v5846_v40 = vpop.f32.mrb[18].mxu0 }
 0x82a   : > { %v5847_v42 = vpop.f32.mrb[19].mxu0 }
 0x82b   : > { %v5848_v41 = vadd.f32 %v5847_v42, %v5846_v40  ;;  %v2697_v44 = vadd.f32 %v5845_v7, %v7986_v6 }
 0x82d   : > { %v2700_v61 = vadd.f32 %v5848_v41, %v2256_v38 }
 0x82f   : > { %v5849_v17 = vpop.f32.mrb[20].mxu0 }
 0x830   : > { %v5850_v46 = vpop.f32.mrb[21].mxu0 }
 0x831   : > { %v5851_v33 = vadd.f32 %v5850_v46, %v5849_v17  ;;  %v5852_v59 = vpop.f32.mrb[22].mxu0 }
 0x832   : > { %v5853_v63 = vpop.f32.mrb[23].mxu0 }
 0x833   : > { %v5854_v56 = vadd.f32 %v5853_v63, %v5852_v59  ;;  %v2643_v39 = vpop.f32.mrb[32].mxu1  ;;  %v2705_v45 = vadd.f32 %v5851_v33, %v7988_v27 }
 0x834   : > { %v7990_v34 = vpop.f32.mrb[33].mxu1 }
 0x835   : > { %v2647_v18 = vpop.f32.mrb[34].mxu1  ;;  %v2708_v49 = vadd.f32 %v5854_v56, %v7995_v53 }
 0x836   : > { %v2649_v21 = vpop.f32.mrb[35].mxu1 }
 0x837   : > { %v5974_v62 = vpop.f32.mrb[24].mxu0 }
 0x838   : > { %v2754_v25 = vadd.f32 %v5974_v62, %v2705_v45  ;;  %v2745_v5 = vpop.f32.mrb[25].mxu0 }
 0x839   : > { %v2746_v0 = vadd.f32 %v2745_v5, %v2697_v44  ;;  %v5975_v30 = vpop.f32.mrb[26].mxu0  ;;  %v6019_v44 = vadd.f32 %v2649_v21, %v2256_v38 }
 0x83a   : > { %v2780_v51 = vadd.f32 %v2754_v25, %v6752_v55  ;;  %v2748_v54 = vpop.f32.mrb[27].mxu0  ;;  %v2757_v11 = vadd.f32 %v5975_v30, %v2708_v49 }
 0x83b   : > { %v7997_v47 = vpop.f32.mrb[36].mxu1  ;;  %v2749_v22 = vadd.f32 %v2748_v54, %v2700_v61  ;;  %v2774_v43 = vadd.f32 %v2746_v0, %v6670_v57  ;;  %v2776_v30 = vadd.f32 %v6019_v44, %v6712_v29 }
 0x83c   : > { %v2804_v10 = vmin.f32 %v2780_v51, 0.0  ;;  %v8000_v50 = vpop.f32.mrb[37].mxu1  ;;  %v2783_v55 = vadd.f32 %v2757_v11, %v6749_v52  ;;  %vm2792_vm8 = vcmp.gt.f32.partialorder %v2780_v51, 0.0  ;;  %v6018_v52 = vadd.f32 %v2647_v18, %v2256_v38 }
 0x83d   : > { %v8002_v28 = vpop.f32.mrb[38].mxu1  ;;  %v2777_v23 = vadd.f32 %v2749_v22, %v6673_v58  ;;  %v2798_v31 = vmin.f32 %v2774_v43, 0.0  ;;  %v6016_v58 = vadd.f32 %v2643_v39, %v7986_v6  ;;  %vm2786_vm12 = vcmp.gt.f32.partialorder %v2774_v43, 0.0 }
 0x83e   : > { %v2824_v9 = vmul.f32 1.442695, %v2804_v10  ;;  %v8004_v60 = vpop.f32.mrb[39].mxu1  ;;  %v2807_v14 = vmin.f32 %v2783_v55, 0.0  ;;  %vm2795_vm10 = vcmp.gt.f32.partialorder %v2783_v55, 0.0  ;;  %v2775_v46 = vadd.f32 %v6018_v52, %v6694_v19 }
 0x83f   : > { %v2801_v2 = vmin.f32 %v2777_v23, 0.0  ;;  %v2812_v20 = vmul.f32 1.442695, %v2798_v31  ;;  %v2772_v63 = vadd.f32 %v6016_v58, %v6690_v16  ;;  %vm2789_vm11 = vcmp.gt.f32.partialorder %v2777_v23, 0.0 }
 0x840   : > { %6220 = vpow2.f32 %v2824_v9  ;;  %v2830_v37 = vmul.f32 1.442695, %v2807_v14  ;;  %v2799_v39 = vmin.f32 %v2775_v46, 0.0  ;;  %v6017_v16 = vadd.f32 %v7990_v34, %v7986_v6 }
 0x841   : > { %v2818_v4 = vmul.f32 1.442695, %v2801_v2  ;;  %v2796_v45 = vmin.f32 %v2772_v63, 0.0  ;;  %v2800_v6 = vmin.f32 %v2776_v30, 0.0  ;;  %vm2787_vm13 = vcmp.gt.f32.partialorder %v2775_v46, 0.0 }
 0x842   : > { %6222 = vpow2.f32 %v2830_v37  ;;  %v2814_v19 = vmul.f32 1.442695, %v2799_v39  ;;  %v2773_v38 = vadd.f32 %v6017_v16, %v6715_v32  ;;  %vm2784_vm14 = vcmp.gt.f32.partialorder %v2772_v63, 0.0 }
 0x843   : > { %6224 = vpow2.f32 %v2818_v4  ;;  %v2808_v5 = vmul.f32 1.442695, %v2796_v45  ;;  %v2816_v29 = vmul.f32 1.442695, %v2800_v6  ;;  %v6022_v14 = vadd.f32 %v8002_v28, %v7995_v53 }
 0x844   : > { %6226 = vpow2.f32 %v2812_v20  ;;  %v2797_v54 = vmin.f32 %v2773_v38, 0.0  ;;  %v6020_v37 = vadd.f32 %v7997_v47, %v7988_v27  ;;  %v6021_v58 = vadd.f32 %v8000_v50, %v7988_v27  ;;  %v8088_v50 = vpop.permute.xlu1 %2945 }
 0x845   : > { %6228 = vpow2.f32 %v2814_v19 }
 0x846   : > { %6230 = vpow2.f32 %v2808_v5  ;;  %v2810_v49 = vmul.f32 1.442695, %v2797_v54  ;;  %v2778_v28 = vadd.f32 %v6020_v37, %v6774_v3  ;;  %v6023_v3 = vadd.f32 %v8004_v60, %v7995_v53 }
 0x847   : > { %6232 = vpow2.f32 %v2816_v29  ;;  %v2779_v53 = vadd.f32 %v6021_v58, %v6794_v13 }
 0x848   : > { %6234 = vpow2.f32 %v2810_v49  ;;  %v8094_v39 = vpop.permute.xlu1 %2953 }
 0x84a   : > { %v6221_v24 = vpop.eup %6220 }
 0x84b   : > { %v5686_v35 = vadd.f32 -1.0, %v6221_v24  ;;  %v2781_v24 = vadd.f32 %v6022_v14, %v6771_v1 }
 0x84c   : > { %v6223_v7 = vpop.eup %6222  ;;  %v8101_v44 = vpop.permute.xlu1 %2967 }
 0x84d   : > { %v2852_v40 = vsel %vm2792_vm8, %v2780_v51, %v5686_v35  ;;  %v5689_v42 = vadd.f32 -1.0, %v6223_v7  ;;  %v6225_v59 = vpop.eup %6224  ;;  %vm2788_vm8 = vcmp.gt.f32.partialorder %v2776_v30, 0.0  ;;  %v2805_v47 = vmin.f32 %v2781_v24, 0.0 }
 0x84e   : > { %v8011_v57 = vmul.f32 %v2852_v40, %v6666_v48  ;;  %v6227_v56 = vpop.eup %6226  ;;  %v5683_v18 = vadd.f32 -1.0, %v6225_v59  ;;  %v2802_v7 = vmin.f32 %v2778_v28, 0.0  ;;  %v2803_v59 = vmin.f32 %v2779_v53, 0.0 }
 0x84f   : > { %v2855_v41 = vsel %vm2795_vm10, %v2783_v55, %v5689_v42  ;;  %v5680_v62 = vadd.f32 -1.0, %v6227_v56  ;;  %v6229_v10 = vpop.eup %6228  ;;  %vm2785_vm10 = vcmp.gt.f32.partialorder %v2773_v38, 0.0  ;;  %v2826_v42 = vmul.f32 1.442695, %v2805_v47 }
 0x850   : > { %v8014_v17 = vmul.f32 %v2855_v41, %v6666_v48  ;;  %v2849_v25 = vsel %vm2789_vm11, %v2777_v23, %v5683_v18  ;;  %v6231_v32 = vpop.eup %6230  ;;  %v5681_v61 = vadd.f32 -1.0, %v6229_v10  ;;  %v2820_v41 = vmul.f32 1.442695, %v2802_v7  ;;  %v3042_v10 = vpop.permute.xlu0 %3041 }
 0x851   : > { %v2846_v0 = vsel %vm2786_vm12, %v2774_v43, %v5680_v62  ;;  %v8030_v51 = vmul.f32 %v2849_v25, %v6666_v48  ;;  %v5678_v9 = vadd.f32 -1.0, %v6231_v32  ;;  %v6233_v23 = vpop.eup %6232  ;;  %6236 = vpow2.f32 %v2826_v42 }
 0x852   : > { %9904 = vst [vmem:[#allocation4_spill] sm:$0xff] %v8014_v17  ;;  %v2912_v33 = vpack.c.bf16 %v8014_v17, %v8011_v57  ;;  %v8034_v21 = vmul.f32 %v2846_v0, %v6666_v48  ;;  %v2847_v11 = vsel %vm2787_vm13, %v2775_v46, %v5681_v61  ;;  %v6235_v2 = vpop.eup %6234  ;;  %v5682_v4 = vadd.f32 -1.0, %v6233_v23 }
 0x853   : > { %9905 = vst [vmem:[#allocation5_spill] sm:$0xff] %v8030_v51  ;;  %v2844_v22 = vsel %vm2784_vm14, %v2772_v63, %v5678_v9  ;;  %v8049_v55 = vmul.f32 %v2847_v11, %v6686_v8  ;;  %v5679_v20 = vadd.f32 -1.0, %v6235_v2  ;;  %6238 = vpow2.f32 %v2820_v41 }
 0x854   : > { %3021 = vrot.lane.b32.xlu1 %v2912_v33, %s6327_s22  ;;  %2959 = vrot.lane.b32.xlu0 %v2912_v33, %s6324_s19  ;;  %9906 = vst [vmem:[#allocation6_spill] sm:$0xff] %v8034_v21  ;;  %v2908_v34 = vpack.c.bf16 %v8030_v51, %v8034_v21  ;;  %v8054_v43 = vmul.f32 %v2844_v22, %v6686_v8  ;;  %v2822_v56 = vmul.f32 1.442695, %v2803_v59  ;;  %vm2793_vm11 = vcmp.gt.f32.partialorder %v2781_v24, 0.0  ;;  %v8130_v9 = vpop.permute.xlu0 %3049 }
 0x855   : > { %v2848_v35 = vsel %vm2788_vm8, %v2776_v30, %v5682_v4  ;;  %v2845_v40 = vsel %vm2785_vm10, %v2773_v38, %v5679_v20  ;;  %vm2790_vm12 = vcmp.gt.f32.partialorder %v2778_v28, 0.0  ;;  %v8112_v38 = vpop.permute.xlu1 %2975  ;;  %vm2791_vm14 = vcmp.gt.f32.partialorder %v2779_v53, 0.0 }
 0x856   : > { %v2906_v31 = vpack.c.bf16 %v8049_v55, %v8054_v43  ;;  %v8069_v1 = vmul.f32 %v2848_v35, %v6704_v26  ;;  %v8074_v52 = vmul.f32 %v2845_v40, %v6704_v26 }
 0x858   : > { %3047 = vrot.lane.b32.xlu1 %v2912_v33, %s6328_s23  ;;  %2981 = vrot.lane.b32.xlu0 %v2912_v33, %s6325_s20  ;;  %v2907_v46 = vpack.c.bf16 %v8069_v1, %v8074_v52  ;;  %v8136_v22 = vpop.permute.xlu0 %3063 }
 0x859   : > { %v8119_v49 = vpop.permute.xlu1 %2989 }
 0x85b   : > { %v6237_v63 = vpop.eup %6236 }
 0x85c   : > { %3069 = vrot.lane.b32.xlu1 %v2912_v33, %s6329_s24  ;;  %3003 = vrot.lane.b32.xlu0 %v2912_v33, %s6326_s21  ;;  %v5687_v13 = vadd.f32 -1.0, %v6237_v63  ;;  %v8144_v23 = vpop.permute.xlu0 %3071 }
 0x85d   : > { %v8132_v11 = vpop.permute.xlu1 %2997 }
 0x85e   : > { %v2853_v45 = vsel %vm2793_vm11, %v2781_v24, %v5687_v13 }
 0x85f   : > { %v8099_v19 = vmul.f32 %v2853_v45, %v6686_v8 }
 0x860   : > { %3091 = vrot.lane.b32.xlu1 %v2912_v33, %s6330_s25  ;;  %3192 = vrot.lane.b32.xlu0 %v2912_v33, %s6332_s27  ;;  %v8150_v2 = vpop.permute.xlu0 %3178 }
 0x861   : > { %9907 = vst [vmem:[#allocation7_spill] sm:$0xff] %v8099_v19  ;;  %v8138_v14 = vpop.permute.xlu1 %3085 }
 0x864   : > { %3113 = vrot.lane.b32.xlu1 %v2912_v33, %s6331_s26  ;;  %2951 = vrot.lane.b32.xlu0 %v2908_v34, %s6324_s19  ;;  %v2782_v33 = vadd.f32 %v6023_v3, %v6791_v12  ;;  %v6239_v12 = vpop.eup %6238  ;;  %v8156_v24 = vpop.permute.xlu0 %3186 }
 0x865   : > { %v5684_v18 = vadd.f32 -1.0, %v6239_v12  ;;  %v8146_v37 = vpop.permute.xlu1 %3093 }
 0x866   : > { %v2806_v60 = vmin.f32 %v2782_v33, 0.0  ;;  %vm2794_vm13 = vcmp.gt.f32.partialorder %v2782_v33, 0.0 }
 0x867   : > { %v2850_v62 = vsel %vm2790_vm12, %v2778_v28, %v5684_v18 }
 0x868   : > { %3061 = vrot.lane.b32.xlu1 %v2908_v34, %s6329_s24  ;;  %2973 = vrot.lane.b32.xlu0 %v2908_v34, %s6325_s20  ;;  %v2828_v27 = vmul.f32 1.442695, %v2806_v60  ;;  %v8104_v5 = vmul.f32 %v2850_v62, %v6686_v8 }
 0x86a   : > { %6240 = vpow2.f32 %v2828_v27  ;;  %9908 = vst [vmem:[#allocation8_spill] sm:$0xff] %v8104_v5  ;;  %v2910_v0 = vpack.c.bf16 %v8099_v19, %v8104_v5 }
 0x86b   : > { %6242 = vpow2.f32 %v2822_v56 }
 0x86c   : > { %3083 = vrot.lane.b32.xlu1 %v2908_v34, %s6330_s25  ;;  %2995 = vrot.lane.b32.xlu0 %v2908_v34, %s6326_s21 }
 0x870   : > { %3105 = vrot.lane.b32.xlu1 %v2908_v34, %s6331_s26  ;;  %3015 = vrot.lane.b32.xlu0 %v2908_v34, %s6327_s22 }
 0x874   : > { %3184 = vrot.lane.b32.xlu1 %v2908_v34, %s6332_s27  ;;  %3039 = vrot.lane.b32.xlu0 %v2908_v34, %s6328_s23  ;;  %v6241_v25 = vpop.eup %6240 }
 0x875   : > { %v6243_v16 = vpop.eup %6242  ;;  %v5688_v30 = vadd.f32 -1.0, %v6241_v25 }
 0x876   : > { %v5685_v6 = vadd.f32 -1.0, %v6243_v16 }
 0x877   : > { %v2854_v34 = vsel %vm2794_vm13, %v2782_v33, %v5688_v30 }
 0x878   : > { %3057 = vrot.lane.b32.xlu1 %v2906_v31, %s6329_s24  ;;  %2947 = vrot.lane.b32.xlu0 %v2906_v31, %s6324_s19  ;;  %v2851_v54 = vsel %vm2791_vm14, %v2779_v53, %v5685_v6  ;;  %v8117_v29 = vmul.f32 %v2854_v34, %v6704_v26 }
 0x879   : > { %v8122_v32 = vmul.f32 %v2851_v54, %v6704_v26 }
 0x87a   : > { %9909 = vst [vmem:[#allocation9_spill] sm:$0xff] %v8117_v29 }
 0x87b   : > { %9910 = vst [vmem:[#allocation10_spill] sm:$0xff] %v8122_v32  ;;  %v2911_v61 = vpack.c.bf16 %v8117_v29, %v8122_v32 }
 0x87c   : > { %3079 = vrot.lane.b32.xlu1 %v2906_v31, %s6330_s25  ;;  %2969 = vrot.lane.b32.xlu0 %v2906_v31, %s6325_s20 }
 0x880   : > { %3101 = vrot.lane.b32.xlu1 %v2906_v31, %s6331_s26  ;;  %2991 = vrot.lane.b32.xlu0 %v2906_v31, %s6326_s21 }
 0x884   : > { %2949 = vrot.lane.b32.xlu1 %v2907_v46, %s6324_s19  ;;  %3011 = vrot.lane.b32.xlu0 %v2906_v31, %s6327_s22 }
 0x888   : > { %2971 = vrot.lane.b32.xlu1 %v2907_v46, %s6325_s20  ;;  %3035 = vrot.lane.b32.xlu0 %v2906_v31, %s6328_s23 }
 0x88c   : > { %2993 = vrot.lane.b32.xlu1 %v2907_v46, %s6326_s21  ;;  %3180 = vrot.lane.b32.xlu0 %v2906_v31, %s6332_s27  ;;  %v8152_v31 = vpop.permute.xlu1 %3107 }
 0x890   : > { %3013 = vrot.lane.b32.xlu1 %v2907_v46, %s6327_s22  ;;  %3059 = vrot.lane.b32.xlu0 %v2907_v46, %s6329_s24  ;;  %v8158_v4 = vpop.permute.xlu1 %3115 }
 0x894   : > { %3037 = vrot.lane.b32.xlu1 %v2907_v46, %s6328_s23  ;;  %3081 = vrot.lane.b32.xlu0 %v2907_v46, %s6330_s25 }
 0x898   : > { %3182 = vrot.lane.b32.xlu1 %v2907_v46, %s6332_s27  ;;  %3103 = vrot.lane.b32.xlu0 %v2907_v46, %s6331_s26 }
 0x89c   : > { %3017 = vrot.lane.b32.xlu1 %v2910_v0, %s6327_s22  ;;  %2955 = vrot.lane.b32.xlu0 %v2910_v0, %s6324_s19 }
 0x8a0   : > { %3043 = vrot.lane.b32.xlu1 %v2910_v0, %s6328_s23  ;;  %2977 = vrot.lane.b32.xlu0 %v2910_v0, %s6325_s20 }
 0x8a4   : > { %3065 = vrot.lane.b32.xlu1 %v2910_v0, %s6329_s24  ;;  %2999 = vrot.lane.b32.xlu0 %v2910_v0, %s6326_s21 }
 0x8a8   : > { %3087 = vrot.lane.b32.xlu1 %v2910_v0, %s6330_s25  ;;  %3019 = vrot.lane.b32.xlu0 %v2911_v61, %s6327_s22 }
 0x8ac   : > { %3188 = vrot.lane.b32.xlu1 %v2910_v0, %s6332_s27  ;;  %3045 = vrot.lane.b32.xlu0 %v2911_v61, %s6328_s23 }
 0x8b0   : > { %3109 = vrot.lane.b32.xlu1 %v2910_v0, %s6331_s26  ;;  %3067 = vrot.lane.b32.xlu0 %v2911_v61, %s6329_s24 }
 0x8b4   : > { %2957 = vrot.lane.b32.xlu1 %v2911_v61, %s6324_s19  ;;  %3089 = vrot.lane.b32.xlu0 %v2911_v61, %s6330_s25 }
 0x8b8   : > { %2979 = vrot.lane.b32.xlu1 %v2911_v61, %s6325_s20  ;;  %3190 = vrot.lane.b32.xlu0 %v2911_v61, %s6332_s27 }
 0x8bc   : > { %3001 = vrot.lane.b32.xlu1 %v2911_v61, %s6326_s21  ;;  %3111 = vrot.lane.b32.xlu0 %v2911_v61, %s6331_s26 }
 0x8c6   : > { %v8160_v28 = vpop.permute.xlu0 %2959  ;;  %v8162_v20 = vpop.permute.xlu1 %3021 }
 0x8c7   : > { %3256 = vrot.lane.b32.xlu1 %v8162_v20, %s6332_s27 }
 0x8ca   : > { %v8166_v47 = vpop.permute.xlu0 %2981  ;;  %v8168_v35 = vpop.permute.xlu1 %3047 }
 0x8ce   : > { %v8170_v7 = vpop.permute.xlu0 %3003  ;;  %v8172_v40 = vpop.permute.xlu1 %3069 }
 0x8d2   : > { %v8174_v42 = vpop.permute.xlu0 %3192  ;;  %v8176_v3 = vpop.permute.xlu1 %3091 }
 0x8d6   : > { %v2952_v41 = vpop.permute.xlu0 %2951  ;;  %v8178_v58 = vpop.permute.xlu1 %3113 }
 0x8d7   : > { %3200 = vrot.lane.b32.xlu1 %v2952_v41, %s6332_s27 }
 0x8da   : > { %v8181_v46 = vpop.permute.xlu0 %2973  ;;  %v8183_v33 = vpop.permute.xlu1 %3061 }
 0x8de   : > { %v8185_v53 = vpop.permute.xlu0 %2995  ;;  %v8187_v60 = vpop.permute.xlu1 %3083 }
 0x8e2   : > { %v3016_v59 = vpop.permute.xlu0 %3015  ;;  %v8189_v27 = vpop.permute.xlu1 %3105 }
 0x8e3   : > { %3248 = vrot.lane.b32.xlu0 %v3016_v59, %s6332_s27 }
 0x8e6   : > { %v8192_v63 = vpop.permute.xlu0 %3039  ;;  %v8194_v56 = vpop.permute.xlu1 %3184 }
 0x8e7   : > { %v3053_v12 = vsel %vm483_vm4, %v8192_v63, %v3042_v10 }
 0x8e8   : > { %3264 = vrot.lane.b32.xlu0 %v3053_v12, %s6332_s27 }
 0x8ea   : > { %v2948_v13 = vpop.permute.xlu0 %2947  ;;  %v3058_v18 = vpop.permute.xlu1 %3057 }
 0x8ee   : > { %v2970_v45 = vpop.permute.xlu0 %2969  ;;  %v8199_v62 = vpop.permute.xlu1 %3079 }
 0x8ef   : > { %v2983_v17 = vsel %vm446_vm1, %v8101_v44, %v2970_v45 }
 0x8f2   : > { %v2992_v25 = vpop.permute.xlu0 %2991  ;;  %v8201_v16 = vpop.permute.xlu1 %3101 }
 0x8f6   : > { %v3012_v0 = vpop.permute.xlu0 %3011  ;;  %v2950_v30 = vpop.permute.xlu1 %2949 }
 0x8f7   : > { %3242 = vrot.lane.b32.xlu0 %v3012_v0, %s6332_s27  ;;  %v2962_v6 = vsel %vm434_vm0, %v2948_v13, %v2950_v30 }
 0x8f8   : > { %3196 = vrot.lane.b32.xlu1 %v2962_v6, %s6332_s27  ;;  %v2961_v6 = vsel %vm434_vm0, %v8088_v50, %v2948_v13 }
 0x8fa   : > { %v3036_v34 = vpop.permute.xlu0 %3035  ;;  %v2972_v54 = vpop.permute.xlu1 %2971 }
 0x8fb   : > { %3258 = vrot.lane.b32.xlu0 %v3036_v34, %s6332_s27  ;;  %v2984_v10 = vsel %vm446_vm1, %v2970_v45, %v2972_v54 }
 0x8fc   : > { %3212 = vrot.lane.b32.xlu1 %v2984_v10, %s6332_s27 }
 0x8fe   : > { %v3181_v61 = vpop.permute.xlu0 %3180  ;;  %v2994_v12 = vpop.permute.xlu1 %2993 }
 0x8ff   : > { %3274 = vrot.lane.b32.xlu0 %v3058_v18, %s6332_s27  ;;  %v3006_v29 = vsel %vm458_vm2, %v2992_v25, %v2994_v12 }
 0x900   : > { %3228 = vrot.lane.b32.xlu1 %v3006_v29, %s6332_s27 }
 0x902   : > { %v3060_v19 = vpop.permute.xlu0 %3059  ;;  %v3014_v32 = vpop.permute.xlu1 %3013 }
 0x903   : > { %3194 = vrot.lane.b32.xlu0 %v2961_v6, %s6332_s27  ;;  %v3024_v5 = vsel %vm468_vm3, %v3014_v32, %v3016_v59  ;;  %v3005_v59 = vsel %vm458_vm2, %v8119_v49, %v2992_v25  ;;  %v2985_v25 = vsel %vm446_vm1, %v2972_v54, %v8181_v46 }
 0x904   : > { %3246 = vrot.lane.b32.xlu1 %v3024_v5, %s6332_s27  ;;  %v3073_v5 = vsel %vm495_vm5, %v3058_v18, %v3060_v19 }
 0x906   : > { %v8217_v10 = vpop.permute.xlu0 %3081  ;;  %v3038_v51 = vpop.permute.xlu1 %3037 }
 0x907   : > { %3210 = vrot.lane.b32.xlu0 %v2983_v17, %s6332_s27  ;;  %v3051_v29 = vsel %vm483_vm4, %v3036_v34, %v3038_v51  ;;  %v3322_v17 = vsel %vm637_vm7, %v8150_v2, %v3181_v61  ;;  %v2963_v34 = vsel %vm434_vm0, %v2950_v30, %v2952_v41  ;;  %v3007_v41 = vsel %vm458_vm2, %v2994_v12, %v8185_v53 }
 0x908   : > { %3260 = vrot.lane.b32.xlu1 %v3051_v29, %s6332_s27  ;;  %v3023_v29 = vsel %vm468_vm3, %v3012_v0, %v3014_v32 }
 0x90a   : > { %v8224_v21 = vpop.permute.xlu0 %3103  ;;  %v8226_v50 = vpop.permute.xlu1 %3182 }
 0x90b   : > { %3226 = vrot.lane.b32.xlu0 %v3005_v59, %s6332_s27  ;;  %v3323_v44 = vsel %vm637_vm7, %v3181_v61, %v8226_v50 }
 0x90c   : > { %3276 = vrot.lane.b32.xlu1 %v3073_v5, %s6332_s27  ;;  %3436 = vmatprep.subr.bf16.mxu0 %v3323_v44  ;;  %v3052_v44 = vsel %vm483_vm4, %v3038_v51, %v8192_v63 }
 0x90d   : > { %3437 = vmatpush1.bf16.msra.mxu0 %v3322_v17 }
 0x90e   : > { %v2956_v13 = vpop.permute.xlu0 %2955  ;;  %v3018_v45 = vpop.permute.xlu1 %3017 }
 0x90f   : > { %3198 = vrot.lane.b32.xlu0 %v2963_v34, %s6332_s27  ;;  %v2964_v0 = vsel %vm434_vm0, %v8094_v39, %v2956_v13  ;;  %v3056_v39 = vsel %vm483_vm4, %v8168_v35, %v8130_v9 }
 0x910   : > { %3250 = vrot.lane.b32.xlu1 %v3018_v45, %s6332_s27 }
 0x912   : > { %v2978_v49 = vpop.permute.xlu0 %2977  ;;  %v8240_v18 = vpop.permute.xlu1 %3043 }
 0x913   : > { %3214 = vrot.lane.b32.xlu0 %v2985_v25, %s6332_s27  ;;  %v2986_v25 = vsel %vm446_vm1, %v8112_v38, %v2978_v49 }
 0x914   : > { %3266 = vrot.lane.b32.xlu1 %v8240_v18, %s6332_s27 }
 0x916   : > { %v3000_v2 = vpop.permute.xlu0 %2999  ;;  %v8247_v61 = vpop.permute.xlu1 %3065 }
 0x917   : > { %3230 = vrot.lane.b32.xlu0 %v3007_v41, %s6332_s27  ;;  %v3008_v30 = vsel %vm458_vm2, %v8132_v11, %v3000_v2  ;;  %v3074_v11 = vsel %vm495_vm5, %v3060_v19, %v8183_v33 }
 0x918   : > { %3234 = vrot.lane.b32.xlu1 %v3008_v30, %s6332_s27 }
 0x91a   : > { %v3020_v6 = vpop.permute.xlu0 %3019  ;;  %v8255_v54 = vpop.permute.xlu1 %3087 }
 0x91b   : > { %3244 = vrot.lane.b32.xlu0 %v3023_v29, %s6332_s27 }
 0x91e   : > { %v3046_v59 = vpop.permute.xlu0 %3045  ;;  %v3189_v5 = vpop.permute.xlu1 %3188 }
 0x91f   : > { %3262 = vrot.lane.b32.xlu0 %v3052_v44, %s6332_s27  ;;  %v3055_v44 = vsel %vm483_vm4, %v3046_v59, %v8168_v35 }
 0x922   : > { %v3068_v12 = vpop.permute.xlu0 %3067  ;;  %v8262_v17 = vpop.permute.xlu1 %3109 }
 0x923   : > { %3278 = vrot.lane.b32.xlu0 %v3074_v11, %s6332_s27  ;;  %v3076_v35 = vsel %vm495_vm5, %v8247_v61, %v3068_v12  ;;  %v3122_v11 = vsel %vm9900_vm9, %v8178_v58, %v8158_v4  ;;  %v5698_v4 = vld [vmem:[%s9885_s7 + $0x60] sm:$0xff] }
 0x926   : > { %v8267_v34 = vpop.permute.xlu0 %3089  ;;  %v2958_v32 = vpop.permute.xlu1 %2957 }
 0x927   : > { %3202 = vrot.lane.b32.xlu0 %v2964_v0, %s6332_s27  ;;  %v2965_v51 = vsel %vm434_vm0, %v2956_v13, %v2958_v32  ;;  %v3325_v13 = vsel %vm637_vm7, %v8156_v24, %v3189_v5  ;;  %v2966_v38 = vsel %vm434_vm0, %v2958_v32, %v8160_v28  ;;  %v3119_v32 = vsel %vm9900_vm9, %v8189_v27, %v8152_v31  ;;  %v5701_v0 = vld [vmem:[%s9885_s7 + $0x78] sm:$0xff] }
 0x928   : > { %3204 = vrot.lane.b32.xlu1 %v2965_v51, %s6332_s27  ;;  %v3324_v31 = vsel %vm637_vm7, %v8226_v50, %v8194_v56  ;;  %v5731_v56 = vld [vmem:[%s9885_s7 + $0x98] sm:$0xff] }
 0x92a   : > { %v8274_v63 = vpop.permute.xlu0 %3190  ;;  %v2980_v41 = vpop.permute.xlu1 %2979 }
 0x92b   : > { %3218 = vrot.lane.b32.xlu0 %v2986_v25, %s6332_s27  ;;  %v3326_v19 = vsel %vm637_vm7, %v3189_v5, %v8274_v63  ;;  %v2987_v30 = vsel %vm446_vm1, %v2978_v49, %v2980_v41  ;;  %v2988_v24 = vsel %vm446_vm1, %v2980_v41, %v8166_v47  ;;  %v3075_v49 = vsel %vm495_vm5, %v8183_v33, %v8136_v22  ;;  %v5728_v41 = vld [vmem:[%s9885_s7 + $0x80] sm:$0xff] }
 0x92c   : > { %3438 = vmatprep.subr.bf16.mxu0 %v3326_v19  ;;  %3272 = vrot.lane.b32.xlu1 %v3056_v39, %s6332_s27  ;;  %v3096_v22 = vsel %vm9901_vm6, %v8217_v10, %v8187_v60  ;;  %v3026_v33 = vsel %vm468_vm3, %v3020_v6, %v8162_v20  ;;  %v3077_v20 = vsel %vm495_vm5, %v3068_v12, %v8172_v40  ;;  %v5729_v39 = vld [vmem:[%s9885_s7 + $0x88] sm:$0xff] }
 0x92d   : > { %3439 = vmatpush1.bf16.msra.mxu0 %v3325_v13 }
 0x92e   : > { %v3002_v9 = vpop.permute.xlu1 %3001 }
 0x92f   : > { %3206 = vrot.lane.b32.xlu0 %v2966_v38, %s6332_s27  ;;  %v3009_v29 = vsel %vm458_vm2, %v3000_v2, %v3002_v9  ;;  %v3010_v5 = vsel %vm458_vm2, %v3002_v9, %v8170_v7  ;;  %v3025_v2 = vsel %vm468_vm3, %v3018_v45, %v3020_v6  ;;  %v3098_v45 = vsel %vm9901_vm6, %v8255_v54, %v8267_v34  ;;  %v5730_v38 = vld [vmem:[%s9885_s7 + $0x90] sm:$0xff] }
 0x930   : > { %3220 = vrot.lane.b32.xlu1 %v2987_v30, %s6332_s27 }
 0x933   : > { %3208 = vrot.lane.b32.xlu0 %v8160_v28, %s6332_s27  ;;  %v3095_v28 = vsel %vm9901_vm6, %v8199_v62, %v8217_v10  ;;  %v3078_v10 = vsel %vm495_vm5, %v8172_v40, %v8144_v23  ;;  %v6129_v23 = vld [vmem:[%s9882_s4 + $0x34] ss:$12 sps:$4 sm:$0xff]   ;;  %v3099_v40 = vsel %vm9901_vm6, %v8267_v34, %v8176_v3 }
 0x934   : > { %3282 = vrot.lane.b32.xlu1 %v8247_v61, %s6332_s27  ;;  %3468 = vmatprep.mubr.bf16.mxu0 %v6129_v23 }
 0x935   : > { %3574 = vmatprep.mubr.bf16.mxu1 %v6129_v23 }
 0x937   : > { %3222 = vrot.lane.b32.xlu0 %v2988_v24, %s6332_s27 }
 0x938   : > { %3236 = vrot.lane.b32.xlu1 %v3009_v29, %s6332_s27 }
 0x939   : > { %v8364_v61 = vpop.permute.xlu1 %3256 }
 0x93b   : > { %3280 = vrot.lane.b32.xlu0 %v3075_v49, %s6332_s27 }
 0x93c   : > { %3292 = vrot.lane.b32.xlu1 %v3095_v28, %s6332_s27 }
 0x93f   : > { %3238 = vrot.lane.b32.xlu0 %v3010_v5, %s6332_s27 }
 0x940   : > { %3252 = vrot.lane.b32.xlu1 %v3025_v2, %s6332_s27 }
 0x943   : > { %3294 = vrot.lane.b32.xlu0 %v3096_v22, %s6332_s27 }
 0x944   : > { %3216 = vrot.lane.b32.xlu1 %v8181_v46, %s6332_s27  ;;  %v3054_v46 = vsel %vm483_vm4, %v8240_v18, %v3046_v59 }
 0x947   : > { %3254 = vrot.lane.b32.xlu0 %v3026_v33, %s6332_s27 }
 0x948   : > { %3270 = vrot.lane.b32.xlu1 %v3055_v44, %s6332_s27 }
 0x949   : > { %v8376_v6 = vpop.permute.xlu1 %3200 }
 0x94b   : > { %3290 = vrot.lane.b32.xlu0 %v8199_v62, %s6332_s27  ;;  %v3112_v62 = vpop.permute.xlu0 %3111 }
 0x94c   : > { %3288 = vrot.lane.b32.xlu1 %v3078_v10, %s6332_s27 }
 0x94f   : > { %3268 = vrot.lane.b32.xlu0 %v3054_v46, %s6332_s27 }
 0x950   : > { %3286 = vrot.lane.b32.xlu1 %v3077_v20, %s6332_s27 }
 0x953   : > { %3224 = vrot.lane.b32.xlu0 %v8166_v47, %s6332_s27  ;;  %v3097_v47 = vsel %vm9901_vm6, %v8187_v60, %v8138_v14  ;;  %v3100_v14 = vsel %vm9901_vm6, %v8176_v3, %v8146_v37  ;;  %v3120_v37 = vsel %vm9900_vm9, %v8262_v17, %v3112_v62 }
 0x954   : > { %3298 = vrot.lane.b32.xlu1 %v8255_v54, %s6332_s27 }
 0x955   : > { %v3249_v18 = vpop.permute.xlu0 %3248 }
 0x957   : > { %3284 = vrot.lane.b32.xlu0 %v3076_v35, %s6332_s27 }
 0x958   : > { %3302 = vrot.lane.b32.xlu1 %v3099_v40, %s6332_s27 }
 0x95a   : > { %v8374_v60 = vpop.permute.xlu0 %3264 }
 0x95b   : > { %3296 = vrot.lane.b32.xlu0 %v3097_v47, %s6332_s27 }
 0x95c   : > { %3232 = vrot.lane.b32.xlu1 %v8185_v53, %s6332_s27  ;;  %v3118_v53 = vsel %vm9900_vm9, %v8224_v21, %v8189_v27  ;;  %v5700_v27 = vld [vmem:[%s9885_s7 + $0x70] sm:$0xff] }
 0x95f   : > { %3300 = vrot.lane.b32.xlu0 %v3098_v45, %s6332_s27 }
 0x960   : > { %3240 = vrot.lane.b32.xlu1 %v8170_v7, %s6332_s27  ;;  %v3117_v7 = vsel %vm9900_vm9, %v8201_v16, %v8224_v21  ;;  %v3121_v21 = vsel %vm9900_vm9, %v3112_v62, %v8178_v58 }
 0x963   : > { %3304 = vrot.lane.b32.xlu0 %v3100_v14, %s6332_s27 }
 0x964   : > { %3310 = vrot.lane.b32.xlu1 %v3118_v53, %s6332_s27 }
 0x967   : > { %3308 = vrot.lane.b32.xlu0 %v3117_v7, %s6332_s27 }
 0x968   : > { %3316 = vrot.lane.b32.xlu1 %v3120_v37, %s6332_s27 }
 0x969   : > { %v8385_v3 = vpop.permute.xlu0 %3242 }
 0x96a   : > { %v3197_v54 = vpop.permute.xlu1 %3196 }
 0x96b   : > { %3306 = vrot.lane.b32.xlu0 %v8201_v16, %s6332_s27  ;;  %v5699_v16 = vld [vmem:[%s9885_s7 + $0x68] sm:$0xff] }
 0x96c   : > { %3314 = vrot.lane.b32.xlu1 %v8262_v17, %s6332_s27 }
 0x96d   : > { %v8391_v59 = vpop.permute.xlu0 %3258 }
 0x96e   : > { %v8393_v12 = vpop.permute.xlu1 %3212 }
 0x96f   : > { %3318 = vrot.lane.b32.xlu0 %v3121_v21, %s6332_s27 }
 0x970   : > { %3320 = vrot.lane.b32.xlu1 %v3122_v11, %s6332_s27 }
 0x971   : > { %v8402_v34 = vpop.permute.xlu0 %3274 }
 0x972   : > { %v8407_v17 = vpop.permute.xlu1 %3228 }
 0x973   : > { %3312 = vrot.lane.b32.xlu0 %v3119_v32, %s6332_s27 }
 0x974   : > { %3135 = vperm.xlu1 %6101, %v5699_v16  }
 0x975   : > { %v3195_v58 = vpop.permute.xlu0 %3194 }
 0x976   : > { %v8419_v51 = vpop.permute.xlu1 %3246  ;;  %v3328_v24 = vsel %vm637_vm7, %v3195_v58, %v3197_v54 }
 0x977   : > { %3130 = vperm.xlu0 %6102, %v5698_v4   ;;  %v3348_v25 = vsel %vm637_vm7, %v8419_v51, %v3249_v18 }
 0x978   : > { %3145 = vperm.xlu1 %6101, %v5701_v0   ;;  %5859 = vmatprep.subr.bf16.mxu1 %v3348_v25 }
 0x979   : > { %v3211_v19 = vpop.permute.xlu0 %3210  ;;  %5860 = vmatpush3.bf16.msra.mxu1 %v3324_v31 }
 0x97a   : > { %v8438_v50 = vpop.permute.xlu1 %3260  ;;  %v3334_v7 = vsel %vm637_vm7, %v3211_v19, %v8393_v12 }
 0x97b   : > { %3140 = vperm.xlu0 %6102, %v5700_v27  }
 0x97c   : > { %3759 = vperm.xlu1 %6101, %v5729_v39  }
 0x97d   : > { %v3227_v13 = vpop.permute.xlu0 %3226 }
 0x97e   : > { %v8448_v29 = vpop.permute.xlu1 %3276  ;;  %v3340_v4 = vsel %vm637_vm7, %v3227_v13, %v8407_v17 }
 0x97f   : > { %3754 = vperm.xlu0 %6102, %v5728_v41  }
 0x980   : > { %3769 = vperm.xlu1 %6101, %v5731_v56  }
 0x981   : > { %v8443_v30 = vpop.permute.xlu0 %3198 }
 0x982   : > { %v3329_v9 = vsel %vm637_vm7, %v3197_v54, %v8443_v30  ;;  %v8460_v5 = vpop.permute.xlu1 %3250 }
 0x983   : > { %3764 = vperm.xlu0 %6102, %v5730_v38   ;;  %3440 = vmatprep.subr.bf16.mxu0 %v3329_v9 }
 0x984   : > { %3441 = vmatpush1.bf16.msra.mxu0 %v3328_v24  ;;  %4051 = vrot.lane.b32.xlu1 %v9902_v36, %s6324_s19 }
 0x985   : > { %v8452_v49 = vpop.permute.xlu0 %3214 }
 0x986   : > { %v8466_v22 = vpop.permute.xlu1 %3266  ;;  %v3335_v18 = vsel %vm637_vm7, %v8393_v12, %v8452_v49 }
 0x987   : > { %4199 = vrot.lane.b32.xlu0 %v9902_v36, %s6330_s25 }
 0x988   : > { %4059 = vrot.lane.b32.xlu1 %v9902_v36, %s6324_s19 }
 0x989   : > { %v8458_v28 = vpop.permute.xlu0 %3230 }
 0x98a   : > { %v3235_v10 = vpop.permute.xlu1 %3234  ;;  %v3341_v16 = vsel %vm637_vm7, %v8407_v17, %v8458_v28 }
 0x98b   : > { %4221 = vrot.lane.b32.xlu0 %v9902_v36, %s6331_s26 }
 0x98c   : > { %4073 = vrot.lane.b32.xlu1 %v9902_v36, %s6325_s20 }
 0x98d   : > { %v3245_v2 = vpop.permute.xlu0 %3244 }
 0x98e   : > { %v3347_v27 = vsel %vm637_vm7, %v3245_v2, %v8419_v51  ;;  %v3346_v39 = vsel %vm637_vm7, %v8385_v3, %v3245_v2  ;;  %v3327_v3 = vsel %vm637_vm7, %v8274_v63, %v8174_v42  ;;  %v3330_v42 = vsel %vm637_vm7, %v8443_v30, %v8376_v6 }
 0x990   : > { %4081 = vrot.lane.b32.xlu1 %v9902_v36, %s6325_s20 }
 0x991   : > { %v8470_v33 = vpop.permute.xlu0 %3262 }
 0x992   : > { %v3353_v9 = vsel %vm637_vm7, %v8438_v50, %v8470_v33  ;;  %v3354_v24 = vsel %vm637_vm7, %v8470_v33, %v8374_v60 }
 0x994   : > { %4095 = vrot.lane.b32.xlu1 %v9902_v36, %s6326_s21 }
 0x995   : > { %v8474_v44 = vpop.permute.xlu0 %3278 }
 0x996   : > { %v3359_v6 = vsel %vm637_vm7, %v8448_v29, %v8474_v44 }
 0x998   : > { %4103 = vrot.lane.b32.xlu1 %v9902_v36, %s6326_s21 }
 0x999   : > { %v3203_v46 = vpop.permute.xlu0 %3202 }
 0x99a   : > { %v3205_v20 = vpop.permute.xlu1 %3204 }
 0x99b   : > { %v3331_v45 = vsel %vm637_vm7, %v3203_v46, %v3205_v20 }
 0x99c   : > { %4147 = vrot.lane.b32.xlu1 %v9902_v36, %s6328_s23 }
 0x99d   : > { %v3219_v23 = vpop.permute.xlu0 %3218 }
 0x99e   : > { %v8480_v35 = vpop.permute.xlu1 %3272 }
 0x9a0   : > { %4155 = vrot.lane.b32.xlu1 %v9902_v36, %s6328_s23 }
 0x9a1   : > { %v8484_v40 = vpop.permute.xlu0 %3206 }
 0x9a2   : > { %v3221_v47 = vpop.permute.xlu1 %3220  ;;  %v3332_v62 = vsel %vm637_vm7, %v3205_v20, %v8484_v40 }
 0x9a3   : > { %3442 = vmatprep.subr.bf16.mxu0 %v3332_v62  ;;  %v3337_v11 = vsel %vm637_vm7, %v3219_v23, %v3221_v47  ;;  %v3358_v23 = vsel %vm637_vm7, %v8402_v34, %v8448_v29 }
 0x9a4   : > { %3443 = vmatpush1.bf16.msra.mxu0 %v3331_v45  ;;  %4169 = vrot.lane.b32.xlu1 %v9902_v36, %s6329_s24 }
 0x9a5   : > { %v3209_v14 = vpop.permute.xlu0 %3208  ;;  %3444 = vmatprep.subr.bf16.mxu0 %v3335_v18 }
 0x9a6   : > { %v8494_v53 = vpop.permute.xlu1 %3282 }
 0x9a8   : > { %3445 = vmatpush1.bf16.msra.mxu0 %v3334_v7  ;;  %4177 = vrot.lane.b32.xlu1 %v9902_v36, %s6329_s24 }
 0x9a9   : > { %v8500_v37 = vpop.permute.xlu0 %3222 }
 0x9aa   : > { %v3237_v54 = vpop.permute.xlu1 %3236  ;;  %v3338_v21 = vsel %vm637_vm7, %v3221_v47, %v8500_v37 }
 0x9ab   : > { %3446 = vmatprep.subr.bf16.mxu0 %v3338_v21  ;;  %v3343_v31 = vsel %vm637_vm7, %v3235_v10, %v3237_v54 }
 0x9ac   : > { %3447 = vmatpush1.bf16.msra.mxu0 %v3337_v11  ;;  %4191 = vrot.lane.b32.xlu1 %v9902_v36, %s6330_s25  ;;  %v6127_v11 = vld [vmem:[%s9882_s4 + $0x30] ss:$12 sps:$4 sm:$0xff]  }
 0x9ad   : > { %v3281_v12 = vpop.permute.xlu0 %3280  ;;  %3448 = vmatprep.subr.bf16.mxu0 %v3341_v16  ;;  %v6130_v16 = vld [vmem:[%s9882_s4 + $0x4c] ss:$12 sps:$4 sm:$0xff]  }
 0x9ae   : > { %v8510_v32 = vpop.permute.xlu1 %3292 }
 0x9b0   : > { %3449 = vmatpush1.bf16.msra.mxu0 %v3340_v4  ;;  %4284 = vrot.lane.b32.xlu1 %v9902_v36, %s6332_s27 }
 0x9b1   : > { %v8516_v58 = vpop.permute.xlu0 %3238 }
 0x9b2   : > { %v3253_v0 = vpop.permute.xlu1 %3252  ;;  %v3344_v25 = vsel %vm637_vm7, %v3237_v54, %v8516_v58 }
 0x9b3   : > { %3450 = vmatprep.subr.bf16.mxu0 %v3344_v25  ;;  %v3349_v38 = vsel %vm637_vm7, %v8460_v5, %v3253_v0  ;;  %v3352_v5 = vsel %vm637_vm7, %v8391_v59, %v8438_v50  ;;  %v3333_v59 = vsel %vm637_vm7, %v8484_v40, %v3209_v14  ;;  %v3360_v50 = vsel %vm637_vm7, %v8474_v44, %v3281_v12 }
 0x9b4   : > { %3451 = vmatpush1.bf16.msra.mxu0 %v3343_v31  ;;  %4292 = vrot.lane.b32.xlu1 %v9902_v36, %s6332_s27 }
 0x9b5   : > { %v3295_v17 = vpop.permute.xlu0 %3294  ;;  %3452 = vmatprep.subr.bf16.mxu0 %v3347_v27  ;;  %v6132_v27 = vld [vmem:[%s9882_s4 + $0x48] ss:$12 sps:$4 sm:$0xff]  }
 0x9b6   : > { %v3217_v19 = vpop.permute.xlu1 %3216  ;;  %v3365_v34 = vsel %vm637_vm7, %v8510_v32, %v3295_v17 }
 0x9b8   : > { %3453 = vmatpush1.bf16.msra.mxu0 %v3346_v39  ;;  %4213 = vrot.lane.b32.xlu1 %v9902_v36, %s6331_s26 }
 0x9b9   : > { %v3255_v41 = vpop.permute.xlu0 %3254 }
 0x9ba   : > { %v3271_v13 = vpop.permute.xlu1 %3270  ;;  %v3350_v56 = vsel %vm637_vm7, %v3253_v0, %v3255_v41  ;;  %v3351_v51 = vsel %vm637_vm7, %v3255_v41, %v8364_v61 }
 0x9bb   : > { %3454 = vmatprep.subr.bf16.mxu0 %v3350_v56  ;;  %5861 = vmatprep.subr.bf16.mxu1 %v3351_v51  ;;  %v3357_v63 = vsel %vm637_vm7, %v3271_v13, %v8480_v35 }
 0x9bc   : > { %3455 = vmatpush1.bf16.msra.mxu0 %v3349_v38  ;;  %5862 = vmatpush3.bf16.msra.mxu1 %v3327_v3 }
 0x9bd   : > { %v3291_v61 = vpop.permute.xlu0 %3290  ;;  %3456 = vmatprep.subr.bf16.mxu0 %v3353_v9  ;;  %5863 = vmatprep.subr.bf16.mxu1 %v3354_v24  ;;  %v6134_v24 = vld [vmem:[%s9882_s4 + $0x50] ss:$12 sps:$4 sm:$0xff]  }
 0x9be   : > { %v3289_v2 = vpop.permute.xlu1 %3288  ;;  %v3364_v14 = vsel %vm637_vm7, %v3291_v61, %v8510_v32  ;;  %v8615_v61 = vld [vmem:[%s9883_s5 + $0x10] sm:$0xff]  }
 0x9c0   : > { %3457 = vmatpush1.bf16.msra.mxu0 %v3352_v5  ;;  %5864 = vmatpush3.bf16.msra.mxu1 %v3330_v42 }
 0x9c1   : > { %v3269_v10 = vpop.permute.xlu0 %3268  ;;  %5865 = vmatprep.subr.bf16.mxu1 %v3357_v63 }
 0x9c2   : > { %v3287_v60 = vpop.permute.xlu1 %3286  ;;  %v3356_v33 = vsel %vm637_vm7, %v3269_v10, %v3271_v13  ;;  %v3355_v46 = vsel %vm637_vm7, %v8466_v22, %v3269_v10  ;;  %v3336_v22 = vsel %vm637_vm7, %v8452_v49, %v3217_v19  ;;  %v6133_v13 = vld [vmem:[%s9882_s4 + $0x38] ss:$12 sps:$4 sm:$0xff]  }
 0x9c3   : > { %3458 = vmatprep.subr.bf16.mxu0 %v3356_v33  ;;  %v3363_v35 = vsel %vm637_vm7, %v3287_v60, %v3289_v2 }
 0x9c4   : > { %3459 = vmatpush1.bf16.msra.mxu0 %v3355_v46  ;;  %5866 = vmatpush3.bf16.msra.mxu1 %v3333_v59 }
 0x9c5   : > { %v3225_v30 = vpop.permute.xlu0 %3224  ;;  %3460 = vmatprep.subr.bf16.mxu0 %v3359_v6  ;;  %5867 = vmatprep.subr.bf16.mxu1 %v3360_v50 }
 0x9c6   : > { %v3299_v20 = vpop.permute.xlu1 %3298  ;;  %v3339_v45 = vsel %vm637_vm7, %v8500_v37, %v3225_v30 }
 0x9c8   : > { %3461 = vmatpush1.bf16.msra.mxu0 %v3358_v23  ;;  %5868 = vmatpush3.bf16.msra.mxu1 %v3336_v22 }
 0x9c9   : > { %v3285_v40 = vpop.permute.xlu0 %3284  ;;  %5869 = vmatprep.subr.bf16.mxu1 %v3363_v35 }
 0x9ca   : > { %v3303_v47 = vpop.permute.xlu1 %3302  ;;  %v3362_v44 = vsel %vm637_vm7, %v3285_v40, %v3287_v60  ;;  %v3361_v62 = vsel %vm637_vm7, %v8494_v53, %v3285_v40 }
 0x9cb   : > { %3462 = vmatprep.subr.bf16.mxu0 %v3362_v44 }
 0x9cc   : > { %3463 = vmatpush1.bf16.msra.mxu0 %v3361_v62  ;;  %5870 = vmatpush3.bf16.msra.mxu1 %v3339_v45 }
 0x9cd   : > { %v3297_v29 = vpop.permute.xlu0 %3296  ;;  %3464 = vmatprep.subr.bf16.mxu0 %v3365_v34 }
 0x9ce   : > { %v3233_v49 = vpop.permute.xlu1 %3232  ;;  %v3366_v18 = vsel %vm637_vm7, %v3295_v17, %v3297_v29 }
 0x9cf   : > { %v3342_v53 = vsel %vm637_vm7, %v8458_v28, %v3233_v49  ;;  %5871 = vmatprep.subr.bf16.mxu1 %v3366_v18 }
 0x9d0   : > { %3465 = vmatpush1.bf16.msra.mxu0 %v3364_v14  ;;  %5872 = vmatpush3.bf16.msra.mxu1 %v3342_v53 }
 0x9d1   : > { %v3301_v7 = vpop.permute.xlu0 %3300 }
 0x9d2   : > { %v3241_v37 = vpop.permute.xlu1 %3240  ;;  %v3368_v54 = vsel %vm637_vm7, %v3301_v7, %v3303_v47  ;;  %v3367_v21 = vsel %vm637_vm7, %v3299_v20, %v3301_v7 }
 0x9d3   : > { %3466 = vmatprep.subr.bf16.mxu0 %v3368_v54  ;;  %v3345_v4 = vsel %vm637_vm7, %v8516_v58, %v3241_v37 }
 0x9d4   : > { %3467 = vmatpush1.bf16.msra.mxu0 %v3367_v21 }
 0x9d5   : > { %v3305_v28 = vpop.permute.xlu0 %3304 }
 0x9d6   : > { %v3311_v12 = vpop.permute.xlu1 %3310  ;;  %v3369_v32 = vsel %vm637_vm7, %v3303_v47, %v3305_v28 }
 0x9d7   : > { %3469 = vmatmul.mubr.bf16.vlgmr.msra.gmra.mrb[28].mxu0 %v6127_v11  ;;  %5873 = vmatprep.subr.bf16.mxu1 %v3369_v32 }
 0x9d8   : > { %5874 = vmatpush3.bf16.msra.mxu1 %v3345_v4  ;;  %3478 = vmatprep.mubr.bf16.mxu0 %v6130_v16 }
 0x9d9   : > { %v3309_v0 = vpop.permute.xlu0 %3308 }
 0x9da   : > { %v3317_v25 = vpop.permute.xlu1 %3316  ;;  %v3371_v31 = vsel %vm637_vm7, %v3309_v0, %v3311_v12 }
 0x9db   : > { %3489 = vmatprep.subr.bf16.mxu0 %v3371_v31  ;;  %3575 = vmatmul.mubr.bf16.vlgmr.msra.gmra.mrb[40].mxu1 %v6127_v11 }
 0x9dc   : > { %3582 = vmatprep.mubr.bf16.mxu1 %v6130_v16 }
 0x9dd   : > { %v3307_v17 = vpop.permute.xlu0 %3306 }
 0x9de   : > { %v3370_v19 = vsel %vm637_vm7, %v3307_v17, %v3309_v0  ;;  %v3315_v39 = vpop.permute.xlu1 %3314 }
 0x9df   : > { %3479 = vmatmul.mubr.bf16.gmra.mrb[32].mxu0 %v6132_v27  ;;  %v3373_v56 = vsel %vm637_vm7, %v3315_v39, %v3317_v25 }
 0x9e0   : > { %3490 = vmatpush1.bf16.msra.mxu0 %v3370_v19  ;;  %3521 = vmatprep.mubr.bf16.mxu0 %v9903_v15 }
 0x9e1   : > { %v3319_v58 = vpop.permute.xlu0 %3318 }
 0x9e2   : > { %v3374_v41 = vsel %vm637_vm7, %v3317_v25, %v3319_v58  ;;  %v3321_v51 = vpop.permute.xlu1 %3320 }
 0x9e3   : > { %3491 = vmatprep.subr.bf16.mxu0 %v3374_v41  ;;  %3583 = vmatmul.mubr.bf16.gmra.mrb[44].mxu1 %v6132_v27  ;;  %v3375_v9 = vsel %vm637_vm7, %v3319_v58, %v3321_v51 }
 0x9e4   : > { %3492 = vmatpush1.bf16.msra.mxu0 %v3373_v56  ;;  %5980 = vmatprep.mubr.msk.bf16.mxu1 %vm1445_vm15, %v6133_v13 }
 0x9e5   : > { %v3313_v38 = vpop.permute.xlu0 %3312 }
 0x9e6   : > { %v3372_v3 = vsel %vm637_vm7, %v3311_v12, %v3313_v38 }
 0x9e7   : > { %5708 = vmatmul.mubr.msk.bf16.vlgmr.msra.gmra.mrb[28].mxu0 %vm1445_vm15, %v6133_v13  ;;  %5976 = vmatprep.subr.bf16.mxu1 %v3372_v3 }
 0x9e8   : > { %5977 = vmatpush3.bf16.msra.mxu1 %v3372_v3  ;;  %3531 = vmatprep.mubr.bf16.mxu0 %v9903_v15 }
 0x9e9   : > { %5978 = vmatprep.subr.bf16.mxu1 %v3375_v9 }
 0x9ec   : > { %5979 = vmatpush3.bf16.msra.mxu1 %v3375_v9 }
 0x9ef   : > { %5709 = vmatmul.mubr.msk.bf16.gmra.mrb[32].mxu0 %vm1445_vm15, %v6134_v24  ;;  %5981 = vmatmul.mubr.msk.bf16.vlgmr.msra.gmra.mrb[48].mxu1 %vm1445_vm15, %v6134_v24 }
 0x9f0   : > { %3820 = vmatprep.mubr.bf16.mxu1 %v9903_v15  ;;  %5988 = vmatprep.mubr.msk.bf16.mxu0 %vm1445_vm15, %v8615_v61 }
 0x9f3   : > { %v3136_v23 = vpop.permute.xlu1 %3135 }
 0x9f6   : > { %v3131_v30 = vpop.permute.xlu0 %3130 }
 0x9f7   : > { %v3146_v54 = vpop.permute.xlu1 %3145 }
 0x9fa   : > { %v3141_v53 = vpop.permute.xlu0 %3140 }
 0xaae   : > { %v5875_v2 = vpop.f32.mrb[40].mxu1 }
 0xaaf   : > { %v5876_v5 = vpop.f32.mrb[41].mxu1 }
 0xab0   : > { %v5877_v42 = vadd.f32 %v5876_v5, %v5875_v2  ;;  %v5878_v63 = vpop.f32.mrb[42].mxu1 }
 0xab1   : > { %v5879_v10 = vpop.f32.mrb[43].mxu1 }
 0xab2   : > { %v5880_v60 = vadd.f32 %v5879_v10, %v5878_v63  ;;  %v3577_v32 = vadd.f32 %v5877_v42, %v3131_v30 }
 0xab4   : > { %v3580_v9 = vadd.f32 %v5880_v60, %v3136_v23 }
 0xab6   : > { %v5881_v33 = vpop.f32.mrb[44].mxu1 }
 0xab7   : > { %v5882_v46 = vpop.f32.mrb[45].mxu1 }
 0xab8   : > { %v5883_v59 = vadd.f32 %v5882_v46, %v5881_v33  ;;  %v5884_v6 = vpop.f32.mrb[46].mxu1 }
 0xab9   : > { %v5885_v50 = vpop.f32.mrb[47].mxu1 }
 0xaba   : > { %v5886_v20 = vadd.f32 %v5885_v50, %v5884_v6  ;;  %v3523_v22 = vpop.f32.mrb[28].mxu0  ;;  %v3585_v11 = vadd.f32 %v5883_v59, %v3141_v53 }
 0xabb   : > { %v8619_v35 = vadd.f32 %v3523_v22, %v3131_v30  ;;  %v3525_v40 = vpop.f32.mrb[29].mxu0 }
 0xabc   : > { %v8621_v47 = vadd.f32 %v3525_v40, %v3131_v30  ;;  %v3527_v44 = vpop.f32.mrb[30].mxu0  ;;  %v3588_v13 = vadd.f32 %v5886_v20, %v3146_v54 }
 0xabd   : > { %v3652_v62 = vmin.f32 %v8619_v35, 0.0  ;;  %v8624_v45 = vadd.f32 %v3527_v44, %v3136_v23  ;;  %v3529_v34 = vpop.f32.mrb[31].mxu0  ;;  %vm3640_vm8 = vcmp.gt.f32.partialorder %v8619_v35, 0.0 }
 0xabe   : > { %v3653_v29 = vmin.f32 %v8621_v47, 0.0  ;;  %v8627_v49 = vadd.f32 %v3529_v34, %v3136_v23  ;;  %vm3641_vm10 = vcmp.gt.f32.partialorder %v8621_v47, 0.0 }
 0xabf   : > { %v3664_v18 = vmul.f32 1.442695, %v3652_v62  ;;  %v3655_v14 = vmin.f32 %v8624_v45, 0.0  ;;  %vm3643_vm11 = vcmp.gt.f32.partialorder %v8624_v45, 0.0 }
 0xac0   : > { %v3666_v7 = vmul.f32 1.442695, %v3653_v29  ;;  %v3656_v37 = vmin.f32 %v8627_v49, 0.0  ;;  %vm3644_vm12 = vcmp.gt.f32.partialorder %v8627_v49, 0.0 }
 0xac1   : > { %6244 = vpow2.f32 %v3664_v18  ;;  %v3670_v21 = vmul.f32 1.442695, %v3655_v14 }
 0xac2   : > { %6246 = vpow2.f32 %v3666_v7  ;;  %v3672_v16 = vmul.f32 1.442695, %v3656_v37  ;;  %v3533_v28 = vpop.f32.mrb[32].mxu0  ;;  %v5982_v12 = vpop.f32.mrb[48].mxu1 }
 0xac3   : > { %6248 = vpow2.f32 %v3670_v21  ;;  %v8631_v4 = vadd.f32 %v3533_v28, %v3141_v53  ;;  %v8633_v0 = vadd.f32 %v5982_v12, %v3585_v11  ;;  %v3535_v25 = vpop.f32.mrb[33].mxu0  ;;  %v3625_v31 = vpop.f32.mrb[49].mxu1 }
 0xac4   : > { %6250 = vpow2.f32 %v3672_v16  ;;  %v8635_v27 = vadd.f32 %v3535_v25, %v3141_v53  ;;  %v8637_v17 = vadd.f32 %v3625_v31, %v3577_v32  ;;  %v3537_v19 = vpop.f32.mrb[34].mxu0  ;;  %v5983_v39 = vpop.f32.mrb[50].mxu1 }
 0xac5   : > { %v3658_v58 = vmin.f32 %v8631_v4, 0.0  ;;  %v3660_v41 = vmin.f32 %v8633_v0, 0.0  ;;  %v3539_v56 = vpop.f32.mrb[35].mxu0  ;;  %v3628_v51 = vpop.f32.mrb[51].mxu1  ;;  %v8643_v5 = vadd.f32 %v3537_v19, %v3146_v54  ;;  %v8645_v42 = vadd.f32 %v5983_v39, %v3588_v13 }
 0xac6   : > { %v3659_v38 = vmin.f32 %v8635_v27, 0.0  ;;  %v3654_v3 = vmin.f32 %v8637_v17, 0.0  ;;  %v8647_v33 = vadd.f32 %v3539_v56, %v3146_v54  ;;  %v8649_v46 = vadd.f32 %v3628_v51, %v3580_v9 }
 0xac7   : > { %v3676_v24 = vmul.f32 1.442695, %v3658_v58  ;;  %v3680_v2 = vmul.f32 1.442695, %v3660_v41  ;;  %v3661_v59 = vmin.f32 %v8643_v5, 0.0  ;;  %v3663_v6 = vmin.f32 %v8645_v42, 0.0 }
 0xac8   : > { %v3678_v63 = vmul.f32 1.442695, %v3659_v38  ;;  %v3668_v10 = vmul.f32 1.442695, %v3654_v3  ;;  %v3662_v60 = vmin.f32 %v8647_v33, 0.0  ;;  %v3657_v20 = vmin.f32 %v8649_v46, 0.0 }
 0xac9   : > { %6252 = vpow2.f32 %v3676_v24  ;;  %v3682_v30 = vmul.f32 1.442695, %v3661_v59  ;;  %v3686_v40 = vmul.f32 1.442695, %v3663_v6  ;;  %vm3646_vm13 = vcmp.gt.f32.partialorder %v8631_v4, 0.0 }
 0xaca   : > { %6254 = vpow2.f32 %v3680_v2  ;;  %v3684_v44 = vmul.f32 1.442695, %v3662_v60  ;;  %v3674_v29 = vmul.f32 1.442695, %v3657_v20  ;;  %vm3648_vm14 = vcmp.gt.f32.partialorder %v8633_v0, 0.0 }
 0xacb   : > { %v6245_v50 = vpop.eup %6244  ;;  %6256 = vpow2.f32 %v3678_v63  ;;  %vm3650_vm9 = vcmp.gt.f32.partialorder %v8647_v33, 0.0  ;;  %vm3645_vm6 = vcmp.gt.f32.partialorder %v8649_v46, 0.0 }
 0xacc   : > { %v6247_v22 = vpop.eup %6246  ;;  %v5712_v23 = vadd.f32 -1.0, %v6245_v50  ;;  %6258 = vpow2.f32 %v3668_v10 }
 0xacd   : > { %v6249_v62 = vpop.eup %6248  ;;  %v5713_v34 = vadd.f32 -1.0, %v6247_v22  ;;  %6260 = vpow2.f32 %v3682_v30 }
 0xace   : > { %v6251_v18 = vpop.eup %6250  ;;  %v5715_v14 = vadd.f32 -1.0, %v6249_v62  ;;  %6262 = vpow2.f32 %v3686_v40  ;;  %v3700_v7 = vsel %vm3640_vm8, %v8619_v35, %v5712_v23  ;;  %vm3647_vm8 = vcmp.gt.f32.partialorder %v8635_v27, 0.0 }
 0xacf   : > { %v5716_v53 = vadd.f32 -1.0, %v6251_v18  ;;  %6264 = vpow2.f32 %v3684_v44  ;;  %v3701_v21 = vsel %vm3641_vm10, %v8621_v47, %v5713_v34  ;;  %vm3642_vm10 = vcmp.gt.f32.partialorder %v8637_v17, 0.0 }
 0xad0   : > { %v3703_v37 = vsel %vm3643_vm11, %v8624_v45, %v5715_v14  ;;  %6266 = vpow2.f32 %v3674_v29  ;;  %vm3649_vm11 = vcmp.gt.f32.partialorder %v8643_v5, 0.0 }
 0xad1   : > { %v3736_v54 = vpack.c.bf16 %v3703_v37, %v3700_v7  ;;  %v3704_v11 = vsel %vm3644_vm12, %v8627_v49, %v5716_v53  ;;  %vm3651_vm12 = vcmp.gt.f32.partialorder %v8645_v42, 0.0 }
 0xad2   : > { %v3737_v16 = vpack.c.bf16 %v3704_v11, %v3701_v21 }
 0xad3   : > { %v6253_v28 = vpop.eup %6252 }
 0xad4   : > { %v6255_v12 = vpop.eup %6254  ;;  %3788 = vmatprep.subr.bf16.mxu1 %v3737_v16  ;;  %v5718_v31 = vadd.f32 -1.0, %v6253_v28 }
 0xad5   : > { %v6257_v32 = vpop.eup %6256  ;;  %3789 = vmatpush1.bf16.msra.mxu1 %v3736_v54  ;;  %v5720_v35 = vadd.f32 -1.0, %v6255_v12 }
 0xad6   : > { %v6259_v25 = vpop.eup %6258  ;;  %v5719_v47 = vadd.f32 -1.0, %v6257_v32  ;;  %v3706_v56 = vsel %vm3646_vm13, %v8631_v4, %v5718_v31 }
 0xad7   : > { %v6261_v19 = vpop.eup %6260  ;;  %v5714_v58 = vadd.f32 -1.0, %v6259_v25  ;;  %v3708_v24 = vsel %vm3648_vm14, %v8633_v0, %v5720_v35  ;;  %v6136_v0 = vld [vmem:[%s9883_s5 + $0x18] sm:$0xff]  }
 0xad8   : > { %v6263_v45 = vpop.eup %6262  ;;  %v5721_v49 = vadd.f32 -1.0, %v6261_v19  ;;  %v3707_v63 = vsel %vm3647_vm8, %v8635_v27, %v5719_v47  ;;  %v3755_v27 = vpop.permute.xlu0 %3754 }
 0xad9   : > { %v6265_v39 = vpop.eup %6264  ;;  %v5723_v41 = vadd.f32 -1.0, %v6263_v45  ;;  %v3702_v59 = vsel %vm3642_vm10, %v8637_v17, %v5714_v58 }
 0xada   : > { %v6267_v13 = vpop.eup %6266  ;;  %v3709_v51 = vsel %vm3649_vm11, %v8643_v5, %v5721_v49  ;;  %v5722_v38 = vadd.f32 -1.0, %v6265_v39 }
 0xadb   : > { %v3739_v3 = vpack.c.bf16 %v3709_v51, %v3706_v56  ;;  %v5717_v9 = vadd.f32 -1.0, %v6267_v13  ;;  %v3711_v2 = vsel %vm3651_vm12, %v8645_v42, %v5723_v41  ;;  %v3760_v42 = vpop.permute.xlu1 %3759 }
 0xadc   : > { %v3710_v4 = vsel %vm3650_vm9, %v8647_v33, %v5722_v38  ;;  %v3741_v5 = vpack.c.bf16 %v3711_v2, %v3708_v24  ;;  %v3765_v44 = vpop.permute.xlu0 %3764 }
 0xadd   : > { %v3740_v10 = vpack.c.bf16 %v3710_v4, %v3707_v63  ;;  %v3705_v6 = vsel %vm3645_vm6, %v8649_v46, %v5717_v9 }
 0xade   : > { %v3738_v60 = vpack.c.bf16 %v3705_v6, %v3702_v59 }
 0xadf   : > { %3790 = vmatprep.subr.bf16.mxu1 %v3740_v10  ;;  %v3770_v37 = vpop.permute.xlu1 %3769 }
 0xae0   : > { %5984 = vmatprep.subr.bf16.mxu0 %v3738_v60  ;;  %3791 = vmatpush1.bf16.msra.mxu1 %v3739_v3 }
 0xae1   : > { %5985 = vmatpush3.bf16.msra.mxu0 %v3738_v60 }
 0xae2   : > { %5986 = vmatprep.subr.bf16.mxu0 %v3741_v5 }
 0xae3   : > { %5734 = vmatmul.mubr.msk.bf16.vlgmr.msra.gmra.mrb[52].mxu1 %vm1445_vm15, %v8615_v61 }
 0xae4   : > { %3830 = vmatprep.mubr.bf16.mxu1 %v9903_v15 }
 0xae5   : > { %5987 = vmatpush3.bf16.msra.mxu0 %v3741_v5 }
 0xae8   : > { %5989 = vmatmul.mubr.msk.bf16.vlgmr.msra.gmra.mrb[36].mxu0 %vm1445_vm15, %v6136_v0 }
 0xaeb   : > { %5735 = vmatmul.mubr.msk.bf16.gmra.mrb[56].mxu1 %vm1445_vm15, %v6136_v0 }
 0xbb6   : > { %v3822_v17 = vpop.f32.mrb[52].mxu1 }
 0xbb7   : > { %v8693_v33 = vadd.f32 %v3822_v17, %v3755_v27  ;;  %v3824_v46 = vpop.f32.mrb[53].mxu1 }
 0xbb8   : > { %v8695_v50 = vadd.f32 %v3824_v46, %v3755_v27  ;;  %v3826_v61 = vpop.f32.mrb[54].mxu1 }
 0xbb9   : > { %v3902_v30 = vmin.f32 %v8693_v33, 0.0  ;;  %v8698_v20 = vadd.f32 %v3826_v61, %v3760_v42  ;;  %v3828_v22 = vpop.f32.mrb[55].mxu1  ;;  %vm3890_vm6 = vcmp.gt.f32.partialorder %v8693_v33, 0.0 }
 0xbba   : > { %v3903_v23 = vmin.f32 %v8695_v50, 0.0  ;;  %v8701_v40 = vadd.f32 %v3828_v22, %v3760_v42  ;;  %vm3891_vm9 = vcmp.gt.f32.partialorder %v8695_v50, 0.0 }
 0xbbb   : > { %v3914_v62 = vmul.f32 1.442695, %v3902_v30  ;;  %v3905_v34 = vmin.f32 %v8698_v20, 0.0  ;;  %v5990_v29 = vpop.f32.mrb[36].mxu0  ;;  %vm3893_vm13 = vcmp.gt.f32.partialorder %v8698_v20, 0.0 }
 0xbbc   : > { %v3916_v18 = vmul.f32 1.442695, %v3903_v23  ;;  %v3906_v14 = vmin.f32 %v8701_v40, 0.0  ;;  %v8705_v53 = vadd.f32 %v5990_v29, %v3765_v44  ;;  %v3875_v7 = vpop.f32.mrb[37].mxu0  ;;  %vm3894_vm14 = vcmp.gt.f32.partialorder %v8701_v40, 0.0 }
 0xbbd   : > { %6268 = vpow2.f32 %v3914_v62  ;;  %v3920_v54 = vmul.f32 1.442695, %v3905_v34  ;;  %v8707_v21 = vadd.f32 %v3875_v7, %v3755_v27  ;;  %v5991_v11 = vpop.f32.mrb[38].mxu0 }
 0xbbe   : > { %6270 = vpow2.f32 %v3916_v18  ;;  %v3922_v16 = vmul.f32 1.442695, %v3906_v14  ;;  %v3910_v28 = vmin.f32 %v8705_v53, 0.0  ;;  %v3878_v12 = vpop.f32.mrb[39].mxu0  ;;  %v3832_v32 = vpop.f32.mrb[56].mxu1  ;;  %v8711_v31 = vadd.f32 %v5991_v11, %v3770_v37 }
 0xbbf   : > { %6272 = vpow2.f32 %v3920_v54  ;;  %v3904_v25 = vmin.f32 %v8707_v21, 0.0  ;;  %v3834_v19 = vpop.f32.mrb[57].mxu1  ;;  %v8713_v45 = vadd.f32 %v3878_v12, %v3760_v42  ;;  %v8715_v47 = vadd.f32 %v3832_v32, %v3765_v44 }
 0xbc0   : > { %6274 = vpow2.f32 %v3922_v16  ;;  %v3930_v35 = vmul.f32 1.442695, %v3910_v28  ;;  %v3836_v49 = vpop.f32.mrb[58].mxu1  ;;  %v3913_v58 = vmin.f32 %v8711_v31, 0.0  ;;  %v8718_v41 = vadd.f32 %v3834_v19, %v3765_v44 }
 0xbc1   : > { %v3918_v39 = vmul.f32 1.442695, %v3904_v25  ;;  %v3838_v13 = vpop.f32.mrb[59].mxu1  ;;  %v3907_v56 = vmin.f32 %v8713_v45, 0.0  ;;  %v3908_v38 = vmin.f32 %v8715_v47, 0.0  ;;  %v8723_v24 = vadd.f32 %v3836_v49, %v3770_v37 }
 0xbc2   : > { %6276 = vpow2.f32 %v3930_v35  ;;  %v3936_v51 = vmul.f32 1.442695, %v3913_v58  ;;  %v3909_v9 = vmin.f32 %v8718_v41, 0.0  ;;  %v8725_v2 = vadd.f32 %v3838_v13, %v3770_v37 }
 0xbc3   : > { %6278 = vpow2.f32 %v3918_v39  ;;  %v3924_v3 = vmul.f32 1.442695, %v3907_v56  ;;  %v3926_v63 = vmul.f32 1.442695, %v3908_v38  ;;  %v3911_v5 = vmin.f32 %v8723_v24, 0.0 }
 0xbc4   : > { %6280 = vpow2.f32 %v3936_v51  ;;  %v3928_v4 = vmul.f32 1.442695, %v3909_v9  ;;  %v3912_v59 = vmin.f32 %v8725_v2, 0.0  ;;  %vm3898_vm8 = vcmp.gt.f32.partialorder %v8705_v53, 0.0 }
 0xbc5   : > { %6282 = vpow2.f32 %v3924_v3  ;;  %v3932_v0 = vmul.f32 1.442695, %v3911_v5  ;;  %vm3892_vm10 = vcmp.gt.f32.partialorder %v8707_v21, 0.0  ;;  %vm3901_vm11 = vcmp.gt.f32.partialorder %v8711_v31, 0.0 }
 0xbc6   : > { %6284 = vpow2.f32 %v3926_v63  ;;  %v3934_v42 = vmul.f32 1.442695, %v3912_v59  ;;  %vm3895_vm12 = vcmp.gt.f32.partialorder %v8713_v45, 0.0 }
 0xbc7   : > { %v6269_v10 = vpop.eup %6268  ;;  %6286 = vpow2.f32 %v3928_v4 }
 0xbc8   : > { %v6271_v6 = vpop.eup %6270  ;;  %v5738_v60 = vadd.f32 -1.0, %v6269_v10  ;;  %6288 = vpow2.f32 %v3932_v0 }
 0xbc9   : > { %v6273_v27 = vpop.eup %6272  ;;  %v5739_v17 = vadd.f32 -1.0, %v6271_v6  ;;  %6290 = vpow2.f32 %v3934_v42 }
 0xbca   : > { %v6275_v46 = vpop.eup %6274  ;;  %v3950_v61 = vsel %vm3890_vm6, %v8693_v33, %v5738_v60  ;;  %v5741_v30 = vadd.f32 -1.0, %v6273_v27  ;;  %vm3896_vm6 = vcmp.gt.f32.partialorder %v8715_v47, 0.0 }
 0xbcb   : > { %v3951_v22 = vsel %vm3891_vm9, %v8695_v50, %v5739_v17  ;;  %v5742_v23 = vadd.f32 -1.0, %v6275_v46  ;;  %v3962_v29 = vmul.f32 %v3950_v61, %v6686_v8  ;;  %vm3897_vm9 = vcmp.gt.f32.partialorder %v8718_v41, 0.0 }
 0xbcc   : > { %v6277_v44 = vpop.eup %6276  ;;  %v3953_v62 = vsel %vm3893_vm13, %v8698_v20, %v5741_v30  ;;  %v3963_v7 = vmul.f32 %v3951_v22, %v6704_v26  ;;  %vm3899_vm13 = vcmp.gt.f32.partialorder %v8723_v24, 0.0 }
 0xbcd   : > { %v6279_v34 = vpop.eup %6278  ;;  %v3965_v33 = vmul.f32 %v3953_v62, %v6686_v8  ;;  %v3954_v18 = vsel %vm3894_vm14, %v8701_v40, %v5742_v23  ;;  %v5746_v14 = vadd.f32 -1.0, %v6277_v44  ;;  %vm3900_vm14 = vcmp.gt.f32.partialorder %v8725_v2, 0.0 }
 0xbce   : > { %v3966_v50 = vmul.f32 %v3954_v18, %v6704_v26  ;;  %v5740_v37 = vadd.f32 -1.0, %v6279_v34  ;;  %v6281_v54 = vpop.eup %6280  ;;  %v8869_v34 = vpop.permute.xlu0 %4199 }
 0xbcf   : > { %v8741_v11 = vpack.c.bf16 %v3965_v33, %v3962_v29  ;;  %v6283_v20 = vpop.eup %6282  ;;  %v3958_v28 = vsel %vm3898_vm8, %v8705_v53, %v5746_v14  ;;  %v5749_v12 = vadd.f32 -1.0, %v6281_v54  ;;  %vm9911_vm8 = vcmask 744448  }
 0xbd0   : > { %v8744_v16 = vpack.c.bf16 %v3966_v50, %v3963_v7  ;;  %v6285_v40 = vpop.eup %6284  ;;  %v3952_v32 = vsel %vm3892_vm10, %v8707_v21, %v5740_v37  ;;  %v5743_v25 = vadd.f32 -1.0, %v6283_v20  ;;  %v3970_v39 = vmul.f32 %v3958_v28, %v6666_v48  ;;  %vm9912_vm10 = vmmov %vm9911_vm8 }
 0xbd1   : > { %v6287_v19 = vpop.eup %6286  ;;  %v3961_v35 = vsel %vm3901_vm11, %v8711_v31, %v5749_v12  ;;  %v5744_v49 = vadd.f32 -1.0, %v6285_v40  ;;  %v3964_v51 = vmul.f32 %v3952_v32, %v6666_v48  ;;  %vm9913_vm11 = vmmov %vm9911_vm8 }
 0xbd2   : > { %v3973_v58 = vmul.f32 %v3961_v35, %v6666_v48  ;;  %v3955_v53 = vsel %vm3895_vm12, %v8713_v45, %v5743_v25  ;;  %v5745_v13 = vadd.f32 -1.0, %v6287_v19  ;;  %v6289_v56 = vpop.eup %6288  ;;  %v8877_v33 = vpop.permute.xlu0 %4221  ;;  %vm9914_vm12 = vmmov %vm9911_vm8 }
 0xbd3   : > { %v3967_v21 = vmul.f32 %v3955_v53, %v6666_v48  ;;  %v6291_v38 = vpop.eup %6290  ;;  %v3956_v31 = vsel %vm3896_vm6, %v8715_v47, %v5744_v49  ;;  %v5747_v9 = vadd.f32 -1.0, %v6289_v56  ;;  %vm9915_vm6 = vmmov %vm9911_vm8 }
 0xbd4   : > { %v4018_v3 = vpack.c.bf16 %v3973_v58, %v3970_v39  ;;  %v3957_v4 = vsel %vm3897_vm9, %v8718_v41, %v5745_v13  ;;  %v5748_v45 = vadd.f32 -1.0, %v6291_v38  ;;  %v3968_v10 = vmul.f32 %v3956_v31, %v6686_v8  ;;  %vm9916_vm9 = vmmov %vm9915_vm6 }
 0xbd5   : > { %v4014_v63 = vpack.c.bf16 %v3967_v21, %v3964_v51  ;;  %v3959_v5 = vsel %vm3899_vm13, %v8723_v24, %v5747_v9  ;;  %v3969_v6 = vmul.f32 %v3957_v4, %v6704_v26  ;;  %v8800_v24 = vpop.permute.xlu1 %4051  ;;  %vm9917_vm13 = vcmask 736256  }
 0xbd6   : > { %4127 = vrot.lane.b32.xlu1 %v4018_v3, %s6327_s22  ;;  %4065 = vrot.lane.b32.xlu0 %v4018_v3, %s6324_s19  ;;  %v3971_v47 = vmul.f32 %v3959_v5, %v6686_v8  ;;  %v3960_v59 = vsel %vm3900_vm14, %v8725_v2, %v5748_v45  ;;  %vm9918_vm14 = vmmov %vm9917_vm13 }
 0xbd7   : > { %v3972_v41 = vmul.f32 %v3960_v59, %v6704_v26 }
 0xbd8   : > { %v8771_v60 = vpack.c.bf16 %v3971_v47, %v3968_v10 }
 0xbd9   : > { %v8773_v0 = vpack.c.bf16 %v3972_v41, %v3969_v6  ;;  %v8805_v2 = vpop.permute.xlu1 %4059 }
 0xbda   : > { %4298 = vrot.lane.b32.xlu1 %v4018_v3, %s6332_s27  ;;  %4087 = vrot.lane.b32.xlu0 %v4018_v3, %s6325_s20 }
 0xbdd   : > { %v8813_v27 = vpop.permute.xlu1 %4073 }
 0xbde   : > { %4211 = vrot.lane.b32.xlu1 %v4014_v63, %s6331_s26  ;;  %4109 = vrot.lane.b32.xlu0 %v4018_v3, %s6326_s21 }
 0xbe1   : > { %v8818_v17 = vpop.permute.xlu1 %4081 }
 0xbe2   : > { %4286 = vrot.lane.b32.xlu1 %v8741_v11, %s6332_s27  ;;  %4153 = vrot.lane.b32.xlu0 %v4018_v3, %s6328_s23 }
 0xbe5   : > { %v8827_v42 = vpop.permute.xlu1 %4095 }
 0xbe6   : > { %4207 = vrot.lane.b32.xlu1 %v8741_v11, %s6331_s26  ;;  %4175 = vrot.lane.b32.xlu0 %v4018_v3, %s6329_s24 }
 0xbe9   : > { %v8833_v46 = vpop.permute.xlu1 %4103 }
 0xbea   : > { %4055 = vrot.lane.b32.xlu1 %v8744_v16, %s6324_s19  ;;  %4197 = vrot.lane.b32.xlu0 %v4018_v3, %s6330_s25 }
 0xbed   : > { %v4148_v61 = vpop.permute.xlu1 %4147 }
 0xbee   : > { %4077 = vrot.lane.b32.xlu1 %v8744_v16, %s6325_s20  ;;  %4219 = vrot.lane.b32.xlu0 %v4018_v3, %s6331_s26 }
 0xbf1   : > { %v4156_v30 = vpop.permute.xlu1 %4155 }
 0xbf2   : > { %4099 = vrot.lane.b32.xlu1 %v8744_v16, %s6326_s21  ;;  %4057 = vrot.lane.b32.xlu0 %v4014_v63, %s6324_s19 }
 0xbf5   : > { %v8853_v22 = vpop.permute.xlu1 %4169 }
 0xbf6   : > { %4119 = vrot.lane.b32.xlu1 %v8744_v16, %s6327_s22  ;;  %4079 = vrot.lane.b32.xlu0 %v4014_v63, %s6325_s20 }
 0xbf9   : > { %v8857_v23 = vpop.permute.xlu1 %4177 }
 0xbfa   : > { %4143 = vrot.lane.b32.xlu1 %v8744_v16, %s6328_s23  ;;  %4101 = vrot.lane.b32.xlu0 %v4014_v63, %s6326_s21 }
 0xbfd   : > { %v8863_v44 = vpop.permute.xlu1 %4191 }
 0xbfe   : > { %4165 = vrot.lane.b32.xlu1 %v8744_v16, %s6329_s24  ;;  %4121 = vrot.lane.b32.xlu0 %v4014_v63, %s6327_s22 }
 0xc01   : > { %v8867_v62 = vpop.permute.xlu1 %4284 }
 0xc02   : > { %4187 = vrot.lane.b32.xlu1 %v8744_v16, %s6330_s25  ;;  %4145 = vrot.lane.b32.xlu0 %v4014_v63, %s6328_s23 }
 0xc05   : > { %v8873_v29 = vpop.permute.xlu1 %4292 }
 0xc06   : > { %4167 = vrot.lane.b32.xlu0 %v4014_v63, %s6329_s24  ;;  %4123 = vrot.lane.b32.xlu1 %v8771_v60, %s6327_s22 }
 0xc09   : > { %v8881_v18 = vpop.permute.xlu1 %4213 }
 0xc0a   : > { %4189 = vrot.lane.b32.xlu0 %v4014_v63, %s6330_s25  ;;  %4063 = vrot.lane.b32.xlu1 %v8773_v0, %s6324_s19 }
 0xc0e   : > { %4290 = vrot.lane.b32.xlu0 %v4014_v63, %s6332_s27  ;;  %4085 = vrot.lane.b32.xlu1 %v8773_v0, %s6325_s20 }
 0xc12   : > { %4053 = vrot.lane.b32.xlu0 %v8741_v11, %s6324_s19  ;;  %4107 = vrot.lane.b32.xlu1 %v8773_v0, %s6326_s21 }
 0xc16   : > { %4075 = vrot.lane.b32.xlu0 %v8741_v11, %s6325_s20  ;;  %4151 = vrot.lane.b32.xlu1 %v8773_v0, %s6328_s23 }
 0xc1a   : > { %4097 = vrot.lane.b32.xlu0 %v8741_v11, %s6326_s21  ;;  %4173 = vrot.lane.b32.xlu1 %v8773_v0, %s6329_s24 }
 0xc1e   : > { %4117 = vrot.lane.b32.xlu0 %v8741_v11, %s6327_s22  ;;  %4195 = vrot.lane.b32.xlu1 %v8773_v0, %s6330_s25 }
 0xc22   : > { %4141 = vrot.lane.b32.xlu0 %v8741_v11, %s6328_s23  ;;  %4296 = vrot.lane.b32.xlu1 %v8773_v0, %s6332_s27 }
 0xc26   : > { %4163 = vrot.lane.b32.xlu0 %v8741_v11, %s6329_s24  ;;  %4217 = vrot.lane.b32.xlu1 %v8773_v0, %s6331_s26 }
 0xc2a   : > { %4185 = vrot.lane.b32.xlu0 %v8741_v11, %s6330_s25 }
 0xc2e   : > { %4288 = vrot.lane.b32.xlu0 %v8744_v16, %s6332_s27 }
 0xc32   : > { %4209 = vrot.lane.b32.xlu0 %v8744_v16, %s6331_s26 }
 0xc36   : > { %4061 = vrot.lane.b32.xlu0 %v8771_v60, %s6324_s19 }
 0xc3a   : > { %4083 = vrot.lane.b32.xlu0 %v8771_v60, %s6325_s20 }
 0xc3e   : > { %4105 = vrot.lane.b32.xlu0 %v8771_v60, %s6326_s21 }
 0xc42   : > { %4149 = vrot.lane.b32.xlu0 %v8771_v60, %s6328_s23 }
 0xc46   : > { %4171 = vrot.lane.b32.xlu0 %v8771_v60, %s6329_s24 }
 0xc48   : > { %v8883_v14 = vpop.permute.xlu0 %4065  ;;  %v8891_v50 = vpop.permute.xlu1 %4127 }
 0xc49   : > { %4314 = vrot.lane.b32.xlu1 %v8883_v14, %s6332_s27 }
 0xc4a   : > { %4193 = vrot.lane.b32.xlu0 %v8771_v60, %s6330_s25 }
 0xc4c   : > { %v8889_v7 = vpop.permute.xlu0 %4087  ;;  %v8899_v54 = vpop.permute.xlu1 %4298 }
 0xc4e   : > { %4294 = vrot.lane.b32.xlu0 %v8771_v60, %s6332_s27 }
 0xc50   : > { %v8895_v37 = vpop.permute.xlu0 %4109  ;;  %v8907_v16 = vpop.permute.xlu1 %4211 }
 0xc52   : > { %4215 = vrot.lane.b32.xlu0 %v8771_v60, %s6331_s26 }
 0xc54   : > { %v8901_v11 = vpop.permute.xlu0 %4153  ;;  %v4287_v12 = vpop.permute.xlu1 %4286 }
 0xc55   : > { %v4162_v35 = vsel %vm483_vm4, %v8901_v11, %v4156_v30 }
 0xc56   : > { %4125 = vrot.lane.b32.xlu0 %v8773_v0, %s6327_s22 }
 0xc58   : > { %v8905_v20 = vpop.permute.xlu0 %4175  ;;  %v8916_v25 = vpop.permute.xlu1 %4207 }
 0xc5a   : > { %4362 = vrot.lane.b32.xlu0 %v8891_v50, %s6332_s27 }
 0xc5c   : > { %v8911_v28 = vpop.permute.xlu0 %4197  ;;  %v4056_v49 = vpop.permute.xlu1 %4055 }
 0xc60   : > { %v8913_v40 = vpop.permute.xlu0 %4219  ;;  %v4078_v53 = vpop.permute.xlu1 %4077 }
 0xc64   : > { %v4058_v32 = vpop.permute.xlu0 %4057  ;;  %v4100_v51 = vpop.permute.xlu1 %4099 }
 0xc65   : > { %4306 = vrot.lane.b32.xlu0 %v4058_v32, %s6332_s27  ;;  %v4069_v47 = vsel %vm434_vm0, %v4056_v49, %v4058_v32 }
 0xc68   : > { %v8918_v19 = vpop.permute.xlu0 %4079  ;;  %v4120_v3 = vpop.permute.xlu1 %4119 }
 0xc69   : > { %4378 = vrot.lane.b32.xlu0 %v4162_v35, %s6332_s27 }
 0xc6c   : > { %v8923_v39 = vpop.permute.xlu0 %4101  ;;  %v4144_v9 = vpop.permute.xlu1 %4143 }
 0xc6d   : > { %v4113_v0 = vsel %vm458_vm2, %v4100_v51, %v8923_v39 }
 0xc70   : > { %v4122_v58 = vpop.permute.xlu0 %4121  ;;  %v4166_v5 = vpop.permute.xlu1 %4165 }
 0xc71   : > { %4354 = vrot.lane.b32.xlu1 %v4122_v58, %s6332_s27  ;;  %v4130_v32 = vsel %vm468_vm3, %v4120_v3, %v4122_v58 }
 0xc74   : > { %v4146_v13 = vpop.permute.xlu0 %4145  ;;  %v8939_v59 = vpop.permute.xlu1 %4187 }
 0xc75   : > { %v4159_v56 = vsel %vm483_vm4, %v4146_v13, %v4148_v61 }
 0xc76   : > { %4370 = vrot.lane.b32.xlu1 %v4159_v56, %s6332_s27 }
 0xc78   : > { %v8928_v21 = vpop.permute.xlu0 %4167 }
 0xc7c   : > { %v8930_v38 = vpop.permute.xlu0 %4189 }
 0xc80   : > { %v8932_v31 = vpop.permute.xlu0 %4290 }
 0xc84   : > { %v4054_v63 = vpop.permute.xlu0 %4053 }
 0xc85   : > { %v4067_v30 = vsel %vm434_vm0, %v8800_v24, %v4054_v63  ;;  %v4068_v24 = vsel %vm434_vm0, %v4054_v63, %v4056_v49  ;;  %v4091_v49 = vsel %vm446_vm1, %v4078_v53, %v8918_v19 }
 0xc88   : > { %v4076_v4 = vpop.permute.xlu0 %4075 }
 0xc89   : > { %v4089_v45 = vsel %vm446_vm1, %v8813_v27, %v4076_v4  ;;  %v4090_v41 = vsel %vm446_vm1, %v4076_v4, %v4078_v53  ;;  %v8947_v27 = vpop.permute.xlu1 %4123  ;;  %v4158_v53 = vsel %vm483_vm4, %v4144_v9, %v4146_v13 }
 0xc8a   : > { %4316 = vrot.lane.b32.xlu1 %v4089_v45, %s6332_s27 }
 0xc8c   : > { %v4098_v10 = vpop.permute.xlu0 %4097 }
 0xc8d   : > { %v4064_v35 = vpop.permute.xlu1 %4063  ;;  %v4111_v4 = vsel %vm458_vm2, %v8827_v42, %v4098_v10  ;;  %v4428_v42 = vsel %vm637_vm7, %v8867_v62, %v4287_v12 }
 0xc8e   : > { %4304 = vrot.lane.b32.xlu1 %v4069_v47, %s6332_s27 }
 0xc90   : > { %v4118_v6 = vpop.permute.xlu0 %4117 }
 0xc91   : > { %4348 = vrot.lane.b32.xlu0 %v4118_v6, %s6332_s27  ;;  %v4129_v62 = vsel %vm468_vm3, %v4118_v6, %v4120_v3  ;;  %v4072_v6 = vsel %vm434_vm0, %v4064_v35, %v8883_v14  ;;  %v4181_v14 = vsel %vm495_vm5, %v8928_v21, %v8853_v22  ;;  %v4184_v22 = vsel %vm495_vm5, %v8905_v20, %v8857_v23 }
 0xc92   : > { %4318 = vrot.lane.b32.xlu1 %v4090_v41, %s6332_s27  ;;  %v4202_v23 = vsel %vm9912_vm10, %v8939_v59, %v8930_v38 }
 0xc94   : > { %v4142_v60 = vpop.permute.xlu0 %4141 }
 0xc95   : > { %4364 = vrot.lane.b32.xlu0 %v4142_v60, %s6332_s27  ;;  %v4157_v45 = vsel %vm483_vm4, %v4142_v60, %v4144_v9 }
 0xc96   : > { %4336 = vrot.lane.b32.xlu1 %v4113_v0, %s6332_s27  ;;  %v4086_v0 = vpop.permute.xlu1 %4085 }
 0xc98   : > { %v4164_v61 = vpop.permute.xlu0 %4163 }
 0xc99   : > { %4300 = vrot.lane.b32.xlu0 %v4067_v30, %s6332_s27  ;;  %v4179_v41 = vsel %vm495_vm5, %v4164_v61, %v4166_v5 }
 0xc9a   : > { %4352 = vrot.lane.b32.xlu1 %v4130_v32, %s6332_s27  ;;  %v4108_v63 = vpop.permute.xlu1 %4107  ;;  %v4112_v32 = vsel %vm458_vm2, %v4098_v10, %v4100_v51 }
 0xc9c   : > { %v8955_v56 = vpop.permute.xlu0 %4185 }
 0xc9d   : > { %4332 = vrot.lane.b32.xlu0 %v4111_v4, %s6332_s27 }
 0xc9e   : > { %4366 = vrot.lane.b32.xlu1 %v4157_v45, %s6332_s27 }
 0xca0   : > { %v8962_v47 = vpop.permute.xlu0 %4288 }
 0xca1   : > { %4302 = vrot.lane.b32.xlu0 %v4068_v24, %s6332_s27  ;;  %v4429_v58 = vsel %vm637_vm7, %v4287_v12, %v8962_v47  ;;  %v4152_v12 = vpop.permute.xlu1 %4151 }
 0xca2   : > { %4542 = vmatprep.subr.bf16.mxu1 %v4429_v58  ;;  %4382 = vrot.lane.b32.xlu1 %v4179_v41, %s6332_s27  ;;  %v4180_v41 = vsel %vm495_vm5, %v4166_v5, %v8928_v21 }
 0xca3   : > { %4543 = vmatpush1.bf16.msra.mxu1 %v4428_v42 }
 0xca4   : > { %v8972_v60 = vpop.permute.xlu0 %4209 }
 0xca5   : > { %4320 = vrot.lane.b32.xlu0 %v4091_v49, %s6332_s27  ;;  %v4174_v24 = vpop.permute.xlu1 %4173 }
 0xca6   : > { %4356 = vrot.lane.b32.xlu1 %v8947_v27, %s6332_s27 }
 0xca8   : > { %v4062_v30 = vpop.permute.xlu0 %4061 }
 0xca9   : > { %4334 = vrot.lane.b32.xlu0 %v4112_v32, %s6332_s27  ;;  %v4070_v3 = vsel %vm434_vm0, %v8805_v2, %v4062_v30  ;;  %v4196_v13 = vpop.permute.xlu1 %4195 }
 0xcac   : > { %v4084_v4 = vpop.permute.xlu0 %4083 }
 0xcad   : > { %4350 = vrot.lane.b32.xlu0 %v4129_v62, %s6332_s27  ;;  %v4092_v10 = vsel %vm446_vm1, %v8818_v17, %v4084_v4  ;;  %v9001_v2 = vpop.permute.xlu1 %4296  ;;  %v4071_v17 = vsel %vm434_vm0, %v4062_v30, %v4064_v35  ;;  %v4093_v32 = vsel %vm446_vm1, %v4084_v4, %v4086_v0  ;;  %v4116_v35 = vsel %vm458_vm2, %v4108_v63, %v8895_v37 }
 0xcae   : > { %v4201_v30 = vsel %vm9911_vm8, %v8955_v56, %v8939_v59  ;;  %v4161_v4 = vsel %vm483_vm4, %v4152_v12, %v8901_v11  ;;  %v4183_v11 = vsel %vm495_vm5, %v4174_v24, %v8905_v20  ;;  %v4205_v62 = vsel %vm9915_vm6, %v4196_v13, %v8911_v28  ;;  %vm9919_vm8 = vmmov %vm9917_vm13 }
 0xcaf   : > { %v4206_v20 = vsel %vm9916_vm9, %v8911_v28, %v8869_v34  ;;  %v4224_v34 = vsel %vm9918_vm14, %v8972_v60, %v8907_v16  ;;  %vm9920_vm10 = vmmov %vm9919_vm8 }
 0xcb0   : > { %v4106_v45 = vpop.permute.xlu0 %4105 }
 0xcb1   : > { %4368 = vrot.lane.b32.xlu0 %v4158_v53, %s6332_s27  ;;  %v4114_v5 = vsel %vm458_vm2, %v8833_v46, %v4106_v45  ;;  %v4115_v21 = vsel %vm458_vm2, %v4106_v45, %v4108_v63 }
 0xcb4   : > { %v4150_v58 = vpop.permute.xlu0 %4149 }
 0xcb5   : > { %4384 = vrot.lane.b32.xlu0 %v4180_v41, %s6332_s27  ;;  %4372 = vrot.lane.b32.xlu1 %v4150_v58, %s6332_s27 }
 0xcb8   : > { %v4172_v51 = vpop.permute.xlu0 %4171 }
 0xcb9   : > { %4308 = vrot.lane.b32.xlu0 %v4070_v3, %s6332_s27  ;;  %4324 = vrot.lane.b32.xlu1 %v4092_v10, %s6332_s27  ;;  %v4182_v59 = vsel %vm495_vm5, %v4172_v51, %v4174_v24  ;;  %v5759_v10 = vld [vmem:[%s9885_s7 + $0xa8] sm:$0xff] }
 0xcbc   : > { %v4194_v9 = vpop.permute.xlu0 %4193 }
 0xcbd   : > { %4340 = vrot.lane.b32.xlu1 %v4114_v5, %s6332_s27  ;;  %4312 = vrot.lane.b32.xlu0 %v4072_v6, %s6332_s27 }
 0xcc0   : > { %v4295_v42 = vpop.permute.xlu0 %4294 }
 0xcc1   : > { %4380 = vrot.lane.b32.xlu0 %v4164_v61, %s6332_s27  ;;  %4310 = vrot.lane.b32.xlu1 %v4071_v17, %s6332_s27  ;;  %v4432_v49 = vsel %vm637_vm7, %v4295_v42, %v9001_v2  ;;  %v4431_v46 = vsel %vm637_vm7, %v8873_v29, %v4295_v42  ;;  %v4094_v61 = vsel %vm446_vm1, %v4086_v0, %v8889_v7 }
 0xcc2   : > { %4544 = vmatprep.subr.bf16.mxu1 %v4432_v49  ;;  %v4430_v17 = vsel %vm637_vm7, %v8962_v47, %v8932_v31 }
 0xcc3   : > { %4545 = vmatpush1.bf16.msra.mxu1 %v4431_v46 }
 0xcc4   : > { %v4216_v29 = vpop.permute.xlu0 %4215 }
 0xcc5   : > { %4386 = vrot.lane.b32.xlu1 %v4181_v14, %s6332_s27  ;;  %4326 = vrot.lane.b32.xlu0 %v4093_v32, %s6332_s27 }
 0xcc8   : > { %v4126_v0 = vpop.permute.xlu0 %4125 }
 0xcc9   : > { %4328 = vrot.lane.b32.xlu1 %v4094_v61, %s6332_s27  ;;  %4322 = vrot.lane.b32.xlu0 %v8918_v19, %s6332_s27  ;;  %v4131_v19 = vsel %vm468_vm3, %v8947_v27, %v4126_v0  ;;  %v4132_v63 = vsel %vm468_vm3, %v4126_v0, %v8891_v50  ;;  %v4160_v27 = vsel %vm483_vm4, %v4150_v58, %v4152_v12 }
 0xcca   : > { %v4203_v50 = vsel %vm9913_vm11, %v8930_v38, %v8863_v44  ;;  %v4204_v44 = vsel %vm9914_vm12, %v4194_v9, %v4196_v13  ;;  %v4223_v12 = vsel %vm9917_vm13, %v8916_v25, %v8972_v60  ;;  %vm9921_vm11 = vmmov %vm9919_vm8  ;;  %v5760_v13 = vld [vmem:[%s9885_s7 + $0xb0] sm:$0xff] }
 0xccb   : > { %vm9922_vm12 = vmmov %vm9919_vm8 }
 0xccc   : > { %v9083_v45 = vpop.permute.xlu0 %4362  ;;  %v4228_v3 = vsel %vm9922_vm12, %v8913_v40, %v8877_v33  ;;  %v5761_v33 = vld [vmem:[%s9885_s7 + $0xb8] sm:$0xff] }
 0xccd   : > { %4388 = vrot.lane.b32.xlu1 %v4172_v51, %s6332_s27  ;;  %4344 = vrot.lane.b32.xlu0 %v4116_v35, %s6332_s27 }
 0xcd1   : > { %4394 = vrot.lane.b32.xlu0 %v4184_v22, %s6332_s27  ;;  %4342 = vrot.lane.b32.xlu1 %v4115_v21, %s6332_s27 }
 0xcd5   : > { %4358 = vrot.lane.b32.xlu0 %v4131_v19, %s6332_s27  ;;  %4398 = vrot.lane.b32.xlu1 %v4201_v30, %s6332_s27 }
 0xcd7   : > { %v9093_v28 = vpop.permute.xlu0 %4306 }
 0xcd9   : > { %4400 = vrot.lane.b32.xlu0 %v4202_v23, %s6332_s27  ;;  %4360 = vrot.lane.b32.xlu1 %v4132_v63, %s6332_s27 }
 0xcdb   : > { %v9106_v60 = vpop.permute.xlu0 %4378 }
 0xcdd   : > { %4330 = vrot.lane.b32.xlu1 %v8889_v7, %s6332_s27  ;;  %4374 = vrot.lane.b32.xlu0 %v4160_v27, %s6332_s27  ;;  %v6139_v7 = vld [vmem:[%s9884_s6 + $0x34] ss:$12 sps:$4 sm:$0xff]  }
 0xcde   : > { %4574 = vmatprep.mubr.bf16.mxu1 %v6139_v7  ;;  %4680 = vmatprep.mubr.bf16.mxu0 %v6139_v7 }
 0xce1   : > { %4376 = vrot.lane.b32.xlu1 %v4161_v4, %s6332_s27  ;;  %4396 = vrot.lane.b32.xlu0 %v8955_v56, %s6332_s27  ;;  %v4218_v56 = vpop.permute.xlu1 %4217 }
 0xce2   : > { %v4226_v58 = vsel %vm9920_vm10, %v4216_v29, %v4218_v56  ;;  %v4227_v51 = vsel %vm9921_vm11, %v4218_v56, %v8913_v40 }
 0xce5   : > { %4402 = vrot.lane.b32.xlu1 %v4203_v50, %s6332_s27  ;;  %4390 = vrot.lane.b32.xlu0 %v4182_v59, %s6332_s27  ;;  %v9071_v38 = vpop.permute.xlu1 %4314 }
 0xce9   : > { %4392 = vrot.lane.b32.xlu1 %v4183_v11, %s6332_s27  ;;  %4338 = vrot.lane.b32.xlu0 %v8923_v39, %s6332_s27  ;;  %v4355_v39 = vpop.permute.xlu1 %4354 }
 0xced   : > { %4404 = vrot.lane.b32.xlu1 %v4194_v9, %s6332_s27  ;;  %4406 = vrot.lane.b32.xlu0 %v4204_v44, %s6332_s27  ;;  %v9088_v53 = vpop.permute.xlu1 %4370 }
 0xcf1   : > { %4408 = vrot.lane.b32.xlu1 %v4205_v62, %s6332_s27  ;;  %4410 = vrot.lane.b32.xlu0 %v4206_v20, %s6332_s27 }
 0xcf5   : > { %4346 = vrot.lane.b32.xlu1 %v8895_v37, %s6332_s27  ;;  %4414 = vrot.lane.b32.xlu0 %v4223_v12, %s6332_s27  ;;  %v4225_v37 = vsel %vm9919_vm8, %v8907_v16, %v8881_v18  ;;  %v5758_v18 = vld [vmem:[%s9885_s7 + $0xa0] sm:$0xff] }
 0xcf9   : > { %4416 = vrot.lane.b32.xlu1 %v4224_v34, %s6332_s27  ;;  %4412 = vrot.lane.b32.xlu0 %v8916_v25, %s6332_s27 }
 0xcfc   : > { %v9098_v24 = vpop.permute.xlu1 %4316 }
 0xcfd   : > { %4418 = vrot.lane.b32.xlu1 %v4225_v37, %s6332_s27  ;;  %4422 = vrot.lane.b32.xlu0 %v4226_v58, %s6332_s27 }
 0xd00   : > { %v9108_v41 = vpop.permute.xlu1 %4304 }
 0xd01   : > { %4424 = vrot.lane.b32.xlu1 %v4227_v51, %s6332_s27  ;;  %4420 = vrot.lane.b32.xlu0 %v4216_v29, %s6332_s27 }
 0xd03   : > { %v9117_v16 = vpop.permute.xlu0 %4348 }
 0xd04   : > { %v9119_v25 = vpop.permute.xlu1 %4318 }
 0xd05   : > { %4426 = vrot.lane.b32.xlu1 %v4228_v3, %s6332_s27  ;;  %4236 = vperm.xlu0 %6102, %v5758_v18  }
 0xd07   : > { %v9131_v9 = vpop.permute.xlu0 %4364 }
 0xd08   : > { %v9133_v5 = vpop.permute.xlu1 %4336 }
 0xd09   : > { %4241 = vperm.xlu1 %6101, %v5759_v10   ;;  %4246 = vperm.xlu0 %6102, %v5760_v13  }
 0xd0b   : > { %v4301_v40 = vpop.permute.xlu0 %4300 }
 0xd0c   : > { %v9138_v6 = vpop.permute.xlu1 %4352 }
 0xd0d   : > { %4251 = vperm.xlu1 %6101, %v5761_v33   ;;  %v4454_v42 = vsel %vm637_vm7, %v9138_v6, %v4355_v39  ;;  %5020 = vrot.lane.b32.xlu0 %v9902_v36, %s6328_s23 }
 0xd0e   : > { %5895 = vmatprep.subr.bf16.mxu0 %v4454_v42 }
 0xd0f   : > { %v4333_v49 = vpop.permute.xlu0 %4332  ;;  %5896 = vmatpush3.bf16.msra.mxu0 %v4430_v17 }
 0xd10   : > { %v9158_v31 = vpop.permute.xlu1 %4366 }
 0xd11   : > { %4924 = vrot.lane.b32.xlu1 %v9902_v36, %s6324_s19  ;;  %5028 = vrot.lane.b32.xlu0 %v9902_v36, %s6328_s23 }
 0xd13   : > { %v4303_v46 = vpop.permute.xlu0 %4302 }
 0xd14   : > { %v4435_v14 = vsel %vm637_vm7, %v4303_v46, %v9108_v41  ;;  %v4434_v32 = vsel %vm637_vm7, %v4301_v40, %v4303_v46  ;;  %v9166_v29 = vpop.permute.xlu1 %4382 }
 0xd15   : > { %4546 = vmatprep.subr.bf16.mxu1 %v4435_v14  ;;  %4932 = vrot.lane.b32.xlu1 %v9902_v36, %s6324_s19 }
 0xd16   : > { %4547 = vmatpush1.bf16.msra.mxu1 %v4434_v32  ;;  %5042 = vrot.lane.b32.xlu0 %v9902_v36, %s6329_s24 }
 0xd17   : > { %v9160_v47 = vpop.permute.xlu0 %4320 }
 0xd18   : > { %v4357_v22 = vpop.permute.xlu1 %4356  ;;  %v4441_v11 = vsel %vm637_vm7, %v9119_v25, %v9160_v47 }
 0xd19   : > { %4946 = vrot.lane.b32.xlu1 %v9902_v36, %s6325_s20 }
 0xd1a   : > { %5050 = vrot.lane.b32.xlu0 %v9902_v36, %s6329_s24 }
 0xd1b   : > { %v4335_v61 = vpop.permute.xlu0 %4334 }
 0xd1c   : > { %v4447_v34 = vsel %vm637_vm7, %v4335_v61, %v9133_v5 }
 0xd1d   : > { %4954 = vrot.lane.b32.xlu1 %v9902_v36, %s6325_s20 }
 0xd1e   : > { %5118 = vrot.lane.b32.xlu0 %v9902_v36, %s6332_s27 }
 0xd1f   : > { %v4351_v35 = vpop.permute.xlu0 %4350 }
 0xd20   : > { %v4453_v10 = vsel %vm637_vm7, %v4351_v35, %v9138_v6  ;;  %v4452_v40 = vsel %vm637_vm7, %v9117_v16, %v4351_v35  ;;  %v4433_v6 = vsel %vm637_vm7, %v9001_v2, %v8899_v54  ;;  %v4458_v35 = vsel %vm637_vm7, %v9131_v9, %v9158_v31 }
 0xd21   : > { %4968 = vrot.lane.b32.xlu1 %v9902_v36, %s6326_s21  ;;  %v4436_v54 = vsel %vm637_vm7, %v9108_v41, %v9093_v28 }
 0xd22   : > { %5126 = vrot.lane.b32.xlu0 %v9902_v36, %s6332_s27 }
 0xd23   : > { %v4369_v21 = vpop.permute.xlu0 %4368 }
 0xd24   : > { %v4459_v16 = vsel %vm637_vm7, %v9158_v31, %v4369_v21  ;;  %v4460_v32 = vsel %vm637_vm7, %v4369_v21, %v9088_v53 }
 0xd25   : > { %4976 = vrot.lane.b32.xlu1 %v9902_v36, %s6326_s21 }
 0xd26   : > { %5086 = vrot.lane.b32.xlu0 %v9902_v36, %s6331_s26 }
 0xd27   : > { %v9180_v0 = vpop.permute.xlu0 %4384  ;;  %v9182_v19 = vpop.permute.xlu1 %4372 }
 0xd28   : > { %v4465_v28 = vsel %vm637_vm7, %v9166_v29, %v9180_v0 }
 0xd29   : > { %5064 = vrot.lane.b32.xlu1 %v9902_v36, %s6330_s25 }
 0xd2b   : > { %v4309_v30 = vpop.permute.xlu0 %4308  ;;  %v4325_v23 = vpop.permute.xlu1 %4324 }
 0xd2d   : > { %5072 = vrot.lane.b32.xlu1 %v9902_v36, %s6330_s25 }
 0xd2f   : > { %v9188_v63 = vpop.permute.xlu0 %4312  ;;  %v4341_v27 = vpop.permute.xlu1 %4340 }
 0xd30   : > { %v4439_v9 = vsel %vm637_vm7, %v9188_v63, %v9071_v38 }
 0xd31   : > { %5094 = vrot.lane.b32.xlu1 %v9902_v36, %s6331_s26  ;;  %v4440_v36 = vsel %vm637_vm7, %v9098_v24, %v9119_v25  ;;  %v4446_v24 = vsel %vm637_vm7, %v4333_v49, %v4335_v61 }
 0xd33   : > { %v9192_v4 = vpop.permute.xlu0 %4380  ;;  %v4311_v50 = vpop.permute.xlu1 %4310 }
 0xd34   : > { %v4438_v59 = vsel %vm637_vm7, %v4311_v50, %v9188_v63  ;;  %v4437_v7 = vsel %vm637_vm7, %v4309_v30, %v4311_v50 }
 0xd35   : > { %4548 = vmatprep.subr.bf16.mxu1 %v4438_v59 }
 0xd36   : > { %4549 = vmatpush1.bf16.msra.mxu1 %v4437_v7 }
 0xd37   : > { %v4327_v56 = vpop.permute.xlu0 %4326  ;;  %4550 = vmatprep.subr.bf16.mxu1 %v4441_v11  ;;  %v4387_v44 = vpop.permute.xlu1 %4386 }
 0xd38   : > { %v4443_v12 = vsel %vm637_vm7, %v4325_v23, %v4327_v56  ;;  %v4466_v41 = vsel %vm637_vm7, %v9180_v0, %v4387_v44 }
 0xd3a   : > { %4551 = vmatpush1.bf16.msra.mxu1 %v4440_v36 }
 0xd3b   : > { %v4323_v62 = vpop.permute.xlu0 %4322  ;;  %v9203_v20 = vpop.permute.xlu1 %4328 }
 0xd3c   : > { %v4444_v39 = vsel %vm637_vm7, %v4327_v56, %v9203_v20  ;;  %v4442_v38 = vsel %vm637_vm7, %v9160_v47, %v4323_v62 }
 0xd3d   : > { %4552 = vmatprep.subr.bf16.mxu1 %v4444_v39 }
 0xd3e   : > { %4553 = vmatpush1.bf16.msra.mxu1 %v4443_v12  ;;  %v6137_v12 = vld [vmem:[%s9884_s6 + $0x30] ss:$12 sps:$4 sm:$0xff]  }
 0xd3f   : > { %v9210_v37 = vpop.permute.xlu0 %4344  ;;  %4554 = vmatprep.subr.bf16.mxu1 %v4447_v34  ;;  %v9212_v58 = vpop.permute.xlu1 %4388 }
 0xd42   : > { %4555 = vmatpush1.bf16.msra.mxu1 %v4446_v24 }
 0xd43   : > { %v4395_v51 = vpop.permute.xlu0 %4394  ;;  %v4343_v18 = vpop.permute.xlu1 %4342 }
 0xd44   : > { %v4450_v25 = vsel %vm637_vm7, %v4343_v18, %v9210_v37  ;;  %v4449_v3 = vsel %vm637_vm7, %v4341_v27, %v4343_v18 }
 0xd45   : > { %4556 = vmatprep.subr.bf16.mxu1 %v4450_v25 }
 0xd46   : > { %4557 = vmatpush1.bf16.msra.mxu1 %v4449_v3 }
 0xd47   : > { %v4359_v13 = vpop.permute.xlu0 %4358  ;;  %4558 = vmatprep.subr.bf16.mxu1 %v4453_v10  ;;  %v4399_v33 = vpop.permute.xlu1 %4398  ;;  %v6142_v10 = vld [vmem:[%s9884_s6 + $0x48] ss:$12 sps:$4 sm:$0xff]  }
 0xd48   : > { %v4455_v14 = vsel %vm637_vm7, %v4357_v22, %v4359_v13 }
 0xd4a   : > { %4559 = vmatpush1.bf16.msra.mxu1 %v4452_v40 }
 0xd4b   : > { %v4401_v42 = vpop.permute.xlu0 %4400  ;;  %v4361_v17 = vpop.permute.xlu1 %4360 }
 0xd4c   : > { %v4456_v49 = vsel %vm637_vm7, %v4359_v13, %v4361_v17  ;;  %v4457_v46 = vsel %vm637_vm7, %v4361_v17, %v9083_v45  ;;  %v4471_v47 = vsel %vm637_vm7, %v4399_v33, %v4401_v42  ;;  %v6143_v17 = vld [vmem:[%s9884_s6 + $0x38] ss:$12 sps:$4 sm:$0xff]  }
 0xd4d   : > { %4560 = vmatprep.subr.bf16.mxu1 %v4456_v49  ;;  %5897 = vmatprep.subr.bf16.mxu0 %v4457_v46 }
 0xd4e   : > { %4561 = vmatpush1.bf16.msra.mxu1 %v4455_v14  ;;  %5898 = vmatpush3.bf16.msra.mxu0 %v4433_v6 }
 0xd4f   : > { %v4375_v61 = vpop.permute.xlu0 %4374  ;;  %4562 = vmatprep.subr.bf16.mxu1 %v4459_v16  ;;  %5899 = vmatprep.subr.bf16.mxu0 %v4460_v32  ;;  %v4331_v45 = vpop.permute.xlu1 %4330  ;;  %v6144_v16 = vld [vmem:[%s9884_s6 + $0x50] ss:$12 sps:$4 sm:$0xff]  }
 0xd50   : > { %v4461_v21 = vsel %vm637_vm7, %v9182_v19, %v4375_v61  ;;  %v4464_v19 = vsel %vm637_vm7, %v9192_v4, %v9166_v29  ;;  %v4445_v0 = vsel %vm637_vm7, %v9203_v20, %v4331_v45 }
 0xd52   : > { %4563 = vmatpush1.bf16.msra.mxu1 %v4458_v35  ;;  %5900 = vmatpush3.bf16.msra.mxu0 %v4436_v54 }
 0xd53   : > { %v4397_v2 = vpop.permute.xlu0 %4396  ;;  %v4377_v22 = vpop.permute.xlu1 %4376 }
 0xd54   : > { %v4462_v30 = vsel %vm637_vm7, %v4375_v61, %v4377_v22  ;;  %v4463_v53 = vsel %vm637_vm7, %v4377_v22, %v9106_v60  ;;  %v4470_v11 = vsel %vm637_vm7, %v4397_v2, %v4399_v33 }
 0xd55   : > { %4564 = vmatprep.subr.bf16.mxu1 %v4462_v30  ;;  %5901 = vmatprep.subr.bf16.mxu0 %v4463_v53 }
 0xd56   : > { %4565 = vmatpush1.bf16.msra.mxu1 %v4461_v21  ;;  %5902 = vmatpush3.bf16.msra.mxu0 %v4439_v9 }
 0xd57   : > { %v4391_v31 = vpop.permute.xlu0 %4390  ;;  %4566 = vmatprep.subr.bf16.mxu1 %v4465_v28  ;;  %5903 = vmatprep.subr.bf16.mxu0 %v4466_v41  ;;  %v4403_v60 = vpop.permute.xlu1 %4402 }
 0xd58   : > { %v4467_v59 = vsel %vm637_vm7, %v9212_v58, %v4391_v31  ;;  %v4472_v29 = vsel %vm637_vm7, %v4401_v42, %v4403_v60 }
 0xd5a   : > { %4567 = vmatpush1.bf16.msra.mxu1 %v4464_v19  ;;  %5904 = vmatpush3.bf16.msra.mxu0 %v4442_v38 }
 0xd5b   : > { %v4339_v23 = vpop.permute.xlu0 %4338  ;;  %v4393_v63 = vpop.permute.xlu1 %4392 }
 0xd5c   : > { %v4468_v27 = vsel %vm637_vm7, %v4391_v31, %v4393_v63  ;;  %v4469_v50 = vsel %vm637_vm7, %v4393_v63, %v4395_v51  ;;  %v4448_v56 = vsel %vm637_vm7, %v9133_v5, %v4339_v23  ;;  %v6140_v5 = vld [vmem:[%s9884_s6 + $0x4c] ss:$12 sps:$4 sm:$0xff]  }
 0xd5d   : > { %4568 = vmatprep.subr.bf16.mxu1 %v4468_v27  ;;  %5905 = vmatprep.subr.bf16.mxu0 %v4469_v50 }
 0xd5e   : > { %4569 = vmatpush1.bf16.msra.mxu1 %v4467_v59  ;;  %5906 = vmatpush3.bf16.msra.mxu0 %v4445_v0 }
 0xd5f   : > { %v4407_v4 = vpop.permute.xlu0 %4406  ;;  %4570 = vmatprep.subr.bf16.mxu1 %v4471_v47  ;;  %5907 = vmatprep.subr.bf16.mxu0 %v4472_v29  ;;  %v4405_v7 = vpop.permute.xlu1 %4404 }
 0xd60   : > { %v4473_v39 = vsel %vm637_vm7, %v4405_v7, %v4407_v4 }
 0xd62   : > { %4571 = vmatpush1.bf16.msra.mxu1 %v4470_v11  ;;  %5908 = vmatpush3.bf16.msra.mxu0 %v4448_v56 }
 0xd63   : > { %v4411_v44 = vpop.permute.xlu0 %4410  ;;  %v4409_v36 = vpop.permute.xlu1 %4408 }
 0xd64   : > { %v4474_v62 = vsel %vm637_vm7, %v4407_v4, %v4409_v36  ;;  %v4475_v20 = vsel %vm637_vm7, %v4409_v36, %v4411_v44 }
 0xd65   : > { %4572 = vmatprep.subr.bf16.mxu1 %v4474_v62  ;;  %5909 = vmatprep.subr.bf16.mxu0 %v4475_v20 }
 0xd66   : > { %4573 = vmatpush1.bf16.msra.mxu1 %v4473_v39 }
 0xd67   : > { %v4415_v34 = vpop.permute.xlu0 %4414  ;;  %v4347_v58 = vpop.permute.xlu1 %4346 }
 0xd68   : > { %v4451_v24 = vsel %vm637_vm7, %v9210_v37, %v4347_v58 }
 0xd69   : > { %4575 = vmatmul.mubr.bf16.vlgmr.msra.gmra.mrb[60].mxu1 %v6137_v12  ;;  %5910 = vmatpush3.bf16.msra.mxu0 %v4451_v24 }
 0xd6a   : > { %4584 = vmatprep.mubr.bf16.mxu1 %v6140_v5 }
 0xd6b   : > { %v4413_v51 = vpop.permute.xlu0 %4412  ;;  %v4417_v18 = vpop.permute.xlu1 %4416 }
 0xd6c   : > { %v4476_v25 = vsel %vm637_vm7, %v4413_v51, %v4415_v34  ;;  %4681 = vmatmul.mubr.bf16.vlgmr.msra.gmra.mrb[40].mxu0 %v6137_v12  ;;  %v4477_v3 = vsel %vm637_vm7, %v4415_v34, %v4417_v18 }
 0xd6d   : > { %4595 = vmatprep.subr.bf16.mxu1 %v4477_v3  ;;  %4688 = vmatprep.mubr.bf16.mxu0 %v6140_v5 }
 0xd6e   : > { %4596 = vmatpush1.bf16.msra.mxu1 %v4476_v25 }
 0xd6f   : > { %v4423_v13 = vpop.permute.xlu0 %4422  ;;  %v4419_v33 = vpop.permute.xlu1 %4418 }
 0xd70   : > { %v4478_v37 = vsel %vm637_vm7, %v4417_v18, %v4419_v33  ;;  %v9923_v18 = vld [vmem:[#allocation6_spill] sm:$0xff] }
 0xd71   : > { %4585 = vmatmul.mubr.bf16.gmra.mrb[64].mxu1 %v6142_v10  ;;  %5992 = vmatprep.subr.bf16.mxu0 %v4478_v37 }
 0xd72   : > { %5993 = vmatpush3.bf16.msra.mxu0 %v4478_v37  ;;  %4627 = vmatprep.mubr.bf16.mxu1 %v9903_v15 }
 0xd73   : > { %v4421_v40 = vpop.permute.xlu0 %4420  ;;  %v4425_v42 = vpop.permute.xlu1 %4424 }
 0xd74   : > { %v4479_v49 = vsel %vm637_vm7, %v4421_v40, %v4423_v13  ;;  %4689 = vmatmul.mubr.bf16.gmra.mrb[44].mxu0 %v6142_v10  ;;  %v4480_v46 = vsel %vm637_vm7, %v4423_v13, %v4425_v42 }
 0xd75   : > { %4597 = vmatprep.subr.bf16.mxu1 %v4480_v46  ;;  %5996 = vmatprep.mubr.msk.bf16.mxu0 %vm1445_vm15, %v6143_v17 }
 0xd76   : > { %4598 = vmatpush1.bf16.msra.mxu1 %v4479_v49 }
 0xd77   : > { %v4427_v14 = vpop.permute.xlu1 %4426 }
 0xd78   : > { %v4481_v6 = vsel %vm637_vm7, %v4425_v42, %v4427_v14 }
 0xd79   : > { %5768 = vmatmul.mubr.msk.bf16.vlgmr.msra.gmra.mrb[60].mxu1 %vm1445_vm15, %v6143_v17  ;;  %5994 = vmatprep.subr.bf16.mxu0 %v4481_v6 }
 0xd7a   : > { %5995 = vmatpush3.bf16.msra.mxu0 %v4481_v6  ;;  %4637 = vmatprep.mubr.bf16.mxu1 %v9903_v15 }
 0xd7d   : > { %5997 = vmatmul.mubr.msk.bf16.vlgmr.msra.gmra.mrb[48].mxu0 %vm1445_vm15, %v6144_v16 }
 0xd81   : > { %5769 = vmatmul.mubr.msk.bf16.gmra.mrb[64].mxu1 %vm1445_vm15, %v6144_v16 }
 0xd84   : > { %v4237_v22 = vpop.permute.xlu0 %4236 }
 0xd88   : > { %v4247_v60 = vpop.permute.xlu0 %4246  ;;  %v4242_v23 = vpop.permute.xlu1 %4241 }
 0xd8c   : > { %v4252_v24 = vpop.permute.xlu1 %4251 }
 0xe3f   : > { %v5911_v32 = vpop.f32.mrb[40].mxu0 }
 0xe40   : > { %v5912_v61 = vpop.f32.mrb[41].mxu0 }
 0xe41   : > { %v5913_v45 = vadd.f32 %v5912_v61, %v5911_v32  ;;  %v5914_v35 = vpop.f32.mrb[42].mxu0  ;;  %v9924_v61 = vld [vmem:[#allocation4_spill] sm:$0xff] }
 0xe42   : > { %v5915_v54 = vpop.f32.mrb[43].mxu0 }
 0xe43   : > { %v5916_v2 = vadd.f32 %v5915_v54, %v5914_v35  ;;  %v4683_v11 = vadd.f32 %v5913_v45, %v4237_v22  ;;  %v9925_v35 = vld [vmem:[#allocation5_spill] sm:$0xff] }
 0xe45   : > { %v4686_v3 = vadd.f32 %v5916_v2, %v4242_v23 }
 0xe47   : > { %v5917_v30 = vpop.f32.mrb[44].mxu0 }
 0xe48   : > { %v5918_v53 = vpop.f32.mrb[45].mxu0 }
 0xe49   : > { %v5919_v21 = vadd.f32 %v5918_v53, %v5917_v30  ;;  %v5920_v9 = vpop.f32.mrb[46].mxu0  ;;  %v9927_v53 = vld [vmem:[#allocation10_spill] sm:$0xff] }
 0xe4a   : > { %v5921_v28 = vpop.f32.mrb[47].mxu0 }
 0xe4b   : > { %v5922_v41 = vadd.f32 %v5921_v28, %v5920_v9  ;;  %v4691_v47 = vadd.f32 %v5919_v21, %v4247_v60 }
 0xe4c   : > { %v4629_v31 = vpop.f32.mrb[60].mxu1 }
 0xe4d   : > { %v6032_v19 = vadd.f32 %v4629_v31, %v4237_v22  ;;  %v4631_v38 = vpop.f32.mrb[61].mxu1  ;;  %v4694_v33 = vadd.f32 %v5922_v41, %v4252_v24 }
 0xe4e   : > { %v6033_v63 = vadd.f32 %v4631_v38, %v4237_v22  ;;  %v4633_v27 = vpop.f32.mrb[62].mxu1  ;;  %v9926_v22 = vld [vmem:[#allocation8_spill] sm:$0xff] }
 0xe4f   : > { %v9301_v50 = vadd.f32 %v6032_v19, %v8054_v43  ;;  %v6034_v0 = vadd.f32 %v4633_v27, %v4242_v23  ;;  %v4635_v59 = vpop.f32.mrb[63].mxu1  ;;  %v9929_v27 = vld [vmem:[#allocation9_spill] sm:$0xff] }
 0xe50   : > { %v9304_v29 = vadd.f32 %v6033_v63, %v8074_v52  ;;  %v6035_v4 = vadd.f32 %v4635_v59, %v4242_v23  ;;  %v5998_v7 = vpop.f32.mrb[48].mxu0  ;;  %v9928_v23 = vld [vmem:[#allocation7_spill] sm:$0xff] }
 0xe51   : > { %v4782_v56 = vmin.f32 %v9301_v50, 0.0  ;;  %v9308_v44 = vadd.f32 %v6034_v0, %v8049_v55  ;;  %v4740_v36 = vadd.f32 %v5998_v7, %v4691_v47  ;;  %v4731_v62 = vpop.f32.mrb[49].mxu0  ;;  %vm4770_vm6 = vcmp.gt.f32.partialorder %v9301_v50, 0.0 }
 0xe52   : > { %v4783_v20 = vmin.f32 %v9304_v29, 0.0  ;;  %v9312_v43 = vadd.f32 %v6035_v4, %v8069_v1  ;;  %v4732_v39 = vadd.f32 %v4731_v62, %v4683_v11  ;;  %v5999_v12 = vpop.f32.mrb[50].mxu0  ;;  %vm4771_vm9 = vcmp.gt.f32.partialorder %v9304_v29, 0.0 }
 0xe53   : > { %v4794_v5 = vmul.f32 1.442695, %v4782_v56  ;;  %v4785_v52 = vmin.f32 %v9308_v44, 0.0  ;;  %v9316_v34 = vadd.f32 %v4740_v36, %v8011_v57  ;;  %v4734_v58 = vpop.f32.mrb[51].mxu0  ;;  %v4743_v49 = vadd.f32 %v5999_v12, %v4694_v33 }
 0xe54   : > { %v4796_v51 = vmul.f32 1.442695, %v4783_v20  ;;  %v4786_v55 = vmin.f32 %v9312_v43, 0.0  ;;  %v9320_v25 = vadd.f32 %v4732_v39, %v9923_v18  ;;  %v4639_v10 = vpop.f32.mrb[64].mxu1  ;;  %v4735_v46 = vadd.f32 %v4734_v58, %v4686_v3 }
 0xe55   : > { %6292 = vpow2.f32 %v4794_v5  ;;  %v4800_v1 = vmul.f32 1.442695, %v4785_v52  ;;  %v4790_v13 = vmin.f32 %v9316_v34, 0.0  ;;  %v4641_v37 = vpop.f32.mrb[65].mxu1  ;;  %v6036_v16 = vadd.f32 %v4639_v10, %v4247_v60 }
 0xe56   : > { %6294 = vpow2.f32 %v4796_v51  ;;  %v4802_v40 = vmul.f32 1.442695, %v4786_v55  ;;  %v4784_v57 = vmin.f32 %v9320_v25, 0.0  ;;  %v4643_v42 = vpop.f32.mrb[66].mxu1  ;;  %v6037_v32 = vadd.f32 %v4641_v37, %v4247_v60 }
 0xe57   : > { %6296 = vpow2.f32 %v4800_v1  ;;  %v4810_v17 = vmul.f32 1.442695, %v4790_v13  ;;  %v4645_v14 = vpop.f32.mrb[67].mxu1  ;;  %v9325_v45 = vadd.f32 %v4743_v49, %v9924_v61  ;;  %v9328_v54 = vadd.f32 %v4735_v46, %v9925_v35 }
 0xe58   : > { %6298 = vpow2.f32 %v4802_v40  ;;  %v4798_v6 = vmul.f32 1.442695, %v4784_v57  ;;  %v6038_v2 = vadd.f32 %v4643_v42, %v4252_v24  ;;  %v9331_v30 = vadd.f32 %v6036_v16, %v9926_v22 }
 0xe59   : > { %6300 = vpow2.f32 %v4810_v17  ;;  %v9334_v21 = vadd.f32 %v6037_v32, %v9927_v53  ;;  %v6039_v9 = vadd.f32 %v4645_v14, %v4252_v24  ;;  %v4793_v28 = vmin.f32 %v9325_v45, 0.0 }
 0xe5a   : > { %6302 = vpow2.f32 %v4798_v6  ;;  %v4787_v41 = vmin.f32 %v9328_v54, 0.0  ;;  %v4788_v31 = vmin.f32 %v9331_v30, 0.0  ;;  %v9341_v63 = vadd.f32 %v6038_v2, %v9928_v23 }
 0xe5b   : > { %v4789_v60 = vmin.f32 %v9334_v21, 0.0  ;;  %v4816_v19 = vmul.f32 1.442695, %v4793_v28  ;;  %v9344_v0 = vadd.f32 %v6039_v9, %v9929_v27  ;;  %vm4773_vm13 = vcmp.gt.f32.partialorder %v9308_v44, 0.0 }
 0xe5c   : > { %v4804_v38 = vmul.f32 1.442695, %v4787_v41  ;;  %v4806_v59 = vmul.f32 1.442695, %v4788_v31  ;;  %v4791_v7 = vmin.f32 %v9341_v63, 0.0  ;;  %vm4774_vm14 = vcmp.gt.f32.partialorder %v9312_v43, 0.0 }
 0xe5d   : > { %v4808_v47 = vmul.f32 1.442695, %v4789_v60  ;;  %6304 = vpow2.f32 %v4816_v19  ;;  %v4792_v36 = vmin.f32 %v9344_v0, 0.0  ;;  %vm4778_vm8 = vcmp.gt.f32.partialorder %v9316_v34, 0.0 }
 0xe5e   : > { %6306 = vpow2.f32 %v4804_v38  ;;  %v4812_v39 = vmul.f32 1.442695, %v4791_v7  ;;  %vm4772_vm10 = vcmp.gt.f32.partialorder %v9320_v25, 0.0  ;;  %vm4781_vm11 = vcmp.gt.f32.partialorder %v9325_v45, 0.0 }
 0xe5f   : > { %v6293_v4 = vpop.eup %6292  ;;  %6308 = vpow2.f32 %v4806_v59  ;;  %v4814_v58 = vmul.f32 1.442695, %v4792_v36  ;;  %vm4775_vm12 = vcmp.gt.f32.partialorder %v9328_v54, 0.0 }
 0xe60   : > { %v6295_v11 = vpop.eup %6294  ;;  %v5772_v56 = vadd.f32 -1.0, %v6293_v4  ;;  %6310 = vpow2.f32 %v4808_v47 }
 0xe61   : > { %v6297_v62 = vpop.eup %6296  ;;  %v5773_v20 = vadd.f32 -1.0, %v6295_v11  ;;  %6312 = vpow2.f32 %v4812_v39 }
 0xe62   : > { %v6299_v12 = vpop.eup %6298  ;;  %v4830_v5 = vsel %vm4770_vm6, %v9301_v50, %v5772_v56  ;;  %v5775_v52 = vadd.f32 -1.0, %v6297_v62  ;;  %6314 = vpow2.f32 %v4814_v58  ;;  %vm4776_vm6 = vcmp.gt.f32.partialorder %v9331_v30, 0.0 }
 0xe63   : > { %v6301_v24 = vpop.eup %6300  ;;  %v4831_v51 = vsel %vm4771_vm9, %v9304_v29, %v5773_v20  ;;  %v5776_v55 = vadd.f32 -1.0, %v6299_v12  ;;  %v4842_v10 = vmul.f32 %v4830_v5, %v6686_v8  ;;  %vm4777_vm9 = vcmp.gt.f32.partialorder %v9334_v21, 0.0 }
 0xe64   : > { %v6303_v18 = vpop.eup %6302  ;;  %v4833_v3 = vsel %vm4773_vm13, %v9308_v44, %v5775_v52  ;;  %v4843_v13 = vmul.f32 %v4831_v51, %v6704_v26  ;;  %v5780_v33 = vadd.f32 -1.0, %v6301_v24  ;;  %vm4779_vm13 = vcmp.gt.f32.partialorder %v9341_v63, 0.0 }
 0xe65   : > { %v4845_v50 = vmul.f32 %v4833_v3, %v6686_v8  ;;  %v4834_v1 = vsel %vm4774_vm14, %v9312_v43, %v5776_v55  ;;  %v5774_v40 = vadd.f32 -1.0, %v6303_v18  ;;  %vm4780_vm14 = vcmp.gt.f32.partialorder %v9344_v0, 0.0 }
 0xe66   : > { %v4846_v29 = vmul.f32 %v4834_v1, %v6704_v26  ;;  %v4838_v17 = vsel %vm4778_vm8, %v9316_v34, %v5780_v33 }
 0xe67   : > { %v9360_v37 = vpack.c.bf16 %v4845_v50, %v4842_v10  ;;  %v6305_v44 = vpop.eup %6304  ;;  %v4832_v46 = vsel %vm4772_vm10, %v9320_v25, %v5774_v40  ;;  %v4850_v61 = vmul.f32 %v4838_v17, %v6666_v48 }
 0xe68   : > { %v9362_v57 = vpack.c.bf16 %v4846_v29, %v4843_v13  ;;  %v6307_v42 = vpop.eup %6306  ;;  %v5783_v49 = vadd.f32 -1.0, %v6305_v44  ;;  %v4844_v53 = vmul.f32 %v4832_v46, %v6666_v48 }
 0xe69   : > { %v6309_v43 = vpop.eup %6308  ;;  %v5777_v14 = vadd.f32 -1.0, %v6307_v42 }
 0xe6a   : > { %v6311_v6 = vpop.eup %6310  ;;  %v4841_v16 = vsel %vm4781_vm11, %v9325_v45, %v5783_v49  ;;  %v5778_v32 = vadd.f32 -1.0, %v6309_v43 }
 0xe6b   : > { %v6313_v34 = vpop.eup %6312  ;;  %v4853_v35 = vmul.f32 %v4841_v16, %v6666_v48  ;;  %v4835_v25 = vsel %vm4775_vm12, %v9328_v54, %v5777_v14  ;;  %v5779_v2 = vadd.f32 -1.0, %v6311_v6 }
 0xe6c   : > { %v6315_v22 = vpop.eup %6314  ;;  %v4847_v9 = vmul.f32 %v4835_v25, %v6666_v48  ;;  %v4836_v45 = vsel %vm4776_vm6, %v9331_v30, %v5778_v32  ;;  %v5781_v28 = vadd.f32 -1.0, %v6313_v34 }
 0xe6d   : > { %v4891_v41 = vpack.c.bf16 %v4853_v35, %v4850_v61  ;;  %v4837_v31 = vsel %vm4777_vm9, %v9334_v21, %v5779_v2  ;;  %v5782_v60 = vadd.f32 -1.0, %v6315_v22  ;;  %v4848_v54 = vmul.f32 %v4836_v45, %v6686_v8 }
 0xe6e   : > { %v4887_v19 = vpack.c.bf16 %v4847_v9, %v4844_v53  ;;  %v4839_v38 = vsel %vm4779_vm13, %v9341_v63, %v5781_v28  ;;  %v4849_v30 = vmul.f32 %v4837_v31, %v6704_v26  ;;  %v5021_v63 = vpop.permute.xlu0 %5020  ;;  %vm6336_vm13 = vmmov 0  }
 0xe6f   : > { %v4851_v23 = vmul.f32 %v4839_v38, %v6686_v8  ;;  %v4840_v48 = vsel %vm4780_vm14, %v9344_v0, %v5782_v60  ;;  %5000 = vrot.lane.b32.xlu1 %v4891_v41, %s6327_s22  ;;  %4938 = vrot.lane.b32.xlu0 %v4891_v41, %s6324_s19  ;;  %v9436_v8 = vpop.permute.xlu1 %4924 }
 0xe70   : > { %v4852_v21 = vmul.f32 %v4840_v48, %v6704_v26 }
 0xe71   : > { %v4889_v27 = vpack.c.bf16 %v4851_v23, %v4848_v54 }
 0xe72   : > { %v9390_v59 = vpack.c.bf16 %v4852_v21, %v4849_v30  ;;  %v5029_v47 = vpop.permute.xlu0 %5028 }
 0xe73   : > { %5026 = vrot.lane.b32.xlu1 %v4891_v41, %s6328_s23  ;;  %4960 = vrot.lane.b32.xlu0 %v4891_v41, %s6325_s20  ;;  %v9442_v26 = vpop.permute.xlu1 %4932 }
 0xe76   : > { %v5043_v7 = vpop.permute.xlu0 %5042 }
 0xe77   : > { %5048 = vrot.lane.b32.xlu1 %v4891_v41, %s6329_s24  ;;  %4982 = vrot.lane.b32.xlu0 %v4891_v41, %s6326_s21  ;;  %v9450_v0 = vpop.permute.xlu1 %4946 }
 0xe7a   : > { %v9465_v56 = vpop.permute.xlu0 %5050 }
 0xe7b   : > { %5070 = vrot.lane.b32.xlu1 %v4891_v41, %s6330_s25  ;;  %5132 = vrot.lane.b32.xlu0 %v4891_v41, %s6332_s27  ;;  %v9454_v4 = vpop.permute.xlu1 %4954 }
 0xe7e   : > { %v9477_v62 = vpop.permute.xlu0 %5118 }
 0xe7f   : > { %5092 = vrot.lane.b32.xlu1 %v4891_v41, %s6331_s26  ;;  %4930 = vrot.lane.b32.xlu0 %v4887_v19, %s6324_s19  ;;  %v9460_v11 = vpop.permute.xlu1 %4968 }
 0xe82   : > { %v9485_v39 = vpop.permute.xlu0 %5126 }
 0xe83   : > { %5040 = vrot.lane.b32.xlu1 %v4887_v19, %s6329_s24  ;;  %4952 = vrot.lane.b32.xlu0 %v4887_v19, %s6325_s20  ;;  %v9467_v36 = vpop.permute.xlu1 %4976 }
 0xe86   : > { %v9493_v5 = vpop.permute.xlu0 %5086 }
 0xe87   : > { %5062 = vrot.lane.b32.xlu1 %v4887_v19, %s6330_s25  ;;  %4974 = vrot.lane.b32.xlu0 %v4887_v19, %s6326_s21  ;;  %v9479_v20 = vpop.permute.xlu1 %5064 }
 0xe8b   : > { %5124 = vrot.lane.b32.xlu1 %v4887_v19, %s6332_s27  ;;  %4994 = vrot.lane.b32.xlu0 %v4887_v19, %s6327_s22  ;;  %v9487_v12 = vpop.permute.xlu1 %5072 }
 0xe8f   : > { %5036 = vrot.lane.b32.xlu1 %v9360_v37, %s6329_s24  ;;  %5018 = vrot.lane.b32.xlu0 %v4887_v19, %s6328_s23  ;;  %v9495_v52 = vpop.permute.xlu1 %5094 }
 0xe93   : > { %5058 = vrot.lane.b32.xlu1 %v9360_v37, %s6330_s25  ;;  %5084 = vrot.lane.b32.xlu0 %v4887_v19, %s6331_s26 }
 0xe97   : > { %5120 = vrot.lane.b32.xlu1 %v9360_v37, %s6332_s27  ;;  %4926 = vrot.lane.b32.xlu0 %v9360_v37, %s6324_s19 }
 0xe9b   : > { %4928 = vrot.lane.b32.xlu1 %v9362_v57, %s6324_s19  ;;  %4948 = vrot.lane.b32.xlu0 %v9360_v37, %s6325_s20 }
 0xe9f   : > { %4950 = vrot.lane.b32.xlu1 %v9362_v57, %s6325_s20  ;;  %4970 = vrot.lane.b32.xlu0 %v9360_v37, %s6326_s21 }
 0xea3   : > { %4972 = vrot.lane.b32.xlu1 %v9362_v57, %s6326_s21  ;;  %4990 = vrot.lane.b32.xlu0 %v9360_v37, %s6327_s22 }
 0xea7   : > { %4992 = vrot.lane.b32.xlu1 %v9362_v57, %s6327_s22  ;;  %5014 = vrot.lane.b32.xlu0 %v9360_v37, %s6328_s23 }
 0xeab   : > { %5016 = vrot.lane.b32.xlu1 %v9362_v57, %s6328_s23  ;;  %5080 = vrot.lane.b32.xlu0 %v9360_v37, %s6331_s26 }
 0xeaf   : > { %5082 = vrot.lane.b32.xlu1 %v9362_v57, %s6331_s26  ;;  %5038 = vrot.lane.b32.xlu0 %v9362_v57, %s6329_s24 }
 0xeb3   : > { %4996 = vrot.lane.b32.xlu1 %v4889_v27, %s6327_s22  ;;  %5060 = vrot.lane.b32.xlu0 %v9362_v57, %s6330_s25 }
 0xeb7   : > { %5022 = vrot.lane.b32.xlu1 %v4889_v27, %s6328_s23  ;;  %5122 = vrot.lane.b32.xlu0 %v9362_v57, %s6332_s27 }
 0xebb   : > { %5044 = vrot.lane.b32.xlu1 %v4889_v27, %s6329_s24  ;;  %4934 = vrot.lane.b32.xlu0 %v4889_v27, %s6324_s19 }
 0xebf   : > { %5066 = vrot.lane.b32.xlu1 %v4889_v27, %s6330_s25  ;;  %4956 = vrot.lane.b32.xlu0 %v4889_v27, %s6325_s20 }
 0xec3   : > { %5088 = vrot.lane.b32.xlu1 %v4889_v27, %s6331_s26  ;;  %4978 = vrot.lane.b32.xlu0 %v4889_v27, %s6326_s21 }
 0xec7   : > { %4936 = vrot.lane.b32.xlu1 %v9390_v59, %s6324_s19  ;;  %5128 = vrot.lane.b32.xlu0 %v4889_v27, %s6332_s27 }
 0xecb   : > { %4958 = vrot.lane.b32.xlu1 %v9390_v59, %s6325_s20  ;;  %4998 = vrot.lane.b32.xlu0 %v9390_v59, %s6327_s22 }
 0xecf   : > { %4980 = vrot.lane.b32.xlu1 %v9390_v59, %s6326_s21  ;;  %5024 = vrot.lane.b32.xlu0 %v9390_v59, %s6328_s23 }
 0xed3   : > { %5130 = vrot.lane.b32.xlu1 %v9390_v59, %s6332_s27  ;;  %5046 = vrot.lane.b32.xlu0 %v9390_v59, %s6329_s24 }
 0xed7   : > { %5068 = vrot.lane.b32.xlu0 %v9390_v59, %s6330_s25  ;;  %s6079_s25 = smul.u32 24, %s9943_s14 }
 0xed9   : > { %s359_s15 = scalar_lea.vmem %s9888_s10, %s6079_s25 }
 0xedb   : > { %5090 = vrot.lane.b32.xlu0 %v9390_v59, %s6331_s26 }
 0xee1   : > { %v9497_v58 = vpop.permute.xlu0 %4938  ;;  %v9499_v24 = vpop.permute.xlu1 %5000 }
 0xee2   : > { %5196 = vrot.lane.b32.xlu0 %v9499_v24, %s6332_s27 }
 0xee5   : > { %v9503_v51 = vpop.permute.xlu0 %4960  ;;  %v9505_v55 = vpop.permute.xlu1 %5026 }
 0xee6   : > { %5148 = vrot.lane.b32.xlu0 %v9497_v58, %s6332_s27  ;;  %v5035_v10 = vsel %vm483_vm4, %v9505_v55, %v5029_v47 }
 0xee9   : > { %v9509_v18 = vpop.permute.xlu0 %4982  ;;  %v9511_v3 = vpop.permute.xlu1 %5048 }
 0xeea   : > { %5212 = vrot.lane.b32.xlu0 %v5035_v10, %s6332_s27 }
 0xeed   : > { %v9516_v50 = vpop.permute.xlu0 %5132  ;;  %v9518_v1 = vpop.permute.xlu1 %5070 }
 0xef1   : > { %v4931_v13 = vpop.permute.xlu0 %4930  ;;  %v9520_v29 = vpop.permute.xlu1 %5092 }
 0xef5   : > { %v9522_v33 = vpop.permute.xlu0 %4952  ;;  %v9524_v37 = vpop.permute.xlu1 %5040 }
 0xef6   : > { %v5054_v32 = vsel %vm495_vm5, %v9524_v37, %v5043_v7 }
 0xef9   : > { %v9526_v40 = vpop.permute.xlu0 %4974  ;;  %v9528_v57 = vpop.permute.xlu1 %5062 }
 0xefd   : > { %v4995_v44 = vpop.permute.xlu0 %4994  ;;  %v9530_v42 = vpop.permute.xlu1 %5124 }
 0xefe   : > { %5188 = vrot.lane.b32.xlu1 %v4995_v44, %s6332_s27 }
 0xf01   : > { %v5019_v17 = vpop.permute.xlu0 %5018  ;;  %v9533_v49 = vpop.permute.xlu1 %5036 }
 0xf02   : > { %5140 = vrot.lane.b32.xlu1 %v4931_v13, %s6332_s27  ;;  %v5032_v14 = vsel %vm483_vm4, %v5019_v17, %v5021_v63 }
 0xf05   : > { %v9536_v43 = vpop.permute.xlu0 %5084  ;;  %v9538_v46 = vpop.permute.xlu1 %5058 }
 0xf06   : > { %5204 = vrot.lane.b32.xlu1 %v5032_v14, %s6332_s27 }
 0xf09   : > { %v4927_v6 = vpop.permute.xlu0 %4926  ;;  %v5121_v16 = vpop.permute.xlu1 %5120 }
 0xf0a   : > { %5220 = vrot.lane.b32.xlu1 %v5054_v32, %s6332_s27  ;;  %v4940_v38 = vsel %vm434_vm0, %v9436_v8, %v4927_v6  ;;  %v5262_v47 = vsel %vm637_vm7, %v9477_v62, %v5121_v16 }
 0xf0d   : > { %v4949_v34 = vpop.permute.xlu0 %4948  ;;  %v4929_v61 = vpop.permute.xlu1 %4928 }
 0xf0e   : > { %v4962_v45 = vsel %vm446_vm1, %v9450_v0, %v4949_v34  ;;  %v4941_v54 = vsel %vm434_vm0, %v4927_v6, %v4929_v61  ;;  %v4942_v23 = vsel %vm434_vm0, %v4929_v61, %v4931_v13 }
 0xf11   : > { %v4971_v35 = vpop.permute.xlu0 %4970  ;;  %v4951_v25 = vpop.permute.xlu1 %4950 }
 0xf12   : > { %v4984_v28 = vsel %vm458_vm2, %v9460_v11, %v4971_v35  ;;  %v4963_v21 = vsel %vm446_vm1, %v4949_v34, %v4951_v25  ;;  %v4964_v27 = vsel %vm446_vm1, %v4951_v25, %v9522_v33 }
 0xf15   : > { %v4991_v2 = vpop.permute.xlu0 %4990  ;;  %v4973_v22 = vpop.permute.xlu1 %4972 }
 0xf16   : > { %5182 = vrot.lane.b32.xlu0 %v4991_v2, %s6332_s27  ;;  %v4985_v63 = vsel %vm458_vm2, %v4971_v35, %v4973_v22  ;;  %v4986_v7 = vsel %vm458_vm2, %v4973_v22, %v9526_v40 }
 0xf19   : > { %v5015_v53 = vpop.permute.xlu0 %5014  ;;  %v4993_v9 = vpop.permute.xlu1 %4992 }
 0xf1a   : > { %5150 = vrot.lane.b32.xlu0 %v4962_v45, %s6332_s27  ;;  %5198 = vrot.lane.b32.xlu1 %v5015_v53, %s6332_s27  ;;  %v5002_v10 = vsel %vm468_vm3, %v4991_v2, %v4993_v9  ;;  %v5003_v13 = vsel %vm468_vm3, %v4993_v9, %v4995_v44 }
 0xf1d   : > { %v9552_v41 = vpop.permute.xlu0 %5080  ;;  %v5017_v31 = vpop.permute.xlu1 %5016 }
 0xf1e   : > { %5166 = vrot.lane.b32.xlu0 %v4984_v28, %s6332_s27  ;;  %5214 = vrot.lane.b32.xlu1 %v9533_v49, %s6332_s27  ;;  %v5030_v62 = vsel %vm483_vm4, %v5015_v53, %v5017_v31 }
 0xf21   : > { %v5039_v60 = vpop.permute.xlu0 %5038  ;;  %v9557_v19 = vpop.permute.xlu1 %5082 }
 0xf22   : > { %5134 = vrot.lane.b32.xlu1 %v4940_v38, %s6332_s27  ;;  %5136 = vrot.lane.b32.xlu0 %v4941_v54, %s6332_s27  ;;  %v5052_v34 = vsel %vm495_vm5, %v9533_v49, %v5039_v60  ;;  %v5053_v61 = vsel %vm495_vm5, %v5039_v60, %v9524_v37  ;;  %v5057_v54 = vsel %vm495_vm5, %v9511_v3, %v9465_v56 }
 0xf25   : > { %v9565_v48 = vpop.permute.xlu0 %5060  ;;  %v9567_v30 = vpop.permute.xlu1 %4996 }
 0xf26   : > { %5138 = vrot.lane.b32.xlu1 %v4942_v23, %s6332_s27  ;;  %5152 = vrot.lane.b32.xlu0 %v4963_v21, %s6332_s27 }
 0xf29   : > { %v9574_v59 = vpop.permute.xlu0 %5122  ;;  %v9576_v8 = vpop.permute.xlu1 %5022 }
 0xf2a   : > { %5154 = vrot.lane.b32.xlu1 %v4964_v27, %s6332_s27  ;;  %v5263_v0 = vsel %vm637_vm7, %v5121_v16, %v9574_v59  ;;  %5168 = vrot.lane.b32.xlu0 %v4985_v63, %s6332_s27  ;;  %v5031_v16 = vsel %vm483_vm4, %v5017_v31, %v5019_v17 }
 0xf2b   : > { %5373 = vmatprep.subr.bf16.mxu0 %v5263_v0 }
 0xf2c   : > { %5374 = vmatpush1.bf16.msra.mxu0 %v5262_v47 }
 0xf2d   : > { %v9587_v11 = vpop.permute.xlu1 %5044  ;;  %v4935_v6 = vpop.permute.xlu0 %4934 }
 0xf2e   : > { %5170 = vrot.lane.b32.xlu1 %v4986_v7, %s6332_s27  ;;  %5184 = vrot.lane.b32.xlu0 %v5002_v10, %s6332_s27  ;;  %v4943_v22 = vsel %vm434_vm0, %v9442_v26, %v4935_v6 }
 0xf31   : > { %v9593_v14 = vpop.permute.xlu1 %5066  ;;  %v4957_v44 = vpop.permute.xlu0 %4956 }
 0xf32   : > { %5186 = vrot.lane.b32.xlu1 %v5003_v13, %s6332_s27  ;;  %5200 = vrot.lane.b32.xlu0 %v5030_v62, %s6332_s27  ;;  %v4965_v17 = vsel %vm446_vm1, %v9454_v4, %v4957_v44  ;;  %v5102_v62 = vld [vmem:[%s9887_s9] sm:$0xff] }
 0xf35   : > { %v9599_v32 = vpop.permute.xlu1 %5088  ;;  %v4979_v2 = vpop.permute.xlu0 %4978 }
 0xf36   : > { %5202 = vrot.lane.b32.xlu1 %v5031_v16, %s6332_s27  ;;  %5216 = vrot.lane.b32.xlu0 %v5052_v34, %s6332_s27  ;;  %v4987_v49 = vsel %vm458_vm2, %v9467_v36, %v4979_v2 }
 0xf39   : > { %v4937_v35 = vpop.permute.xlu1 %4936  ;;  %v5129_v53 = vpop.permute.xlu0 %5128 }
 0xf3a   : > { %5218 = vrot.lane.b32.xlu1 %v5053_v61, %s6332_s27  ;;  %5190 = vrot.lane.b32.xlu0 %v9567_v30, %s6332_s27  ;;  %v4944_v4 = vsel %vm434_vm0, %v4935_v6, %v4937_v35  ;;  %v4945_v45 = vsel %vm434_vm0, %v4937_v35, %v9497_v58  ;;  %v5265_v26 = vsel %vm637_vm7, %v9485_v39, %v5129_v53  ;;  %vm9930_vm0 = vcmask 744448  }
 0xf3b   : > { %v5075_v39 = vsel %vm9930_vm0, %v9565_v48, %v9528_v57  ;;  %vm9931_vm8 = vmmov %vm9930_vm0 }
 0xf3d   : > { %v4959_v25 = vpop.permute.xlu1 %4958  ;;  %v4999_v38 = vpop.permute.xlu0 %4998 }
 0xf3e   : > { %5158 = vrot.lane.b32.xlu1 %v4965_v17, %s6332_s27  ;;  %5206 = vrot.lane.b32.xlu0 %v9576_v8, %s6332_s27  ;;  %v4966_v58 = vsel %vm446_vm1, %v4957_v44, %v4959_v25  ;;  %v4967_v28 = vsel %vm446_vm1, %v4959_v25, %v9503_v51  ;;  %v5004_v23 = vsel %vm468_vm3, %v9567_v30, %v4999_v38  ;;  %vm9932_vm1 = vmmov %vm9930_vm0 }
 0xf3f   : > { %v5076_v21 = vsel %vm9932_vm1, %v9528_v57, %v9479_v20  ;;  %v9685_v20 = vld [vmem:[%s9886_s8] sm:$0xff] }
 0xf41   : > { %v4981_v37 = vpop.permute.xlu1 %4980  ;;  %v5025_v56 = vpop.permute.xlu0 %5024 }
 0xf42   : > { %5174 = vrot.lane.b32.xlu1 %v4987_v49, %s6332_s27  ;;  %5142 = vrot.lane.b32.xlu0 %v4943_v22, %s6332_s27  ;;  %v4988_v31 = vsel %vm458_vm2, %v4979_v2, %v4981_v37  ;;  %v4989_v60 = vsel %vm458_vm2, %v4981_v37, %v9509_v18  ;;  %vm9933_vm2 = vmmov %vm9930_vm0 }
 0xf45   : > { %v9622_v9 = vpop.permute.xlu1 %5130  ;;  %v5047_v30 = vpop.permute.xlu0 %5046 }
 0xf46   : > { %5144 = vrot.lane.b32.xlu1 %v4944_v4, %s6332_s27  ;;  %v5266_v36 = vsel %vm637_vm7, %v5129_v53, %v9622_v9  ;;  %5146 = vrot.lane.b32.xlu0 %v4945_v45, %s6332_s27  ;;  %v5056_v57 = vsel %vm495_vm5, %v5047_v30, %v9511_v3  ;;  %v5264_v45 = vsel %vm637_vm7, %v9574_v59, %v9530_v42 }
 0xf47   : > { %5375 = vmatprep.subr.bf16.mxu0 %v5266_v36 }
 0xf48   : > { %5376 = vmatpush1.bf16.msra.mxu0 %v5265_v26 }
 0xf49   : > { %v5069_v27 = vpop.permute.xlu0 %5068 }
 0xf4a   : > { %5156 = vrot.lane.b32.xlu1 %v9522_v33, %s6332_s27  ;;  %5222 = vrot.lane.b32.xlu0 %v9587_v11, %s6332_s27  ;;  %v5074_v33 = vsel %vm9931_vm8, %v9538_v46, %v9565_v48  ;;  %v5005_v48 = vsel %vm468_vm3, %v4999_v38, %v9499_v24  ;;  %v5034_v24 = vsel %vm483_vm4, %v5025_v56, %v9505_v55  ;;  %vm9934_vm3 = vmmov %vm9930_vm0 }
 0xf4b   : > { %v5055_v55 = vsel %vm495_vm5, %v9587_v11, %v5047_v30  ;;  %v5077_v3 = vsel %vm9934_vm3, %v9593_v14, %v5069_v27  ;;  %vm9936_vm5 = vcmask 736256  }
 0xf4c   : > { %vm9937_vm10 = vmmov %vm9936_vm5 }
 0xf4d   : > { %vm9938_vm11 = vmmov %vm9936_vm5 }
 0xf4e   : > { %5160 = vrot.lane.b32.xlu1 %v4966_v58, %s6332_s27  ;;  %5162 = vrot.lane.b32.xlu0 %v4967_v28, %s6332_s27  ;;  %v5098_v7 = vsel %vm9938_vm11, %v9536_v43, %v9493_v5  ;;  %vm9939_vm12 = vmmov %vm9936_vm5 }
 0xf4f   : > { %vm9940_vm6 = vmmov %vm9936_vm5 }
 0xf50   : > { %vm9941_vm9 = vmmov %vm9936_vm5 }
 0xf52   : > { %5234 = vrot.lane.b32.xlu1 %v5075_v39, %s6332_s27  ;;  %5232 = vrot.lane.b32.xlu0 %v5074_v33, %s6332_s27 }
 0xf56   : > { %5176 = vrot.lane.b32.xlu1 %v4988_v31, %s6332_s27  ;;  %5178 = vrot.lane.b32.xlu0 %v4989_v60, %s6332_s27 }
 0xf5a   : > { %5230 = vrot.lane.b32.xlu1 %v9538_v46, %s6332_s27  ;;  %5228 = vrot.lane.b32.xlu0 %v5057_v54, %s6332_s27  ;;  %v5033_v46 = vsel %vm483_vm4, %v9576_v8, %v5025_v56  ;;  %v5091_v8 = vpop.permute.xlu0 %5090  ;;  %vm9935_vm4 = vmmov %vm9930_vm0 }
 0xf5b   : > { %v5078_v63 = vsel %vm9935_vm4, %v5069_v27, %v9518_v1  ;;  %v5099_v10 = vsel %vm9940_vm6, %v9599_v32, %v5091_v8 }
 0xf5e   : > { %5192 = vrot.lane.b32.xlu1 %v5004_v23, %s6332_s27  ;;  %5194 = vrot.lane.b32.xlu0 %v5005_v48, %s6332_s27  ;;  %v9707_v47 = vpop.permute.xlu0 %5196 }
 0xf62   : > { %5236 = vrot.lane.b32.xlu1 %v5076_v21, %s6332_s27  ;;  %5164 = vrot.lane.b32.xlu0 %v9503_v51, %s6332_s27  ;;  %v5785_v51 = vcombine.high %v9685_v20, %v9685_v20  ;;  %v9722_v11 = vpop.permute.xlu0 %5148 }
 0xf64   : > { %5487 = vmatprep.mubr.bf16.mxu1 %v5785_v51  ;;  %5405 = vmatprep.mubr.bf16.mxu0 %v5785_v51 }
 0xf66   : > { %5208 = vrot.lane.b32.xlu1 %v5033_v46, %s6332_s27  ;;  %5210 = vrot.lane.b32.xlu0 %v5034_v24, %s6332_s27  ;;  %v9735_v5 = vpop.permute.xlu0 %5212 }
 0xf6a   : > { %5172 = vrot.lane.b32.xlu1 %v9526_v40, %s6332_s27  ;;  %5238 = vrot.lane.b32.xlu0 %v9593_v14, %s6332_s27  ;;  %v5079_v40 = vsel %vm9933_vm2, %v9518_v1, %v9487_v12  ;;  %v5097_v12 = vsel %vm9936_vm5, %v9557_v19, %v9536_v43  ;;  %v5101_v43 = vsel %vm9941_vm9, %v9520_v29, %v9495_v52 }
 0xf6e   : > { %5224 = vrot.lane.b32.xlu1 %v5055_v55, %s6332_s27  ;;  %5226 = vrot.lane.b32.xlu0 %v5056_v57, %s6332_s27 }
 0xf70   : > { %v5189_v0 = vpop.permute.xlu1 %5188 }
 0xf72   : > { %5180 = vrot.lane.b32.xlu1 %v9509_v18, %s6332_s27  ;;  %5244 = vrot.lane.b32.xlu0 %v5079_v40, %s6332_s27  ;;  %v5096_v18 = vsel %vm9937_vm10, %v9552_v41, %v9557_v19  ;;  %v5100_v19 = vsel %vm9939_vm12, %v5091_v8, %v9520_v29 }
 0xf74   : > { %v9717_v1 = vpop.permute.xlu1 %5140 }
 0xf76   : > { %5240 = vrot.lane.b32.xlu1 %v5077_v3, %s6332_s27  ;;  %5242 = vrot.lane.b32.xlu0 %v5078_v63, %s6332_s27 }
 0xf78   : > { %v9731_v13 = vpop.permute.xlu1 %5204 }
 0xf7a   : > { %5250 = vrot.lane.b32.xlu1 %v5097_v12, %s6332_s27  ;;  %5248 = vrot.lane.b32.xlu0 %v5096_v18, %s6332_s27 }
 0xf7e   : > { %5252 = vrot.lane.b32.xlu1 %v5098_v7, %s6332_s27  ;;  %5246 = vrot.lane.b32.xlu0 %v9552_v41, %s6332_s27  ;;  %v9743_v41 = vpop.permute.xlu1 %5220 }
 0xf82   : > { %5258 = vrot.lane.b32.xlu1 %v5100_v19, %s6332_s27  ;;  %5256 = vrot.lane.b32.xlu0 %v5099_v10, %s6332_s27 }
 0xf86   : > { %5260 = vrot.lane.b32.xlu1 %v5101_v43, %s6332_s27  ;;  %5254 = vrot.lane.b32.xlu0 %v9599_v32, %s6332_s27 }
 0xf88   : > { %v9745_v14 = vpop.permute.xlu0 %5182 }
 0xf8a   : > { %5105 = vperm.xlu0 %6102, %v5102_v62  }
 0xf8c   : > { %v5151_v6 = vpop.permute.xlu0 %5150  ;;  %v9750_v16 = vpop.permute.xlu1 %5198 }
 0xf90   : > { %v5167_v34 = vpop.permute.xlu0 %5166  ;;  %v9752_v44 = vpop.permute.xlu1 %5214 }
 0xf94   : > { %v5135_v52 = vpop.permute.xlu1 %5134  ;;  %v5137_v29 = vpop.permute.xlu0 %5136 }
 0xf95   : > { %v5268_v17 = vsel %vm637_vm7, %v5135_v52, %v5137_v29  ;;  %v5267_v52 = vsel %vm637_vm7, %v9622_v9, %v9516_v50 }
 0xf98   : > { %v9754_v61 = vpop.permute.xlu1 %5138  ;;  %v5153_v32 = vpop.permute.xlu0 %5152 }
 0xf99   : > { %v5269_v35 = vsel %vm637_vm7, %v5137_v29, %v9754_v61  ;;  %v5274_v56 = vsel %vm637_vm7, %v5151_v6, %v5153_v32 }
 0xf9a   : > { %5377 = vmatprep.subr.bf16.mxu0 %v5269_v35 }
 0xf9b   : > { %5378 = vmatpush1.bf16.msra.mxu0 %v5268_v17 }
 0xf9c   : > { %v9759_v25 = vpop.permute.xlu1 %5154  ;;  %v5169_v2 = vpop.permute.xlu0 %5168 }
 0xf9d   : > { %v5275_v42 = vsel %vm637_vm7, %v5153_v32, %v9759_v25  ;;  %v5280_v40 = vsel %vm637_vm7, %v5167_v34, %v5169_v2 }
 0xfa0   : > { %v9761_v49 = vpop.permute.xlu1 %5170  ;;  %v5185_v37 = vpop.permute.xlu0 %5184 }
 0xfa1   : > { %v5281_v55 = vsel %vm637_vm7, %v5169_v2, %v9761_v49  ;;  %v5286_v19 = vsel %vm637_vm7, %v9745_v14, %v5185_v37 }
 0xfa4   : > { %v5187_v22 = vpop.permute.xlu1 %5186  ;;  %v9763_v53 = vpop.permute.xlu0 %5200 }
 0xfa5   : > { %v5288_v4 = vsel %vm637_vm7, %v5187_v22, %v5189_v0  ;;  %v5287_v12 = vsel %vm637_vm7, %v5185_v37, %v5187_v22  ;;  %v5292_v50 = vsel %vm637_vm7, %v9750_v16, %v9763_v53 }
 0xfa6   : > { %5927 = vmatprep.subr.bf16.mxu1 %v5288_v4 }
 0xfa7   : > { %5928 = vmatpush3.bf16.msra.mxu1 %v5264_v45 }
 0xfa8   : > { %v5203_v36 = vpop.permute.xlu1 %5202  ;;  %v9769_v26 = vpop.permute.xlu0 %5216 }
 0xfa9   : > { %v5293_v14 = vsel %vm637_vm7, %v9763_v53, %v5203_v36  ;;  %v5294_v29 = vsel %vm637_vm7, %v5203_v36, %v9731_v13 }
 0xfac   : > { %v9771_v58 = vpop.permute.xlu1 %5218  ;;  %v5191_v28 = vpop.permute.xlu0 %5190 }
 0xfad   : > { %v5300_v16 = vsel %vm637_vm7, %v9771_v58, %v9743_v41 }
 0xfb0   : > { %v5159_v39 = vpop.permute.xlu1 %5158  ;;  %v5207_v33 = vpop.permute.xlu0 %5206 }
 0xfb4   : > { %v5175_v31 = vpop.permute.xlu1 %5174  ;;  %v5143_v60 = vpop.permute.xlu0 %5142 }
 0xfb8   : > { %v5145_v38 = vpop.permute.xlu1 %5144  ;;  %v5147_v54 = vpop.permute.xlu0 %5146 }
 0xfb9   : > { %v5271_v23 = vsel %vm637_vm7, %v5143_v60, %v5145_v38  ;;  %v5272_v48 = vsel %vm637_vm7, %v5145_v38, %v5147_v54  ;;  %v5273_v22 = vsel %vm637_vm7, %v5147_v54, %v9722_v11  ;;  %v5298_v11 = vsel %vm637_vm7, %v9752_v44, %v9769_v26 }
 0xfba   : > { %5379 = vmatprep.subr.bf16.mxu0 %v5272_v48 }
 0xfbb   : > { %5380 = vmatpush1.bf16.msra.mxu0 %v5271_v23 }
 0xfbc   : > { %v9777_v59 = vpop.permute.xlu1 %5156  ;;  %v9779_v21 = vpop.permute.xlu0 %5222  ;;  %5381 = vmatprep.subr.bf16.mxu0 %v5275_v42 }
 0xfbf   : > { %5382 = vmatpush1.bf16.msra.mxu0 %v5274_v56  ;;  %v6335_v56 = vmov 0.0  }
 0xfc0   : > { %v5161_v46 = vpop.permute.xlu1 %5160  ;;  %v9782_v24 = vpop.permute.xlu0 %5162 }
 0xfc1   : > { %v5277_v30 = vsel %vm637_vm7, %v5159_v39, %v5161_v46  ;;  %v5278_v51 = vsel %vm637_vm7, %v5161_v46, %v9782_v24 }
 0xfc2   : > { %5383 = vmatprep.subr.bf16.mxu0 %v5278_v51 }
 0xfc3   : > { %5384 = vmatpush1.bf16.msra.mxu0 %v5277_v30 }
 0xfc4   : > { %v9789_v57 = vpop.permute.xlu1 %5234  ;;  %v9791_v27 = vpop.permute.xlu0 %5232  ;;  %5385 = vmatprep.subr.bf16.mxu0 %v5281_v55 }
 0xfc5   : > { %v5305_v44 = vsel %vm637_vm7, %v9791_v27, %v9789_v57 }
 0xfc7   : > { %5386 = vmatpush1.bf16.msra.mxu0 %v5280_v40 }
 0xfc8   : > { %v5177_v8 = vpop.permute.xlu1 %5176  ;;  %v9794_v3 = vpop.permute.xlu0 %5178 }
 0xfc9   : > { %v5283_v63 = vsel %vm637_vm7, %v5175_v31, %v5177_v8  ;;  %v5284_v0 = vsel %vm637_vm7, %v5177_v8, %v9794_v3 }
 0xfca   : > { %5387 = vmatprep.subr.bf16.mxu0 %v5284_v0 }
 0xfcb   : > { %5388 = vmatpush1.bf16.msra.mxu0 %v5283_v63  ;;  %v6147_v63 = vld [vmem:[%s9886_s8 + $0x8] ss:$0 sps:$4 sm:$0xff]  }
 0xfcc   : > { %v5231_v18 = vpop.permute.xlu1 %5230  ;;  %v5229_v7 = vpop.permute.xlu0 %5228  ;;  %5389 = vmatprep.subr.bf16.mxu0 %v5287_v12 }
 0xfcf   : > { %5390 = vmatpush1.bf16.msra.mxu0 %v5286_v19 }
 0xfd0   : > { %v5193_v10 = vpop.permute.xlu1 %5192  ;;  %v5195_v43 = vpop.permute.xlu0 %5194 }
 0xfd1   : > { %v5289_v62 = vsel %vm637_vm7, %v5191_v28, %v5193_v10  ;;  %v5290_v6 = vsel %vm637_vm7, %v5193_v10, %v5195_v43  ;;  %v5291_v34 = vsel %vm637_vm7, %v5195_v43, %v9707_v47  ;;  %v5270_v47 = vsel %vm637_vm7, %v9754_v61, %v9717_v1 }
 0xfd2   : > { %5391 = vmatprep.subr.bf16.mxu0 %v5290_v6  ;;  %5929 = vmatprep.subr.bf16.mxu1 %v5291_v34  ;;  %v5299_v1 = vsel %vm637_vm7, %v9769_v26, %v9771_v58 }
 0xfd3   : > { %5392 = vmatpush1.bf16.msra.mxu0 %v5289_v62  ;;  %5930 = vmatpush3.bf16.msra.mxu1 %v5267_v52 }
 0xfd4   : > { %v5237_v32 = vpop.permute.xlu1 %5236  ;;  %v5165_v35 = vpop.permute.xlu0 %5164  ;;  %5393 = vmatprep.subr.bf16.mxu0 %v5293_v14  ;;  %5931 = vmatprep.subr.bf16.mxu1 %v5294_v29 }
 0xfd5   : > { %v5279_v28 = vsel %vm637_vm7, %v9782_v24, %v5165_v35 }
 0xfd7   : > { %5394 = vmatpush1.bf16.msra.mxu0 %v5292_v50  ;;  %5932 = vmatpush3.bf16.msra.mxu1 %v5270_v47 }
 0xfd8   : > { %v5209_v9 = vpop.permute.xlu1 %5208  ;;  %v5211_v17 = vpop.permute.xlu0 %5210 }
 0xfd9   : > { %v5295_v2 = vsel %vm637_vm7, %v5207_v33, %v5209_v9  ;;  %v5296_v13 = vsel %vm637_vm7, %v5209_v9, %v5211_v17  ;;  %v5297_v37 = vsel %vm637_vm7, %v5211_v17, %v9735_v5  ;;  %v5276_v5 = vsel %vm637_vm7, %v9759_v25, %v9777_v59 }
 0xfda   : > { %5395 = vmatprep.subr.bf16.mxu0 %v5296_v13  ;;  %5933 = vmatprep.subr.bf16.mxu1 %v5297_v37  ;;  %v5306_v25 = vsel %vm637_vm7, %v9789_v57, %v5237_v32  ;;  %v5304_v33 = vsel %vm637_vm7, %v5231_v18, %v9791_v27  ;;  %v5784_v59 = vcombine.low %v9685_v20, %v9685_v20 }
 0xfdb   : > { %5396 = vmatpush1.bf16.msra.mxu0 %v5295_v2  ;;  %5934 = vmatpush3.bf16.msra.mxu1 %v5273_v22 }
 0xfdc   : > { %v5173_v61 = vpop.permute.xlu1 %5172  ;;  %v5239_v53 = vpop.permute.xlu0 %5238  ;;  %5397 = vmatprep.subr.bf16.mxu0 %v5299_v1  ;;  %5935 = vmatprep.subr.bf16.mxu1 %v5300_v16 }
 0xfdd   : > { %v5282_v31 = vsel %vm637_vm7, %v9761_v49, %v5173_v61 }
 0xfdf   : > { %5398 = vmatpush1.bf16.msra.mxu0 %v5298_v11  ;;  %5936 = vmatpush3.bf16.msra.mxu1 %v5276_v5 }
 0xfe0   : > { %v5225_v4 = vpop.permute.xlu1 %5224  ;;  %v5227_v45 = vpop.permute.xlu0 %5226 }
 0xfe1   : > { %v5301_v36 = vsel %vm637_vm7, %v9779_v21, %v5225_v4  ;;  %v5302_v41 = vsel %vm637_vm7, %v5225_v4, %v5227_v45  ;;  %v5303_v58 = vsel %vm637_vm7, %v5227_v45, %v5229_v7 }
 0xfe2   : > { %5399 = vmatprep.subr.bf16.mxu0 %v5302_v41  ;;  %5937 = vmatprep.subr.bf16.mxu1 %v5303_v58 }
 0xfe3   : > { %5400 = vmatpush1.bf16.msra.mxu0 %v5301_v36  ;;  %5938 = vmatpush3.bf16.msra.mxu1 %v5279_v28 }
 0xfe4   : > { %v5181_v26 = vpop.permute.xlu1 %5180  ;;  %v5245_v39 = vpop.permute.xlu0 %5244  ;;  %5401 = vmatprep.subr.bf16.mxu0 %v5305_v44  ;;  %5939 = vmatprep.subr.bf16.mxu1 %v5306_v25 }
 0xfe5   : > { %v5285_v42 = vsel %vm637_vm7, %v9794_v3, %v5181_v26 }
 0xfe7   : > { %5402 = vmatpush1.bf16.msra.mxu0 %v5304_v33  ;;  %5940 = vmatpush3.bf16.msra.mxu1 %v5282_v31 }
 0xfe8   : > { %v5241_v60 = vpop.permute.xlu1 %5240  ;;  %v5243_v38 = vpop.permute.xlu0 %5242 }
 0xfe9   : > { %v5307_v54 = vsel %vm637_vm7, %v5239_v53, %v5241_v60  ;;  %v5308_v23 = vsel %vm637_vm7, %v5241_v60, %v5243_v38  ;;  %v5309_v48 = vsel %vm637_vm7, %v5243_v38, %v5245_v39 }
 0xfea   : > { %5403 = vmatprep.subr.bf16.mxu0 %v5308_v23  ;;  %5941 = vmatprep.subr.bf16.mxu1 %v5309_v48 }
 0xfeb   : > { %5404 = vmatpush1.bf16.msra.mxu0 %v5307_v54  ;;  %5942 = vmatpush3.bf16.msra.mxu1 %v5285_v42 }
 0xfec   : > { %v5251_v49 = vpop.permute.xlu1 %5250  ;;  %v5249_v21 = vpop.permute.xlu0 %5248  ;;  %6000 = vmatprep.subr.bf16.mxu1 %v6335_v56 }
 0xfed   : > { %v5311_v46 = vsel %vm637_vm7, %v5249_v21, %v5251_v49 }
 0xfee   : > { %5414 = vmatprep.subr.bf16.mxu0 %v5311_v46  ;;  %5488 = vmatmul.mubr.bf16.vlgmr.msra.gmra.mrb[68].mxu1 %v5784_v59 }
 0xfef   : > { %5406 = vmatmul.mubr.bf16.vlgmr.msra.gmra.mrb[52].mxu0 %v5784_v59  ;;  %6004 = vmatprep.mubr.msk.bf16.mxu1 %vm6336_vm13, %v6335_v56 }
 0xff0   : > { %v5253_v24 = vpop.permute.xlu1 %5252  ;;  %v5247_v30 = vpop.permute.xlu0 %5246  ;;  %5446 = vmatprep.mubr.bf16.mxu0 %v9903_v15 }
 0xff1   : > { %v5312_v51 = vsel %vm637_vm7, %v5251_v49, %v5253_v24  ;;  %v5310_v20 = vsel %vm637_vm7, %v5247_v30, %v5249_v21 }
 0xff2   : > { %6001 = vmatpush3.bf16.msra.mxu1 %v5312_v51  ;;  %5415 = vmatpush1.bf16.msra.mxu0 %v5310_v20 }
 0xff3   : > { %6002 = vmatprep.subr.bf16.mxu1 %v6335_v56 }
 0xff4   : > { %v5259_v55 = vpop.permute.xlu1 %5258  ;;  %v5257_v57 = vpop.permute.xlu0 %5256 }
 0xff5   : > { %v5314_v27 = vsel %vm637_vm7, %v5257_v57, %v5259_v55 }
 0xff6   : > { %5416 = vmatprep.subr.bf16.mxu0 %v5314_v27 }
 0xff8   : > { %v5261_v40 = vpop.permute.xlu1 %5260  ;;  %v5255_v8 = vpop.permute.xlu0 %5254 }
 0xff9   : > { %v5315_v3 = vsel %vm637_vm7, %v5259_v55, %v5261_v40  ;;  %v5313_v15 = vsel %vm637_vm7, %v5255_v8, %v5257_v57 }
 0xffa   : > { %6003 = vmatpush3.bf16.msra.mxu1 %v5315_v3  ;;  %5417 = vmatpush1.bf16.msra.mxu0 %v5313_v15 }
 0xffd   : > { %6005 = vmatmul.mubr.msk.bf16.vlgmr.msra.gmra.mrb[72].mxu1 %vm1445_vm15, %v6147_v63  ;;  %5787 = vmatmul.mubr.msk.bf16.vlgmr.msra.gmra.mrb[52].mxu0 %vm1445_vm15, %v6147_v63 }
0x1009   : > { %v5106_v10 = vpop.permute.xlu0 %5105 }
0x10c1   : > { %v5943_v0 = vpop.f32.mrb[68].mxu1 }
0x10c2   : > { %v5944_v12 = vpop.f32.mrb[69].mxu1 }
0x10c3   : > { %v5945_v18 = vadd.f32 %v5944_v12, %v5943_v0  ;;  %v5946_v7 = vpop.f32.mrb[70].mxu1 }
0x10c4   : > { %v5947_v19 = vpop.f32.mrb[71].mxu1 }
0x10c5   : > { %v5490_v43 = vadd.f32 %v5945_v18, %v5106_v10 }
0x10d0   : > { %v5529_v62 = vpop.f32.mrb[72].mxu1  ;;  %v5448_v6 = vpop.f32.mrb[52].mxu0 }
0x10d1   : > { %v5530_v34 = vadd.f32 %v5529_v62, %v5490_v43  ;;  %v6006_v52 = vpop.f32.mrb[73].mxu1  ;;  %v6040_v14 = vadd.f32 %v5448_v6, %v5106_v10  ;;  %v5450_v29 = vpop.f32.mrb[53].mxu0 }
0x10d2   : > { %v5532_v32 = vpop.f32.mrb[74].mxu1  ;;  %v6041_v35 = vadd.f32 %v5450_v29, %v5106_v10  ;;  %v5452_v47 = vpop.f32.mrb[54].mxu0 }
0x10d3   : > { %5537 = vst [vmem:[%s359_s15 + $0x10] sm:$0xff] %v5530_v34  ;;  %v6007_v50 = vpop.f32.mrb[75].mxu1  ;;  %5535 = vst [vmem:[%s359_s15] sm:$0xff] %v6040_v14  ;;  %v5453_v9 = vpop.f32.mrb[55].mxu0 }
0x10d4   : > { %5536 = vst [vmem:[%s359_s15 + $0x8] sm:$0xff] %v6041_v35 }
0x10d5 PF: > { %s20_s13 = sadd.s32 1, %s6322_s13  }
0x10d6   : > { %p17_p4 = scmp.ge.s32.totalorder %s20_s13, 4  }
0x10d8   :  { %19 = sbr.rel (!%p17_p4) target bundleno = 1 (0x1), region = 98 }

</bundles_post_ra>
